<compile_context>
chip_gen: v6e
topology: v6e:2x2x1
jax: 0.10.0
libtpu: 0.0.40
codegen_flags: <defaults>
</compile_context>

<pallas_src>
import numpy as np
import jax
import jax.numpy as jnp
from jax.experimental import pallas as pl
from jax.experimental.pallas import tpu as pltpu

FEAT_DIM = 128            # synthetic ArcFace embedding width per level
NUM_LEVELS = 5            # forward() indexes 5 feature levels
D_TOTAL = NUM_LEVELS * FEAT_DIM
EPS = 1e-8                # torch cosine-similarity eps
POOL_OUT = 7              # synthetic backbone spatial output
CROP_H = (35, 223)        # same crop as the torch module
CROP_W = (32, 220)
ROWS_READ = 224           # rows 0:224 cover the H-crop; last 32 rows never leave HBM


# ------------------------------------------------------------------ pool matrices
def _adaptive_pool_matrix(in_size, out_size):
    """Row-stochastic matrix reproducing torch.nn.AdaptiveAvgPool2d along one axis."""
    P = np.zeros((out_size, in_size), dtype=np.float64)
    for i in range(out_size):
        s = (i * in_size) // out_size
        e = -((-(i + 1) * in_size) // out_size)        # ceil((i+1)*in/out)
        P[i, s:e] = 1.0 / (e - s)
    return P


def _composed_crop_pool_matrix(full_size, crop):
    """Crop + AdaptiveAvgPool(crop->112) + AdaptiveAvgPool(112->7), composed in f64."""
    start, stop = crop
    p1 = _adaptive_pool_matrix(stop - start, 112)       # (112, crop)
    p2 = _adaptive_pool_matrix(112, POOL_OUT)           # (7, 112)
    comp = p2 @ p1                                      # exact 2-stage product (f64)
    full = np.zeros((POOL_OUT, full_size), dtype=np.float64)
    full[:, start:stop] = comp                          # crop folded in as zero columns
    return full.astype(np.float32)


# ------------------------------------------------------------------ fused kernel
def _id_loss_kernel(ph_ref, pwt_ref, wp_ref, seg_ref, y_ref, yh_ref, x_ref, out_ref):
    # ph : (R_pad, C*224)  block-diagonal crop+pool (H side), one 7x224 block per channel
    # pwt: (W, 7)          crop+pool (W side), transposed
    # wp : (R_pad, 7, 640) synthetic 5 linear heads, row = (c*7+p), middle dim = q
    # seg: (640, 5)        level-segment summing matrix (lane k belongs to level k//128)
    ph = ph_ref[...]
    pwt = pwt_ref[...]
    wp = wp_ref[...]
    seg = seg_ref[...]

    def extract(img_ref):
        c, rows, w = img_ref.shape[1], img_ref.shape[2], img_ref.shape[3]
        img = img_ref[0].reshape(c * rows, w)                              # (672, 256)
        u = jnp.dot(img, pwt, preferred_element_type=jnp.float32)          # (672, 7)
        t = jnp.dot(ph, u, preferred_element_type=jnp.float32)             # (R_pad, 7) pooled
        # project through the 5 heads without flattening (c,p,q) into lanes:
        # feat[d] = sum_{r,q} t[r,q] * wp[r,q,d]  (lane-broadcast multiplies on the VPU)
        part = t[:, 0:1] * wp[:, 0, :]                                     # (R_pad, 640)
        for q in range(1, POOL_OUT):
            part = part + t[:, q:q + 1] * wp[:, q, :]
        return jnp.sum(part, axis=0, keepdims=True)                        # (1, 640)

    yf = extract(y_ref)
    yhf = extract(yh_ref)
    xf = extract(x_ref)

    # all 6 pairwise per-level dot products in one MXU op: (6,640) @ (640,5)
    prods = jnp.concatenate(
        [yf * yhf, yhf * xf, yf * xf, yf * yf, yhf * yhf, xf * xf], axis=0)
    d = jnp.dot(prods, seg, preferred_element_type=jnp.float32)            # (6, 5)

    e2 = EPS * EPS                                  # torch: max(||a||,eps)*max(||b||,eps)
    nyy = jnp.maximum(d[3:4], e2)
    nhh = jnp.maximum(d[4:5], e2)
    nxx = jnp.maximum(d[5:6], e2)
    out_ref[0, 0:1, :] = d[0:1] * jax.lax.rsqrt(nyy * nhh)   # cos(y_l,    y_hat_l)
    out_ref[0, 1:2, :] = d[1:2] * jax.lax.rsqrt(nhh * nxx)   # cos(y_hat_l, x_l)
    out_ref[0, 2:3, :] = d[2:3] * jax.lax.rsqrt(nyy * nxx)   # cos(y_l,     x_l)


# ------------------------------------------------------------------ IDLoss factory
def make_id_loss(head_w, image_hw):
    """Precompute pool matrices / head weights once; return a forward() callable."""
    img_h, img_w = image_hw
    assert img_h >= CROP_H[1] and img_w >= CROP_W[1], "images must be at least 223x220"

    # TODO(synk): the pretrained IR-SE-50 ArcFace backbone (ir_se50 checkpoint) has no
    # clean in-script equivalent; it is replaced by a synthetic crop + pool + 5
    # linear-head feature extractor with deterministically initialized weights.
    hw = np.asarray(head_w)                                  # (5, C*7*7, 128)
    l, f, dfeat = hw.shape
    assert l == NUM_LEVELS and dfeat == FEAT_DIM
    c = f // (POOL_OUT * POOL_OUT)
    assert c * POOL_OUT * POOL_OUT == f

    ph_full = _composed_crop_pool_matrix(img_h, CROP_H)      # (7, H), zeros outside 35:223
    assert np.all(ph_full[:, ROWS_READ:] == 0.0)
    ph224 = ph_full[:, :ROWS_READ]                           # (7, 224)
    pwt = _composed_crop_pool_matrix(img_w, CROP_W).T        # (W, 7)

    r = c * POOL_OUT                                         # 21 pooled (c,p) rows
    r_pad = ((r + 7) // 8) * 8                               # sublane-friendly 24
    ph_blk = np.zeros((r_pad, c * ROWS_READ), np.float32)
    for ci in range(c):
        ph_blk[ci * POOL_OUT:(ci + 1) * POOL_OUT,
               ci * ROWS_READ:(ci + 1) * ROWS_READ] = ph224

    # heads: (5, C*7*7, 128) -> (C*7*7, 640) level-major cols -> (21, 7, 640) -> pad rows
    wp_full = np.transpose(hw, (1, 0, 2)).reshape(f, D_TOTAL)
    wp3 = np.zeros((r_pad, POOL_OUT, D_TOTAL), np.float32)
    wp3[:r] = wp_full.reshape(r, POOL_OUT, D_TOTAL)

    seg = np.zeros((D_TOTAL, NUM_LEVELS), np.float32)
    for li in range(NUM_LEVELS):
        seg[li * FEAT_DIM:(li + 1) * FEAT_DIM, li] = 1.0

    ph_blk_d = jnp.asarray(ph_blk)
    pwt_d = jnp.asarray(pwt)
    wp_d = jnp.asarray(wp3)
    seg_d = jnp.asarray(seg)

    @jax.jit
    def forward_device(y_hat, y, x):
        n = y.shape[0]
        cosm = pl.pallas_call(
            _id_loss_kernel,
            out_shape=jax.ShapeDtypeStruct((n, 3, NUM_LEVELS), jnp.float32),
            grid=(n,),
            in_specs=[
                pl.BlockSpec((r_pad, c * ROWS_READ), lambda i: (0, 0)),
                pl.BlockSpec((img_w, POOL_OUT), lambda i: (0, 0)),
                pl.BlockSpec((r_pad, POOL_OUT, D_TOTAL), lambda i: (0, 0, 0)),
                pl.BlockSpec((D_TOTAL, NUM_LEVELS), lambda i: (0, 0)),
                pl.BlockSpec((1, c, ROWS_READ, img_w), lambda i: (i, 0, 0, 0)),
                pl.BlockSpec((1, c, ROWS_READ, img_w), lambda i: (i, 0, 0, 0)),
                pl.BlockSpec((1, c, ROWS_READ, img_w), lambda i: (i, 0, 0, 0)),
            ],
            out_specs=pl.BlockSpec((1, 3, NUM_LEVELS), lambda i: (i, 0, 0)),
            compiler_params=pltpu.CompilerParams(dimension_semantics=("parallel",)),
        )(ph_blk_d, pwt_d, wp_d, seg_d, y, y_hat, x)

        # tiny fused epilogue on a (N,3,5) array (negligible vs a second kernel launch)
        lvl = cosm[:, 0, :]                                    # cos(y_l, y_hat_l)
        loss = jnp.sum(jnp.mean(1.0 - lvl, axis=0))            # CosineEmbeddingLoss over 5 levels
        diff_target = cosm[:, 0, NUM_LEVELS - 1]
        diff_input = cosm[:, 1, NUM_LEVELS - 1]
        diff_views = cosm[:, 2, NUM_LEVELS - 1]
        sim = jnp.mean(diff_target - diff_views)
        diffs = jnp.stack([diff_target, diff_input, diff_views], axis=1)
        return loss, sim, diffs

    def forward(y_hat, y, x):
        loss, sim, diffs = forward_device(y_hat, y, x)
        sim_np, diffs_np = jax.device_get((sim, diffs))        # single host transfer
        id_logs = []
        for j in range(diffs_np.shape[0]):
            id_logs.append({'diff_target': float(diffs_np[j, 0]),
                            'diff_input': float(diffs_np[j, 1]),
                            'diff_views': float(diffs_np[j, 2])})
        return loss, float(sim_np), id_logs

    return forward


# --------------------------------------------------------------------- main
if __name__ == "__main__":
    key = jax.random.PRNGKey(0)
    k1, k2, k3, kw = jax.random.split(key, 4)

    # crop indices 35:223 / 32:220 require spatial >= 223 -> use 256x256 RGB, batch 2
    N, C, H, W = 2, 3, 256, 256
    y_hat = jax.random.normal(k1, (N, C, H, W), jnp.float32)
    y = jax.random.normal(k2, (N, C, H, W), jnp.float32)
    x = jax.random.normal(k3, (N, C, H, W), jnp.float32)

    # deterministic synthetic backbone weights: 5 heads, (C*7*7) -> FEAT_DIM
    head_w = 0.02 * jax.random.normal(
        kw, (NUM_LEVELS, C * POOL_OUT * POOL_OUT, FEAT_DIM), jnp.float32)

    id_loss = make_id_loss(head_w, (H, W))
    loss, sim_imp, id_logs = id_loss(y_hat, y, x)
    jax.block_until_ready(loss)
    print("KERNEL_OK")
</pallas_src>

<mosaic_0001>
module attributes {stable_mosaic.version = 11 : i64} {
  func.func @_id_loss_kernel(%arg0: i32, %arg1: memref<24x672xf32, #tpu.memory_space<vmem>>, %arg2: memref<256x7xf32, #tpu.memory_space<vmem>>, %arg3: memref<24x7x640xf32, #tpu.memory_space<vmem>>, %arg4: memref<640x5xf32, #tpu.memory_space<vmem>>, %arg5: memref<1x3x224x256xf32, #tpu.memory_space<vmem>>, %arg6: memref<1x3x224x256xf32, #tpu.memory_space<vmem>>, %arg7: memref<1x3x224x256xf32, #tpu.memory_space<vmem>>, %arg8: memref<1x3x5xf32, #tpu.memory_space<vmem>>) attributes {dimension_semantics = [#tpu.dimension_semantics<parallel>], iteration_bounds = array<i64: 2>, scalar_prefetch = 0 : i64, scratch_operands = 0 : i64, tpu.core_type = #tpu.core_type<tc>, window_params = [{pipeline_mode = #tpu.pipeline_mode<synchronous>, transform_indices = @transform_0, window_bounds = array<i64: 24, 672>}, {pipeline_mode = #tpu.pipeline_mode<synchronous>, transform_indices = @transform_1, window_bounds = array<i64: 256, 7>}, {pipeline_mode = #tpu.pipeline_mode<synchronous>, transform_indices = @transform_2, window_bounds = array<i64: 24, 7, 640>}, {pipeline_mode = #tpu.pipeline_mode<synchronous>, transform_indices = @transform_3, window_bounds = array<i64: 640, 5>}, {transform_indices = @transform_4, window_bounds = array<i64: 1, 3, 224, 256>}, {transform_indices = @transform_5, window_bounds = array<i64: 1, 3, 224, 256>}, {transform_indices = @transform_6, window_bounds = array<i64: 1, 3, 224, 256>}, {transform_indices = @transform_7, window_bounds = array<i64: 1, 3, 5>}]} {
    %c0 = arith.constant 0 : index
    %c0_0 = arith.constant 0 : index
    %0 = vector.load %arg1[%c0, %c0_0] : memref<24x672xf32, #tpu.memory_space<vmem>>, vector<24x672xf32>
    %c0_1 = arith.constant 0 : index
    %c0_2 = arith.constant 0 : index
    %1 = vector.load %arg2[%c0_1, %c0_2] : memref<256x7xf32, #tpu.memory_space<vmem>>, vector<256x7xf32>
    %c0_3 = arith.constant 0 : index
    %c0_4 = arith.constant 0 : index
    %c0_5 = arith.constant 0 : index
    %2 = vector.load %arg3[%c0_3, %c0_4, %c0_5] : memref<24x7x640xf32, #tpu.memory_space<vmem>>, vector<24x7x640xf32>
    %c0_6 = arith.constant 0 : index
    %c0_7 = arith.constant 0 : index
    %3 = vector.load %arg4[%c0_6, %c0_7] : memref<640x5xf32, #tpu.memory_space<vmem>>, vector<640x5xf32>
    %c0_8 = arith.constant 0 : index
    %c0_9 = arith.constant 0 : index
    %c0_10 = arith.constant 0 : index
    %c0_11 = arith.constant 0 : index
    %4 = vector.load %arg5[%c0_8, %c0_9, %c0_10, %c0_11] : memref<1x3x224x256xf32, #tpu.memory_space<vmem>>, vector<1x3x224x256xf32>
    %5 = vector.shape_cast %4 : vector<1x3x224x256xf32> to vector<3x224x256xf32>
    %6 = vector.shape_cast %5 : vector<3x224x256xf32> to vector<672x256xf32>
    %cst = arith.constant dense<0.000000e+00> : vector<672x7xf32>
    %7 = tpu.matmul %6, %1, %cst {dimension_numbers = #tpu.dot_dimension_numbers<[1], [0], [0], [1], [0, 0, 1, 1], [], []>} : vector<672x256xf32>, vector<256x7xf32>, vector<672x7xf32> -> vector<672x7xf32>
    %cst_12 = arith.constant dense<0.000000e+00> : vector<24x7xf32>
    %8 = tpu.matmul %0, %7, %cst_12 {dimension_numbers = #tpu.dot_dimension_numbers<[1], [0], [0], [1], [0, 0, 1, 1], [], []>} : vector<24x672xf32>, vector<672x7xf32>, vector<24x7xf32> -> vector<24x7xf32>
    %9 = vector.extract_strided_slice %8 {offsets = [0, 0], sizes = [24, 1], strides = [1, 1]} : vector<24x7xf32> to vector<24x1xf32>
    %10 = vector.extract_strided_slice %2 {offsets = [0, 0, 0], sizes = [24, 1, 640], strides = [1, 1, 1]} : vector<24x7x640xf32> to vector<24x1x640xf32>
    %11 = vector.shape_cast %10 : vector<24x1x640xf32> to vector<24x640xf32>
    %12 = vector.broadcast %9 : vector<24x1xf32> to vector<24x640xf32>
    %13 = arith.mulf %12, %11 : vector<24x640xf32>
    %14 = vector.extract_strided_slice %8 {offsets = [0, 1], sizes = [24, 1], strides = [1, 1]} : vector<24x7xf32> to vector<24x1xf32>
    %15 = vector.extract_strided_slice %2 {offsets = [0, 1, 0], sizes = [24, 1, 640], strides = [1, 1, 1]} : vector<24x7x640xf32> to vector<24x1x640xf32>
    %16 = vector.shape_cast %15 : vector<24x1x640xf32> to vector<24x640xf32>
    %17 = vector.broadcast %14 : vector<24x1xf32> to vector<24x640xf32>
    %18 = arith.mulf %17, %16 : vector<24x640xf32>
    %19 = arith.addf %13, %18 : vector<24x640xf32>
    %20 = vector.extract_strided_slice %8 {offsets = [0, 2], sizes = [24, 1], strides = [1, 1]} : vector<24x7xf32> to vector<24x1xf32>
    %21 = vector.extract_strided_slice %2 {offsets = [0, 2, 0], sizes = [24, 1, 640], strides = [1, 1, 1]} : vector<24x7x640xf32> to vector<24x1x640xf32>
    %22 = vector.shape_cast %21 : vector<24x1x640xf32> to vector<24x640xf32>
    %23 = vector.broadcast %20 : vector<24x1xf32> to vector<24x640xf32>
    %24 = arith.mulf %23, %22 : vector<24x640xf32>
    %25 = arith.addf %19, %24 : vector<24x640xf32>
    %26 = vector.extract_strided_slice %8 {offsets = [0, 3], sizes = [24, 1], strides = [1, 1]} : vector<24x7xf32> to vector<24x1xf32>
    %27 = vector.extract_strided_slice %2 {offsets = [0, 3, 0], sizes = [24, 1, 640], strides = [1, 1, 1]} : vector<24x7x640xf32> to vector<24x1x640xf32>
    %28 = vector.shape_cast %27 : vector<24x1x640xf32> to vector<24x640xf32>
    %29 = vector.broadcast %26 : vector<24x1xf32> to vector<24x640xf32>
    %30 = arith.mulf %29, %28 : vector<24x640xf32>
    %31 = arith.addf %25, %30 : vector<24x640xf32>
    %32 = vector.extract_strided_slice %8 {offsets = [0, 4], sizes = [24, 1], strides = [1, 1]} : vector<24x7xf32> to vector<24x1xf32>
    %33 = vector.extract_strided_slice %2 {offsets = [0, 4, 0], sizes = [24, 1, 640], strides = [1, 1, 1]} : vector<24x7x640xf32> to vector<24x1x640xf32>
    %34 = vector.shape_cast %33 : vector<24x1x640xf32> to vector<24x640xf32>
    %35 = vector.broadcast %32 : vector<24x1xf32> to vector<24x640xf32>
    %36 = arith.mulf %35, %34 : vector<24x640xf32>
    %37 = arith.addf %31, %36 : vector<24x640xf32>
    %38 = vector.extract_strided_slice %8 {offsets = [0, 5], sizes = [24, 1], strides = [1, 1]} : vector<24x7xf32> to vector<24x1xf32>
    %39 = vector.extract_strided_slice %2 {offsets = [0, 5, 0], sizes = [24, 1, 640], strides = [1, 1, 1]} : vector<24x7x640xf32> to vector<24x1x640xf32>
    %40 = vector.shape_cast %39 : vector<24x1x640xf32> to vector<24x640xf32>
    %41 = vector.broadcast %38 : vector<24x1xf32> to vector<24x640xf32>
    %42 = arith.mulf %41, %40 : vector<24x640xf32>
    %43 = arith.addf %37, %42 : vector<24x640xf32>
    %44 = vector.extract_strided_slice %8 {offsets = [0, 6], sizes = [24, 1], strides = [1, 1]} : vector<24x7xf32> to vector<24x1xf32>
    %45 = vector.extract_strided_slice %2 {offsets = [0, 6, 0], sizes = [24, 1, 640], strides = [1, 1, 1]} : vector<24x7x640xf32> to vector<24x1x640xf32>
    %46 = vector.shape_cast %45 : vector<24x1x640xf32> to vector<24x640xf32>
    %47 = vector.broadcast %44 : vector<24x1xf32> to vector<24x640xf32>
    %48 = arith.mulf %47, %46 : vector<24x640xf32>
    %49 = arith.addf %43, %48 : vector<24x640xf32>
    %cst_13 = arith.constant dense<0.000000e+00> : vector<640xf32>
    %50 = vector.multi_reduction <add>, %49, %cst_13 [0] : vector<24x640xf32> to vector<640xf32>
    %51 = vector.shape_cast %50 : vector<640xf32> to vector<1x640xf32>
    %c0_14 = arith.constant 0 : index
    %c0_15 = arith.constant 0 : index
    %c0_16 = arith.constant 0 : index
    %c0_17 = arith.constant 0 : index
    %52 = vector.load %arg6[%c0_14, %c0_15, %c0_16, %c0_17] : memref<1x3x224x256xf32, #tpu.memory_space<vmem>>, vector<1x3x224x256xf32>
    %53 = vector.shape_cast %52 : vector<1x3x224x256xf32> to vector<3x224x256xf32>
    %54 = vector.shape_cast %53 : vector<3x224x256xf32> to vector<672x256xf32>
    %cst_18 = arith.constant dense<0.000000e+00> : vector<672x7xf32>
    %55 = tpu.matmul %54, %1, %cst_18 {dimension_numbers = #tpu.dot_dimension_numbers<[1], [0], [0], [1], [0, 0, 1, 1], [], []>} : vector<672x256xf32>, vector<256x7xf32>, vector<672x7xf32> -> vector<672x7xf32>
    %cst_19 = arith.constant dense<0.000000e+00> : vector<24x7xf32>
    %56 = tpu.matmul %0, %55, %cst_19 {dimension_numbers = #tpu.dot_dimension_numbers<[1], [0], [0], [1], [0, 0, 1, 1], [], []>} : vector<24x672xf32>, vector<672x7xf32>, vector<24x7xf32> -> vector<24x7xf32>
    %57 = vector.extract_strided_slice %56 {offsets = [0, 0], sizes = [24, 1], strides = [1, 1]} : vector<24x7xf32> to vector<24x1xf32>
    %58 = vector.extract_strided_slice %2 {offsets = [0, 0, 0], sizes = [24, 1, 640], strides = [1, 1, 1]} : vector<24x7x640xf32> to vector<24x1x640xf32>
    %59 = vector.shape_cast %58 : vector<24x1x640xf32> to vector<24x640xf32>
    %60 = vector.broadcast %57 : vector<24x1xf32> to vector<24x640xf32>
    %61 = arith.mulf %60, %59 : vector<24x640xf32>
    %62 = vector.extract_strided_slice %56 {offsets = [0, 1], sizes = [24, 1], strides = [1, 1]} : vector<24x7xf32> to vector<24x1xf32>
    %63 = vector.extract_strided_slice %2 {offsets = [0, 1, 0], sizes = [24, 1, 640], strides = [1, 1, 1]} : vector<24x7x640xf32> to vector<24x1x640xf32>
    %64 = vector.shape_cast %63 : vector<24x1x640xf32> to vector<24x640xf32>
    %65 = vector.broadcast %62 : vector<24x1xf32> to vector<24x640xf32>
    %66 = arith.mulf %65, %64 : vector<24x640xf32>
    %67 = arith.addf %61, %66 : vector<24x640xf32>
    %68 = vector.extract_strided_slice %56 {offsets = [0, 2], sizes = [24, 1], strides = [1, 1]} : vector<24x7xf32> to vector<24x1xf32>
    %69 = vector.extract_strided_slice %2 {offsets = [0, 2, 0], sizes = [24, 1, 640], strides = [1, 1, 1]} : vector<24x7x640xf32> to vector<24x1x640xf32>
    %70 = vector.shape_cast %69 : vector<24x1x640xf32> to vector<24x640xf32>
    %71 = vector.broadcast %68 : vector<24x1xf32> to vector<24x640xf32>
    %72 = arith.mulf %71, %70 : vector<24x640xf32>
    %73 = arith.addf %67, %72 : vector<24x640xf32>
    %74 = vector.extract_strided_slice %56 {offsets = [0, 3], sizes = [24, 1], strides = [1, 1]} : vector<24x7xf32> to vector<24x1xf32>
    %75 = vector.extract_strided_slice %2 {offsets = [0, 3, 0], sizes = [24, 1, 640], strides = [1, 1, 1]} : vector<24x7x640xf32> to vector<24x1x640xf32>
    %76 = vector.shape_cast %75 : vector<24x1x640xf32> to vector<24x640xf32>
    %77 = vector.broadcast %74 : vector<24x1xf32> to vector<24x640xf32>
    %78 = arith.mulf %77, %76 : vector<24x640xf32>
    %79 = arith.addf %73, %78 : vector<24x640xf32>
    %80 = vector.extract_strided_slice %56 {offsets = [0, 4], sizes = [24, 1], strides = [1, 1]} : vector<24x7xf32> to vector<24x1xf32>
    %81 = vector.extract_strided_slice %2 {offsets = [0, 4, 0], sizes = [24, 1, 640], strides = [1, 1, 1]} : vector<24x7x640xf32> to vector<24x1x640xf32>
    %82 = vector.shape_cast %81 : vector<24x1x640xf32> to vector<24x640xf32>
    %83 = vector.broadcast %80 : vector<24x1xf32> to vector<24x640xf32>
    %84 = arith.mulf %83, %82 : vector<24x640xf32>
    %85 = arith.addf %79, %84 : vector<24x640xf32>
    %86 = vector.extract_strided_slice %56 {offsets = [0, 5], sizes = [24, 1], strides = [1, 1]} : vector<24x7xf32> to vector<24x1xf32>
    %87 = vector.extract_strided_slice %2 {offsets = [0, 5, 0], sizes = [24, 1, 640], strides = [1, 1, 1]} : vector<24x7x640xf32> to vector<24x1x640xf32>
    %88 = vector.shape_cast %87 : vector<24x1x640xf32> to vector<24x640xf32>
    %89 = vector.broadcast %86 : vector<24x1xf32> to vector<24x640xf32>
    %90 = arith.mulf %89, %88 : vector<24x640xf32>
    %91 = arith.addf %85, %90 : vector<24x640xf32>
    %92 = vector.extract_strided_slice %56 {offsets = [0, 6], sizes = [24, 1], strides = [1, 1]} : vector<24x7xf32> to vector<24x1xf32>
    %93 = vector.extract_strided_slice %2 {offsets = [0, 6, 0], sizes = [24, 1, 640], strides = [1, 1, 1]} : vector<24x7x640xf32> to vector<24x1x640xf32>
    %94 = vector.shape_cast %93 : vector<24x1x640xf32> to vector<24x640xf32>
    %95 = vector.broadcast %92 : vector<24x1xf32> to vector<24x640xf32>
    %96 = arith.mulf %95, %94 : vector<24x640xf32>
    %97 = arith.addf %91, %96 : vector<24x640xf32>
    %cst_20 = arith.constant dense<0.000000e+00> : vector<640xf32>
    %98 = vector.multi_reduction <add>, %97, %cst_20 [0] : vector<24x640xf32> to vector<640xf32>
    %99 = vector.shape_cast %98 : vector<640xf32> to vector<1x640xf32>
    %c0_21 = arith.constant 0 : index
    %c0_22 = arith.constant 0 : index
    %c0_23 = arith.constant 0 : index
    %c0_24 = arith.constant 0 : index
    %100 = vector.load %arg7[%c0_21, %c0_22, %c0_23, %c0_24] : memref<1x3x224x256xf32, #tpu.memory_space<vmem>>, vector<1x3x224x256xf32>
    %101 = vector.shape_cast %100 : vector<1x3x224x256xf32> to vector<3x224x256xf32>
    %102 = vector.shape_cast %101 : vector<3x224x256xf32> to vector<672x256xf32>
    %cst_25 = arith.constant dense<0.000000e+00> : vector<672x7xf32>
    %103 = tpu.matmul %102, %1, %cst_25 {dimension_numbers = #tpu.dot_dimension_numbers<[1], [0], [0], [1], [0, 0, 1, 1], [], []>} : vector<672x256xf32>, vector<256x7xf32>, vector<672x7xf32> -> vector<672x7xf32>
    %cst_26 = arith.constant dense<0.000000e+00> : vector<24x7xf32>
    %104 = tpu.matmul %0, %103, %cst_26 {dimension_numbers = #tpu.dot_dimension_numbers<[1], [0], [0], [1], [0, 0, 1, 1], [], []>} : vector<24x672xf32>, vector<672x7xf32>, vector<24x7xf32> -> vector<24x7xf32>
    %105 = vector.extract_strided_slice %104 {offsets = [0, 0], sizes = [24, 1], strides = [1, 1]} : vector<24x7xf32> to vector<24x1xf32>
    %106 = vector.extract_strided_slice %2 {offsets = [0, 0, 0], sizes = [24, 1, 640], strides = [1, 1, 1]} : vector<24x7x640xf32> to vector<24x1x640xf32>
    %107 = vector.shape_cast %106 : vector<24x1x640xf32> to vector<24x640xf32>
    %108 = vector.broadcast %105 : vector<24x1xf32> to vector<24x640xf32>
    %109 = arith.mulf %108, %107 : vector<24x640xf32>
    %110 = vector.extract_strided_slice %104 {offsets = [0, 1], sizes = [24, 1], strides = [1, 1]} : vector<24x7xf32> to vector<24x1xf32>
    %111 = vector.extract_strided_slice %2 {offsets = [0, 1, 0], sizes = [24, 1, 640], strides = [1, 1, 1]} : vector<24x7x640xf32> to vector<24x1x640xf32>
    %112 = vector.shape_cast %111 : vector<24x1x640xf32> to vector<24x640xf32>
    %113 = vector.broadcast %110 : vector<24x1xf32> to vector<24x640xf32>
    %114 = arith.mulf %113, %112 : vector<24x640xf32>
    %115 = arith.addf %109, %114 : vector<24x640xf32>
    %116 = vector.extract_strided_slice %104 {offsets = [0, 2], sizes = [24, 1], strides = [1, 1]} : vector<24x7xf32> to vector<24x1xf32>
    %117 = vector.extract_strided_slice %2 {offsets = [0, 2, 0], sizes = [24, 1, 640], strides = [1, 1, 1]} : vector<24x7x640xf32> to vector<24x1x640xf32>
    %118 = vector.shape_cast %117 : vector<24x1x640xf32> to vector<24x640xf32>
    %119 = vector.broadcast %116 : vector<24x1xf32> to vector<24x640xf32>
    %120 = arith.mulf %119, %118 : vector<24x640xf32>
    %121 = arith.addf %115, %120 : vector<24x640xf32>
    %122 = vector.extract_strided_slice %104 {offsets = [0, 3], sizes = [24, 1], strides = [1, 1]} : vector<24x7xf32> to vector<24x1xf32>
    %123 = vector.extract_strided_slice %2 {offsets = [0, 3, 0], sizes = [24, 1, 640], strides = [1, 1, 1]} : vector<24x7x640xf32> to vector<24x1x640xf32>
    %124 = vector.shape_cast %123 : vector<24x1x640xf32> to vector<24x640xf32>
    %125 = vector.broadcast %122 : vector<24x1xf32> to vector<24x640xf32>
    %126 = arith.mulf %125, %124 : vector<24x640xf32>
    %127 = arith.addf %121, %126 : vector<24x640xf32>
    %128 = vector.extract_strided_slice %104 {offsets = [0, 4], sizes = [24, 1], strides = [1, 1]} : vector<24x7xf32> to vector<24x1xf32>
    %129 = vector.extract_strided_slice %2 {offsets = [0, 4, 0], sizes = [24, 1, 640], strides = [1, 1, 1]} : vector<24x7x640xf32> to vector<24x1x640xf32>
    %130 = vector.shape_cast %129 : vector<24x1x640xf32> to vector<24x640xf32>
    %131 = vector.broadcast %128 : vector<24x1xf32> to vector<24x640xf32>
    %132 = arith.mulf %131, %130 : vector<24x640xf32>
    %133 = arith.addf %127, %132 : vector<24x640xf32>
    %134 = vector.extract_strided_slice %104 {offsets = [0, 5], sizes = [24, 1], strides = [1, 1]} : vector<24x7xf32> to vector<24x1xf32>
    %135 = vector.extract_strided_slice %2 {offsets = [0, 5, 0], sizes = [24, 1, 640], strides = [1, 1, 1]} : vector<24x7x640xf32> to vector<24x1x640xf32>
    %136 = vector.shape_cast %135 : vector<24x1x640xf32> to vector<24x640xf32>
    %137 = vector.broadcast %134 : vector<24x1xf32> to vector<24x640xf32>
    %138 = arith.mulf %137, %136 : vector<24x640xf32>
    %139 = arith.addf %133, %138 : vector<24x640xf32>
    %140 = vector.extract_strided_slice %104 {offsets = [0, 6], sizes = [24, 1], strides = [1, 1]} : vector<24x7xf32> to vector<24x1xf32>
    %141 = vector.extract_strided_slice %2 {offsets = [0, 6, 0], sizes = [24, 1, 640], strides = [1, 1, 1]} : vector<24x7x640xf32> to vector<24x1x640xf32>
    %142 = vector.shape_cast %141 : vector<24x1x640xf32> to vector<24x640xf32>
    %143 = vector.broadcast %140 : vector<24x1xf32> to vector<24x640xf32>
    %144 = arith.mulf %143, %142 : vector<24x640xf32>
    %145 = arith.addf %139, %144 : vector<24x640xf32>
    %cst_27 = arith.constant dense<0.000000e+00> : vector<640xf32>
    %146 = vector.multi_reduction <add>, %145, %cst_27 [0] : vector<24x640xf32> to vector<640xf32>
    %147 = vector.shape_cast %146 : vector<640xf32> to vector<1x640xf32>
    %148 = arith.mulf %51, %99 : vector<1x640xf32>
    %149 = arith.mulf %99, %147 : vector<1x640xf32>
    %150 = arith.mulf %51, %147 : vector<1x640xf32>
    %151 = arith.mulf %51, %51 : vector<1x640xf32>
    %152 = arith.mulf %99, %99 : vector<1x640xf32>
    %153 = arith.mulf %147, %147 : vector<1x640xf32>
    %154 = tpu.concatenate %148, %149, %150, %151, %152, %153 in 0 : vector<1x640xf32>, vector<1x640xf32>, vector<1x640xf32>, vector<1x640xf32>, vector<1x640xf32>, vector<1x640xf32> -> vector<6x640xf32>
    %cst_28 = arith.constant dense<0.000000e+00> : vector<6x5xf32>
    %155 = tpu.matmul %154, %3, %cst_28 {dimension_numbers = #tpu.dot_dimension_numbers<[1], [0], [0], [1], [0, 0, 1, 1], [], []>} : vector<6x640xf32>, vector<640x5xf32>, vector<6x5xf32> -> vector<6x5xf32>
    %156 = vector.extract_strided_slice %155 {offsets = [3, 0], sizes = [1, 5], strides = [1, 1]} : vector<6x5xf32> to vector<1x5xf32>
    %cst_29 = arith.constant 1.000000e-16 : f32
    %157 = vector.broadcast %cst_29 : f32 to vector<1x5xf32>
    %158 = arith.maximumf %156, %157 : vector<1x5xf32>
    %159 = vector.extract_strided_slice %155 {offsets = [4, 0], sizes = [1, 5], strides = [1, 1]} : vector<6x5xf32> to vector<1x5xf32>
    %cst_30 = arith.constant 1.000000e-16 : f32
    %160 = vector.broadcast %cst_30 : f32 to vector<1x5xf32>
    %161 = arith.maximumf %159, %160 : vector<1x5xf32>
    %162 = vector.extract_strided_slice %155 {offsets = [5, 0], sizes = [1, 5], strides = [1, 1]} : vector<6x5xf32> to vector<1x5xf32>
    %cst_31 = arith.constant 1.000000e-16 : f32
    %163 = vector.broadcast %cst_31 : f32 to vector<1x5xf32>
    %164 = arith.maximumf %162, %163 : vector<1x5xf32>
    %165 = vector.extract_strided_slice %155 {offsets = [0, 0], sizes = [1, 5], strides = [1, 1]} : vector<6x5xf32> to vector<1x5xf32>
    %166 = arith.mulf %158, %161 : vector<1x5xf32>
    %167 = math.rsqrt %166 : vector<1x5xf32>
    %168 = arith.mulf %165, %167 : vector<1x5xf32>
    %c0_32 = arith.constant 0 : index
    %c0_33 = arith.constant 0 : index
    %c0_34 = arith.constant 0 : index
    %169 = vector.load %arg8[%c0_32, %c0_33, %c0_34] : memref<1x3x5xf32, #tpu.memory_space<vmem>>, vector<1x1x5xf32>
    %170 = vector.shape_cast %169 : vector<1x1x5xf32> to vector<1x5xf32>
    %171 = vector.shape_cast %168 : vector<1x5xf32> to vector<1x1x5xf32>
    tpu.vector_store %arg8[%c0_32, %c0_33, %c0_34], %171 {strides = array<i32>} : memref<1x3x5xf32, #tpu.memory_space<vmem>>, vector<1x1x5xf32>,
    %172 = vector.extract_strided_slice %155 {offsets = [1, 0], sizes = [1, 5], strides = [1, 1]} : vector<6x5xf32> to vector<1x5xf32>
    %173 = arith.mulf %161, %164 : vector<1x5xf32>
    %174 = math.rsqrt %173 : vector<1x5xf32>
    %175 = arith.mulf %172, %174 : vector<1x5xf32>
    %c0_35 = arith.constant 0 : index
    %c1 = arith.constant 1 : index
    %c0_36 = arith.constant 0 : index
    %176 = vector.load %arg8[%c0_35, %c1, %c0_36] : memref<1x3x5xf32, #tpu.memory_space<vmem>>, vector<1x1x5xf32>
    %177 = vector.shape_cast %176 : vector<1x1x5xf32> to vector<1x5xf32>
    %178 = vector.shape_cast %175 : vector<1x5xf32> to vector<1x1x5xf32>
    tpu.vector_store %arg8[%c0_35, %c1, %c0_36], %178 {strides = array<i32>} : memref<1x3x5xf32, #tpu.memory_space<vmem>>, vector<1x1x5xf32>,
    %179 = vector.extract_strided_slice %155 {offsets = [2, 0], sizes = [1, 5], strides = [1, 1]} : vector<6x5xf32> to vector<1x5xf32>
    %180 = arith.mulf %158, %164 : vector<1x5xf32>
    %181 = math.rsqrt %180 : vector<1x5xf32>
    %182 = arith.mulf %179, %181 : vector<1x5xf32>
    %c0_37 = arith.constant 0 : index
    %c2 = arith.constant 2 : index
    %c0_38 = arith.constant 0 : index
    %183 = vector.load %arg8[%c0_37, %c2, %c0_38] : memref<1x3x5xf32, #tpu.memory_space<vmem>>, vector<1x1x5xf32>
    %184 = vector.shape_cast %183 : vector<1x1x5xf32> to vector<1x5xf32>
    %185 = vector.shape_cast %182 : vector<1x5xf32> to vector<1x1x5xf32>
    tpu.vector_store %arg8[%c0_37, %c2, %c0_38], %185 {strides = array<i32>} : memref<1x3x5xf32, #tpu.memory_space<vmem>>, vector<1x1x5xf32>,
    return
  }
  func.func @transform_0(%arg0: i32) -> (i32, i32) {
    %c0_i32 = arith.constant 0 : i32
    %c0_i32_0 = arith.constant 0 : i32
    %c0_i32_1 = arith.constant 0 : i32
    return %c0_i32, %c0_i32_0 : i32, i32
  }
  func.func @transform_1(%arg0: i32) -> (i32, i32) {
    %c0_i32 = arith.constant 0 : i32
    %c0_i32_0 = arith.constant 0 : i32
    %c0_i32_1 = arith.constant 0 : i32
    return %c0_i32, %c0_i32_0 : i32, i32
  }
  func.func @transform_2(%arg0: i32) -> (i32, i32, i32) {
    %c0_i32 = arith.constant 0 : i32
    %c0_i32_0 = arith.constant 0 : i32
    %c0_i32_1 = arith.constant 0 : i32
    %c0_i32_2 = arith.constant 0 : i32
    return %c0_i32, %c0_i32_0, %c0_i32_1 : i32, i32, i32
  }
  func.func @transform_3(%arg0: i32) -> (i32, i32) {
    %c0_i32 = arith.constant 0 : i32
    %c0_i32_0 = arith.constant 0 : i32
    %c0_i32_1 = arith.constant 0 : i32
    return %c0_i32, %c0_i32_0 : i32, i32
  }
  func.func @transform_4(%arg0: i32) -> (i32, i32, i32, i32) {
    %c0_i32 = arith.constant 0 : i32
    %c0_i32_0 = arith.constant 0 : i32
    %c0_i32_1 = arith.constant 0 : i32
    %c0_i32_2 = arith.constant 0 : i32
    return %arg0, %c0_i32, %c0_i32_0, %c0_i32_1 : i32, i32, i32, i32
  }
  func.func @transform_5(%arg0: i32) -> (i32, i32, i32, i32) {
    %c0_i32 = arith.constant 0 : i32
    %c0_i32_0 = arith.constant 0 : i32
    %c0_i32_1 = arith.constant 0 : i32
    %c0_i32_2 = arith.constant 0 : i32
    return %arg0, %c0_i32, %c0_i32_0, %c0_i32_1 : i32, i32, i32, i32
  }
  func.func @transform_6(%arg0: i32) -> (i32, i32, i32, i32) {
    %c0_i32 = arith.constant 0 : i32
    %c0_i32_0 = arith.constant 0 : i32
    %c0_i32_1 = arith.constant 0 : i32
    %c0_i32_2 = arith.constant 0 : i32
    return %arg0, %c0_i32, %c0_i32_0, %c0_i32_1 : i32, i32, i32, i32
  }
  func.func @transform_7(%arg0: i32) -> (i32, i32, i32) {
    %c0_i32 = arith.constant 0 : i32
    %c0_i32_0 = arith.constant 0 : i32
    %c0_i32_1 = arith.constant 0 : i32
    return %arg0, %c0_i32, %c0_i32_0 : i32, i32, i32
  }
}

</mosaic_0001>

<bundles_post_ra>
// kernel: forward_device.1
= control target key start
LH: loop header
LB: loop body
LE: loop exit
PB: predicated region body
PF: predicated region fallthrough
CT: control target
= control target key end

     0   :  { %12 = vsyncpa [#allocation3], 0  ;;  %s12605_s0 = inlined_call_operand.hbm [shape: f32[24,672], index: 0, kind: input, shape index: {}]   ;;  %s12606_s1 = inlined_call_operand.hbm [shape: f32[256,7], index: 1, kind: input, shape index: {}]   ;;  %s12607_s2 = inlined_call_operand.hbm [shape: f32[24,7,640], index: 2, kind: input, shape index: {}]   ;;  %s12608_s3 = inlined_call_operand.hbm [shape: f32[640,5], index: 3, kind: input, shape index: {}]   ;;  %s12609_s4 = inlined_call_operand.hbm [shape: f32[2,3,256,256], index: 4, kind: input, shape index: {}]   ;;  %s12610_s5 = inlined_call_operand.hbm [shape: f32[2,3,256,256], index: 5, kind: input, shape index: {}]   ;;  %s12611_s6 = inlined_call_operand.hbm [shape: f32[2,3,256,256], index: 6, kind: input, shape index: {}]   ;;  %s12612_s7 = inlined_call_operand.vmem [shape: f32[2,3,5], index: 7, kind: output, shape index: {}]  }
   0x1   :  { %13 = vsyncpa [#allocation5], 0 }
   0x2   :  { %14 = vsyncpa [#allocation8], 0  ;;  %s7614_s24 = smov 0   ;;  %s7616_s25 = smov 0  }
   0x3   :  { %s7618_s26 = smov 0   ;;  %s7620_s27 = smov 0  }
   0x4 LB: > { %s7633_s28 = sadd.s32 4294967295, %s7535_s27   ;;  %s7636_s29 = sadd.s32 1, %s7535_s27   ;;  %s7535_s27 = sphi %s7620_s27, %s13614_s27   ;;  %s7531_s26 = sphi %s7618_s26, %s13613_s26   ;;  %s7527_s25 = sphi %s7616_s25, %s13612_s25   ;;  %s7523_s24 = sphi %s7614_s24, %s13611_s24  }
   0x5   : > { %s108_s30 = ssub.s32 %s7535_s27, %s7636_s29  ;;  %s111_s8 = sadd.s32 1, %s7531_s26 }
   0x6   : > { %p109_p0 = scmp.eq.s32.totalorder %s108_s30, 0  ;;  %p118_p1 = scmp.ne.s32.totalorder %s7531_s26, %s7527_s25 }
   0x7   : > { %p119_p2 = scmp.eq.s32.totalorder %s7535_s27, 0  ;;  %p124_p3 = scmp.ne.s32.totalorder %s7527_s25, %s7523_s24 }
   0x8   : > { %s7646_s9 = scalar_select %p109_p0, %s7531_s26, %s111_s8  }
   0x9   : > { %p7648_p4 = por %p119_p2, %p118_p1  ;;  %p125_p5 = scmp.eq.s32.totalorder %s7633_s28, 0 }
   0xa   : > { %p6547_p6 = scmp.ge.s32.totalorder %s7535_s27, 1  ;;  %p213_p7 = scmp.lt.s32.totalorder %s7535_s27, 3 }
   0xb   : > { %p7657_p8 = por %p125_p5, %p124_p3  ;;  %s7537_s13 = smov [#allocation4]  }
   0xc   : > { %p7661_p9 = pnand %p6547_p6, %p213_p7  ;;  %s238_s14 = sshll.u32 %s7537_s13, 4  ;;  %s239_s14 = int_to_ptr.vmem [resolvable:$true] %s238_s14 }
   0xd   : > { %s7538_s16 = smov [#allocation2]   ;;  %s7396_s18 = scalar_lea.vmem %s239_s14, 4096 }
   0xe   : > { %p7061_p10 = pneg %p7661_p9  ;;  %s225_s17 = sshll.u32 %s7538_s16, 4  ;;  %s226_s17 = int_to_ptr.vmem [resolvable:$true] %s225_s17 }
   0xf   : > { %p7397_p13 = scmp.ne.s32.totalorder %s239_s14, %s7396_s18  ;;  %p7404_p2 = scmp.lt.s32.totalorder %s239_s14, %s239_s14 }
  0x10   : > { %p7669_p11 = pnand %p7061_p10, %p125_p5  ;;  %p7405_p3 = scmp.lt.s32.totalorder %s7396_s18, %s7396_s18 }
  0x12   : > { %p7387_p12 = pneg %p7669_p11  ;;  %p7406_p6 = por %p7405_p3, %p7404_p2 }
  0x14   : > { %p7399_p0 = pnand %p7397_p13, %p7387_p12 }
  0x16   : > { %p7400_p1 = pneg %p7399_p0 }
  0x18   : > { %p7407_p7 = pnand %p7406_p6, %p7400_p1 }
  0x1a   : > { %7410 = shalt.err (!%p7407_p7)
}
  0x1b   : > { %s7539_s19 = smov 128   ;;  %s7540_s20 = smov 8  }
  0x1c   : > { %7067 = dma.hbm_to_vmem [thread:$0]  (!%p7669_p11), %s12606_s1, 4096, %s239_s14, [#allocation5], %s7539_s19, %s7539_s19, %s7540_s20  }
  0x1d   : > { %s7422_s23 = scalar_lea.vmem %s226_s17, 2304  ;;  %p7430_p1 = scmp.lt.s32.totalorder %s226_s17, %s226_s17 }
  0x1e   : > { %p7423_p10 = scmp.ne.s32.totalorder %s226_s17, %s7422_s23  ;;  %p7431_p2 = scmp.lt.s32.totalorder %s7422_s23, %s7422_s23 }
  0x20   : > { %p7425_p13 = pnand %p7423_p10, %p7387_p12  ;;  %p7432_p3 = por %p7431_p2, %p7430_p1 }
  0x22   : > { %p7426_p0 = pneg %p7425_p13 }
  0x24   : > { %p7433_p6 = pnand %p7432_p3, %p7426_p0 }
  0x26   : > { %7436 = shalt.err (!%p7433_p6)
}
  0x27   : > { %s7541_s24 = smov 768   ;;  %s7542_s30 = smov 48  }
  0x28   : > { %7064 = dma.hbm_to_vmem [thread:$0]  (!%p7669_p11), %s12605_s0, 2304, %s226_s17, [#allocation3], %s7541_s24, %s7541_s24, %s7542_s30  }
  0x29   : > { %s7543_s14 = smov [#allocation6]  }
  0x2a   : > { %s251_s16 = sshll.u32 %s7543_s14, 4  ;;  %s252_s16 = int_to_ptr.vmem [resolvable:$true] %s251_s16 }
  0x2b   : > { %s7448_s18 = scalar_lea.vmem %s252_s16, 15360  ;;  %p7456_p0 = scmp.lt.s32.totalorder %s252_s16, %s252_s16 }
  0x2c   : > { %p7449_p7 = scmp.ne.s32.totalorder %s252_s16, %s7448_s18  ;;  %p7457_p1 = scmp.lt.s32.totalorder %s7448_s18, %s7448_s18 }
  0x2e   : > { %p7451_p10 = pnand %p7449_p7, %p7387_p12  ;;  %p7458_p2 = por %p7457_p1, %p7456_p0 }
  0x30   : > { %p7452_p13 = pneg %p7451_p10 }
  0x32   : > { %p7459_p3 = pnand %p7458_p2, %p7452_p13 }
  0x34   : > { %7462 = shalt.err (!%p7459_p3)
}
  0x35   : > { %s7544_s21 = smov 640   ;;  %s7545_s22 = smov 40  }
  0x36   : > { %7070 = dma.hbm_to_vmem [thread:$0]  (!%p7669_p11), %s12607_s2, 15360, %s252_s16, [#allocation5], %s7544_s21, %s7544_s21, %s7545_s22  }
  0x37   : > { %s7546_s24 = smov [#allocation7]  }
  0x38   : > { %s264_s30 = sshll.u32 %s7546_s24, 4  ;;  %s265_s30 = int_to_ptr.vmem [resolvable:$true] %s264_s30 }
  0x39   : > { %s7474_s8 = scalar_lea.vmem %s265_s30, 10240  ;;  %p7482_p13 = scmp.lt.s32.totalorder %s265_s30, %s265_s30 }
  0x3a   : > { %p7475_p6 = scmp.ne.s32.totalorder %s265_s30, %s7474_s8  ;;  %p7483_p0 = scmp.lt.s32.totalorder %s7474_s8, %s7474_s8 }
  0x3c   : > { %p7477_p7 = pnand %p7475_p6, %p7387_p12  ;;  %p7484_p1 = por %p7483_p0, %p7482_p13 }
  0x3e   : > { %p7478_p10 = pneg %p7477_p7 }
  0x40   : > { %p7485_p2 = pnand %p7484_p1, %p7478_p10 }
  0x42   : > { %7488 = shalt.err (!%p7485_p2)
}
  0x43   : > { %7073 = dma.hbm_to_vmem [thread:$0]  (!%p7669_p11), %s12608_s3, 10240, %s265_s30, [#allocation8], %s7539_s19, %s7539_s19, %s7540_s20  }
  0x44   : > { %p6552_p3 = scmp.ge.s32.totalorder %s7535_s27, 2 }
  0x46   : > { %274 = sbr.rel (%p6552_p3) target bundleno = 113 (0x71), region = 32 }
  0x4b   : > { %s280_s16 = sand.u32 1, %s7531_s26   ;;  %s278_s15 = sand.u32 1, %s7535_s27  }
  0x4c   : > { %s7716_s18 = smul.u32 1344, %s280_s16  ;;  %s7547_s21 = smov 8192  }
  0x4d   : > { %7027 = sst [smem:[#allocation13]] (%p7648_p4), %s7547_s21  ;;  %s7721_s19 = smul.u32 24576, %s7535_s27 }
  0x4e   : > { %s7026_s20 = scalar_select %p7648_p4, [#allocation0], [#allocation18] }
  0x4f   : > { %s282_s22 = scalar_lea.vmem [#allocation9], %s7716_s18  ;;  %s7548_s24 = smov 7168  }
  0x50   : > { %s301_s17 = sshll.u32 %s282_s22, 4  ;;  %s293_s23 = sld [smem:[%s7026_s20]]   ;;  %s302_s17 = int_to_ptr.vmem [resolvable:$true] %s301_s17 }
  0x51   : > { %7028 = sst [smem:[#allocation13 + $0x1]] (%p7648_p4), %s7548_s24  ;;  %s7549_s30 = smov 28  }
  0x52   : > { %7029 = sst [smem:[#allocation13 + $0x2]] (%p7648_p4), %s7549_s30  ;;  %s288_s14 = scalar_lea.hbm %s12609_s4, %s7721_s19 }
  0x53   : > { %s7550_s16 = smov 256   ;;  %s7551_s27 = smov 16  }
  0x54   : > { %7030 = sst [smem:[#allocation13 + $0x3]] (%p7648_p4), %s7550_s16  ;;  %s7740_s22 = scalar_lea.sflag [#allocation3], %s278_s15 }
  0x55   : > { %7031 = sst [smem:[#allocation13 + $0x4]] (%p7648_p4), %s7550_s16  ;;  %s7552_s24 = smov 131072  }
  0x56   : > { %7032 = sst [smem:[#allocation13 + $0x5]] (%p7648_p4), %s7551_s27  ;;  %s6554_s21 = sshll.u32 %s293_s23, 26 }
  0x57   : > { %s6555_s20 = sadd.s32 134217728, %s6554_s21 }
  0x58   : > { %7033 = dma.general (%p7648_p4), %s288_s14, 21504, %s302_s17, %s7740_s22, %s7552_s24, [#allocation13], %s6555_s20, 0  }
  0x59   : > { %s334_s13 = scalar_lea.hbm %s12610_s5, %s7721_s19  ;;  %s328_s15 = scalar_lea.vmem [#allocation10], %s7716_s18 }
  0x5a   : > { %s7034_s23 = scalar_select %p7648_p4, [#allocation0], [#allocation19] }
  0x5b   : > { %s347_s16 = sshll.u32 %s328_s15, 4  ;;  %s7553_s17 = smov 8192   ;;  %s348_s16 = int_to_ptr.vmem [resolvable:$true] %s347_s16 }
  0x5c   : > { %s339_s27 = sld [smem:[%s7034_s23]]   ;;  %s7554_s14 = smov 7168  }
  0x5d   : > { %7035 = sst [smem:[#allocation15]] (%p7648_p4), %s7553_s17  ;;  %s7555_s21 = smov 28  }
  0x5e   : > { %7036 = sst [smem:[#allocation15 + $0x1]] (%p7648_p4), %s7554_s14  ;;  %s7556_s20 = smov 256  }
  0x5f   : > { %7037 = sst [smem:[#allocation15 + $0x2]] (%p7648_p4), %s7555_s21  ;;  %s7557_s30 = smov 16  }
  0x60   : > { %7038 = sst [smem:[#allocation15 + $0x3]] (%p7648_p4), %s7556_s20  ;;  %s7558_s23 = smov 131072  }
  0x61   : > { %7039 = sst [smem:[#allocation15 + $0x4]] (%p7648_p4), %s7556_s20 }
  0x62   : > { %s6557_s24 = sshll.u32 %s339_s27, 26  ;;  %7040 = sst [smem:[#allocation15 + $0x5]] (%p7648_p4), %s7557_s30 }
  0x63   : > { %s6558_s8 = sadd.s32 134217728, %s6557_s24 }
  0x64   : > { %7041 = dma.general (%p7648_p4), %s334_s13, 21504, %s348_s16, %s7740_s22, %s7558_s23, [#allocation15], %s6558_s8, 0  }
  0x65   : > { %s380_s14 = scalar_lea.hbm %s12611_s6, %s7721_s19  ;;  %s374_s21 = scalar_lea.vmem [#allocation11], %s7716_s18 }
  0x66   : > { %s7042_s27 = scalar_select %p7648_p4, [#allocation0], [#allocation20] }
  0x67   : > { %s393_s20 = sshll.u32 %s374_s21, 4  ;;  %s7559_s13 = smov 8192   ;;  %s394_s20 = int_to_ptr.vmem [resolvable:$true] %s393_s20 }
  0x68   : > { %s385_s24 = sld [smem:[%s7042_s27]]   ;;  %s7560_s16 = smov 7168  }
  0x69   : > { %7043 = sst [smem:[#allocation17]] (%p7648_p4), %s7559_s13  ;;  %s7561_s30 = smov 28  }
  0x6a   : > { %7044 = sst [smem:[#allocation17 + $0x1]] (%p7648_p4), %s7560_s16  ;;  %s7562_s8 = smov 256  }
  0x6b   : > { %7045 = sst [smem:[#allocation17 + $0x2]] (%p7648_p4), %s7561_s30  ;;  %s7563_s19 = smov 16  }
  0x6c   : > { %7046 = sst [smem:[#allocation17 + $0x3]] (%p7648_p4), %s7562_s8  ;;  %s7564_s15 = smov 131072  }
  0x6d   : > { %7047 = sst [smem:[#allocation17 + $0x4]] (%p7648_p4), %s7562_s8 }
  0x6e   : > { %s6560_s18 = sshll.u32 %s385_s24, 26  ;;  %7048 = sst [smem:[#allocation17 + $0x5]] (%p7648_p4), %s7563_s19 }
  0x6f   : > { %s6561_s23 = sadd.s32 134217728, %s6560_s18 }
  0x70   : > { %7049 = dma.general (%p7648_p4), %s380_s14, 21504, %s394_s20, %s7740_s22, %s7564_s15, [#allocation17], %s6561_s23, 0  }
  0x71 PF: > { %418 = sbr.rel (%p7661_p9) target bundleno = 2423 (0x977), region = 48 }
  0x76   : > { %7506 = dma.done.wait (%p125_p5), [#allocation3], 2304  }
  0x77   : > { %7508 = vsyncadd (%p125_p5), [#allocation3], 4294964992 }
  0x78   : > { %7510 = dma.done.wait (%p125_p5), [#allocation5], 19456  }
  0x79   : > { %7512 = vsyncadd (%p125_p5), [#allocation5], 4294947840 }
  0x7a   : > { %7514 = dma.done.wait (%p125_p5), [#allocation8], 10240  }
  0x7b   : > { %7516 = vsyncadd (%p125_p5), [#allocation8], 4294957056  ;;  %s436_s10 = sand.u32 1, %s7633_s28   ;;  %s438_s12 = sand.u32 1, %s7527_s25  }
  0x7c   : > { %s7805_s22 = smul.u32 1344, %s438_s12  ;;  %s437_s17 = scalar_lea.sflag [#allocation3], %s436_s10 }
  0x7e   : > { %s7808_s14 = scalar_lea.vmem [#allocation9], %s7805_s22 }
  0x7f   : > { %7518 = dma.done.wait (%p7657_p8), %s437_s17, 64512  }
  0x80   : > { %7520 = vsyncadd (%p7657_p8), %s437_s17, 4294902784  ;;  %v12613_v0 = vmov 0.0   ;;  %v7815_v1 = vld [vmem:[#allocation4 + $0x78] sm:$0xff]  ;;  %v7817_v2 = vld [vmem:[#allocation4 + $0x70] sm:$0xff]  ;;  %s8299_s11 = scalar_lea.vmem [#allocation10], %s7805_s22  ;;  %vm1405_vm0 = vcmask 261120  }
  0x81   : > { %920 = vmatprep.subr.mxu0 %v12613_v0  ;;  %v7821_v3 = vld [vmem:[#allocation4 + $0x68] sm:$0xff]  ;;  %v7825_v4 = vld [vmem:[#allocation4 + $0x60] sm:$0xff]  ;;  %v7829_v5 = vld [vmem:[#allocation4 + $0x58] sm:$0xff]  ;;  %vm1791_vm1 = vcmask 1041409   ;;  %vm1794_vm2 = vcmask 1042434   ;;  %vm1797_vm3 = vcmask 1043459  }
  0x82   : > { %921 = vmatpush1.msra.mxu0 %v7815_v1  ;;  %v7833_v6 = vld [vmem:[#allocation4 + $0x50] sm:$0xff]  ;;  %v7837_v7 = vld [vmem:[#allocation4 + $0x48] sm:$0xff]  ;;  %v7842_v9 = vld [vmem:[#allocation4 + $0x40] sm:$0xff]  ;;  %vm1800_vm4 = vcmask 1044484   ;;  %vm1803_vm5 = vcmask 1045509   ;;  %vm1806_vm6 = vcmask 1046534  }
  0x83   : > { %922 = vmatprep.subr.mxu0 %v12613_v0  ;;  %v753_v8 = vld [vmem:[%s7808_s14 + $0x8] sm:$0xff]  ;;  %v7846_v10 = vld [vmem:[#allocation4 + $0x38] sm:$0xff]  ;;  %v7850_v11 = vld [vmem:[#allocation4 + $0x30] sm:$0xff]  ;;  %vm1809_vm7 = vcmask 1047559   ;;  %s9620_s27 = scalar_lea.vmem [#allocation11], %s7805_s22  ;;  %vm6139_vm8 = vcmask 1040384  }
  0x84   : > { %923 = vmatpush1.msra.mxu0 %v7817_v2  ;;  %984 = vmatprep.mubr.f32.mxu0 %v753_v8  ;;  %v7854_v12 = vld [vmem:[#allocation4 + $0x28] sm:$0xff]  ;;  %v7858_v13 = vld [vmem:[#allocation4 + $0x20] sm:$0xff]  ;;  %v7862_v14 = vld [vmem:[#allocation4 + $0x18] sm:$0xff]  ;;  %vm6145_vm9 = vcmask 1041408   ;;  %vm6151_vm10 = vcmask 1042432   ;;  %vm6157_vm11 = vcmask 1043456  }
  0x85   : > { %924 = vmatprep.subr.mxu0 %v12613_v0  ;;  %v7866_v15 = vld [vmem:[#allocation4 + $0x10] sm:$0xff]  ;;  %v7870_v16 = vld [vmem:[#allocation4 + $0x8] sm:$0xff]  ;;  %v7874_v17 = vld [vmem:[#allocation4] sm:$0xff]  ;;  %vm6163_vm12 = vcmask 1044480   ;;  %vm7573_vm13 = vmmov 0   ;;  %p498_p4 = scmp.lt.s32.totalorder %s7633_s28, 1 }
  0x86   : > { %925 = vmatpush1.msra.mxu0 %v7821_v3  ;;  %v7878_v18 = vld [vmem:[#allocation4 + $0xf8] sm:$0xff]  ;;  %v7882_v19 = vld [vmem:[#allocation4 + $0xf0] sm:$0xff]  ;;  %v7886_v20 = vld [vmem:[#allocation4 + $0xe8] sm:$0xff]  ;;  %vm6389_vm14 = vcmask 32768   ;;  %vm6391_vm15 = vcmask 33793  }
  0x87   : > { %926 = vmatprep.subr.mxu0 %v12613_v0  ;;  %v7890_v21 = vld [vmem:[#allocation4 + $0xe0] sm:$0xff]  ;;  %v7894_v22 = vld [vmem:[#allocation4 + $0xd8] sm:$0xff]  ;;  %v7898_v23 = vld [vmem:[#allocation4 + $0xd0] sm:$0xff]  ;;  %s13616_s28 = smov (!%p498_p4, %s7633_s28), 1 }
  0x88   : > { %927 = vmatpush1.msra.mxu0 %v7825_v4  ;;  %v7902_v24 = vld [vmem:[#allocation4 + $0xc8] sm:$0xff]  ;;  %v7906_v25 = vld [vmem:[#allocation4 + $0xc0] sm:$0xff]  ;;  %v7910_v26 = vld [vmem:[#allocation4 + $0xb8] sm:$0xff]  ;;  %s6567_s21 = sshll.u32 %s13616_s28, 2 }
  0x89   : > { %928 = vmatprep.subr.mxu0 %v12613_v0  ;;  %v7914_v27 = vld [vmem:[#allocation4 + $0xb0] sm:$0xff]  ;;  %v7918_v28 = vld [vmem:[#allocation4 + $0xa8] sm:$0xff]  ;;  %v7922_v29 = vld [vmem:[#allocation4 + $0xa0] sm:$0xff]  ;;  %s501_s13 = scalar_lea.vmem %s12612_s7, %s6567_s21 }
  0x8a   : > { %929 = vmatpush1.msra.mxu0 %v7829_v5  ;;  %v7926_v30 = vld [vmem:[#allocation4 + $0x98] sm:$0xff]  ;;  %v7930_v31 = vld [vmem:[#allocation4 + $0x90] sm:$0xff]  ;;  %v7934_v32 = vld [vmem:[#allocation4 + $0x88] sm:$0xff] }
  0x8b   : > { %930 = vmatprep.subr.mxu0 %v12613_v0  ;;  %v7938_v33 = vld [vmem:[#allocation4 + $0x80] sm:$0xff]  ;;  %v755_v35 = vld [vmem:[%s7808_s14 + $0x18] sm:$0xff]  ;;  %v754_v36 = vld [vmem:[%s7808_s14 + $0x10] sm:$0xff] }
  0x8c   : > { %931 = vmatpush1.msra.mxu0 %v7833_v6  ;;  %v752_v34 = vld [vmem:[%s7808_s14] sm:$0xff]  ;;  %v757_v37 = vld [vmem:[%s7808_s14 + $0x28] sm:$0xff]  ;;  %v759_v39 = vld [vmem:[%s7808_s14 + $0x38] sm:$0xff] }
  0x8d   : > { %932 = vmatprep.subr.mxu0 %v12613_v0  ;;  %v756_v38 = vld [vmem:[%s7808_s14 + $0x20] sm:$0xff]  ;;  %v758_v40 = vld [vmem:[%s7808_s14 + $0x30] sm:$0xff]  ;;  %v761_v41 = vld [vmem:[%s7808_s14 + $0x48] sm:$0xff] }
  0x8e   : > { %933 = vmatpush1.msra.mxu0 %v7837_v7  ;;  %v760_v42 = vld [vmem:[%s7808_s14 + $0x40] sm:$0xff]  ;;  %v763_v43 = vld [vmem:[%s7808_s14 + $0x58] sm:$0xff]  ;;  %v762_v44 = vld [vmem:[%s7808_s14 + $0x50] sm:$0xff] }
  0x8f   : > { %934 = vmatprep.subr.mxu0 %v12613_v0  ;;  %v765_v45 = vld [vmem:[%s7808_s14 + $0x68] sm:$0xff]  ;;  %v764_v46 = vld [vmem:[%s7808_s14 + $0x60] sm:$0xff]  ;;  %v767_v47 = vld [vmem:[%s7808_s14 + $0x78] sm:$0xff] }
  0x90   : > { %935 = vmatpush1.msra.mxu0 %v7842_v9  ;;  %v766_v48 = vld [vmem:[%s7808_s14 + $0x70] sm:$0xff]  ;;  %v769_v49 = vld [vmem:[%s7808_s14 + $0x88] sm:$0xff]  ;;  %v768_v50 = vld [vmem:[%s7808_s14 + $0x80] sm:$0xff] }
  0x91   : > { %936 = vmatprep.subr.mxu0 %v12613_v0  ;;  %v771_v51 = vld [vmem:[%s7808_s14 + $0x98] sm:$0xff]  ;;  %v770_v52 = vld [vmem:[%s7808_s14 + $0x90] sm:$0xff]  ;;  %v773_v53 = vld [vmem:[%s7808_s14 + $0xa8] sm:$0xff] }
  0x92   : > { %937 = vmatpush1.msra.mxu0 %v7846_v10  ;;  %v772_v54 = vld [vmem:[%s7808_s14 + $0xa0] sm:$0xff]  ;;  %v775_v55 = vld [vmem:[%s7808_s14 + $0xb8] sm:$0xff]  ;;  %v774_v56 = vld [vmem:[%s7808_s14 + $0xb0] sm:$0xff] }
  0x93   : > { %938 = vmatprep.subr.mxu0 %v12613_v0  ;;  %v777_v57 = vld [vmem:[%s7808_s14 + $0xc8] sm:$0xff]  ;;  %v776_v58 = vld [vmem:[%s7808_s14 + $0xc0] sm:$0xff]  ;;  %v779_v59 = vld [vmem:[%s7808_s14 + $0xd8] sm:$0xff] }
  0x94   : > { %939 = vmatpush1.msra.mxu0 %v7850_v11  ;;  %v778_v60 = vld [vmem:[%s7808_s14 + $0xd0] sm:$0xff]  ;;  %v781_v61 = vld [vmem:[%s7808_s14 + $0xe8] sm:$0xff]  ;;  %v780_v62 = vld [vmem:[%s7808_s14 + $0xe0] sm:$0xff] }
  0x95   : > { %940 = vmatprep.subr.mxu0 %v12613_v0  ;;  %v783_v63 = vld [vmem:[%s7808_s14 + $0xf8] sm:$0xff] }
  0x96   : > { %941 = vmatpush1.msra.mxu0 %v7854_v12  ;;  %v791_v8 = vld [vmem:[%s7808_s14 + $0x138] sm:$0xff] }
  0x97   : > { %942 = vmatprep.subr.mxu0 %v12613_v0 }
  0x98   : > { %943 = vmatpush1.msra.mxu0 %v7858_v13 }
  0x99   : > { %944 = vmatprep.subr.mxu0 %v12613_v0 }
  0x9a   : > { %945 = vmatpush1.msra.mxu0 %v7862_v14 }
  0x9b   : > { %946 = vmatprep.subr.mxu0 %v12613_v0 }
  0x9c   : > { %947 = vmatpush1.msra.mxu0 %v7866_v15 }
  0x9d   : > { %948 = vmatprep.subr.mxu0 %v12613_v0 }
  0x9e   : > { %949 = vmatpush1.msra.mxu0 %v7870_v16 }
  0x9f   : > { %950 = vmatprep.subr.mxu0 %v12613_v0 }
  0xa0   : > { %951 = vmatpush1.msra.mxu0 %v7874_v17 }
  0xa1   : > { %952 = vmatprep.subr.mxu0 %v12613_v0 }
  0xa2   : > { %953 = vmatpush2.msra.mxu0 %v7878_v18 }
  0xa3   : > { %954 = vmatprep.subr.mxu0 %v12613_v0 }
  0xa4   : > { %955 = vmatpush2.msra.mxu0 %v7882_v19 }
  0xa5   : > { %956 = vmatprep.subr.mxu0 %v12613_v0 }
  0xa6   : > { %957 = vmatpush2.msra.mxu0 %v7886_v20 }
  0xa7   : > { %958 = vmatprep.subr.mxu0 %v12613_v0 }
  0xa8   : > { %959 = vmatpush2.msra.mxu0 %v7890_v21 }
  0xa9   : > { %960 = vmatprep.subr.mxu0 %v12613_v0 }
  0xaa   : > { %961 = vmatpush2.msra.mxu0 %v7894_v22 }
  0xab   : > { %962 = vmatprep.subr.mxu0 %v12613_v0 }
  0xac   : > { %963 = vmatpush2.msra.mxu0 %v7898_v23 }
  0xad   : > { %964 = vmatprep.subr.mxu0 %v12613_v0 }
  0xae   : > { %965 = vmatpush2.msra.mxu0 %v7902_v24 }
  0xaf   : > { %966 = vmatprep.subr.mxu0 %v12613_v0 }
  0xb0   : > { %967 = vmatpush2.msra.mxu0 %v7906_v25 }
  0xb1   : > { %968 = vmatprep.subr.mxu0 %v12613_v0 }
  0xb2   : > { %969 = vmatpush2.msra.mxu0 %v7910_v26 }
  0xb3   : > { %970 = vmatprep.subr.mxu0 %v12613_v0 }
  0xb4   : > { %971 = vmatpush2.msra.mxu0 %v7914_v27 }
  0xb5   : > { %972 = vmatprep.subr.mxu0 %v12613_v0 }
  0xb6   : > { %973 = vmatpush2.msra.mxu0 %v7918_v28 }
  0xb7   : > { %974 = vmatprep.subr.mxu0 %v12613_v0 }
  0xb8   : > { %975 = vmatpush2.msra.mxu0 %v7922_v29 }
  0xb9   : > { %976 = vmatprep.subr.mxu0 %v12613_v0 }
  0xba   : > { %977 = vmatpush2.msra.mxu0 %v7926_v30 }
  0xbb   : > { %978 = vmatprep.subr.mxu0 %v12613_v0 }
  0xbc   : > { %979 = vmatpush2.msra.mxu0 %v7930_v31 }
  0xbd   : > { %980 = vmatprep.subr.mxu0 %v12613_v0 }
  0xbe   : > { %981 = vmatpush2.msra.mxu0 %v7934_v32 }
  0xbf   : > { %982 = vmatprep.subr.mxu0 %v12613_v0 }
  0xc0   : > { %983 = vmatpush2.msra.mxu0 %v7938_v33 }
  0xc1   : > { %985 = vmatmul.mubr.f32.vlgmr.msra.gmra.mxu0 %v752_v34  ;;  %3847 = vmatprep.subr.mxu0 %v12613_v0  ;;  %v817_v34 = vld [vmem:[%s7808_s14 + $0x208] sm:$0xff] }
  0xc2   : > { %989 = vmatprep.mubr.f32.mxu0 %v755_v35  ;;  %3848 = vmatpush1.msra.mxu0 %v7815_v1  ;;  %v782_v1 = vld [vmem:[%s7808_s14 + $0xf0] sm:$0xff]  ;;  %v816_v35 = vld [vmem:[%s7808_s14 + $0x200] sm:$0xff] }
  0xc3   : > { %3849 = vmatprep.subr.mxu0 %v12613_v0 }
  0xc4   : > { %3850 = vmatpush1.msra.mxu0 %v7817_v2  ;;  %v785_v2 = vld [vmem:[%s7808_s14 + $0x108] sm:$0xff] }
  0xc5   : > { %990 = vmatmul.mubr.f32.gmra.mxu0 %v754_v36  ;;  %3851 = vmatprep.subr.mxu0 %v12613_v0  ;;  %v819_v36 = vld [vmem:[%s7808_s14 + $0x218] sm:$0xff] }
  0xc6   : > { %994 = vmatprep.mubr.f32.mxu0 %v757_v37  ;;  %3852 = vmatpush1.msra.mxu0 %v7821_v3  ;;  %v784_v3 = vld [vmem:[%s7808_s14 + $0x100] sm:$0xff]  ;;  %v818_v37 = vld [vmem:[%s7808_s14 + $0x210] sm:$0xff] }
  0xc7   : > { %3853 = vmatprep.subr.mxu0 %v12613_v0 }
  0xc8   : > { %3854 = vmatpush1.msra.mxu0 %v7825_v4  ;;  %v787_v4 = vld [vmem:[%s7808_s14 + $0x118] sm:$0xff] }
  0xc9   : > { %995 = vmatmul.mubr.f32.gmra.mxu0 %v756_v38  ;;  %3855 = vmatprep.subr.mxu0 %v12613_v0  ;;  %v821_v38 = vld [vmem:[%s7808_s14 + $0x228] sm:$0xff] }
  0xca   : > { %999 = vmatprep.mubr.f32.mxu0 %v759_v39  ;;  %3856 = vmatpush1.msra.mxu0 %v7829_v5  ;;  %v786_v5 = vld [vmem:[%s7808_s14 + $0x110] sm:$0xff]  ;;  %v820_v39 = vld [vmem:[%s7808_s14 + $0x220] sm:$0xff] }
  0xcb   : > { %3857 = vmatprep.subr.mxu0 %v12613_v0 }
  0xcc   : > { %3858 = vmatpush1.msra.mxu0 %v7833_v6  ;;  %v789_v6 = vld [vmem:[%s7808_s14 + $0x128] sm:$0xff] }
  0xcd   : > { %1000 = vmatmul.mubr.f32.gmra.mxu0 %v758_v40  ;;  %3859 = vmatprep.subr.mxu0 %v12613_v0  ;;  %v823_v40 = vld [vmem:[%s7808_s14 + $0x238] sm:$0xff] }
  0xce   : > { %1004 = vmatprep.mubr.f32.mxu0 %v761_v41  ;;  %3860 = vmatpush1.msra.mxu0 %v7837_v7  ;;  %v788_v7 = vld [vmem:[%s7808_s14 + $0x120] sm:$0xff]  ;;  %v822_v41 = vld [vmem:[%s7808_s14 + $0x230] sm:$0xff] }
  0xcf   : > { %3861 = vmatprep.subr.mxu0 %v12613_v0 }
  0xd0   : > { %3862 = vmatpush1.msra.mxu0 %v7842_v9  ;;  %v790_v9 = vld [vmem:[%s7808_s14 + $0x130] sm:$0xff] }
  0xd1   : > { %1005 = vmatmul.mubr.f32.gmra.mxu0 %v760_v42  ;;  %3863 = vmatprep.subr.mxu0 %v12613_v0  ;;  %v825_v42 = vld [vmem:[%s7808_s14 + $0x248] sm:$0xff] }
  0xd2   : > { %1009 = vmatprep.mubr.f32.mxu0 %v763_v43  ;;  %3864 = vmatpush1.msra.mxu0 %v7846_v10  ;;  %v793_v10 = vld [vmem:[%s7808_s14 + $0x148] sm:$0xff]  ;;  %v824_v43 = vld [vmem:[%s7808_s14 + $0x240] sm:$0xff] }
  0xd3   : > { %3865 = vmatprep.subr.mxu0 %v12613_v0 }
  0xd4   : > { %3866 = vmatpush1.msra.mxu0 %v7850_v11  ;;  %v792_v11 = vld [vmem:[%s7808_s14 + $0x140] sm:$0xff] }
  0xd5   : > { %1010 = vmatmul.mubr.f32.gmra.mxu0 %v762_v44  ;;  %3867 = vmatprep.subr.mxu0 %v12613_v0  ;;  %v827_v44 = vld [vmem:[%s7808_s14 + $0x258] sm:$0xff] }
  0xd6   : > { %1014 = vmatprep.mubr.f32.mxu0 %v765_v45  ;;  %3868 = vmatpush1.msra.mxu0 %v7854_v12  ;;  %v795_v12 = vld [vmem:[%s7808_s14 + $0x158] sm:$0xff]  ;;  %v826_v45 = vld [vmem:[%s7808_s14 + $0x250] sm:$0xff] }
  0xd7   : > { %3869 = vmatprep.subr.mxu0 %v12613_v0 }
  0xd8   : > { %3870 = vmatpush1.msra.mxu0 %v7858_v13  ;;  %v794_v13 = vld [vmem:[%s7808_s14 + $0x150] sm:$0xff] }
  0xd9   : > { %1015 = vmatmul.mubr.f32.gmra.mxu0 %v764_v46  ;;  %3871 = vmatprep.subr.mxu0 %v12613_v0  ;;  %v829_v46 = vld [vmem:[%s7808_s14 + $0x268] sm:$0xff] }
  0xda   : > { %1019 = vmatprep.mubr.f32.mxu0 %v767_v47  ;;  %3872 = vmatpush1.msra.mxu0 %v7862_v14  ;;  %v797_v14 = vld [vmem:[%s7808_s14 + $0x168] sm:$0xff]  ;;  %v828_v47 = vld [vmem:[%s7808_s14 + $0x260] sm:$0xff] }
  0xdb   : > { %3873 = vmatprep.subr.mxu0 %v12613_v0 }
  0xdc   : > { %3874 = vmatpush1.msra.mxu0 %v7866_v15  ;;  %v796_v15 = vld [vmem:[%s7808_s14 + $0x160] sm:$0xff] }
  0xdd   : > { %1020 = vmatmul.mubr.f32.gmra.mxu0 %v766_v48  ;;  %3875 = vmatprep.subr.mxu0 %v12613_v0  ;;  %v831_v48 = vld [vmem:[%s7808_s14 + $0x278] sm:$0xff] }
  0xde   : > { %1024 = vmatprep.mubr.f32.mxu0 %v769_v49  ;;  %3876 = vmatpush1.msra.mxu0 %v7870_v16  ;;  %v799_v16 = vld [vmem:[%s7808_s14 + $0x178] sm:$0xff]  ;;  %v830_v49 = vld [vmem:[%s7808_s14 + $0x270] sm:$0xff] }
  0xdf   : > { %3877 = vmatprep.subr.mxu0 %v12613_v0 }
  0xe0   : > { %3878 = vmatpush1.msra.mxu0 %v7874_v17  ;;  %v798_v17 = vld [vmem:[%s7808_s14 + $0x170] sm:$0xff] }
  0xe1   : > { %1025 = vmatmul.mubr.f32.gmra.mxu0 %v768_v50  ;;  %3879 = vmatprep.subr.mxu0 %v12613_v0  ;;  %v833_v50 = vld [vmem:[%s7808_s14 + $0x288] sm:$0xff] }
  0xe2   : > { %1029 = vmatprep.mubr.f32.mxu0 %v771_v51  ;;  %3880 = vmatpush2.msra.mxu0 %v7878_v18  ;;  %v801_v18 = vld [vmem:[%s7808_s14 + $0x188] sm:$0xff]  ;;  %v832_v51 = vld [vmem:[%s7808_s14 + $0x280] sm:$0xff] }
  0xe3   : > { %3881 = vmatprep.subr.mxu0 %v12613_v0 }
  0xe4   : > { %3882 = vmatpush2.msra.mxu0 %v7882_v19  ;;  %v800_v19 = vld [vmem:[%s7808_s14 + $0x180] sm:$0xff] }
  0xe5   : > { %1030 = vmatmul.mubr.f32.gmra.mxu0 %v770_v52  ;;  %3883 = vmatprep.subr.mxu0 %v12613_v0  ;;  %v835_v52 = vld [vmem:[%s7808_s14 + $0x298] sm:$0xff] }
  0xe6   : > { %1034 = vmatprep.mubr.f32.mxu0 %v773_v53  ;;  %3884 = vmatpush2.msra.mxu0 %v7886_v20  ;;  %v803_v20 = vld [vmem:[%s7808_s14 + $0x198] sm:$0xff]  ;;  %v834_v53 = vld [vmem:[%s7808_s14 + $0x290] sm:$0xff] }
  0xe7   : > { %3885 = vmatprep.subr.mxu0 %v12613_v0 }
  0xe8   : > { %3886 = vmatpush2.msra.mxu0 %v7890_v21  ;;  %v802_v21 = vld [vmem:[%s7808_s14 + $0x190] sm:$0xff] }
  0xe9   : > { %1035 = vmatmul.mubr.f32.gmra.mxu0 %v772_v54  ;;  %3887 = vmatprep.subr.mxu0 %v12613_v0  ;;  %v837_v54 = vld [vmem:[%s7808_s14 + $0x2a8] sm:$0xff] }
  0xea   : > { %1039 = vmatprep.mubr.f32.mxu0 %v775_v55  ;;  %3888 = vmatpush2.msra.mxu0 %v7894_v22  ;;  %v805_v22 = vld [vmem:[%s7808_s14 + $0x1a8] sm:$0xff]  ;;  %v836_v55 = vld [vmem:[%s7808_s14 + $0x2a0] sm:$0xff] }
  0xeb   : > { %3889 = vmatprep.subr.mxu0 %v12613_v0 }
  0xec   : > { %3890 = vmatpush2.msra.mxu0 %v7898_v23  ;;  %v804_v23 = vld [vmem:[%s7808_s14 + $0x1a0] sm:$0xff] }
  0xed   : > { %1040 = vmatmul.mubr.f32.gmra.mxu0 %v774_v56  ;;  %3891 = vmatprep.subr.mxu0 %v12613_v0  ;;  %v839_v56 = vld [vmem:[%s7808_s14 + $0x2b8] sm:$0xff] }
  0xee   : > { %1044 = vmatprep.mubr.f32.mxu0 %v777_v57  ;;  %3892 = vmatpush2.msra.mxu0 %v7902_v24  ;;  %v807_v24 = vld [vmem:[%s7808_s14 + $0x1b8] sm:$0xff]  ;;  %v838_v57 = vld [vmem:[%s7808_s14 + $0x2b0] sm:$0xff] }
  0xef   : > { %3893 = vmatprep.subr.mxu0 %v12613_v0 }
  0xf0   : > { %3894 = vmatpush2.msra.mxu0 %v7906_v25  ;;  %v806_v25 = vld [vmem:[%s7808_s14 + $0x1b0] sm:$0xff] }
  0xf1   : > { %1045 = vmatmul.mubr.f32.gmra.mxu0 %v776_v58  ;;  %3895 = vmatprep.subr.mxu0 %v12613_v0  ;;  %v841_v58 = vld [vmem:[%s7808_s14 + $0x2c8] sm:$0xff] }
  0xf2   : > { %1049 = vmatprep.mubr.f32.mxu0 %v779_v59  ;;  %3896 = vmatpush2.msra.mxu0 %v7910_v26  ;;  %v809_v26 = vld [vmem:[%s7808_s14 + $0x1c8] sm:$0xff]  ;;  %v840_v59 = vld [vmem:[%s7808_s14 + $0x2c0] sm:$0xff] }
  0xf3   : > { %3897 = vmatprep.subr.mxu0 %v12613_v0 }
  0xf4   : > { %3898 = vmatpush2.msra.mxu0 %v7914_v27  ;;  %v808_v27 = vld [vmem:[%s7808_s14 + $0x1c0] sm:$0xff] }
  0xf5   : > { %1050 = vmatmul.mubr.f32.gmra.mxu0 %v778_v60  ;;  %3899 = vmatprep.subr.mxu0 %v12613_v0  ;;  %v843_v60 = vld [vmem:[%s7808_s14 + $0x2d8] sm:$0xff] }
  0xf6   : > { %1054 = vmatprep.mubr.f32.mxu0 %v781_v61  ;;  %3900 = vmatpush2.msra.mxu0 %v7918_v28  ;;  %v811_v28 = vld [vmem:[%s7808_s14 + $0x1d8] sm:$0xff]  ;;  %v842_v61 = vld [vmem:[%s7808_s14 + $0x2d0] sm:$0xff] }
  0xf7   : > { %3901 = vmatprep.subr.mxu0 %v12613_v0 }
  0xf8   : > { %3902 = vmatpush2.msra.mxu0 %v7922_v29  ;;  %v810_v29 = vld [vmem:[%s7808_s14 + $0x1d0] sm:$0xff] }
  0xf9   : > { %1055 = vmatmul.mubr.f32.gmra.mxu0 %v780_v62  ;;  %3903 = vmatprep.subr.mxu0 %v12613_v0  ;;  %v845_v62 = vld [vmem:[%s7808_s14 + $0x2e8] sm:$0xff] }
  0xfa   : > { %1059 = vmatprep.mubr.f32.mxu0 %v783_v63  ;;  %3904 = vmatpush2.msra.mxu0 %v7926_v30  ;;  %v813_v30 = vld [vmem:[%s7808_s14 + $0x1e8] sm:$0xff]  ;;  %v844_v63 = vld [vmem:[%s7808_s14 + $0x2e0] sm:$0xff] }
  0xfb   : > { %3905 = vmatprep.subr.mxu0 %v12613_v0 }
  0xfc   : > { %3906 = vmatpush2.msra.mxu0 %v7930_v31  ;;  %v812_v31 = vld [vmem:[%s7808_s14 + $0x1e0] sm:$0xff] }
  0xfd   : > { %1060 = vmatmul.mubr.f32.gmra.mxu0 %v782_v1  ;;  %3907 = vmatprep.subr.mxu0 %v12613_v0  ;;  %v847_v1 = vld [vmem:[%s7808_s14 + $0x2f8] sm:$0xff] }
  0xfe   : > { %1064 = vmatprep.mubr.f32.mxu0 %v785_v2  ;;  %3908 = vmatpush2.msra.mxu0 %v7934_v32  ;;  %v815_v32 = vld [vmem:[%s7808_s14 + $0x1f8] sm:$0xff]  ;;  %v846_v2 = vld [vmem:[%s7808_s14 + $0x2f0] sm:$0xff] }
  0xff   : > { %3909 = vmatprep.subr.mxu0 %v12613_v0 }
 0x100   : > { %3910 = vmatpush2.msra.mxu0 %v7938_v33  ;;  %v814_v33 = vld [vmem:[%s7808_s14 + $0x1f0] sm:$0xff] }
 0x101   : > { %1065 = vmatmul.mubr.f32.gmra.mxu0 %v784_v3  ;;  %v849_v3 = vld [vmem:[%s7808_s14 + $0x308] sm:$0xff] }
 0x102   : > { %1069 = vmatprep.mubr.f32.mxu0 %v787_v4  ;;  %v848_v4 = vld [vmem:[%s7808_s14 + $0x300] sm:$0xff] }
 0x105   : > { %1070 = vmatmul.mubr.f32.gmra.mxu0 %v786_v5  ;;  %v851_v5 = vld [vmem:[%s7808_s14 + $0x318] sm:$0xff] }
 0x106   : > { %1074 = vmatprep.mubr.f32.mxu0 %v789_v6 }
 0x109   : > { %1075 = vmatmul.mubr.f32.gmra.mxu0 %v788_v7  ;;  %v850_v7 = vld [vmem:[%s7808_s14 + $0x310] sm:$0xff] }
 0x10a   : > { %1079 = vmatprep.mubr.f32.mxu0 %v791_v8 }
 0x10d   : > { %1080 = vmatmul.mubr.f32.gmra.mxu0 %v790_v9  ;;  %v853_v9 = vld [vmem:[%s7808_s14 + $0x328] sm:$0xff] }
 0x10e   : > { %1084 = vmatprep.mubr.f32.mxu0 %v793_v10 }
 0x111   : > { %1085 = vmatmul.mubr.f32.gmra.mxu0 %v792_v11  ;;  %v852_v11 = vld [vmem:[%s7808_s14 + $0x320] sm:$0xff] }
 0x112   : > { %1089 = vmatprep.mubr.f32.mxu0 %v795_v12 }
 0x115   : > { %1090 = vmatmul.mubr.f32.gmra.mxu0 %v794_v13  ;;  %v855_v13 = vld [vmem:[%s7808_s14 + $0x338] sm:$0xff] }
 0x116   : > { %1094 = vmatprep.mubr.f32.mxu0 %v797_v14 }
 0x119   : > { %1095 = vmatmul.mubr.f32.gmra.mxu0 %v796_v15  ;;  %v854_v15 = vld [vmem:[%s7808_s14 + $0x330] sm:$0xff] }
 0x11a   : > { %1099 = vmatprep.mubr.f32.mxu0 %v799_v16 }
 0x11d   : > { %1100 = vmatmul.mubr.f32.gmra.mxu0 %v798_v17  ;;  %v857_v17 = vld [vmem:[%s7808_s14 + $0x348] sm:$0xff] }
 0x11e   : > { %1104 = vmatprep.mubr.f32.mxu0 %v801_v18 }
 0x121   : > { %1105 = vmatmul.mubr.f32.gmra.mxu0 %v800_v19  ;;  %v856_v19 = vld [vmem:[%s7808_s14 + $0x340] sm:$0xff] }
 0x122   : > { %1109 = vmatprep.mubr.f32.mxu0 %v803_v20 }
 0x125   : > { %1110 = vmatmul.mubr.f32.gmra.mxu0 %v802_v21  ;;  %v859_v21 = vld [vmem:[%s7808_s14 + $0x358] sm:$0xff] }
 0x126   : > { %1114 = vmatprep.mubr.f32.mxu0 %v805_v22 }
 0x129   : > { %1115 = vmatmul.mubr.f32.gmra.mxu0 %v804_v23  ;;  %v858_v23 = vld [vmem:[%s7808_s14 + $0x350] sm:$0xff] }
 0x12a   : > { %1119 = vmatprep.mubr.f32.mxu0 %v807_v24 }
 0x12d   : > { %1120 = vmatmul.mubr.f32.gmra.mxu0 %v806_v25  ;;  %v861_v25 = vld [vmem:[%s7808_s14 + $0x368] sm:$0xff] }
 0x12e   : > { %1124 = vmatprep.mubr.f32.mxu0 %v809_v26 }
 0x131   : > { %1125 = vmatmul.mubr.f32.gmra.mxu0 %v808_v27  ;;  %v860_v27 = vld [vmem:[%s7808_s14 + $0x360] sm:$0xff] }
 0x132   : > { %1129 = vmatprep.mubr.f32.mxu0 %v811_v28 }
 0x135   : > { %1130 = vmatmul.mubr.f32.gmra.mxu0 %v810_v29  ;;  %v863_v29 = vld [vmem:[%s7808_s14 + $0x378] sm:$0xff] }
 0x136   : > { %1134 = vmatprep.mubr.f32.mxu0 %v813_v30 }
 0x139   : > { %1135 = vmatmul.mubr.f32.gmra.mxu0 %v812_v31  ;;  %v862_v31 = vld [vmem:[%s7808_s14 + $0x370] sm:$0xff] }
 0x13a   : > { %1139 = vmatprep.mubr.f32.mxu0 %v815_v32 }
 0x13d   : > { %1140 = vmatmul.mubr.f32.gmra.mxu0 %v814_v33  ;;  %v865_v33 = vld [vmem:[%s7808_s14 + $0x388] sm:$0xff] }
 0x13e   : > { %1144 = vmatprep.mubr.f32.mxu0 %v817_v34 }
 0x141   : > { %1145 = vmatmul.mubr.f32.gmra.mxu0 %v816_v35  ;;  %v864_v35 = vld [vmem:[%s7808_s14 + $0x380] sm:$0xff] }
 0x142   : > { %1149 = vmatprep.mubr.f32.mxu0 %v819_v36 }
 0x145   : > { %1150 = vmatmul.mubr.f32.gmra.mxu0 %v818_v37  ;;  %v867_v37 = vld [vmem:[%s7808_s14 + $0x398] sm:$0xff] }
 0x146   : > { %1154 = vmatprep.mubr.f32.mxu0 %v821_v38 }
 0x149   : > { %1155 = vmatmul.mubr.f32.gmra.mxu0 %v820_v39  ;;  %v866_v39 = vld [vmem:[%s7808_s14 + $0x390] sm:$0xff] }
 0x14a   : > { %1159 = vmatprep.mubr.f32.mxu0 %v823_v40 }
 0x14d   : > { %1160 = vmatmul.mubr.f32.gmra.mxu0 %v822_v41  ;;  %v869_v41 = vld [vmem:[%s7808_s14 + $0x3a8] sm:$0xff] }
 0x14e   : > { %1164 = vmatprep.mubr.f32.mxu0 %v825_v42 }
 0x151   : > { %1165 = vmatmul.mubr.f32.gmra.mxu0 %v824_v43  ;;  %v868_v43 = vld [vmem:[%s7808_s14 + $0x3a0] sm:$0xff] }
 0x152   : > { %1169 = vmatprep.mubr.f32.mxu0 %v827_v44 }
 0x155   : > { %1170 = vmatmul.mubr.f32.gmra.mxu0 %v826_v45  ;;  %v871_v45 = vld [vmem:[%s7808_s14 + $0x3b8] sm:$0xff] }
 0x156   : > { %1174 = vmatprep.mubr.f32.mxu0 %v829_v46 }
 0x159   : > { %1175 = vmatmul.mubr.f32.gmra.mxu0 %v828_v47  ;;  %v870_v47 = vld [vmem:[%s7808_s14 + $0x3b0] sm:$0xff] }
 0x15a   : > { %1179 = vmatprep.mubr.f32.mxu0 %v831_v48 }
 0x15d   : > { %1180 = vmatmul.mubr.f32.gmra.mxu0 %v830_v49  ;;  %v873_v49 = vld [vmem:[%s7808_s14 + $0x3c8] sm:$0xff] }
 0x15e   : > { %1184 = vmatprep.mubr.f32.mxu0 %v833_v50 }
 0x161   : > { %1185 = vmatmul.mubr.f32.gmra.mxu0 %v832_v51  ;;  %v872_v51 = vld [vmem:[%s7808_s14 + $0x3c0] sm:$0xff] }
 0x162   : > { %1189 = vmatprep.mubr.f32.mxu0 %v835_v52 }
 0x165   : > { %1190 = vmatmul.mubr.f32.gmra.mxu0 %v834_v53  ;;  %v875_v53 = vld [vmem:[%s7808_s14 + $0x3d8] sm:$0xff] }
 0x166   : > { %1194 = vmatprep.mubr.f32.mxu0 %v837_v54 }
 0x169   : > { %1195 = vmatmul.mubr.f32.gmra.mxu0 %v836_v55  ;;  %v874_v55 = vld [vmem:[%s7808_s14 + $0x3d0] sm:$0xff] }
 0x16a   : > { %1199 = vmatprep.mubr.f32.mxu0 %v839_v56 }
 0x16d   : > { %1200 = vmatmul.mubr.f32.gmra.mxu0 %v838_v57  ;;  %v877_v57 = vld [vmem:[%s7808_s14 + $0x3e8] sm:$0xff] }
 0x16e   : > { %1204 = vmatprep.mubr.f32.mxu0 %v841_v58 }
 0x171   : > { %1205 = vmatmul.mubr.f32.gmra.mxu0 %v840_v59  ;;  %v876_v59 = vld [vmem:[%s7808_s14 + $0x3e0] sm:$0xff] }
 0x172   : > { %1209 = vmatprep.mubr.f32.mxu0 %v843_v60 }
 0x175   : > { %1210 = vmatmul.mubr.f32.gmra.mxu0 %v842_v61  ;;  %v879_v61 = vld [vmem:[%s7808_s14 + $0x3f8] sm:$0xff] }
 0x176   : > { %1214 = vmatprep.mubr.f32.mxu0 %v845_v62 }
 0x179   : > { %1215 = vmatmul.mubr.f32.gmra.mxu0 %v844_v63  ;;  %v878_v63 = vld [vmem:[%s7808_s14 + $0x3f0] sm:$0xff] }
 0x17a   : > { %1219 = vmatprep.mubr.f32.mxu0 %v847_v1 }
 0x17d   : > { %1220 = vmatmul.mubr.f32.gmra.mxu0 %v846_v2  ;;  %v881_v2 = vld [vmem:[%s7808_s14 + $0x408] sm:$0xff] }
 0x17e   : > { %1224 = vmatprep.mubr.f32.mxu0 %v849_v3 }
 0x181   : > { %v8105_v6 = vpop.f32.mrf.mxu0  ;;  %1225 = vmatmul.mubr.f32.gmra.mxu0 %v848_v4  ;;  %v880_v4 = vld [vmem:[%s7808_s14 + $0x400] sm:$0xff] }
 0x182   : > { %1229 = vmatprep.mubr.f32.mxu0 %v851_v5 }
 0x183   : > { %v988_v8 = vpop.f32.mrf.mxu0 }
 0x185   : > { %v8109_v10 = vpop.f32.mrf.mxu0  ;;  %1230 = vmatmul.mubr.f32.gmra.mxu0 %v850_v7  ;;  %v883_v7 = vld [vmem:[%s7808_s14 + $0x418] sm:$0xff] }
 0x186   : > { %1234 = vmatprep.mubr.f32.mxu0 %v853_v9  ;;  %v882_v9 = vld [vmem:[%s7808_s14 + $0x410] sm:$0xff] }
 0x187   : > { %v993_v12 = vpop.f32.mrf.mxu0 }
 0x188   : > { %v885_v12 = vld [vmem:[%s7808_s14 + $0x428] sm:$0xff] }
 0x189   : > { %v8113_v14 = vpop.f32.mrf.mxu0  ;;  %1235 = vmatmul.mubr.f32.gmra.mxu0 %v852_v11 }
 0x18a   : > { %1239 = vmatprep.mubr.f32.mxu0 %v855_v13 }
 0x18b   : > { %v998_v16 = vpop.f32.mrf.mxu0 }
 0x18d   : > { %v8117_v18 = vpop.f32.mrf.mxu0  ;;  %1240 = vmatmul.mubr.f32.gmra.mxu0 %v854_v15  ;;  %v884_v15 = vld [vmem:[%s7808_s14 + $0x420] sm:$0xff] }
 0x18e   : > { %1244 = vmatprep.mubr.f32.mxu0 %v857_v17  ;;  %v887_v17 = vld [vmem:[%s7808_s14 + $0x438] sm:$0xff] }
 0x18f   : > { %v1003_v20 = vpop.f32.mrf.mxu0 }
 0x190   : > { %v886_v20 = vld [vmem:[%s7808_s14 + $0x430] sm:$0xff] }
 0x191   : > { %v8121_v22 = vpop.f32.mrf.mxu0  ;;  %1245 = vmatmul.mubr.f32.gmra.mxu0 %v856_v19 }
 0x192   : > { %1249 = vmatprep.mubr.f32.mxu0 %v859_v21 }
 0x193   : > { %v1008_v24 = vpop.f32.mrf.mxu0 }
 0x195   : > { %v8125_v26 = vpop.f32.mrf.mxu0  ;;  %1250 = vmatmul.mubr.f32.gmra.mxu0 %v858_v23  ;;  %v889_v23 = vld [vmem:[%s7808_s14 + $0x448] sm:$0xff] }
 0x196   : > { %1254 = vmatprep.mubr.f32.mxu0 %v861_v25  ;;  %v888_v25 = vld [vmem:[%s7808_s14 + $0x440] sm:$0xff] }
 0x197   : > { %v1013_v28 = vpop.f32.mrf.mxu0 }
 0x198   : > { %v891_v28 = vld [vmem:[%s7808_s14 + $0x458] sm:$0xff] }
 0x199   : > { %v8129_v30 = vpop.f32.mrf.mxu0  ;;  %1255 = vmatmul.mubr.f32.gmra.mxu0 %v860_v27 }
 0x19a   : > { %1259 = vmatprep.mubr.f32.mxu0 %v863_v29 }
 0x19b   : > { %v1018_v32 = vpop.f32.mrf.mxu0 }
 0x19d   : > { %v8133_v34 = vpop.f32.mrf.mxu0  ;;  %1260 = vmatmul.mubr.f32.gmra.mxu0 %v862_v31  ;;  %v890_v31 = vld [vmem:[%s7808_s14 + $0x450] sm:$0xff] }
 0x19e   : > { %1264 = vmatprep.mubr.f32.mxu0 %v865_v33  ;;  %v893_v33 = vld [vmem:[%s7808_s14 + $0x468] sm:$0xff] }
 0x19f   : > { %v1023_v36 = vpop.f32.mrf.mxu0 }
 0x1a0   : > { %v892_v36 = vld [vmem:[%s7808_s14 + $0x460] sm:$0xff] }
 0x1a1   : > { %v8137_v38 = vpop.f32.mrf.mxu0  ;;  %1265 = vmatmul.mubr.f32.gmra.mxu0 %v864_v35 }
 0x1a2   : > { %1269 = vmatprep.mubr.f32.mxu0 %v867_v37 }
 0x1a3   : > { %v1028_v40 = vpop.f32.mrf.mxu0 }
 0x1a5   : > { %v8141_v42 = vpop.f32.mrf.mxu0  ;;  %1270 = vmatmul.mubr.f32.gmra.mxu0 %v866_v39  ;;  %v895_v39 = vld [vmem:[%s7808_s14 + $0x478] sm:$0xff] }
 0x1a6   : > { %1274 = vmatprep.mubr.f32.mxu0 %v869_v41  ;;  %v894_v41 = vld [vmem:[%s7808_s14 + $0x470] sm:$0xff] }
 0x1a7   : > { %v1033_v44 = vpop.f32.mrf.mxu0 }
 0x1a8   : > { %v897_v44 = vld [vmem:[%s7808_s14 + $0x488] sm:$0xff] }
 0x1a9   : > { %v8145_v46 = vpop.f32.mrf.mxu0  ;;  %1275 = vmatmul.mubr.f32.gmra.mxu0 %v868_v43 }
 0x1aa   : > { %1279 = vmatprep.mubr.f32.mxu0 %v871_v45 }
 0x1ab   : > { %v1038_v48 = vpop.f32.mrf.mxu0 }
 0x1ad   : > { %v8149_v50 = vpop.f32.mrf.mxu0  ;;  %1280 = vmatmul.mubr.f32.gmra.mxu0 %v870_v47  ;;  %v896_v47 = vld [vmem:[%s7808_s14 + $0x480] sm:$0xff] }
 0x1ae   : > { %1284 = vmatprep.mubr.f32.mxu0 %v873_v49  ;;  %v899_v49 = vld [vmem:[%s7808_s14 + $0x498] sm:$0xff] }
 0x1af   : > { %v1043_v52 = vpop.f32.mrf.mxu0 }
 0x1b0   : > { %v898_v52 = vld [vmem:[%s7808_s14 + $0x490] sm:$0xff] }
 0x1b1   : > { %v8153_v54 = vpop.f32.mrf.mxu0  ;;  %1285 = vmatmul.mubr.f32.gmra.mxu0 %v872_v51 }
 0x1b2   : > { %1289 = vmatprep.mubr.f32.mxu0 %v875_v53 }
 0x1b3   : > { %v1048_v56 = vpop.f32.mrf.mxu0 }
 0x1b5   : > { %v8157_v58 = vpop.f32.mrf.mxu0  ;;  %1290 = vmatmul.mubr.f32.gmra.mxu0 %v874_v55  ;;  %v901_v55 = vld [vmem:[%s7808_s14 + $0x4a8] sm:$0xff] }
 0x1b6   : > { %1294 = vmatprep.mubr.f32.mxu0 %v877_v57  ;;  %v900_v57 = vld [vmem:[%s7808_s14 + $0x4a0] sm:$0xff] }
 0x1b7   : > { %v1053_v60 = vpop.f32.mrf.mxu0 }
 0x1b8   : > { %v903_v60 = vld [vmem:[%s7808_s14 + $0x4b8] sm:$0xff] }
 0x1b9   : > { %v8161_v62 = vpop.f32.mrf.mxu0  ;;  %1295 = vmatmul.mubr.f32.gmra.mxu0 %v876_v59 }
 0x1ba   : > { %1299 = vmatprep.mubr.f32.mxu0 %v879_v61 }
 0x1bb   : > { %v1058_v1 = vpop.f32.mrf.mxu0 }
 0x1bd   : > { %v8165_v3 = vpop.f32.mrf.mxu0  ;;  %1300 = vmatmul.mubr.f32.gmra.mxu0 %v878_v63  ;;  %v902_v63 = vld [vmem:[%s7808_s14 + $0x4b0] sm:$0xff] }
 0x1be   : > { %1304 = vmatprep.mubr.f32.mxu0 %v881_v2  ;;  %v905_v2 = vld [vmem:[%s7808_s14 + $0x4c8] sm:$0xff] }
 0x1bf   : > { %v1063_v5 = vpop.f32.mrf.mxu0 }
 0x1c0   : > { %v904_v5 = vld [vmem:[%s7808_s14 + $0x4c0] sm:$0xff] }
 0x1c1   : > { %v8169_v8 = vpop.f32.mrf.mxu0  ;;  %1305 = vmatmul.mubr.f32.gmra.mxu0 %v880_v4 }
 0x1c2   : > { %1309 = vmatprep.mubr.f32.mxu0 %v883_v7 }
 0x1c3   : > { %v1068_v11 = vpop.f32.mrf.mxu0 }
 0x1c5   : > { %v8173_v13 = vpop.f32.mrf.mxu0  ;;  %1310 = vmatmul.mubr.f32.gmra.mxu0 %v882_v9  ;;  %v907_v9 = vld [vmem:[%s7808_s14 + $0x4d8] sm:$0xff] }
 0x1c6   : > { %1314 = vmatprep.mubr.f32.mxu0 %v885_v12  ;;  %v906_v12 = vld [vmem:[%s7808_s14 + $0x4d0] sm:$0xff] }
 0x1c7   : > { %v1073_v16 = vpop.f32.mrf.mxu0 }
 0x1c8   : > { %v909_v16 = vld [vmem:[%s7808_s14 + $0x4e8] sm:$0xff] }
 0x1c9   : > { %v8177_v19 = vpop.f32.mrf.mxu0  ;;  %1315 = vmatmul.mubr.f32.gmra.mxu0 %v884_v15 }
 0x1ca   : > { %1319 = vmatprep.mubr.f32.mxu0 %v887_v17 }
 0x1cb   : > { %v1078_v21 = vpop.f32.mrf.mxu0 }
 0x1cd   : > { %v8181_v24 = vpop.f32.mrf.mxu0  ;;  %1320 = vmatmul.mubr.f32.gmra.mxu0 %v886_v20  ;;  %v908_v20 = vld [vmem:[%s7808_s14 + $0x4e0] sm:$0xff] }
 0x1ce   : > { %1324 = vmatprep.mubr.f32.mxu0 %v889_v23  ;;  %v911_v23 = vld [vmem:[%s7808_s14 + $0x4f8] sm:$0xff] }
 0x1cf   : > { %v1083_v27 = vpop.f32.mrf.mxu0 }
 0x1d0   : > { %v910_v27 = vld [vmem:[%s7808_s14 + $0x4f0] sm:$0xff] }
 0x1d1   : > { %v8185_v29 = vpop.f32.mrf.mxu0  ;;  %1325 = vmatmul.mubr.f32.gmra.mxu0 %v888_v25 }
 0x1d2   : > { %1329 = vmatprep.mubr.f32.mxu0 %v891_v28 }
 0x1d3   : > { %v1088_v32 = vpop.f32.mrf.mxu0 }
 0x1d5   : > { %v8189_v35 = vpop.f32.mrf.mxu0  ;;  %1330 = vmatmul.mubr.f32.gmra.mxu0 %v890_v31  ;;  %v913_v31 = vld [vmem:[%s7808_s14 + $0x508] sm:$0xff] }
 0x1d6   : > { %1334 = vmatprep.mubr.f32.mxu0 %v893_v33  ;;  %v8219_v33 = vld [vmem:[#allocation2 + $0x8] sm:$0xff] }
 0x1d7   : > { %v1093_v37 = vpop.f32.mrf.mxu0  ;;  %1479 = vmatprep.mubr.f32.mxu1 %v8219_v33 }
 0x1d9   : > { %v8193_v40 = vpop.f32.mrf.mxu0  ;;  %1335 = vmatmul.mubr.f32.gmra.mxu0 %v892_v36  ;;  %v912_v36 = vld [vmem:[%s7808_s14 + $0x500] sm:$0xff] }
 0x1da   : > { %1339 = vmatprep.mubr.f32.mxu0 %v895_v39  ;;  %v915_v39 = vld [vmem:[%s7808_s14 + $0x518] sm:$0xff] }
 0x1db   : > { %v1098_v43 = vpop.f32.mrf.mxu0 }
 0x1dc   : > { %v914_v43 = vld [vmem:[%s7808_s14 + $0x510] sm:$0xff] }
 0x1dd   : > { %v8197_v45 = vpop.f32.mrf.mxu0  ;;  %1340 = vmatmul.mubr.f32.gmra.mxu0 %v894_v41 }
 0x1de   : > { %1344 = vmatprep.mubr.f32.mxu0 %v897_v44 }
 0x1df   : > { %v1103_v48 = vpop.f32.mrf.mxu0 }
 0x1e0   : > { %v916_v48 = vld [vmem:[%s7808_s14 + $0x520] sm:$0xff] }
 0x1e1   : > { %v8201_v51 = vpop.f32.mrf.mxu0  ;;  %1345 = vmatmul.mubr.f32.gmra.mxu0 %v896_v47  ;;  %v917_v47 = vld [vmem:[%s7808_s14 + $0x528] sm:$0xff] }
 0x1e2   : > { %1349 = vmatprep.mubr.f32.mxu0 %v899_v49  ;;  %v919_v49 = vld [vmem:[%s7808_s14 + $0x538] sm:$0xff] }
 0x1e3   : > { %v1108_v53 = vpop.f32.mrf.mxu0 }
 0x1e5   : > { %v8205_v56 = vpop.f32.mrf.mxu0  ;;  %1350 = vmatmul.mubr.f32.gmra.mxu0 %v898_v52 }
 0x1e6   : > { %1354 = vmatprep.mubr.f32.mxu0 %v901_v55 }
 0x1e7   : > { %v1113_v59 = vpop.f32.mrf.mxu0 }
 0x1e9   : > { %v1116_v61 = vpop.f32.mrf.mxu0  ;;  %1355 = vmatmul.mubr.f32.gmra.mxu0 %v900_v57 }
 0x1ea   : > { %1359 = vmatprep.mubr.f32.mxu0 %v903_v60 }
 0x1eb   : > { %v1118_v1 = vpop.f32.mrf.mxu0 }
 0x1ed   : > { %v1121_v4 = vpop.f32.mrf.mxu0  ;;  %1360 = vmatmul.mubr.f32.gmra.mxu0 %v902_v63 }
 0x1ee   : > { %1364 = vmatprep.mubr.f32.mxu0 %v905_v2 }
 0x1ef   : > { %v1123_v7 = vpop.f32.mrf.mxu0 }
 0x1f1   : > { %v1126_v11 = vpop.f32.mrf.mxu0  ;;  %1365 = vmatmul.mubr.f32.gmra.mxu0 %v904_v5 }
 0x1f2   : > { %1369 = vmatprep.mubr.f32.mxu0 %v907_v9 }
 0x1f3   : > { %v1128_v15 = vpop.f32.mrf.mxu0 }
 0x1f5   : > { %v1131_v17 = vpop.f32.mrf.mxu0  ;;  %1370 = vmatmul.mubr.f32.gmra.mxu0 %v906_v12 }
 0x1f6   : > { %1374 = vmatprep.mubr.f32.mxu0 %v909_v16 }
 0x1f7   : > { %v1133_v21 = vpop.f32.mrf.mxu0 }
 0x1f9   : > { %v1136_v25 = vpop.f32.mrf.mxu0  ;;  %1375 = vmatmul.mubr.f32.gmra.mxu0 %v908_v20 }
 0x1fa   : > { %1379 = vmatprep.mubr.f32.mxu0 %v911_v23 }
 0x1fb   : > { %v1138_v28 = vpop.f32.mrf.mxu0 }
 0x1fd   : > { %v1141_v32 = vpop.f32.mrf.mxu0  ;;  %1380 = vmatmul.mubr.f32.gmra.mxu0 %v910_v27 }
 0x1fe   : > { %6579 = vmatprep.subr.mxu1 %v1141_v32  ;;  %1384 = vmatprep.mubr.f32.mxu0 %v913_v31 }
 0x1ff   : > { %v1143_v37 = vpop.f32.mrf.mxu0  ;;  %6580 = vmatpush3.msra.mxu1 %v8165_v3 }
 0x200   : > { %6581 = vmatprep.subr.mxu1 %v1136_v25 }
 0x201   : > { %v8225_v41 = vpop.f32.mrf.mxu0  ;;  %6582 = vmatpush3.msra.mxu1 %v8161_v62  ;;  %1385 = vmatmul.mubr.f32.gmra.mxu0 %v912_v36 }
 0x202   : > { %6583 = vmatprep.subr.mxu1 %v1131_v17  ;;  %1389 = vmatprep.mubr.f32.mxu0 %v915_v39 }
 0x203   : > { %v1148_v44 = vpop.f32.mrf.mxu0  ;;  %6584 = vmatpush3.msra.mxu1 %v8157_v58  ;;  %v918_v58 = vld [vmem:[%s7808_s14 + $0x530] sm:$0xff] }
 0x204   : > { %6585 = vmatprep.subr.mxu1 %v1126_v11 }
 0x205   : > { %v8231_v3 = vpop.f32.mrf.mxu0  ;;  %6586 = vmatpush3.msra.mxu1 %v8153_v54  ;;  %1390 = vmatmul.mubr.f32.gmra.mxu0 %v914_v43 }
 0x206   : > { %6587 = vmatprep.subr.mxu1 %v1121_v4  ;;  %1394 = vmatprep.mubr.f32.mxu0 %v917_v47 }
 0x207   : > { %v1153_v62 = vpop.f32.mrf.mxu0  ;;  %6588 = vmatpush3.msra.mxu1 %v8149_v50 }
 0x208   : > { %6589 = vmatprep.subr.mxu1 %v1116_v61 }
 0x209   : > { %v8237_v52 = vpop.f32.mrf.mxu0  ;;  %6590 = vmatpush3.msra.mxu1 %v8145_v46  ;;  %1395 = vmatmul.mubr.f32.gmra.mxu0 %v916_v48 }
 0x20a   : > { %6591 = vmatprep.subr.mxu1 %v8205_v56  ;;  %1399 = vmatprep.mubr.f32.mxu0 %v919_v49 }
 0x20b   : > { %v1158_v53 = vpop.f32.mrf.mxu0  ;;  %6592 = vmatpush3.msra.mxu1 %v8141_v42 }
 0x20c   : > { %6593 = vmatprep.subr.mxu1 %v8201_v51 }
 0x20d   : > { %v8244_v54 = vpop.f32.mrf.mxu0  ;;  %6594 = vmatpush3.msra.mxu1 %v8137_v38  ;;  %1400 = vmatmul.mubr.f32.gmra.mxu0 %v918_v58 }
 0x20e   : > { %6595 = vmatprep.subr.mxu1 %v8197_v45 }
 0x20f   : > { %v1163_v50 = vpop.f32.mrf.mxu0  ;;  %6596 = vmatpush3.msra.mxu1 %v8133_v34 }
 0x210   : > { %6597 = vmatprep.subr.mxu1 %v8193_v40 }
 0x211   : > { %v8250_v46 = vpop.f32.mrf.mxu0  ;;  %6598 = vmatpush3.msra.mxu1 %v8129_v30  ;;  %v502_v30 = vld [vmem:[#allocation2] sm:$0xff] }
 0x212   : > { %6599 = vmatprep.subr.mxu1 %v8189_v35 }
 0x213   : > { %v1168_v42 = vpop.f32.mrf.mxu0  ;;  %6600 = vmatpush3.msra.mxu1 %v8125_v26 }
 0x214   : > { %6601 = vmatprep.subr.mxu1 %v8185_v29 }
 0x215   : > { %v8256_v38 = vpop.f32.mrf.mxu0  ;;  %6602 = vmatpush3.msra.mxu1 %v8121_v22  ;;  %v509_v22 = vld [vmem:[#allocation2 + $0x38] sm:$0xff] }
 0x216   : > { %6603 = vmatprep.subr.mxu1 %v8181_v24  ;;  %v515_v24 = vld [vmem:[#allocation2 + $0x68] sm:$0xff] }
 0x217   : > { %v1173_v34 = vpop.f32.mrf.mxu0  ;;  %6604 = vmatpush3.msra.mxu1 %v8117_v18 }
 0x218   : > { %6605 = vmatprep.subr.mxu1 %v8177_v19  ;;  %v508_v19 = vld [vmem:[#allocation2 + $0x30] sm:$0xff] }
 0x219   : > { %v8262_v40 = vpop.f32.mrf.mxu0  ;;  %6606 = vmatpush3.msra.mxu1 %v8113_v14 }
 0x21a   : > { %6607 = vmatprep.subr.mxu1 %v8173_v13  ;;  %v514_v13 = vld [vmem:[#allocation2 + $0x60] sm:$0xff] }
 0x21b   : > { %v1178_v26 = vpop.f32.mrf.mxu0  ;;  %6608 = vmatpush3.msra.mxu1 %v8109_v10  ;;  %v505_v10 = vld [vmem:[#allocation2 + $0x18] sm:$0xff] }
 0x21c   : > { %6609 = vmatprep.subr.mxu1 %v8169_v8 }
 0x21d   : > { %v8268_v29 = vpop.f32.mrf.mxu0  ;;  %6610 = vmatpush3.msra.mxu1 %v8105_v6 }
 0x21e   : > { %1480 = vmatmul.mubr.f32.vlgmr.msra.gmra.mxu1 %v502_v30 }
 0x21f   : > { %v1183_v18 = vpop.f32.mrf.mxu0  ;;  %1484 = vmatprep.mubr.f32.mxu1 %v509_v22 }
 0x221   : > { %v8271_v35 = vpop.f32.mrf.mxu0 }
 0x222   : > { %1485 = vmatmul.mubr.f32.gmra.mxu1 %v508_v19 }
 0x223   : > { %v1188_v14 = vpop.f32.mrf.mxu0  ;;  %1489 = vmatprep.mubr.f32.mxu1 %v515_v24 }
 0x225   : > { %v8273_v45 = vpop.f32.mrf.mxu0 }
 0x226   : > { %1490 = vmatmul.mubr.f32.gmra.mxu1 %v514_v13 }
 0x227   : > { %v1193_v8 = vpop.f32.mrf.mxu0  ;;  %1559 = vmatprep.mubr.f32.mxu1 %v505_v10 }
 0x229   : > { %v1196_v51 = vpop.f32.mrf.mxu0 }
 0x22b   : > { %v1198_v55 = vpop.f32.mrf.mxu0 }
 0x22d   : > { %v1201_v6 = vpop.f32.mrf.mxu0 }
 0x22f   : > { %v1203_v56 = vpop.f32.mrf.mxu0 }
 0x230   : > { %v3681_v56 = vld [vmem:[%s8299_s11 + $0x10] sm:$0xff] }
 0x231   : > { %v1206_v57 = vpop.f32.mrf.mxu0 }
 0x233   : > { %v1208_v59 = vpop.f32.mrf.mxu0 }
 0x234   : > { %v3684_v59 = vld [vmem:[%s8299_s11 + $0x28] sm:$0xff] }
 0x235   : > { %v1211_v60 = vpop.f32.mrf.mxu0 }
 0x237   : > { %v1213_v61 = vpop.f32.mrf.mxu0 }
 0x239   : > { %v1216_v63 = vpop.f32.mrf.mxu0 }
 0x23b   : > { %v1218_v1 = vpop.f32.mrf.mxu0 }
 0x23c   : > { %v3686_v1 = vld [vmem:[%s8299_s11 + $0x38] sm:$0xff] }
 0x23d   : > { %v1221_v2 = vpop.f32.mrf.mxu0 }
 0x23f   : > { %v1223_v4 = vpop.f32.mrf.mxu0 }
 0x240   : > { %v3685_v4 = vld [vmem:[%s8299_s11 + $0x30] sm:$0xff] }
 0x241   : > { %v8275_v5 = vpop.f32.mrf.mxu0 }
 0x243   : > { %v1228_v7 = vpop.f32.mrf.mxu0 }
 0x244   : > { %v507_v7 = vld [vmem:[#allocation2 + $0x28] sm:$0xff] }
 0x245   : > { %v8277_v9 = vpop.f32.mrf.mxu0 }
 0x247   : > { %v1233_v11 = vpop.f32.mrf.mxu0 }
 0x249   : > { %v8279_v12 = vpop.f32.mrf.mxu0 }
 0x24b   : > { %v1238_v15 = vpop.f32.mrf.mxu0 }
 0x24c   : > { %v3690_v15 = vld [vmem:[%s8299_s11 + $0x58] sm:$0xff] }
 0x24d   : > { %v8281_v16 = vpop.f32.mrf.mxu0 }
 0x24f   : > { %v1243_v17 = vpop.f32.mrf.mxu0 }
 0x251   : > { %v1246_v20 = vpop.f32.mrf.mxu0 }
 0x253   : > { %v1248_v21 = vpop.f32.mrf.mxu0 }
 0x254   : > { %v3692_v21 = vld [vmem:[%s8299_s11 + $0x68] sm:$0xff] }
 0x255   : > { %v1251_v23 = vpop.f32.mrf.mxu0 }
 0x257   : > { %v1253_v25 = vpop.f32.mrf.mxu0 }
 0x259   : > { %v1256_v27 = vpop.f32.mrf.mxu0 }
 0x25b   : > { %v1258_v28 = vpop.f32.mrf.mxu0 }
 0x25c   : > { %v3694_v28 = vld [vmem:[%s8299_s11 + $0x78] sm:$0xff] }
 0x25d   : > { %v1261_v31 = vpop.f32.mrf.mxu0 }
 0x25f   : > { %v1263_v32 = vpop.f32.mrf.mxu0 }
 0x261   : > { %v1266_v36 = vpop.f32.mrf.mxu0 }
 0x263   : > { %v1268_v37 = vpop.f32.mrf.mxu0 }
 0x264   : > { %v3696_v37 = vld [vmem:[%s8299_s11 + $0x88] sm:$0xff] }
 0x265   : > { %v1271_v39 = vpop.f32.mrf.mxu0 }
 0x267   : > { %v1273_v43 = vpop.f32.mrf.mxu0 }
 0x269   : > { %v1276_v44 = vpop.f32.mrf.mxu0 }
 0x26b   : > { %v1278_v47 = vpop.f32.mrf.mxu0 }
 0x26c   : > { %v3698_v47 = vld [vmem:[%s8299_s11 + $0x98] sm:$0xff] }
 0x26d   : > { %v1281_v48 = vpop.f32.mrf.mxu0 }
 0x26f   : > { %v1283_v62 = vpop.f32.mrf.mxu0 }
 0x271   : > { %v1286_v49 = vpop.f32.mrf.mxu0 }
 0x273   : > { %v1288_v58 = vpop.f32.mrf.mxu0 }
 0x274   : > { %v3700_v58 = vld [vmem:[%s8299_s11 + $0xa8] sm:$0xff] }
 0x275   : > { %v1291_v53 = vpop.f32.mrf.mxu0 }
 0x277   : > { %v1293_v50 = vpop.f32.mrf.mxu0 }
 0x279   : > { %v1296_v42 = vpop.f32.mrf.mxu0 }
 0x27b   : > { %v1298_v34 = vpop.f32.mrf.mxu0 }
 0x27c   : > { %v3702_v34 = vld [vmem:[%s8299_s11 + $0xb8] sm:$0xff] }
 0x27d   : > { %v1301_v26 = vpop.f32.mrf.mxu0 }
 0x27e   : > { %6620 = vmatprep.subr.mxu1 %v1301_v26 }
 0x27f   : > { %v1303_v30 = vpop.f32.mrf.mxu0  ;;  %6621 = vmatpush3.msra.mxu1 %v1221_v2 }
 0x280   : > { %6622 = vmatprep.subr.mxu1 %v1296_v42  ;;  %v3699_v42 = vld [vmem:[%s8299_s11 + $0xa0] sm:$0xff] }
 0x281   : > { %v8283_v22 = vpop.f32.mrf.mxu0  ;;  %6623 = vmatpush3.msra.mxu1 %v1216_v63  ;;  %v517_v63 = vld [vmem:[#allocation2 + $0x78] sm:$0xff] }
 0x282   : > { %6624 = vmatprep.subr.mxu1 %v1291_v53 }
 0x283   : > { %v1308_v18 = vpop.f32.mrf.mxu0  ;;  %6625 = vmatpush3.msra.mxu1 %v1211_v60 }
 0x284   : > { %6626 = vmatprep.subr.mxu1 %v1286_v49  ;;  %v3697_v49 = vld [vmem:[%s8299_s11 + $0x90] sm:$0xff] }
 0x285   : > { %v8285_v19 = vpop.f32.mrf.mxu0  ;;  %6627 = vmatpush3.msra.mxu1 %v1206_v57  ;;  %v504_v57 = vld [vmem:[#allocation2 + $0x10] sm:$0xff]  ;;  %v3701_v18 = vld [vmem:[%s8299_s11 + $0xb0] sm:$0xff] }
 0x286   : > { %6628 = vmatprep.subr.mxu1 %v1281_v48 }
 0x287   : > { %v1313_v24 = vpop.f32.mrf.mxu0  ;;  %6629 = vmatpush3.msra.mxu1 %v1201_v6 }
 0x288   : > { %6630 = vmatprep.subr.mxu1 %v1276_v44  ;;  %v3695_v44 = vld [vmem:[%s8299_s11 + $0x80] sm:$0xff]  ;;  %v3704_v24 = vld [vmem:[%s8299_s11 + $0xc8] sm:$0xff] }
 0x289   : > { %v8287_v14 = vpop.f32.mrf.mxu0  ;;  %6631 = vmatpush3.msra.mxu1 %v1196_v51 }
 0x28a   : > { %6632 = vmatprep.subr.mxu1 %v1271_v39 }
 0x28b   : > { %v1318_v13 = vpop.f32.mrf.mxu0  ;;  %6633 = vmatpush3.msra.mxu1 %v8273_v45 }
 0x28c   : > { %6634 = vmatprep.subr.mxu1 %v1266_v36  ;;  %v3693_v36 = vld [vmem:[%s8299_s11 + $0x70] sm:$0xff] }
 0x28d   : > { %v8290_v10 = vpop.f32.mrf.mxu0  ;;  %6635 = vmatpush3.msra.mxu1 %v8271_v35  ;;  %v3680_v35 = vld [vmem:[%s8299_s11 + $0x8] sm:$0xff] }
 0x28e   : > { %6636 = vmatprep.subr.mxu1 %v1261_v31  ;;  %3911 = vmatprep.mubr.f32.mxu0 %v3680_v35  ;;  %v3706_v35 = vld [vmem:[%s8299_s11 + $0xd8] sm:$0xff] }
 0x28f   : > { %v1323_v8 = vpop.f32.mrf.mxu0  ;;  %6637 = vmatpush3.msra.mxu1 %v8268_v29  ;;  %v3679_v29 = vld [vmem:[%s8299_s11] sm:$0xff] }
 0x290   : > { %6638 = vmatprep.subr.mxu1 %v1256_v27  ;;  %3912 = vmatmul.mubr.f32.vlgmr.msra.gmra.mxu0 %v3679_v29  ;;  %v3691_v27 = vld [vmem:[%s8299_s11 + $0x60] sm:$0xff] }
 0x291   : > { %v8294_v55 = vpop.f32.mrf.mxu0  ;;  %6639 = vmatpush3.msra.mxu1 %v8262_v40 }
 0x292   : > { %6640 = vmatprep.subr.mxu1 %v1251_v23 }
 0x293   : > { %v1328_v51 = vpop.f32.mrf.mxu0  ;;  %6641 = vmatpush3.msra.mxu1 %v8256_v38  ;;  %v3682_v38 = vld [vmem:[%s8299_s11 + $0x18] sm:$0xff] }
 0x294   : > { %6642 = vmatprep.subr.mxu1 %v1246_v20  ;;  %3916 = vmatprep.mubr.f32.mxu0 %v3682_v38  ;;  %v3689_v20 = vld [vmem:[%s8299_s11 + $0x50] sm:$0xff]  ;;  %v3703_v51 = vld [vmem:[%s8299_s11 + $0xc0] sm:$0xff] }
 0x295   : > { %v8302_v45 = vpop.f32.mrf.mxu0  ;;  %6643 = vmatpush3.msra.mxu1 %v8250_v46  ;;  %3917 = vmatmul.mubr.f32.gmra.mxu0 %v3681_v56  ;;  %v3705_v38 = vld [vmem:[%s8299_s11 + $0xd0] sm:$0xff]  ;;  %v3708_v56 = vld [vmem:[%s8299_s11 + $0xe8] sm:$0xff] }
 0x296   : > { %6644 = vmatprep.subr.mxu1 %v8281_v16  ;;  %3921 = vmatprep.mubr.f32.mxu0 %v3684_v59  ;;  %v3710_v59 = vld [vmem:[%s8299_s11 + $0xf8] sm:$0xff] }
 0x297   : > { %v1333_v40 = vpop.f32.mrf.mxu0  ;;  %6645 = vmatpush3.msra.mxu1 %v8244_v54  ;;  %v511_v54 = vld [vmem:[#allocation2 + $0x48] sm:$0xff] }
 0x298   : > { %6646 = vmatprep.subr.mxu1 %v8279_v12  ;;  %v3687_v12 = vld [vmem:[%s8299_s11 + $0x40] sm:$0xff] }
 0x299   : > { %v8310_v6 = vpop.f32.mrf.mxu0  ;;  %6647 = vmatpush3.msra.mxu1 %v8237_v52  ;;  %v3683_v52 = vld [vmem:[%s8299_s11 + $0x20] sm:$0xff] }
 0x29a   : > { %6648 = vmatprep.subr.mxu1 %v8277_v9  ;;  %3922 = vmatmul.mubr.f32.gmra.mxu0 %v3683_v52  ;;  %v3688_v9 = vld [vmem:[%s8299_s11 + $0x48] sm:$0xff] }
 0x29b   : > { %v1338_v46 = vpop.f32.mrf.mxu0  ;;  %6649 = vmatpush3.msra.mxu1 %v8231_v3  ;;  %v510_v3 = vld [vmem:[#allocation2 + $0x40] sm:$0xff]  ;;  %3926 = vmatprep.mubr.f32.mxu0 %v3686_v1  ;;  %v8403_v1 = vld [vmem:[#allocation4 + $0x58] sm:$0xff] }
 0x29c   : > { %6650 = vmatprep.subr.mxu1 %v8275_v5  ;;  %v516_v5 = vld [vmem:[#allocation2 + $0x70] sm:$0xff] }
 0x29d   : > { %v8318_v60 = vpop.f32.mrf.mxu0  ;;  %6651 = vmatpush3.msra.mxu1 %v8225_v41 }
 0x29e   : > { %1560 = vmatmul.mubr.f32.vlgmr.msra.gmra.mxu1 %v504_v57  ;;  %1575 = vmatprep.subr.mxu1 %v12613_v0 }
 0x29f   : > { %v1343_v61 = vpop.f32.mrf.mxu0  ;;  %1564 = vmatprep.mubr.f32.mxu1 %v511_v54  ;;  %3927 = vmatmul.mubr.f32.gmra.mxu0 %v3685_v4  ;;  %v3707_v54 = vld [vmem:[%s8299_s11 + $0xe0] sm:$0xff]  ;;  %v8411_v4 = vld [vmem:[#allocation4 + $0x48] sm:$0xff] }
 0x2a0   : > { %3931 = vmatprep.mubr.f32.mxu0 %v3688_v9  ;;  %v3709_v61 = vld [vmem:[%s8299_s11 + $0xf0] sm:$0xff]  ;;  %v8427_v9 = vld [vmem:[#allocation4 + $0x28] sm:$0xff] }
 0x2a1   : > { %v8324_v2 = vpop.f32.mrf.mxu0 }
 0x2a2   : > { %1565 = vmatmul.mubr.f32.gmra.mxu1 %v510_v3  ;;  %v3720_v3 = vld [vmem:[%s8299_s11 + $0x148] sm:$0xff] }
 0x2a3   : > { %v1348_v41 = vpop.f32.mrf.mxu0  ;;  %1569 = vmatprep.mubr.f32.mxu1 %v517_v63  ;;  %3932 = vmatmul.mubr.f32.gmra.mxu0 %v3687_v12  ;;  %v8399_v63 = vld [vmem:[#allocation4 + $0x60] sm:$0xff]  ;;  %v8435_v12 = vld [vmem:[#allocation4 + $0x18] sm:$0xff] }
 0x2a4   : > { %3936 = vmatprep.mubr.f32.mxu0 %v3690_v15  ;;  %v8415_v41 = vld [vmem:[#allocation4 + $0x40] sm:$0xff]  ;;  %v8439_v15 = vld [vmem:[#allocation4 + $0x10] sm:$0xff] }
 0x2a5   : > { %v8328_v11 = vpop.f32.mrf.mxu0 }
 0x2a6   : > { %1570 = vmatmul.mubr.f32.gmra.mxu1 %v516_v5  ;;  %v8419_v5 = vld [vmem:[#allocation4 + $0x38] sm:$0xff] }
 0x2a7   : > { %v1353_v16 = vpop.f32.mrf.mxu0  ;;  %6568 = vmatprep.mubr.msk.f32.mxu1 %vm1405_vm0, %v507_v7  ;;  %3937 = vmatmul.mubr.f32.gmra.mxu0 %v3689_v20  ;;  %v8423_v7 = vld [vmem:[#allocation4 + $0x30] sm:$0xff]  ;;  %v8451_v20 = vld [vmem:[#allocation4 + $0xf8] sm:$0xff] }
 0x2a8   : > { %3941 = vmatprep.mubr.f32.mxu0 %v3692_v21  ;;  %v8443_v16 = vld [vmem:[#allocation4 + $0x8] sm:$0xff]  ;;  %v8455_v21 = vld [vmem:[#allocation4 + $0xf0] sm:$0xff] }
 0x2a9   : > { %v1356_v17 = vpop.f32.mrf.mxu0 }
 0x2ab   : > { %v1358_v23 = vpop.f32.mrf.mxu0  ;;  %3942 = vmatmul.mubr.f32.gmra.mxu0 %v3691_v27  ;;  %v8467_v27 = vld [vmem:[#allocation4 + $0xd8] sm:$0xff] }
 0x2ac   : > { %3946 = vmatprep.mubr.f32.mxu0 %v3694_v28  ;;  %v8459_v23 = vld [vmem:[#allocation4 + $0xe8] sm:$0xff]  ;;  %v8471_v28 = vld [vmem:[#allocation4 + $0xd0] sm:$0xff] }
 0x2ad   : > { %v1361_v25 = vpop.f32.mrf.mxu0 }
 0x2af   : > { %v1363_v31 = vpop.f32.mrf.mxu0  ;;  %3947 = vmatmul.mubr.f32.gmra.mxu0 %v3693_v36  ;;  %v8483_v36 = vld [vmem:[#allocation4 + $0xb8] sm:$0xff] }
 0x2b0   : > { %3951 = vmatprep.mubr.f32.mxu0 %v3696_v37  ;;  %v8475_v31 = vld [vmem:[#allocation4 + $0xc8] sm:$0xff]  ;;  %v8487_v37 = vld [vmem:[#allocation4 + $0xb0] sm:$0xff] }
 0x2b1   : > { %v1366_v32 = vpop.f32.mrf.mxu0 }
 0x2b3   : > { %v1368_v39 = vpop.f32.mrf.mxu0  ;;  %3952 = vmatmul.mubr.f32.gmra.mxu0 %v3695_v44  ;;  %v8499_v44 = vld [vmem:[#allocation4 + $0x98] sm:$0xff] }
 0x2b4   : > { %3956 = vmatprep.mubr.f32.mxu0 %v3698_v47  ;;  %v8491_v39 = vld [vmem:[#allocation4 + $0xa8] sm:$0xff]  ;;  %v8503_v47 = vld [vmem:[#allocation4 + $0x90] sm:$0xff] }
 0x2b5   : > { %v1371_v43 = vpop.f32.mrf.mxu0 }
 0x2b7   : > { %v1373_v48 = vpop.f32.mrf.mxu0  ;;  %3957 = vmatmul.mubr.f32.gmra.mxu0 %v3697_v49  ;;  %v3722_v49 = vld [vmem:[%s8299_s11 + $0x158] sm:$0xff] }
 0x2b8   : > { %3961 = vmatprep.mubr.f32.mxu0 %v3700_v58  ;;  %v8507_v48 = vld [vmem:[#allocation4 + $0x88] sm:$0xff]  ;;  %v8513_v58 = vld [vmem:[#allocation4 + $0x80] sm:$0xff] }
 0x2b9   : > { %v1376_v62 = vpop.f32.mrf.mxu0 }
 0x2bb   : > { %v1378_v53 = vpop.f32.mrf.mxu0  ;;  %3962 = vmatmul.mubr.f32.gmra.mxu0 %v3699_v42  ;;  %v12617_v42 = vmov 1  }
 0x2bc   : > { %3966 = vmatprep.mubr.f32.mxu0 %v3702_v34  ;;  %v3721_v53 = vld [vmem:[%s8299_s11 + $0x150] sm:$0xff]  ;;  %7152 = vset.pattern.permute.xlu1 %v12617_v42  ;;  %v12621_v34 = vmov 0   ;;  %v8776_v42 = vld [vmem:[#allocation6 + $0x100] sm:$0x7f] }
 0x2bd   : > { %v1381_v50 = vpop.f32.mrf.mxu0  ;;  %7151 = vset.pattern.permute.xlu0 %v12621_v34 }
 0x2be   : > { %1576 = vmatpush1.msra.mxu1 %v1381_v50  ;;  %v3724_v50 = vld [vmem:[%s8299_s11 + $0x168] sm:$0xff] }
 0x2bf   : > { %v1383_v26 = vpop.f32.mrf.mxu0  ;;  %1577 = vmatprep.subr.mxu1 %v12613_v0  ;;  %3967 = vmatmul.mubr.f32.gmra.mxu0 %v3701_v18  ;;  %v3725_v18 = vld [vmem:[%s8299_s11 + $0x170] sm:$0xff] }
 0x2c0   : > { %1578 = vmatpush1.msra.mxu1 %v1376_v62  ;;  %3971 = vmatprep.mubr.f32.mxu0 %v3704_v24  ;;  %v3719_v62 = vld [vmem:[%s8299_s11 + $0x140] sm:$0xff]  ;;  %v3728_v24 = vld [vmem:[%s8299_s11 + $0x188] sm:$0xff] }
 0x2c1   : > { %1579 = vmatprep.subr.mxu1 %v12613_v0  ;;  %v1386_v30 = vpop.f32.mrf.mxu0  ;;  %v3723_v26 = vld [vmem:[%s8299_s11 + $0x160] sm:$0xff] }
 0x2c2   : > { %1580 = vmatpush1.msra.mxu1 %v1371_v43  ;;  %v8495_v43 = vld [vmem:[#allocation4 + $0xa0] sm:$0xff] }
 0x2c3   : > { %1581 = vmatprep.subr.mxu1 %v12613_v0  ;;  %v1388_v13 = vpop.f32.mrf.mxu0  ;;  %3972 = vmatmul.mubr.f32.gmra.mxu0 %v3703_v51  ;;  %v3729_v51 = vld [vmem:[%s8299_s11 + $0x190] sm:$0xff] }
 0x2c4   : > { %1582 = vmatpush1.msra.mxu1 %v1366_v32  ;;  %3976 = vmatprep.mubr.f32.mxu0 %v3706_v35  ;;  %v8479_v32 = vld [vmem:[#allocation4 + $0xc0] sm:$0xff]  ;;  %v3732_v35 = vld [vmem:[%s8299_s11 + $0x1a8] sm:$0xff] }
 0x2c5   : > { %1583 = vmatprep.subr.mxu1 %v12613_v0  ;;  %v1391_v8 = vpop.f32.mrf.mxu0  ;;  %v3727_v13 = vld [vmem:[%s8299_s11 + $0x180] sm:$0xff] }
 0x2c6   : > { %1584 = vmatpush1.msra.mxu1 %v1361_v25  ;;  %v8463_v25 = vld [vmem:[#allocation4 + $0xe0] sm:$0xff] }
 0x2c7   : > { %1585 = vmatprep.subr.mxu1 %v12613_v0  ;;  %v1393_v29 = vpop.f32.mrf.mxu0  ;;  %3977 = vmatmul.mubr.f32.gmra.mxu0 %v3705_v38  ;;  %v3712_v38 = vld [vmem:[%s8299_s11 + $0x108] sm:$0xff] }
 0x2c8   : > { %1586 = vmatpush1.msra.mxu1 %v1356_v17  ;;  %3981 = vmatprep.mubr.f32.mxu0 %v3708_v56  ;;  %v8447_v17 = vld [vmem:[#allocation4] sm:$0xff] }
 0x2c9   : > { %1587 = vmatprep.subr.mxu1 %v12613_v0  ;;  %v1396_v40 = vpop.f32.mrf.mxu0  ;;  %v3731_v29 = vld [vmem:[%s8299_s11 + $0x1a0] sm:$0xff] }
 0x2ca   : > { %1588 = vmatpush1.msra.mxu1 %v8328_v11  ;;  %v8431_v11 = vld [vmem:[#allocation4 + $0x20] sm:$0xff] }
 0x2cb   : > { %1589 = vmatprep.subr.mxu1 %v12613_v0  ;;  %v1398_v46 = vpop.f32.mrf.mxu0  ;;  %3982 = vmatmul.mubr.f32.gmra.mxu0 %v3707_v54  ;;  %v3711_v56 = vld [vmem:[%s8299_s11 + $0x100] sm:$0xff]  ;;  %v3714_v54 = vld [vmem:[%s8299_s11 + $0x118] sm:$0xff] }
 0x2cc   : > { %1590 = vmatpush1.msra.mxu1 %v8324_v2  ;;  %3986 = vmatprep.mubr.f32.mxu0 %v3710_v59  ;;  %v8407_v2 = vld [vmem:[#allocation4 + $0x50] sm:$0xff] }
 0x2cd   : > { %1591 = vmatprep.subr.mxu1 %v12613_v0  ;;  %v1401_v57 = vpop.f32.mrf.mxu0  ;;  %v3733_v46 = vld [vmem:[%s8299_s11 + $0x1b0] sm:$0xff] }
 0x2ce   : > { %1592 = vmatpush1.msra.mxu1 %v8318_v60  ;;  %v518_v60 = vld [vmem:[#allocation2 + $0x80] sm:$0xff] }
 0x2cf   : > { %1593 = vmatprep.subr.mxu1 %v12613_v0  ;;  %v1403_v52 = vpop.f32.mrf.mxu0  ;;  %3987 = vmatmul.mubr.f32.gmra.mxu0 %v3709_v61  ;;  %v3713_v59 = vld [vmem:[%s8299_s11 + $0x110] sm:$0xff]  ;;  %v3738_v61 = vld [vmem:[%s8299_s11 + $0x1d8] sm:$0xff] }
 0x2d0   : > { %1594 = vmatpush1.msra.mxu1 %v8310_v6  ;;  %v8393_v6 = vld [vmem:[#allocation4 + $0x68] sm:$0xff]  ;;  %3991 = vmatprep.mubr.f32.mxu0 %v3712_v38  ;;  %v3735_v52 = vld [vmem:[%s8299_s11 + $0x1c0] sm:$0xff] }
 0x2d1   : > { %1595 = vmatprep.subr.mxu1 %v12613_v0 }
 0x2d2   : > { %1596 = vmatpush1.msra.mxu1 %v8302_v45  ;;  %v8389_v45 = vld [vmem:[#allocation4 + $0x70] sm:$0xff] }
 0x2d3   : > { %1597 = vmatprep.subr.mxu1 %v12613_v0  ;;  %3992 = vmatmul.mubr.f32.gmra.mxu0 %v3711_v56  ;;  %v3765_v56 = vld [vmem:[%s8299_s11 + $0x2b0] sm:$0xff] }
 0x2d4   : > { %1598 = vmatpush1.msra.mxu1 %v8294_v55  ;;  %v519_v55 = vld [vmem:[#allocation2 + $0x88] sm:$0xff]  ;;  %3996 = vmatprep.mubr.f32.mxu0 %v3714_v54 }
 0x2d5   : > { %1599 = vmatprep.subr.mxu1 %v12613_v0 }
 0x2d6   : > { %1600 = vmatpush1.msra.mxu1 %v8290_v10  ;;  %v506_v10 = vld [vmem:[#allocation2 + $0x20] sm:$0xff] }
 0x2d7   : > { %1601 = vmatprep.subr.mxu1 %v12613_v0  ;;  %3997 = vmatmul.mubr.f32.gmra.mxu0 %v3713_v59 }
 0x2d8   : > { %1602 = vmatpush1.msra.mxu1 %v8287_v14  ;;  %v513_v14 = vld [vmem:[#allocation2 + $0x58] sm:$0xff] }
 0x2d9   : > { %1603 = vmatprep.subr.mxu1 %v12613_v0 }
 0x2da   : > { %1604 = vmatpush1.msra.mxu1 %v8285_v19  ;;  %v8384_v19 = vld [vmem:[#allocation4 + $0x78] sm:$0xff] }
 0x2db   : > { %1605 = vmatprep.subr.mxu1 %v12613_v0 }
 0x2dc   : > { %1606 = vmatpush1.msra.mxu1 %v8283_v22  ;;  %v512_v22 = vld [vmem:[#allocation2 + $0x50] sm:$0xff] }
 0x2dd   : > { %1631 = vmatprep.subr.mxu1 %v12613_v0 }
 0x2de   : > { %1632 = vmatpush2.msra.mxu1 %v1401_v57  ;;  %v3736_v57 = vld [vmem:[%s8299_s11 + $0x1c8] sm:$0xff] }
 0x2df   : > { %1633 = vmatprep.subr.mxu1 %v12613_v0 }
 0x2e0   : > { %1634 = vmatpush2.msra.mxu1 %v1396_v40  ;;  %v3734_v40 = vld [vmem:[%s8299_s11 + $0x1b8] sm:$0xff] }
 0x2e1   : > { %1635 = vmatprep.subr.mxu1 %v12613_v0 }
 0x2e2   : > { %1636 = vmatpush2.msra.mxu1 %v1391_v8  ;;  %v3730_v8 = vld [vmem:[%s8299_s11 + $0x198] sm:$0xff] }
 0x2e3   : > { %1637 = vmatprep.subr.mxu1 %v12613_v0 }
 0x2e4   : > { %1638 = vmatpush2.msra.mxu1 %v1386_v30  ;;  %v3726_v30 = vld [vmem:[%s8299_s11 + $0x178] sm:$0xff] }
 0x2e5   : > { %1640 = vmatmul.mubr.f32.vlgmr.msra.gmra.mxu1 %v506_v10  ;;  %6947 = vmatprep.subr.mxu1 %v12613_v0  ;;  %v3716_v10 = vld [vmem:[%s8299_s11 + $0x128] sm:$0xff] }
 0x2e6   : > { %6979 = vmatpush1.msra.mxu1 %v8384_v19  ;;  %6569 = vmatprep.mubr.msk.f32.mxu1 %vm1405_vm0, %v513_v14  ;;  %v3715_v14 = vld [vmem:[%s8299_s11 + $0x120] sm:$0xff] }
 0x2e7   : > { %6948 = vmatprep.subr.mxu1 %v12613_v0  ;;  %4001 = vmatprep.mubr.f32.mxu0 %v3716_v10 }
 0x2e8   : > { %6980 = vmatpush1.msra.mxu1 %v8389_v45  ;;  %4002 = vmatmul.mubr.f32.gmra.mxu0 %v3715_v14 }
 0x2e9   : > { %1645 = vmatmul.mubr.f32.gmra.mxu1 %v512_v22  ;;  %6949 = vmatprep.subr.mxu1 %v12613_v0  ;;  %v3740_v22 = vld [vmem:[%s8299_s11 + $0x1e8] sm:$0xff] }
 0x2ea   : > { %6981 = vmatpush1.msra.mxu1 %v8393_v6  ;;  %6570 = vmatprep.mubr.msk.f32.mxu1 %vm1405_vm0, %v519_v55  ;;  %v3718_v55 = vld [vmem:[%s8299_s11 + $0x138] sm:$0xff] }
 0x2eb   : > { %6950 = vmatprep.subr.mxu1 %v12613_v0  ;;  %4006 = vmatprep.mubr.f32.mxu0 %v3718_v55  ;;  %v3772_v55 = vld [vmem:[%s8299_s11 + $0x2e8] sm:$0xff] }
 0x2ec   : > { %6982 = vmatpush1.msra.mxu1 %v8399_v63 }
 0x2ed   : > { %1650 = vmatmul.mubr.f32.gmra.mxu1 %v518_v60  ;;  %6951 = vmatprep.subr.mxu1 %v12613_v0  ;;  %v3742_v60 = vld [vmem:[%s8299_s11 + $0x1f8] sm:$0xff] }
 0x2ee   : > { %6983 = vmatpush1.msra.mxu1 %v8403_v1  ;;  %4011 = vmatprep.mubr.f32.mxu1 %v3720_v3  ;;  %v3741_v3 = vld [vmem:[%s8299_s11 + $0x1f0] sm:$0xff] }
 0x2ef   : > { %6952 = vmatprep.subr.mxu1 %v12613_v0 }
 0x2f0   : > { %6984 = vmatpush1.msra.mxu1 %v8407_v2 }
 0x2f1   : > { %6953 = vmatprep.subr.mxu1 %v12613_v0 }
 0x2f2   : > { %6985 = vmatpush1.msra.mxu1 %v8411_v4 }
 0x2f3   : > { %6954 = vmatprep.subr.mxu1 %v12613_v0 }
 0x2f4   : > { %6986 = vmatpush1.msra.mxu1 %v8415_v41 }
 0x2f5   : > { %6955 = vmatprep.subr.mxu1 %v12613_v0 }
 0x2f6   : > { %6987 = vmatpush1.msra.mxu1 %v8419_v5 }
 0x2f7   : > { %6956 = vmatprep.subr.mxu1 %v12613_v0 }
 0x2f8   : > { %6988 = vmatpush1.msra.mxu1 %v8423_v7 }
 0x2f9   : > { %6957 = vmatprep.subr.mxu1 %v12613_v0 }
 0x2fa   : > { %6989 = vmatpush1.msra.mxu1 %v8427_v9 }
 0x2fb   : > { %6958 = vmatprep.subr.mxu1 %v12613_v0 }
 0x2fc   : > { %6990 = vmatpush1.msra.mxu1 %v8431_v11 }
 0x2fd   : > { %6959 = vmatprep.subr.mxu1 %v12613_v0 }
 0x2fe   : > { %6991 = vmatpush1.msra.mxu1 %v8435_v12 }
 0x2ff   : > { %6960 = vmatprep.subr.mxu1 %v12613_v0 }
 0x300   : > { %6992 = vmatpush1.msra.mxu1 %v8439_v15 }
 0x301   : > { %6961 = vmatprep.subr.mxu1 %v12613_v0 }
 0x302   : > { %6993 = vmatpush1.msra.mxu1 %v8443_v16 }
 0x303   : > { %6962 = vmatprep.subr.mxu1 %v12613_v0 }
 0x304   : > { %6994 = vmatpush1.msra.mxu1 %v8447_v17 }
 0x305   : > { %6963 = vmatprep.subr.mxu1 %v12613_v0 }
 0x306   : > { %6995 = vmatpush2.msra.mxu1 %v8451_v20 }
 0x307   : > { %6964 = vmatprep.subr.mxu1 %v12613_v0 }
 0x308   : > { %6996 = vmatpush2.msra.mxu1 %v8455_v21 }
 0x309   : > { %6965 = vmatprep.subr.mxu1 %v12613_v0 }
 0x30a   : > { %6997 = vmatpush2.msra.mxu1 %v8459_v23 }
 0x30b   : > { %6966 = vmatprep.subr.mxu1 %v12613_v0 }
 0x30c   : > { %6998 = vmatpush2.msra.mxu1 %v8463_v25 }
 0x30d   : > { %6967 = vmatprep.subr.mxu1 %v12613_v0 }
 0x30e   : > { %6999 = vmatpush2.msra.mxu1 %v8467_v27 }
 0x30f   : > { %6968 = vmatprep.subr.mxu1 %v12613_v0 }
 0x310   : > { %7000 = vmatpush2.msra.mxu1 %v8471_v28 }
 0x311   : > { %6969 = vmatprep.subr.mxu1 %v12613_v0 }
 0x312   : > { %7001 = vmatpush2.msra.mxu1 %v8475_v31 }
 0x313   : > { %6970 = vmatprep.subr.mxu1 %v12613_v0 }
 0x314   : > { %7002 = vmatpush2.msra.mxu1 %v8479_v32 }
 0x315   : > { %6971 = vmatprep.subr.mxu1 %v12613_v0 }
 0x316   : > { %7003 = vmatpush2.msra.mxu1 %v8483_v36 }
 0x317   : > { %6972 = vmatprep.subr.mxu1 %v12613_v0 }
 0x318   : > { %7004 = vmatpush2.msra.mxu1 %v8487_v37 }
 0x319   : > { %6973 = vmatprep.subr.mxu1 %v12613_v0 }
 0x31a   : > { %7005 = vmatpush2.msra.mxu1 %v8491_v39 }
 0x31b   : > { %6974 = vmatprep.subr.mxu1 %v12613_v0 }
 0x31c   : > { %7006 = vmatpush2.msra.mxu1 %v8495_v43 }
 0x31d   : > { %6975 = vmatprep.subr.mxu1 %v12613_v0 }
 0x31e   : > { %7007 = vmatpush2.msra.mxu1 %v8499_v44 }
 0x31f   : > { %6976 = vmatprep.subr.mxu1 %v12613_v0 }
 0x320   : > { %7008 = vmatpush2.msra.mxu1 %v8503_v47 }
 0x321   : > { %6977 = vmatprep.subr.mxu1 %v12613_v0 }
 0x322   : > { %7009 = vmatpush2.msra.mxu1 %v8507_v48 }
 0x323   : > { %6978 = vmatprep.subr.mxu1 %v12613_v0 }
 0x324   : > { %7010 = vmatpush2.msra.mxu1 %v8513_v58 }
 0x325   : > { %4012 = vmatmul.mubr.f32.vlgmr.msra.gmra.mxu1 %v3719_v62  ;;  %5062 = vmatprep.subr.mxu1 %v12613_v0 }
 0x326   : > { %5063 = vmatpush1.msra.mxu1 %v8384_v19  ;;  %4016 = vmatprep.mubr.f32.mxu1 %v3722_v49  ;;  %v3737_v19 = vld [vmem:[%s8299_s11 + $0x1d0] sm:$0xff] }
 0x327   : > { %5064 = vmatprep.subr.mxu1 %v12613_v0 }
 0x328   : > { %5065 = vmatpush1.msra.mxu1 %v8389_v45  ;;  %v3717_v45 = vld [vmem:[%s8299_s11 + $0x130] sm:$0xff] }
 0x329   : > { %4017 = vmatmul.mubr.f32.gmra.mxu1 %v3721_v53  ;;  %5066 = vmatprep.subr.mxu1 %v12613_v0  ;;  %v3762_v53 = vld [vmem:[%s8299_s11 + $0x298] sm:$0xff] }
 0x32a   : > { %4021 = vmatprep.mubr.f32.mxu1 %v3724_v50  ;;  %5067 = vmatpush1.msra.mxu1 %v8393_v6  ;;  %v3739_v6 = vld [vmem:[%s8299_s11 + $0x1e0] sm:$0xff] }
 0x32b   : > { %5068 = vmatprep.subr.mxu1 %v12613_v0  ;;  %4007 = vmatmul.mubr.f32.gmra.mxu0 %v3717_v45 }
 0x32c   : > { %5069 = vmatpush1.msra.mxu1 %v8399_v63  ;;  %v3744_v63 = vld [vmem:[%s8299_s11 + $0x208] sm:$0xff]  ;;  %4396 = vmatprep.mubr.f32.mxu0 %v8219_v33  ;;  %v3745_v33 = vld [vmem:[%s8299_s11 + $0x210] sm:$0xff] }
 0x32d   : > { %4022 = vmatmul.mubr.f32.gmra.mxu1 %v3723_v26  ;;  %5070 = vmatprep.subr.mxu1 %v12613_v0 }
 0x32e   : > { %4026 = vmatprep.mubr.f32.mxu1 %v3726_v30  ;;  %5071 = vmatpush1.msra.mxu1 %v8403_v1  ;;  %v3743_v1 = vld [vmem:[%s8299_s11 + $0x200] sm:$0xff]  ;;  %v3761_v30 = vld [vmem:[%s8299_s11 + $0x290] sm:$0xff] }
 0x32f   : > { %5072 = vmatprep.subr.mxu1 %v12613_v0 }
 0x330   : > { %5073 = vmatpush1.msra.mxu1 %v8407_v2  ;;  %v3746_v2 = vld [vmem:[%s8299_s11 + $0x218] sm:$0xff] }
 0x331   : > { %4027 = vmatmul.mubr.f32.gmra.mxu1 %v3725_v18  ;;  %5074 = vmatprep.subr.mxu1 %v12613_v0  ;;  %v3764_v18 = vld [vmem:[%s8299_s11 + $0x2a8] sm:$0xff] }
 0x332   : > { %4031 = vmatprep.mubr.f32.mxu1 %v3728_v24  ;;  %5075 = vmatpush1.msra.mxu1 %v8411_v4 }
 0x333   : > { %5076 = vmatprep.subr.mxu1 %v12613_v0 }
 0x334   : > { %5077 = vmatpush1.msra.mxu1 %v8415_v41  ;;  %v3748_v41 = vld [vmem:[%s8299_s11 + $0x228] sm:$0xff] }
 0x335   : > { %4032 = vmatmul.mubr.f32.gmra.mxu1 %v3727_v13  ;;  %5078 = vmatprep.subr.mxu1 %v12613_v0  ;;  %v8651_v13 = vpop.f32.mrf.mxu1 }
 0x336   : > { %4036 = vmatprep.mubr.f32.mxu1 %v3730_v8  ;;  %5079 = vmatpush1.msra.mxu1 %v8419_v5 }
 0x337   : > { %5080 = vmatprep.subr.mxu1 %v12613_v0 }
 0x338   : > { %5081 = vmatpush1.msra.mxu1 %v8423_v7  ;;  %v3747_v7 = vld [vmem:[%s8299_s11 + $0x220] sm:$0xff] }
 0x339   : > { %4037 = vmatmul.mubr.f32.gmra.mxu1 %v3729_v51  ;;  %5082 = vmatprep.subr.mxu1 %v12613_v0  ;;  %v3763_v51 = vld [vmem:[%s8299_s11 + $0x2a0] sm:$0xff] }
 0x33a   : > { %4041 = vmatprep.mubr.f32.mxu1 %v3732_v35  ;;  %5083 = vmatpush1.msra.mxu1 %v8427_v9  ;;  %v3766_v35 = vld [vmem:[%s8299_s11 + $0x2b8] sm:$0xff] }
 0x33b   : > { %5084 = vmatprep.subr.mxu1 %v12613_v0 }
 0x33c   : > { %5085 = vmatpush1.msra.mxu1 %v8431_v11  ;;  %v3750_v11 = vld [vmem:[%s8299_s11 + $0x238] sm:$0xff] }
 0x33d   : > { %4042 = vmatmul.mubr.f32.gmra.mxu1 %v3731_v29  ;;  %5086 = vmatprep.subr.mxu1 %v12613_v0 }
 0x33e   : > { %4046 = vmatprep.mubr.f32.mxu1 %v3734_v40  ;;  %5087 = vmatpush1.msra.mxu1 %v8435_v12  ;;  %v6612_v40 = vpop.f32.mrf.mxu1 }
 0x33f   : > { %5088 = vmatprep.subr.mxu1 %v12613_v0 }
 0x340   : > { %5089 = vmatpush1.msra.mxu1 %v8439_v15  ;;  %v3749_v15 = vld [vmem:[%s8299_s11 + $0x230] sm:$0xff]  ;;  %v6614_v54 = vpop.f32.mrf.mxu1 }
 0x341   : > { %4047 = vmatmul.mubr.f32.gmra.mxu1 %v3733_v46  ;;  %5090 = vmatprep.subr.mxu1 %v12613_v0  ;;  %v3768_v46 = vld [vmem:[%s8299_s11 + $0x2c8] sm:$0xff] }
 0x342   : > { %4051 = vmatprep.mubr.f32.mxu1 %v3736_v57  ;;  %5091 = vmatpush1.msra.mxu1 %v8443_v16  ;;  %v3752_v16 = vld [vmem:[%s8299_s11 + $0x248] sm:$0xff]  ;;  %v6615_v14 = vpop.f32.mrf.mxu1 }
 0x343   : > { %5092 = vmatprep.subr.mxu1 %v12613_v0 }
 0x344   : > { %5093 = vmatpush1.msra.mxu1 %v8447_v17 }
 0x345   : > { %4052 = vmatmul.mubr.f32.gmra.mxu1 %v3735_v52  ;;  %5094 = vmatprep.subr.mxu1 %v12613_v0  ;;  %v3767_v52 = vld [vmem:[%s8299_s11 + $0x2c0] sm:$0xff] }
 0x346   : > { %4056 = vmatprep.mubr.f32.mxu1 %v3738_v61  ;;  %5095 = vmatpush2.msra.mxu1 %v8451_v20  ;;  %v3770_v61 = vld [vmem:[%s8299_s11 + $0x2d8] sm:$0xff] }
 0x347   : > { %5096 = vmatprep.subr.mxu1 %v12613_v0 }
 0x348   : > { %5097 = vmatpush2.msra.mxu1 %v8455_v21  ;;  %v3751_v21 = vld [vmem:[%s8299_s11 + $0x240] sm:$0xff] }
 0x349   : > { %4057 = vmatmul.mubr.f32.gmra.mxu1 %v3737_v19  ;;  %5098 = vmatprep.subr.mxu1 %v12613_v0 }
 0x34a   : > { %4061 = vmatprep.mubr.f32.mxu1 %v3740_v22  ;;  %5099 = vmatpush2.msra.mxu1 %v8459_v23  ;;  %v3754_v23 = vld [vmem:[%s8299_s11 + $0x258] sm:$0xff]  ;;  %v3769_v22 = vld [vmem:[%s8299_s11 + $0x2d0] sm:$0xff] }
 0x34b   : > { %5100 = vmatprep.subr.mxu1 %v12613_v0 }
 0x34c   : > { %5101 = vmatpush2.msra.mxu1 %v8463_v25 }
 0x34d   : > { %4062 = vmatmul.mubr.f32.gmra.mxu1 %v3739_v6  ;;  %5102 = vmatprep.subr.mxu1 %v12613_v0  ;;  %v6617_v6 = vpop.f32.mrf.mxu1 }
 0x34e   : > { %4066 = vmatprep.mubr.f32.mxu1 %v3742_v60  ;;  %5103 = vmatpush2.msra.mxu1 %v8467_v27 }
 0x34f   : > { %5104 = vmatprep.subr.mxu1 %v12613_v0 }
 0x350   : > { %5105 = vmatpush2.msra.mxu1 %v8471_v28  ;;  %v8601_v4 = vpop.f32.mrf.mxu0  ;;  %v3753_v28 = vld [vmem:[%s8299_s11 + $0x250] sm:$0xff] }
 0x351   : > { %4067 = vmatmul.mubr.f32.gmra.mxu1 %v3741_v3  ;;  %5106 = vmatprep.subr.mxu1 %v12613_v0  ;;  %12933 = vst [vmem:[#allocation25_spill] sm:$0xff] %v8601_v4  ;;  %v3771_v3 = vld [vmem:[%s8299_s11 + $0x2e0] sm:$0xff] }
 0x352   : > { %4071 = vmatprep.mubr.f32.mxu1 %v3744_v63  ;;  %5107 = vmatpush2.msra.mxu1 %v8475_v31  ;;  %v3915_v5 = vpop.f32.mrf.mxu0  ;;  %v3756_v31 = vld [vmem:[%s8299_s11 + $0x268] sm:$0xff]  ;;  %v3774_v63 = vld [vmem:[%s8299_s11 + $0x2f8] sm:$0xff] }
 0x353   : > { %5108 = vmatprep.subr.mxu1 %v12613_v0  ;;  %v3776_v5 = vld [vmem:[%s8299_s11 + $0x308] sm:$0xff] }
 0x354   : > { %5109 = vmatpush2.msra.mxu1 %v8479_v32 }
 0x355   : > { %4072 = vmatmul.mubr.f32.gmra.mxu1 %v3743_v1  ;;  %5110 = vmatprep.subr.mxu1 %v12613_v0  ;;  %v8609_v9 = vpop.f32.mrf.mxu0 }
 0x356   : > { %4076 = vmatprep.mubr.f32.mxu1 %v3746_v2  ;;  %5111 = vmatpush2.msra.mxu1 %v8483_v36  ;;  %12934 = vst [vmem:[#allocation26_spill] sm:$0xff] %v8609_v9  ;;  %v6618_v2 = vpop.f32.mrf.mxu1  ;;  %v8799_v9 = vld [vmem:[#allocation6 + $0x70] sm:$0x7f] }
 0x357   : > { %5112 = vmatprep.subr.mxu1 %v12613_v0  ;;  %v3920_v12 = vpop.f32.mrf.mxu0 }
 0x358   : > { %5113 = vmatpush2.msra.mxu1 %v8487_v37  ;;  %v3755_v37 = vld [vmem:[%s8299_s11 + $0x260] sm:$0xff] }
 0x359   : > { %4077 = vmatmul.mubr.f32.gmra.mxu1 %v3745_v33  ;;  %5114 = vmatprep.subr.mxu1 %v12613_v0 }
 0x35a   : > { %4081 = vmatprep.mubr.f32.mxu1 %v3748_v41  ;;  %5115 = vmatpush2.msra.mxu1 %v8491_v39  ;;  %v8619_v17 = vpop.f32.mrf.mxu0  ;;  %v3758_v39 = vld [vmem:[%s8299_s11 + $0x278] sm:$0xff]  ;;  %v3773_v41 = vld [vmem:[%s8299_s11 + $0x2f0] sm:$0xff] }
 0x35b   : > { %5116 = vmatprep.subr.mxu1 %v12613_v0  ;;  %12935 = vst [vmem:[#allocation27_spill] sm:$0xff] %v8619_v17  ;;  %v8811_v17 = vld [vmem:[#allocation6 + $0x40] sm:$0x7f] }
 0x35c   : > { %5117 = vmatpush2.msra.mxu1 %v8495_v43  ;;  %v3925_v20 = vpop.f32.mrf.mxu0 }
 0x35d   : > { %4082 = vmatmul.mubr.f32.gmra.mxu1 %v3747_v7  ;;  %5118 = vmatprep.subr.mxu1 %v12613_v0 }
 0x35e   : > { %4086 = vmatprep.mubr.f32.mxu1 %v3750_v11  ;;  %5119 = vmatpush2.msra.mxu1 %v8499_v44  ;;  %v6652_v11 = vpop.f32.mrf.mxu1 }
 0x35f   : > { %5120 = vmatprep.subr.mxu1 %v12613_v0  ;;  %v8627_v25 = vpop.f32.mrf.mxu0 }
 0x360   : > { %5121 = vmatpush2.msra.mxu1 %v8503_v47  ;;  %12936 = vst [vmem:[#allocation28_spill] sm:$0xff] %v8627_v25  ;;  %v3757_v47 = vld [vmem:[%s8299_s11 + $0x270] sm:$0xff]  ;;  %v8813_v25 = vld [vmem:[#allocation6 + $0xe0] sm:$0x7f] }
 0x361   : > { %4087 = vmatmul.mubr.f32.gmra.mxu1 %v3749_v15  ;;  %5122 = vmatprep.subr.mxu1 %v12613_v0  ;;  %v3930_v27 = vpop.f32.mrf.mxu0  ;;  %v3775_v15 = vld [vmem:[%s8299_s11 + $0x300] sm:$0xff] }
 0x362   : > { %4091 = vmatprep.mubr.f32.mxu1 %v3752_v16  ;;  %5123 = vmatpush2.msra.mxu1 %v8507_v48  ;;  %v3760_v48 = vld [vmem:[%s8299_s11 + $0x288] sm:$0xff]  ;;  %v3778_v16 = vld [vmem:[%s8299_s11 + $0x318] sm:$0xff] }
 0x363   : > { %5124 = vmatprep.subr.mxu1 %v12613_v0  ;;  %v8633_v32 = vpop.f32.mrf.mxu0 }
 0x364   : > { %5125 = vmatpush2.msra.mxu1 %v8513_v58  ;;  %12937 = vst [vmem:[#allocation29_spill] sm:$0xff] %v8633_v32  ;;  %v3759_v58 = vld [vmem:[%s8299_s11 + $0x280] sm:$0xff]  ;;  %v8815_v32 = vld [vmem:[#allocation6 + $0x108] sm:$0x7f] }
 0x365   : > { %4092 = vmatmul.mubr.f32.gmra.mxu1 %v3751_v21  ;;  %v3935_v36 = vpop.f32.mrf.mxu0  ;;  %v6653_v21 = vpop.f32.mrf.mxu1 }
 0x366   : > { %4096 = vmatprep.mubr.f32.mxu1 %v3754_v23 }
 0x367   : > { %v8637_v43 = vpop.f32.mrf.mxu0  ;;  %v6655_v27 = vpop.f32.mrf.mxu1 }
 0x368   : > { %12938 = vst [vmem:[#allocation30_spill] sm:$0xff] %v8637_v43 }
 0x369   : > { %4097 = vmatmul.mubr.f32.gmra.mxu1 %v3753_v28  ;;  %v3940_v44 = vpop.f32.mrf.mxu0  ;;  %v3777_v28 = vld [vmem:[%s8299_s11 + $0x310] sm:$0xff]  ;;  %v6656_v36 = vpop.f32.mrf.mxu1 }
 0x36a   : > { %4101 = vmatprep.mubr.f32.mxu1 %v3756_v31  ;;  %v3780_v31 = vld [vmem:[%s8299_s11 + $0x328] sm:$0xff] }
 0x36b   : > { %v8641_v62 = vpop.f32.mrf.mxu0  ;;  %v6658_v44 = vpop.f32.mrf.mxu1 }
 0x36c   : > { %12939 = vst [vmem:[#allocation31_spill] sm:$0xff] %v8641_v62  ;;  %v8823_v62 = vld [vmem:[#allocation6 + $0x98] sm:$0x7f] }
 0x36d   : > { %4102 = vmatmul.mubr.f32.gmra.mxu1 %v3755_v37  ;;  %v3945_v49 = vpop.f32.mrf.mxu0  ;;  %v3779_v37 = vld [vmem:[%s8299_s11 + $0x320] sm:$0xff] }
 0x36e   : > { %4106 = vmatprep.mubr.f32.mxu1 %v3758_v39  ;;  %v3782_v39 = vld [vmem:[%s8299_s11 + $0x338] sm:$0xff]  ;;  %v6654_v49 = vadd.f32 %v6653_v21, %v6652_v11  ;;  %v8721_v11 = vld [vmem:[#allocation6 + $0xf0] sm:$0x7f] }
 0x36f   : > { %v8645_v50 = vpop.f32.mrf.mxu0 }
 0x370   : > { %12940 = vst [vmem:[#allocation32_spill] sm:$0xff] %v8645_v50 }
 0x371   : > { %4107 = vmatmul.mubr.f32.gmra.mxu1 %v3757_v47  ;;  %v3950_v26 = vpop.f32.mrf.mxu0  ;;  %v3781_v47 = vld [vmem:[%s8299_s11 + $0x330] sm:$0xff] }
 0x372   : > { %4111 = vmatprep.mubr.f32.mxu1 %v3760_v48  ;;  %v3784_v48 = vld [vmem:[%s8299_s11 + $0x348] sm:$0xff]  ;;  %v3783_v26 = vld [vmem:[%s8299_s11 + $0x340] sm:$0xff] }
 0x373   : > { %v8649_v24 = vpop.f32.mrf.mxu0 }
 0x374   : > { %12941 = vst [vmem:[#allocation33_spill] sm:$0xff] %v8649_v24 }
 0x375   : > { %4112 = vmatmul.mubr.f32.gmra.mxu1 %v3759_v58  ;;  %v3955_v8 = vpop.f32.mrf.mxu0  ;;  %v6613_v58 = vadd.f32 %v6612_v40, %v8651_v13  ;;  %v8696_v40 = vld [vmem:[#allocation6 + $0x8] sm:$0x7f] }
 0x376   : > { %4116 = vmatprep.mubr.f32.mxu1 %v3762_v53  ;;  %v6659_v53 = vpop.f32.mrf.mxu1  ;;  %v6657_v8 = vadd.f32 %v6656_v36, %v6655_v27  ;;  %v8729_v27 = vld [vmem:[#allocation6 + $0x10] sm:$0x7f] }
 0x377   : > { %v8655_v29 = vpop.f32.mrf.mxu0 }
 0x378   : > { %12942 = vst [vmem:[#allocation34_spill] sm:$0xff] %v8655_v29 }
 0x379   : > { %4117 = vmatmul.mubr.f32.gmra.mxu1 %v3761_v30  ;;  %v3960_v38 = vpop.f32.mrf.mxu0  ;;  %v3786_v30 = vld [vmem:[%s8299_s11 + $0x358] sm:$0xff] }
 0x37a   : > { %4121 = vmatprep.mubr.f32.mxu1 %v3764_v18  ;;  %v6616_v18 = vadd.f32 %v6615_v14, %v6614_v54  ;;  %v6660_v38 = vadd.f32 %v6659_v53, %v6658_v44  ;;  %v8700_v54 = vld [vmem:[#allocation6 + $0x78] sm:$0x7f]  ;;  %v12619_v44 = vmov 3   ;;  %v2059_v53 = vrot.slane %v8721_v11, 3 }
 0x37b   : > { %v8659_v57 = vpop.f32.mrf.mxu0 }
 0x37c   : > { %12943 = vst [vmem:[#allocation35_spill] sm:$0xff] %v8659_v57  ;;  %v1567_v14 = vadd.f32 %v6657_v8, %v6616_v18  ;;  %v3789_v18 = vld [vmem:[%s8299_s11 + $0x370] sm:$0xff]  ;;  %v8749_v8 = vld [vmem:[#allocation6 + $0x60] sm:$0x7f] }
 0x37d   : > { %4122 = vmatmul.mubr.f32.gmra.mxu1 %v3763_v51  ;;  %v3965_v59 = vpop.f32.mrf.mxu0  ;;  %v1562_v51 = vadd.f32 %v6654_v49, %v6613_v58  ;;  %v2079_v34 = vrot.slane %v8749_v8, 7 }
 0x37e   : > { %4126 = vmatprep.mubr.f32.mxu1 %v3766_v35  ;;  %v6619_v35 = vadd.f32 %v6618_v2, %v6617_v6  ;;  %v8707_v6 = vld [vmem:[#allocation6 + $0x80] sm:$0x7f] }
 0x37f   : > { %v8663_v10 = vpop.f32.mrf.mxu0 }
 0x380   : > { %12944 = vst [vmem:[#allocation36_spill] sm:$0xff] %v8663_v10 }
 0x381   : > { %4127 = vmatmul.mubr.f32.gmra.mxu1 %v3765_v56  ;;  %v3970_v19 = vpop.f32.mrf.mxu0 }
 0x382   : > { %4131 = vmatprep.mubr.f32.mxu1 %v3768_v46  ;;  %v3785_v46 = vld [vmem:[%s8299_s11 + $0x350] sm:$0xff] }
 0x383   : > { %v8667_v45 = vpop.f32.mrf.mxu0  ;;  %v8698_v19 = vld [vmem:[#allocation6 + $0x50] sm:$0x7f] }
 0x384   : > { %12945 = vst [vmem:[#allocation37_spill] sm:$0xff] %v8667_v45  ;;  %v2051_v36 = vrot.slane %v8698_v19, 7 }
 0x385   : > { %4132 = vmatmul.mubr.f32.gmra.mxu1 %v3767_v52  ;;  %v3975_v60 = vpop.f32.mrf.mxu0  ;;  %v3788_v52 = vld [vmem:[%s8299_s11 + $0x368] sm:$0xff] }
 0x386   : > { %4136 = vmatprep.mubr.f32.mxu1 %v3770_v61  ;;  %v8694_v61 = vld [vmem:[#allocation6] sm:$0x7f] }
 0x387   : > { %v8671_v1 = vpop.f32.mrf.mxu0  ;;  %v8709_v60 = vld [vmem:[#allocation6 + $0xa0] sm:$0x7f]  ;;  %v2049_v21 = vrot.slane %v8694_v61, 1 }
 0x388   : > { %12946 = vst [vmem:[#allocation38_spill] sm:$0xff] %v8671_v1  ;;  %v2109_v1 = vrot.slane %v8823_v62, 6 }
 0x389   : > { %4137 = vmatmul.mubr.f32.gmra.mxu1 %v3769_v22  ;;  %v3980_v33 = vpop.f32.mrf.mxu0  ;;  %v3787_v22 = vld [vmem:[%s8299_s11 + $0x360] sm:$0xff] }
 0x38a   : > { %4141 = vmatprep.mubr.f32.mxu1 %v3772_v55  ;;  %v8705_v55 = vld [vmem:[#allocation6 + $0x58] sm:$0x7f]  ;;  %v8715_v33 = vadd.f32 %v6660_v38, %v6619_v35  ;;  %v2067_v38 = vrot.slane %v8707_v6, 6 }
 0x38b   : > { %v8675_v7 = vpop.f32.mrf.mxu0  ;;  %v2065_v35 = vrot.slane %v8705_v55, 7 }
 0x38c   : > { %12947 = vst [vmem:[#allocation39_spill] sm:$0xff] %v8675_v7 }
 0x38d   : > { %4142 = vmatmul.mubr.f32.gmra.mxu1 %v3771_v3  ;;  %v3985_v12 = vpop.f32.mrf.mxu0  ;;  %v8711_v3 = vld [vmem:[#allocation6 + $0xa8] sm:$0x7f] }
 0x38e   : > { %4146 = vmatprep.mubr.f32.mxu1 %v3774_v63  ;;  %v8713_v63 = vld [vmem:[#allocation6 + $0xc8] sm:$0x7f] }
 0x38f   : > { %v8679_v20 = vpop.f32.mrf.mxu0  ;;  %v2057_v58 = vrot.slane %v8713_v63, 4 }
 0x390   : > { %12948 = vst [vmem:[#allocation40_spill] sm:$0xff] %v8679_v20 }
 0x391   : > { %4147 = vmatmul.mubr.f32.gmra.mxu1 %v3773_v41  ;;  %v3990_v23 = vpop.f32.mrf.mxu0  ;;  %v8717_v41 = vld [vmem:[#allocation6 + $0x28] sm:$0x7f] }
 0x392   : > { %4151 = vmatprep.mubr.f32.mxu1 %v3776_v5  ;;  %v8719_v5 = vld [vmem:[#allocation6 + $0xd0] sm:$0x7f]  ;;  %v2050_v49 = vsel %vm1791_vm1, %v8717_v41, %v2049_v21 }
 0x393   : > { %v2071_v21 = vrot.slane %v8719_v5, 4 }
 0x395   : > { %4152 = vmatmul.mubr.f32.gmra.mxu1 %v3775_v15  ;;  %v3790_v15 = vld [vmem:[%s8299_s11 + $0x378] sm:$0xff] }
 0x396   : > { %4156 = vmatprep.mubr.f32.mxu1 %v3778_v16  ;;  %v8726_v16 = vld [vmem:[#allocation6 + $0xf8] sm:$0x7f] }
 0x399   : > { %4157 = vmatmul.mubr.f32.gmra.mxu1 %v3777_v28  ;;  %v8731_v28 = vld [vmem:[#allocation6 + $0x30] sm:$0x7f] }
 0x39a   : > { %4161 = vmatprep.mubr.f32.mxu1 %v3780_v31  ;;  %v8733_v31 = vld [vmem:[#allocation6 + $0x118] sm:$0x7f] }
 0x39d   : > { %4162 = vmatmul.mubr.f32.gmra.mxu1 %v3779_v37  ;;  %v2053_v37 = vrot.slane %v8700_v54, 6 }
 0x39e   : > { %4166 = vmatprep.mubr.f32.mxu1 %v3782_v39  ;;  %v2055_v39 = vrot.slane %v8709_v60, 5 }
 0x3a1   : > { %4167 = vmatmul.mubr.f32.gmra.mxu1 %v3781_v47  ;;  %v12615_v47 = vmov 2  }
 0x3a2   : > { %4171 = vmatprep.mubr.f32.mxu1 %v3784_v48  ;;  %v8740_v48 = vld [vmem:[#allocation6 + $0x120] sm:$0x7f] }
 0x3a5   : > { %v1641_v56 = vpop.f32.mrf.mxu1  ;;  %4172 = vmatmul.mubr.f32.gmra.mxu1 %v3783_v26  ;;  %v2063_v26 = vrot.slane %v8696_v40, 1 }
 0x3a6   : > { %v8691_v59 = vadd.f32 %v1641_v56, %v1562_v51  ;;  %4176 = vmatprep.mubr.f32.mxu1 %v3786_v30  ;;  %v2052_v51 = vsel %vm1794_vm2, %v2051_v36, %v2050_v49  ;;  %v2069_v56 = vrot.slane %v8711_v3, 5  ;;  %v8766_v36 = vld [vmem:[#allocation6 + $0x18] sm:$0x7f] }
 0x3a7   : > { %v1643_v13 = vpop.f32.mrf.mxu1  ;;  %v8768_v49 = vld [vmem:[#allocation6 + $0xd8] sm:$0x7f]  ;;  %v2091_v24 = vrot.slane %v8766_v36, 1 }
 0x3a8   : > { %2038 = vperm.xlu1 %7152, %v8691_v59   ;;  %1657 = vperm.xlu0 %7151, %v8691_v59   ;;  %v8759_v13 = vld [vmem:[#allocation6 + $0xb0] sm:$0x7f] }
 0x3a9   : > { %v1646_v2 = vpop.f32.mrf.mxu1  ;;  %4177 = vmatmul.mubr.f32.gmra.mxu1 %v3785_v46  ;;  %v3792_v46 = vld [vmem:[%s8299_s11 + $0x388] sm:$0xff]  ;;  %v2092_v57 = vsel %vm1791_vm1, %v8811_v17, %v2091_v24  ;;  %v2107_v24 = vrot.slane %v8799_v9, 7 }
 0x3aa   : > { %v8723_v12 = vadd.f32 %v1646_v2, %v1567_v14  ;;  %4181 = vmatprep.mubr.f32.mxu1 %v3788_v52  ;;  %v8757_v52 = vld [vmem:[#allocation6 + $0x88] sm:$0x7f]  ;;  %v2054_v14 = vsel %vm1797_vm3, %v2053_v37, %v2052_v51  ;;  %v2064_v2 = vsel %vm1791_vm1, %v8731_v28, %v2063_v26  ;;  %v2075_v37 = vrot.slane %v8740_v48, 2  ;;  %v8774_v51 = vld [vmem:[#allocation6 + $0x38] sm:$0x7f] }
 0x3ab   : > { %v1648_v23 = vpop.f32.mrf.mxu1  ;;  %v2066_v0 = vsel %vm1794_vm2, %v2065_v35, %v2064_v2  ;;  %v8783_v35 = vld [vmem:[#allocation6 + $0x68] sm:$0x7f] }
 0x3ac   : > { %7154 = vset.pattern.permute.xlu1 %v12619_v44  ;;  %7153 = vset.pattern.permute.xlu0 %v12615_v47  ;;  %v2073_v47 = vrot.slane %v8726_v16, 3  ;;  %v2077_v44 = vrot.slane %v8729_v27, 1  ;;  %v2093_v29 = vrot.slane %v8783_v35, 7 }
 0x3ad   : > { %v1651_v30 = vpop.f32.mrf.mxu1  ;;  %4182 = vmatmul.mubr.f32.gmra.mxu1 %v3787_v22  ;;  %2572 = vperm.xlu1 %7154, %v8691_v59   ;;  %v2061_v22 = vrot.slane %v8733_v31, 2 }
 0x3ae   : > { %2305 = vperm.xlu0 %7153, %v8691_v59   ;;  %4186 = vmatprep.mubr.f32.mxu1 %v3790_v15  ;;  %v2056_v15 = vsel %vm1800_vm4, %v2055_v39, %v2054_v14  ;;  %v12623_v39 = vmov 4   ;;  %v8785_v14 = vld [vmem:[#allocation6 + $0x128] sm:$0x7f] }
 0x3af   : > { %v1653_v23 = vpop.f32.mrf.mxu1  ;;  %v2058_v26 = vsel %vm1803_vm5, %v2057_v58, %v2056_v15  ;;  %v2081_v58 = vrot.slane %v8757_v52, 6  ;;  %v3791_v15 = vld [vmem:[%s8299_s11 + $0x380] sm:$0xff]  ;;  %v2089_v50 = vrot.slane %v8785_v14, 2 }
 0x3b0   : > { %v2068_v23 = vsel %vm1797_vm3, %v2067_v38, %v2066_v0  ;;  %v2060_v2 = vsel %vm1806_vm6, %v2059_v53, %v2058_v26  ;;  %v2083_v0 = vrot.slane %v8759_v13, 5  ;;  %v8792_v38 = vadd.f32 %v1651_v30, %v8715_v33  ;;  %v8801_v53 = vld [vmem:[#allocation6 + $0x90] sm:$0x7f]  ;;  %v3794_v30 = vld [vmem:[%s8299_s11 + $0x398] sm:$0xff] }
 0x3b1   : > { %4187 = vmatmul.mubr.f32.gmra.mxu1 %v3789_v18  ;;  %7155 = vset.pattern.permute.xlu1 %v12623_v39  ;;  %v2070_v4 = vsel %vm1800_vm4, %v2069_v56, %v2068_v23  ;;  %v12950_v18 = vmov 0   ;;  %v8797_v39 = vld [vmem:[#allocation6 + $0x20] sm:$0x7f]  ;;  %12951 = vst [vmem:[#allocation42_spill] sm:$0xff] %v8801_v53  ;;  %v8803_v56 = vld [vmem:[#allocation6 + $0xb8] sm:$0x7f]  ;;  %v2078_v23 = vsel %vm1791_vm1, %v8774_v51, %v2077_v44 }
 0x3b2   : > { %12949 = vst [vmem:[#allocation41_spill] sm:$0xff] %v8792_v38  ;;  %7158 = vset.pattern.permute.xlu0 %v12950_v18  ;;  %2839 = vperm.xlu1 %7155, %v8691_v59   ;;  %v2072_v26 = vsel %vm1803_vm5, %v2071_v21, %v2070_v4  ;;  %v2085_v33 = vrot.slane %v8768_v49, 4  ;;  %v8818_v43 = vsel %vm1809_vm7, %v2061_v22, %v2060_v2  ;;  %v2087_v44 = vrot.slane %v8776_v42, 3  ;;  %v8829_v22 = vld [vmem:[#allocation6 + $0xc0] sm:$0x7f] }
 0x3b3   : > { %1662 = vperm.xlu0 %7158, %v8723_v12   ;;  %4191 = vmatprep.mubr.f32.mxu1 %v3792_v46  ;;  %12952 = vst [vmem:[#allocation43_spill] sm:$0xff] %v8818_v43  ;;  %v2074_v4 = vsel %vm1806_vm6, %v2073_v47, %v2072_v26  ;;  %v2080_v21 = vsel %vm1794_vm2, %v2079_v34, %v2078_v23  ;;  %v8831_v2 = vld [vmem:[#allocation6 + $0x130] sm:$0x7f]  ;;  %v2095_v26 = vrot.slane %v8801_v53, 6  ;;  %v12627_v23 = vmov 5  }
 0x3b4   : > { %v2082_v46 = vsel %vm1797_vm3, %v2081_v58, %v2080_v21  ;;  %v8834_v34 = vsel %vm1809_vm7, %v2075_v37, %v2074_v4  ;;  %v2097_v58 = vrot.slane %v8803_v56, 5  ;;  %v3793_v21 = vld [vmem:[%s8299_s11 + $0x390] sm:$0xff]  ;;  %v2099_v37 = vrot.slane %v8813_v25, 4 }
 0x3b5   : > { %4192 = vmatmul.mubr.f32.gmra.mxu1 %v3791_v15  ;;  %12953 = vst [vmem:[#allocation44_spill] sm:$0xff] %v8834_v34  ;;  %v2084_v47 = vsel %vm1800_vm4, %v2083_v0, %v2082_v46  ;;  %v8841_v15 = vld [vmem:[#allocation6 + $0xe8] sm:$0x7f]  ;;  %v2101_v0 = vrot.slane %v8815_v32, 3  ;;  %v12954_v4 = vmov 3   ;;  %v2103_v45 = vrot.slane %v8831_v2, 2 }
 0x3b6   : > { %7156 = vset.pattern.permute.xlu1 %v12627_v23  ;;  %4196 = vmatprep.mubr.f32.mxu1 %v3794_v30  ;;  %v2086_v43 = vsel %vm1803_vm5, %v2085_v33, %v2084_v47  ;;  %v3796_v46 = vld [vmem:[%s8299_s11 + $0x3a8] sm:$0xff]  ;;  %v8851_v34 = vld [vmem:[#allocation6 + $0x110] sm:$0x7f]  ;;  %v2094_v23 = vsel %vm1794_vm2, %v2093_v29, %v2092_v57  ;;  %v2105_v33 = vrot.slane %v8797_v39, 1  ;;  %v8864_v29 = vld [vmem:[#allocation6 + $0x138] sm:$0x7f] }
 0x3b7   : > { %7161 = vset.pattern.permute.xlu0 %v12954_v4  ;;  %3106 = vperm.xlu1 %7156, %v8691_v59   ;;  %v2088_v30 = vsel %vm1806_vm6, %v2087_v44, %v2086_v43  ;;  %v8858_v47 = vld [vmem:[#allocation6 + $0x48] sm:$0x7f]  ;;  %v2096_v10 = vsel %vm1797_vm3, %v2095_v26, %v2094_v23  ;;  %v2111_v43 = vrot.slane %v8829_v22, 5  ;;  %v2113_v26 = vrot.slane %v8841_v15, 4  ;;  %v3795_v23 = vld [vmem:[%s8299_s11 + $0x3a0] sm:$0xff] }
 0x3b8   : > { %2576 = vperm.xlu0 %7161, %v8723_v12   ;;  %v8867_v57 = vsel %vm1809_vm7, %v2089_v50, %v2088_v30  ;;  %v2098_v44 = vsel %vm1800_vm4, %v2097_v58, %v2096_v10  ;;  %v2106_v7 = vsel %vm1791_vm1, %v8858_v47, %v2105_v33  ;;  %v1790_v38 = vrot.slane %v8717_v41, 7  ;;  %v3798_v50 = vld [vmem:[%s8299_s11 + $0x3b8] sm:$0xff] }
 0x3b9   : > { %4197 = vmatmul.mubr.f32.gmra.mxu1 %v3793_v21  ;;  %12955 = vst [vmem:[#allocation45_spill] sm:$0xff] %v8867_v57  ;;  %v2100_v20 = vsel %vm1803_vm5, %v2099_v37, %v2098_v44  ;;  %v2108_v4 = vsel %vm1794_vm2, %v2107_v24, %v2106_v7  ;;  %v2115_v21 = vrot.slane %v8851_v34, 3  ;;  %v12630_v18 = vmov 6  }
 0x3ba   : > { %4201 = vmatprep.mubr.f32.mxu1 %v3796_v46  ;;  %v2102_v10 = vsel %vm1806_vm6, %v2101_v0, %v2100_v20  ;;  %v2110_v58 = vsel %vm1797_vm3, %v2109_v1, %v2108_v4  ;;  %v1793_v46 = vrot.slane %v8698_v19, 6  ;;  %v1796_v30 = vrot.slane %v8700_v54, 5 }
 0x3bb   : > { %7157 = vset.pattern.permute.xlu1 %v12630_v18  ;;  %v12956_v37 = vmov 4   ;;  %v2112_v7 = vsel %vm1800_vm4, %v2111_v43, %v2110_v58  ;;  %v2117_v33 = vrot.slane %v8864_v29, 2  ;;  %v1792_v24 = vsel %vm1791_vm1, %v1790_v38, %v8694_v61  ;;  %v3797_v43 = vld [vmem:[%s8299_s11 + $0x3b0] sm:$0xff] }
 0x3bc   : > { %7162 = vset.pattern.permute.xlu0 %v12956_v37  ;;  %3373 = vperm.xlu1 %7157, %v8691_v59   ;;  %v1799_v20 = vrot.slane %v8709_v60, 4  ;;  %v2114_v1 = vsel %vm1803_vm5, %v2113_v26, %v2112_v7  ;;  %v1795_v0 = vsel %vm1794_vm2, %v1793_v46, %v1792_v24  ;;  %v1802_v4 = vrot.slane %v8713_v63, 3  ;;  %v3800_v24 = vld [vmem:[%s8299_s11 + $0x3c8] sm:$0xff] }
 0x3bd   : > { %2843 = vperm.xlu0 %7162, %v8723_v12   ;;  %4202 = vmatmul.mubr.f32.gmra.mxu1 %v3795_v23  ;;  %v1805_v59 = vrot.slane %v8721_v11, 2  ;;  %v8898_v44 = vsel %vm1809_vm7, %v2103_v45, %v2102_v10  ;;  %v2116_v38 = vsel %vm1806_vm6, %v2115_v21, %v2114_v1  ;;  %v1798_v58 = vsel %vm1797_vm3, %v1796_v30, %v1795_v0 }
 0x3be   : > { %4206 = vmatprep.mubr.f32.mxu1 %v3798_v50  ;;  %12957 = vst [vmem:[#allocation46_spill] sm:$0xff] %v8898_v44  ;;  %v1811_v23 = vrot.slane %v8731_v28, 7  ;;  %v1801_v18 = vsel %vm1800_vm4, %v1799_v20, %v1798_v58  ;;  %v1808_v26 = vrot.slane %v8733_v31, 1  ;;  %v1813_v46 = vrot.slane %v8705_v55, 6 }
 0x3bf   : > { %v1815_v7 = vrot.slane %v8707_v6, 5  ;;  %v12958_v50 = vmov 1   ;;  %v1804_v45 = vsel %vm1803_vm5, %v1802_v4, %v1801_v18  ;;  %v1817_v10 = vrot.slane %v8711_v3, 4  ;;  %v3799_v18 = vld [vmem:[%s8299_s11 + $0x3c0] sm:$0xff] }
 0x3c0   : > { %7159 = vset.pattern.permute.xlu1 %v12958_v50  ;;  %v1812_v21 = vsel %vm1791_vm1, %v1811_v23, %v8696_v40  ;;  %v1819_v30 = vrot.slane %v8719_v5, 3  ;;  %v12959_v20 = vmov 5   ;;  %v8916_v1 = vsel %vm1809_vm7, %v2117_v33, %v2116_v38 }
 0x3c1   : > { %7163 = vset.pattern.permute.xlu0 %v12959_v20  ;;  %4207 = vmatmul.mubr.f32.gmra.mxu1 %v3797_v43  ;;  %12960 = vst [vmem:[#allocation47_spill] sm:$0xff] %v8916_v1  ;;  %v1807_v0 = vsel %vm1806_vm6, %v1805_v59, %v1804_v45  ;;  %v1814_v58 = vsel %vm1794_vm2, %v1813_v46, %v1812_v21  ;;  %v1821_v44 = vrot.slane %v8726_v16, 2  ;;  %v1823_v23 = vrot.slane %v8740_v48, 1 }
 0x3c2   : > { %2042 = vperm.xlu1 %7159, %v8723_v12   ;;  %3110 = vperm.xlu0 %7163, %v8723_v12   ;;  %v1816_v4 = vsel %vm1797_vm3, %v1815_v7, %v1814_v58  ;;  %v1825_v43 = vrot.slane %v8774_v51, 7  ;;  %v1827_v33 = vrot.slane %v8749_v8, 6  ;;  %v8929_v59 = vsel %vm1809_vm7, %v1808_v26, %v1807_v0  ;;  %v3802_v26 = vld [vmem:[%s8299_s11 + $0x3d8] sm:$0xff] }
 0x3c3   : > { %4211 = vmatprep.mubr.f32.mxu1 %v3800_v24  ;;  %12961 = vst [vmem:[#allocation48_spill] sm:$0xff] %v8929_v59  ;;  %v1818_v38 = vsel %vm1800_vm4, %v1817_v10, %v1816_v4  ;;  %v1829_v46 = vrot.slane %v8757_v52, 5  ;;  %v1831_v45 = vrot.slane %v8759_v13, 4  ;;  %v1833_v58 = vrot.slane %v8768_v49, 3 }
 0x3c4   : > { %v1820_v21 = vsel %vm1803_vm5, %v1819_v30, %v1818_v38  ;;  %v1826_v7 = vsel %vm1791_vm1, %v1825_v43, %v8729_v27  ;;  %v1835_v1 = vrot.slane %v8776_v42, 2  ;;  %v1839_v0 = vrot.slane %v8811_v17, 7  ;;  %v3801_v43 = vld [vmem:[%s8299_s11 + $0x3d0] sm:$0xff] }
 0x3c5   : > { %4212 = vmatmul.mubr.f32.gmra.mxu1 %v3799_v18  ;;  %v1822_v24 = vsel %vm1806_vm6, %v1821_v44, %v1820_v21  ;;  %v1828_v10 = vsel %vm1794_vm2, %v1827_v33, %v1826_v7  ;;  %v1841_v4 = vrot.slane %v8783_v35, 6  ;;  %v12962_v59 = vmov 2   ;;  %v3804_v44 = vld [vmem:[%s8299_s11 + $0x3e8] sm:$0xff] }
 0x3c6   : > { %7160 = vset.pattern.permute.xlu1 %v12962_v59  ;;  %v12963_v30 = vmov 6   ;;  %v1830_v38 = vsel %vm1797_vm3, %v1829_v46, %v1828_v10  ;;  %v1837_v57 = vrot.slane %v8785_v14, 1  ;;  %v1843_v18 = vrot.slane %v8801_v53, 5  ;;  %4216 = vmatprep.mubr.f32.mxu1 %v3802_v26  ;;  %v3803_v26 = vld [vmem:[%s8299_s11 + $0x3e0] sm:$0xff] }
 0x3c7   : > { %7164 = vset.pattern.permute.xlu0 %v12963_v30  ;;  %v1845_v20 = vrot.slane %v8803_v56, 4  ;;  %2309 = vperm.xlu1 %7160, %v8723_v12   ;;  %v8955_v33 = vsel %vm1809_vm7, %v1823_v23, %v1822_v24  ;;  %v1832_v21 = vsel %vm1800_vm4, %v1831_v45, %v1830_v38  ;;  %v1840_v46 = vsel %vm1791_vm1, %v1839_v0, %v8766_v36 }
 0x3c8   : > { %3377 = vperm.xlu0 %7164, %v8723_v12   ;;  %12964 = vst [vmem:[#allocation49_spill] sm:$0xff] %v8955_v33  ;;  %v1847_v7 = vrot.slane %v8813_v25, 3  ;;  %v1834_v10 = vsel %vm1803_vm5, %v1833_v58, %v1832_v21  ;;  %v1842_v30 = vsel %vm1794_vm2, %v1841_v4, %v1840_v46  ;;  %v1849_v12 = vrot.slane %v8815_v32, 2  ;;  %v12966_v46 = vld [vmem:[#allocation41_spill] sm:$0xff]  ;;  %v3810_v33 = vld [vmem:[%s8299_s11 + $0x418] sm:$0xff] }
 0x3c9   : > { %v1853_v53 = vrot.slane %v8858_v47, 7  ;;  %4217 = vmatmul.mubr.f32.gmra.mxu1 %v3801_v43  ;;  %v1836_v23 = vsel %vm1806_vm6, %v1835_v1, %v1834_v10  ;;  %v1844_v45 = vsel %vm1797_vm3, %v1843_v18, %v1842_v30  ;;  %v1855_v24 = vrot.slane %v8799_v9, 6  ;;  %v3806_v30 = vld [vmem:[%s8299_s11 + $0x3f8] sm:$0xff] }
 0x3ca   : > { %v1857_v0 = vrot.slane %v8823_v62, 5  ;;  %4221 = vmatprep.mubr.f32.mxu1 %v3804_v44  ;;  %v1846_v58 = vsel %vm1800_vm4, %v1845_v20, %v1844_v45  ;;  %v1851_v4 = vrot.slane %v8831_v2, 1  ;;  %v1859_v21 = vrot.slane %v8829_v22, 4 }
 0x3cb   : > { %v1854_v38 = vsel %vm1791_vm1, %v1853_v53, %v8797_v39  ;;  %7166 = vset.pattern.permute.xlu1 %v12958_v50  ;;  %v12965_v1 = vmov 0   ;;  %v1848_v43 = vsel %vm1803_vm5, %v1847_v7, %v1846_v58  ;;  %v1861_v44 = vrot.slane %v8841_v15, 3 }
 0x3cc   : > { %7165 = vset.pattern.permute.xlu0 %v12965_v1  ;;  %v1856_v18 = vsel %vm1794_vm2, %v1855_v24, %v1854_v38  ;;  %v1863_v20 = vrot.slane %v8851_v34, 2  ;;  %2046 = vperm.xlu1 %7166, %v12966_v46   ;;  %v8985_v53 = vsel %vm1809_vm7, %v1837_v57, %v1836_v23  ;;  %v1850_v10 = vsel %vm1806_vm6, %v1849_v12, %v1848_v43 }
 0x3cd   : > { %1667 = vperm.xlu0 %7165, %v12966_v46   ;;  %12967 = vst [vmem:[#allocation50_spill] sm:$0xff] %v8985_v53  ;;  %v1858_v45 = vsel %vm1797_vm3, %v1857_v0, %v1856_v18  ;;  %v2583_v7 = vrot.slane %v8694_v61, 3  ;;  %4222 = vmatmul.mubr.f32.gmra.mxu1 %v3803_v26  ;;  %v1865_v58 = vrot.slane %v8864_v29, 1  ;;  %v2584_v38 = vrot.slane %v8717_v41, 2  ;;  %v3805_v26 = vld [vmem:[%s8299_s11 + $0x3f0] sm:$0xff]  ;;  %v3807_v53 = vld [vmem:[%s8299_s11 + $0x400] sm:$0xff] }
 0x3ce   : > { %v1860_v24 = vsel %vm1800_vm4, %v1859_v21, %v1858_v45  ;;  %v2586_v50 = vrot.slane %v8698_v19, 1  ;;  %4226 = vmatprep.mubr.f32.mxu1 %v3806_v30  ;;  %v8995_v57 = vsel %vm1809_vm7, %v1851_v4, %v1850_v10  ;;  %v2589_v23 = vrot.slane %v8709_v60, 7  ;;  %v3808_v4 = vld [vmem:[%s8299_s11 + $0x408] sm:$0xff] }
 0x3cf   : > { %12968 = vst [vmem:[#allocation51_spill] sm:$0xff] %v8995_v57  ;;  %v1862_v12 = vsel %vm1803_vm5, %v1861_v44, %v1860_v24  ;;  %v2591_v0 = vrot.slane %v8713_v63, 6  ;;  %v2585_v43 = vsel %vm1791_vm1, %v2584_v38, %v2583_v7  ;;  %v2593_v18 = vrot.slane %v8721_v11, 5 }
 0x3d0   : > { %v1864_v21 = vsel %vm1806_vm6, %v1863_v20, %v1862_v12  ;;  %v2597_v45 = vrot.slane %v8696_v40, 3  ;;  %7167 = vset.pattern.permute.xlu1 %v12962_v59  ;;  %v12969_v30 = vmov 3   ;;  %v2587_v44 = vsel %vm1794_vm2, %v2586_v50, %v2585_v43 }
 0x3d1   : > { %7168 = vset.pattern.permute.xlu0 %v12969_v30  ;;  %v2595_v10 = vrot.slane %v8733_v31, 4  ;;  %v2598_v24 = vrot.slane %v8731_v28, 2  ;;  %v2600_v20 = vrot.slane %v8705_v55, 1  ;;  %2313 = vperm.xlu1 %7167, %v12966_v46   ;;  %v9015_v7 = vsel %vm1809_vm7, %v1865_v58, %v1864_v21 }
 0x3d2   : > { %2580 = vperm.xlu0 %7168, %v12966_v46   ;;  %12970 = vst [vmem:[#allocation52_spill] sm:$0xff] %v9015_v7  ;;  %v2588_v38 = vsel %vm1797_vm3, %v8700_v54, %v2587_v44  ;;  %v2603_v50 = vrot.slane %v8711_v3, 7  ;;  %v2605_v12 = vrot.slane %v8719_v5, 6  ;;  %4227 = vmatmul.mubr.f32.gmra.mxu1 %v3805_v26  ;;  %v2607_v30 = vrot.slane %v8726_v16, 5 }
 0x3d3   : > { %v2590_v43 = vsel %vm1800_vm4, %v2589_v23, %v2588_v38  ;;  %v2599_v59 = vsel %vm1791_vm1, %v2598_v24, %v2597_v45  ;;  %v2611_v57 = vrot.slane %v8729_v27, 3  ;;  %4231 = vmatprep.mubr.f32.mxu1 %v3808_v4  ;;  %v2612_v44 = vrot.slane %v8774_v51, 2 }
 0x3d4   : > { %v2592_v58 = vsel %vm1803_vm5, %v2591_v0, %v2590_v43  ;;  %v2601_v21 = vsel %vm1794_vm2, %v2600_v20, %v2599_v59  ;;  %v2614_v7 = vrot.slane %v8749_v8, 1  ;;  %v2609_v45 = vrot.slane %v8740_v48, 4 }
 0x3d5   : > { %v2594_v26 = vsel %vm1806_vm6, %v2593_v18, %v2592_v58  ;;  %v2602_v23 = vsel %vm1797_vm3, %v8707_v6, %v2601_v21  ;;  %v2617_v4 = vrot.slane %v8759_v13, 7  ;;  %v2613_v24 = vsel %vm1791_vm1, %v2612_v44, %v2611_v57  ;;  %v3812_v44 = vld [vmem:[%s8299_s11 + $0x428] sm:$0xff] }
 0x3d6   : > { %7169 = vset.pattern.permute.xlu0 %v12956_v37  ;;  %v9038_v0 = vsel %vm1809_vm7, %v2595_v10, %v2594_v26  ;;  %v2604_v59 = vsel %vm1800_vm4, %v2603_v50, %v2602_v23  ;;  %v2619_v18 = vrot.slane %v8768_v49, 6  ;;  %4232 = vmatmul.mubr.f32.gmra.mxu1 %v3807_v53  ;;  %v2615_v38 = vsel %vm1794_vm2, %v2614_v7, %v2613_v24  ;;  %v3809_v10 = vld [vmem:[%s8299_s11 + $0x410] sm:$0xff] }
 0x3d7   : > { %12971 = vst [vmem:[#allocation53_spill] sm:$0xff] %v9038_v0  ;;  %2847 = vperm.xlu0 %7169, %v12966_v46   ;;  %v2606_v20 = vsel %vm1803_vm5, %v2605_v12, %v2604_v59  ;;  %v2621_v43 = vrot.slane %v8776_v42, 5  ;;  %v2625_v58 = vrot.slane %v8766_v36, 3  ;;  %4236 = vmatprep.mubr.f32.mxu1 %v3810_v33  ;;  %v2616_v57 = vsel %vm1797_vm3, %v8757_v52, %v2615_v38 }
 0x3d8   : > { %v2608_v21 = vsel %vm1806_vm6, %v2607_v30, %v2606_v20  ;;  %v2626_v50 = vrot.slane %v8811_v17, 2  ;;  %v2628_v53 = vrot.slane %v8783_v35, 1  ;;  %v2618_v7 = vsel %vm1800_vm4, %v2617_v4, %v2616_v57 }
 0x3d9   : > { %v9056_v12 = vsel %vm1809_vm7, %v2609_v45, %v2608_v21  ;;  %v2623_v26 = vrot.slane %v8785_v14, 4  ;;  %v2631_v33 = vrot.slane %v8803_v56, 7  ;;  %v2620_v30 = vsel %vm1803_vm5, %v2619_v18, %v2618_v7  ;;  %v3811_v18 = vld [vmem:[%s8299_s11 + $0x420] sm:$0xff] }
 0x3da   : > { %12972 = vst [vmem:[#allocation54_spill] sm:$0xff] %v9056_v12  ;;  %v2627_v23 = vsel %vm1791_vm1, %v2626_v50, %v2625_v58  ;;  %v2633_v59 = vrot.slane %v8813_v25, 6  ;;  %v2635_v24 = vrot.slane %v8815_v32, 5  ;;  %4237 = vmatmul.mubr.f32.gmra.mxu1 %v3809_v10  ;;  %v12973_v20 = vmov 5   ;;  %v12974_v58 = vld [vmem:[#allocation42_spill] sm:$0xff] }
 0x3db   : > { %7170 = vset.pattern.permute.xlu0 %v12973_v20  ;;  %v2622_v45 = vsel %vm1806_vm6, %v2621_v43, %v2620_v30  ;;  %v2629_v4 = vsel %vm1794_vm2, %v2628_v53, %v2627_v23  ;;  %v2639_v38 = vrot.slane %v8797_v39, 3  ;;  %v2640_v21 = vrot.slane %v8858_v47, 2  ;;  %4241 = vmatprep.mubr.f32.mxu1 %v3812_v44  ;;  %v3814_v43 = vld [vmem:[%s8299_s11 + $0x438] sm:$0xff] }
 0x3dc   : > { %3114 = vperm.xlu0 %7170, %v12966_v46   ;;  %v2630_v57 = vsel %vm1797_vm3, %v12974_v58, %v2629_v4  ;;  %v2637_v50 = vrot.slane %v8831_v2, 4  ;;  %v2642_v10 = vrot.slane %v8799_v9, 1  ;;  %v2645_v7 = vrot.slane %v8829_v22, 7 }
 0x3dd   : > { %v9079_v53 = vsel %vm1809_vm7, %v2623_v26, %v2622_v45  ;;  %v2632_v30 = vsel %vm1800_vm4, %v2631_v33, %v2630_v57  ;;  %v2641_v23 = vsel %vm1791_vm1, %v2640_v21, %v2639_v38  ;;  %v2647_v44 = vrot.slane %v8841_v15, 6  ;;  %v3813_v38 = vld [vmem:[%s8299_s11 + $0x430] sm:$0xff] }
 0x3de   : > { %12975 = vst [vmem:[#allocation42_spill] sm:$0xff] %v9079_v53  ;;  %v2634_v46 = vsel %vm1803_vm5, %v2633_v59, %v2632_v30  ;;  %v2643_v4 = vsel %vm1794_vm2, %v2642_v10, %v2641_v23  ;;  %v2649_v20 = vrot.slane %v8851_v34, 5  ;;  %v2316_v37 = vrot.slane %v8694_v61, 2  ;;  %4242 = vmatmul.mubr.f32.gmra.mxu1 %v3811_v18 }
 0x3df   : > { %v2636_v12 = vsel %vm1806_vm6, %v2635_v24, %v2634_v46  ;;  %v2644_v26 = vsel %vm1797_vm3, %v8823_v62, %v2643_v4  ;;  %v2317_v33 = vrot.slane %v8717_v41, 1  ;;  %v2320_v45 = vrot.slane %v8700_v54, 7  ;;  %4246 = vmatprep.mubr.f32.mxu1 %v3814_v43  ;;  %v3816_v46 = vld [vmem:[%s8299_s11 + $0x448] sm:$0xff] }
 0x3e0   : > { %v9095_v59 = vsel %vm1809_vm7, %v2637_v50, %v2636_v12  ;;  %v2646_v21 = vsel %vm1800_vm4, %v2645_v7, %v2644_v26  ;;  %v2651_v57 = vrot.slane %v8864_v29, 4  ;;  %v2322_v18 = vrot.slane %v8709_v60, 6  ;;  %7171 = vset.pattern.permute.xlu0 %v12965_v1 }
 0x3e1   : > { %12976 = vst [vmem:[#allocation55_spill] sm:$0xff] %v9095_v59  ;;  %v2648_v24 = vsel %vm1803_vm5, %v2647_v44, %v2646_v21  ;;  %v2318_v10 = vsel %vm1791_vm1, %v2317_v33, %v2316_v37  ;;  %v2324_v43 = vrot.slane %v8713_v63, 5  ;;  %v2326_v30 = vrot.slane %v8721_v11, 4  ;;  %v3815_v33 = vld [vmem:[%s8299_s11 + $0x440] sm:$0xff] }
 0x3e2   : > { %v2650_v12 = vsel %vm1806_vm6, %v2649_v20, %v2648_v24  ;;  %v2319_v50 = vsel %vm1794_vm2, %v8698_v19, %v2318_v10  ;;  %v2330_v7 = vrot.slane %v8696_v40, 2  ;;  %v2331_v23 = vrot.slane %v8731_v28, 1  ;;  %4247 = vmatmul.mubr.f32.gmra.mxu1 %v3813_v38  ;;  %v3818_v38 = vld [vmem:[%s8299_s11 + $0x458] sm:$0xff] }
 0x3e3   : > { %v2321_v4 = vsel %vm1797_vm3, %v2320_v45, %v2319_v50  ;;  %v2328_v44 = vrot.slane %v8733_v31, 3  ;;  %v2334_v37 = vrot.slane %v8707_v6, 7  ;;  %v2336_v26 = vrot.slane %v8711_v3, 6  ;;  %4251 = vmatprep.mubr.f32.mxu1 %v3816_v46 }
 0x3e4   : > { %v9117_v20 = vsel %vm1809_vm7, %v2651_v57, %v2650_v12  ;;  %v2323_v21 = vsel %vm1800_vm4, %v2322_v18, %v2321_v4  ;;  %v2332_v24 = vsel %vm1791_vm1, %v2331_v23, %v2330_v7  ;;  %v2338_v10 = vrot.slane %v8719_v5, 5 }
 0x3e5   : > { %12977 = vst [vmem:[#allocation56_spill] sm:$0xff] %v9117_v20  ;;  %v2325_v45 = vsel %vm1803_vm5, %v2324_v43, %v2323_v21  ;;  %v2333_v50 = vsel %vm1794_vm2, %v8705_v55, %v2332_v24  ;;  %v2340_v1 = vrot.slane %v8726_v16, 4  ;;  %v2344_v46 = vrot.slane %v8729_v27, 2  ;;  %v9128_v59 = vpop.f32.mrf.mxu1  ;;  %v3820_v20 = vld [vmem:[%s8299_s11 + $0x468] sm:$0xff] }
 0x3e6   : > { %v2327_v57 = vsel %vm1806_vm6, %v2326_v30, %v2325_v45  ;;  %v2335_v18 = vsel %vm1797_vm3, %v2334_v37, %v2333_v50  ;;  %v2345_v12 = vrot.slane %v8774_v51, 1  ;;  %v2348_v7 = vrot.slane %v8757_v52, 7  ;;  %4252 = vmatmul.mubr.f32.gmra.mxu1 %v3815_v33  ;;  %v3817_v30 = vld [vmem:[%s8299_s11 + $0x450] sm:$0xff] }
 0x3e7   : > { %v9135_v43 = vsel %vm1809_vm7, %v2328_v44, %v2327_v57  ;;  %v2337_v23 = vsel %vm1800_vm4, %v2336_v26, %v2335_v18  ;;  %v2342_v4 = vrot.slane %v8740_v48, 3  ;;  %v2350_v21 = vrot.slane %v8759_v13, 6  ;;  %v4015_v24 = vpop.f32.mrf.mxu1  ;;  %4256 = vmatprep.mubr.f32.mxu1 %v3818_v38 }
 0x3e8   : > { %12978 = vst [vmem:[#allocation57_spill] sm:$0xff] %v9135_v43  ;;  %v2339_v45 = vsel %vm1803_vm5, %v2338_v10, %v2337_v23  ;;  %v2346_v37 = vsel %vm1791_vm1, %v2345_v12, %v2344_v46  ;;  %v2352_v50 = vrot.slane %v8768_v49, 5  ;;  %v2354_v33 = vrot.slane %v8776_v42, 4 }
 0x3e9   : > { %v2341_v44 = vsel %vm1806_vm6, %v2340_v1, %v2339_v45  ;;  %v2347_v26 = vsel %vm1794_vm2, %v8749_v8, %v2346_v37  ;;  %v2358_v57 = vrot.slane %v8766_v36, 2  ;;  %v2359_v38 = vrot.slane %v8811_v17, 1  ;;  %v9151_v18 = vpop.f32.mrf.mxu1 }
 0x3ea   : > { %v2349_v10 = vsel %vm1797_vm3, %v2348_v7, %v2347_v26  ;;  %v2356_v46 = vrot.slane %v8785_v14, 3  ;;  %v2362_v12 = vrot.slane %v12974_v58, 7  ;;  %v2364_v23 = vrot.slane %v8803_v56, 6  ;;  %4257 = vmatmul.mubr.f32.gmra.mxu1 %v3817_v30  ;;  %v3819_v7 = vld [vmem:[%s8299_s11 + $0x460] sm:$0xff] }
 0x3eb   : > { %v9158_v1 = vsel %vm1809_vm7, %v2342_v4, %v2341_v44  ;;  %v2351_v24 = vsel %vm1800_vm4, %v2350_v21, %v2349_v10  ;;  %v2360_v45 = vsel %vm1791_vm1, %v2359_v38, %v2358_v57  ;;  %v2366_v37 = vrot.slane %v8813_v25, 5  ;;  %v4020_v43 = vpop.f32.mrf.mxu1  ;;  %4261 = vmatprep.mubr.f32.mxu1 %v3820_v20  ;;  %v3822_v4 = vld [vmem:[%s8299_s11 + $0x478] sm:$0xff] }
 0x3ec   : > { %12979 = vst [vmem:[#allocation58_spill] sm:$0xff] %v9158_v1  ;;  %v2353_v26 = vsel %vm1803_vm5, %v2352_v50, %v2351_v24  ;;  %v2361_v53 = vsel %vm1794_vm2, %v8783_v35, %v2360_v45  ;;  %v2368_v0 = vrot.slane %v8815_v32, 4  ;;  %v2372_v30 = vrot.slane %v8797_v39, 2 }
 0x3ed   : > { %v2355_v44 = vsel %vm1806_vm6, %v2354_v33, %v2353_v26  ;;  %v2363_v21 = vsel %vm1797_vm3, %v2362_v12, %v2361_v53  ;;  %v2373_v57 = vrot.slane %v8858_v47, 1  ;;  %v2376_v20 = vrot.slane %v8823_v62, 7  ;;  %v9174_v43 = vpop.f32.mrf.mxu1 }
 0x3ee   : > { %v9177_v50 = vsel %vm1809_vm7, %v2356_v46, %v2355_v44  ;;  %v2365_v38 = vsel %vm1800_vm4, %v2364_v23, %v2363_v21  ;;  %v2370_v10 = vrot.slane %v8831_v2, 3  ;;  %v2378_v24 = vrot.slane %v8829_v22, 6  ;;  %4262 = vmatmul.mubr.f32.gmra.mxu1 %v3819_v7  ;;  %v3821_v46 = vld [vmem:[%s8299_s11 + $0x470] sm:$0xff] }
 0x3ef   : > { %12980 = vst [vmem:[#allocation59_spill] sm:$0xff] %v9177_v50  ;;  %v2367_v33 = vsel %vm1803_vm5, %v2366_v37, %v2365_v38  ;;  %v2374_v53 = vsel %vm1791_vm1, %v2373_v57, %v2372_v30  ;;  %v2380_v12 = vrot.slane %v8841_v15, 5  ;;  %v2382_v45 = vrot.slane %v8851_v34, 4  ;;  %v4025_v26 = vpop.f32.mrf.mxu1  ;;  %4266 = vmatprep.mubr.f32.mxu1 %v3822_v4  ;;  %v3824_v50 = vld [vmem:[%s8299_s11 + $0x488] sm:$0xff] }
 0x3f0   : > { %v2369_v44 = vsel %vm1806_vm6, %v2368_v0, %v2367_v33  ;;  %v2375_v23 = vsel %vm1794_vm2, %v8799_v9, %v2374_v53  ;;  %v2850_v21 = vrot.slane %v8694_v61, 4  ;;  %v2851_v7 = vrot.slane %v8717_v41, 3 }
 0x3f1   : > { %v2377_v37 = vsel %vm1797_vm3, %v2376_v20, %v2375_v23  ;;  %v2384_v30 = vrot.slane %v8864_v29, 3  ;;  %v2853_v57 = vrot.slane %v8698_v19, 2  ;;  %v2855_v4 = vrot.slane %v8700_v54, 1  ;;  %v9197_v38 = vpop.f32.mrf.mxu1 }
 0x3f2   : > { %v9200_v0 = vsel %vm1809_vm7, %v2370_v10, %v2369_v44  ;;  %v2379_v61 = vsel %vm1800_vm4, %v2378_v24, %v2377_v37  ;;  %v2852_v41 = vsel %vm1791_vm1, %v2851_v7, %v2850_v21  ;;  %v2858_v33 = vrot.slane %v8713_v63, 7  ;;  %4267 = vmatmul.mubr.f32.gmra.mxu1 %v3821_v46  ;;  %v3823_v10 = vld [vmem:[%s8299_s11 + $0x480] sm:$0xff]  ;;  %v3826_v46 = vld [vmem:[%s8299_s11 + $0x498] sm:$0xff] }
 0x3f3   : > { %12981 = vst [vmem:[#allocation60_spill] sm:$0xff] %v9200_v0  ;;  %v2381_v20 = vsel %vm1803_vm5, %v2380_v12, %v2379_v61  ;;  %v2854_v53 = vsel %vm1794_vm2, %v2853_v57, %v2852_v41  ;;  %v2860_v19 = vrot.slane %v8721_v11, 6  ;;  %v2864_v54 = vrot.slane %v8696_v40, 4  ;;  %v4030_v26 = vpop.f32.mrf.mxu1  ;;  %4271 = vmatprep.mubr.f32.mxu1 %v3824_v50  ;;  %v3825_v57 = vld [vmem:[%s8299_s11 + $0x490] sm:$0xff]  ;;  %v3828_v41 = vld [vmem:[%s8299_s11 + $0x4a8] sm:$0xff] }
 0x3f4   : > { %v2383_v44 = vsel %vm1806_vm6, %v2382_v45, %v2381_v20  ;;  %v2856_v24 = vsel %vm1797_vm3, %v2855_v4, %v2854_v53  ;;  %v2865_v23 = vrot.slane %v8731_v28, 3  ;;  %v2867_v63 = vrot.slane %v8705_v55, 2 }
 0x3f5   : > { %v9216_v12 = vsel %vm1809_vm7, %v2384_v30, %v2383_v44  ;;  %v2857_v11 = vsel %vm1800_vm4, %v8709_v60, %v2856_v24  ;;  %v2862_v40 = vrot.slane %v8733_v31, 5  ;;  %v2869_v50 = vrot.slane %v8707_v6, 1  ;;  %v9222_v21 = vpop.f32.mrf.mxu1  ;;  %v3827_v44 = vld [vmem:[%s8299_s11 + $0x4a0] sm:$0xff] }
 0x3f6   : > { %12982 = vst [vmem:[#allocation61_spill] sm:$0xff] %v9216_v12  ;;  %v2859_v45 = vsel %vm1803_vm5, %v2858_v33, %v2857_v11  ;;  %v2866_v28 = vsel %vm1791_vm1, %v2865_v23, %v2864_v54  ;;  %v2872_v55 = vrot.slane %v8719_v5, 7  ;;  %v2874_v7 = vrot.slane %v8726_v16, 6  ;;  %4272 = vmatmul.mubr.f32.gmra.mxu1 %v3823_v10 }
 0x3f7   : > { %v2861_v37 = vsel %vm1806_vm6, %v2860_v19, %v2859_v45  ;;  %v2868_v60 = vsel %vm1794_vm2, %v2867_v63, %v2866_v28  ;;  %v2878_v31 = vrot.slane %v8729_v27, 4  ;;  %v2879_v6 = vrot.slane %v8774_v51, 3  ;;  %v4035_v30 = vpop.f32.mrf.mxu1  ;;  %4276 = vmatprep.mubr.f32.mxu1 %v3826_v46  ;;  %v3830_v63 = vld [vmem:[%s8299_s11 + $0x4b8] sm:$0xff]  ;;  %v9274_v45 = vld [vmem:[#allocation6 + $0x168] sm:$0x7f] }
 0x3f8   : > { %v2870_v4 = vsel %vm1797_vm3, %v2869_v50, %v2868_v60  ;;  %v2876_v61 = vrot.slane %v8740_v48, 5  ;;  %v2881_v5 = vrot.slane %v8749_v8, 2  ;;  %v2883_v16 = vrot.slane %v8757_v52, 1  ;;  %v9276_v28 = vld [vmem:[#allocation6 + $0x190] sm:$0x7f] }
 0x3f9   : > { %v9239_v33 = vsel %vm1809_vm7, %v2862_v40, %v2861_v37  ;;  %v2871_v27 = vsel %vm1800_vm4, %v8711_v3, %v2870_v4  ;;  %v2880_v51 = vsel %vm1791_vm1, %v2879_v6, %v2878_v31  ;;  %v2886_v20 = vrot.slane %v8768_v49, 7  ;;  %v9245_v53 = vpop.f32.mrf.mxu1  ;;  %v9283_v60 = vld [vmem:[#allocation6 + $0x1b8] sm:$0x7f] }
 0x3fa   : > { %12983 = vst [vmem:[#allocation62_spill] sm:$0xff] %v9239_v33  ;;  %v2873_v48 = vsel %vm1803_vm5, %v2872_v55, %v2871_v27  ;;  %v2882_v8 = vsel %vm1794_vm2, %v2881_v5, %v2880_v51  ;;  %v2888_v52 = vrot.slane %v8776_v42, 6  ;;  %v2892_v19 = vrot.slane %v8766_v36, 4  ;;  %4277 = vmatmul.mubr.f32.gmra.mxu1 %v3825_v57  ;;  %v3829_v55 = vld [vmem:[%s8299_s11 + $0x4b0] sm:$0xff]  ;;  %v9293_v57 = vld [vmem:[#allocation6 + $0x140] sm:$0x7f] }
 0x3fb   : > { %v2875_v54 = vsel %vm1806_vm6, %v2874_v7, %v2873_v48  ;;  %v2884_v3 = vsel %vm1797_vm3, %v2883_v16, %v2882_v8  ;;  %v2893_v26 = vrot.slane %v8811_v17, 3  ;;  %v2895_v49 = vrot.slane %v8783_v35, 2  ;;  %v4040_v10 = vpop.f32.mrf.mxu1  ;;  %4281 = vmatprep.mubr.f32.mxu1 %v3828_v41  ;;  %v9300_v5 = vld [vmem:[#allocation6 + $0x208] sm:$0x7f]  ;;  %v9302_v16 = vld [vmem:[#allocation6 + $0x230] sm:$0x7f] }
 0x3fc   : > { %v9257_v24 = vsel %vm1809_vm7, %v2876_v61, %v2875_v54  ;;  %v2885_v42 = vsel %vm1800_vm4, %v8759_v13, %v2884_v3  ;;  %v2890_v36 = vrot.slane %v8785_v14, 5  ;;  %v2897_v23 = vrot.slane %v12974_v58, 1  ;;  %v3831_v27 = vld [vmem:[%s8299_s11 + $0x4c0] sm:$0xff]  ;;  %v9312_v48 = vld [vmem:[#allocation6 + $0x170] sm:$0x7f] }
 0x3fd   : > { %12984 = vst [vmem:[#allocation63_spill] sm:$0xff] %v9257_v24  ;;  %v2887_v46 = vsel %vm1803_vm5, %v2886_v20, %v2885_v42  ;;  %v2894_v17 = vsel %vm1791_vm1, %v2893_v26, %v2892_v19  ;;  %v2900_v35 = vrot.slane %v8813_v25, 7  ;;  %v2902_v11 = vrot.slane %v8815_v32, 6  ;;  %v9268_v40 = vpop.f32.mrf.mxu1  ;;  %v9310_v20 = vld [vmem:[#allocation6 + $0x148] sm:$0x7f] }
 0x3fe   : > { %v2889_v50 = vsel %vm1806_vm6, %v2888_v52, %v2887_v46  ;;  %v2896_v13 = vsel %vm1794_vm2, %v2895_v49, %v2894_v17  ;;  %v2906_v14 = vrot.slane %v8797_v39, 4  ;;  %v2907_v58 = vrot.slane %v8858_v47, 3  ;;  %4282 = vmatmul.mubr.f32.gmra.mxu1 %v3827_v44  ;;  %v3832_v39 = vld [vmem:[%s8299_s11 + $0x4c8] sm:$0xff]  ;;  %v9314_v8 = vld [vmem:[#allocation6 + $0x198] sm:$0x7f] }
 0x3ff   : > { %v2898_v25 = vsel %vm1797_vm3, %v2897_v23, %v2896_v13  ;;  %v2904_v32 = vrot.slane %v8831_v2, 5  ;;  %v2909_v7 = vrot.slane %v8799_v9, 2  ;;  %v2911_v37 = vrot.slane %v8823_v62, 1  ;;  %v4045_v31 = vpop.f32.mrf.mxu1  ;;  %4286 = vmatprep.mubr.f32.mxu1 %v3830_v63  ;;  %v9295_v9 = vld [vmem:[#allocation6 + $0x1e0] sm:$0x7f]  ;;  %v3834_v17 = vld [vmem:[%s8299_s11 + $0x4d8] sm:$0xff] }
 0x400   : > { %v9287_v47 = vsel %vm1809_vm7, %v2890_v36, %v2889_v50  ;;  %v2899_v6 = vsel %vm1800_vm4, %v8803_v56, %v2898_v25  ;;  %v2908_v30 = vsel %vm1791_vm1, %v2907_v58, %v2906_v14  ;;  %v2914_v2 = vrot.slane %v8841_v15, 7  ;;  %v9321_v3 = vld [vmem:[#allocation6 + $0x1c0] sm:$0x7f]  ;;  %v9323_v26 = vld [vmem:[#allocation6 + $0x258] sm:$0x7f] }
 0x401   : > { %12985 = vst [vmem:[#allocation64_spill] sm:$0xff] %v9287_v47  ;;  %v2901_v62 = vsel %vm1803_vm5, %v2900_v35, %v2899_v6  ;;  %v2910_v4 = vsel %vm1794_vm2, %v2909_v7, %v2908_v30  ;;  %v2916_v61 = vrot.slane %v8851_v34, 6  ;;  %v1867_v56 = vrot.slane %v9274_v45, 7  ;;  %v9305_v41 = vpop.f32.mrf.mxu1  ;;  %12986 = vst [vmem:[#allocation65_spill] sm:$0xff] %v9321_v3  ;;  %v9329_v36 = vld [vmem:[#allocation6 + $0x178] sm:$0x7f] }
 0x402   : > { %v2903_v15 = vsel %vm1806_vm6, %v2902_v11, %v2901_v62  ;;  %v2912_v51 = vsel %vm1797_vm3, %v2911_v37, %v2910_v4  ;;  %v1869_v34 = vrot.slane %v9276_v28, 6  ;;  %v1871_v52 = vrot.slane %v9283_v60, 5  ;;  %4287 = vmatmul.mubr.f32.gmra.mxu1 %v3829_v55  ;;  %12987 = vst [vmem:[#allocation66_spill] sm:$0xff] %v9329_v36  ;;  %v9331_v23 = vld [vmem:[#allocation6 + $0x1e8] sm:$0x7f] }
 0x403   : > { %v2913_v19 = vsel %vm1800_vm4, %v8829_v22, %v2912_v51  ;;  %v2918_v54 = vrot.slane %v8864_v29, 5  ;;  %v1868_v49 = vsel %vm1791_vm1, %v1867_v56, %v9293_v57  ;;  %v1873_v10 = vrot.slane %v9295_v9, 4  ;;  %v4050_v44 = vpop.f32.mrf.mxu1  ;;  %4291 = vmatprep.mubr.f32.mxu1 %v3832_v39  ;;  %v9333_v22 = vld [vmem:[#allocation6 + $0x210] sm:$0x7f]  ;;  %v9343_v50 = vld [vmem:[#allocation6 + $0x1a0] sm:$0x7f] }
 0x404   : > { %v2915_v42 = vsel %vm1803_vm5, %v2914_v2, %v2913_v19  ;;  %12988 = vst [vmem:[#allocation67_spill] sm:$0xff] %v9333_v22  ;;  %v1870_v29 = vsel %vm1794_vm2, %v1869_v34, %v1868_v49  ;;  %v1875_v63 = vrot.slane %v9300_v5, 3  ;;  %v1877_v46 = vrot.slane %v9302_v16, 2  ;;  %12990 = vst [vmem:[#allocation69_spill] sm:$0xff] %v9343_v50  ;;  %v9345_v13 = vld [vmem:[#allocation6 + $0x238] sm:$0x7f] }
 0x405   : > { %v9340_v35 = vsel %vm1809_vm7, %v2904_v32, %v2903_v15  ;;  %v2917_v11 = vsel %vm1806_vm6, %v2916_v61, %v2915_v42  ;;  %12991 = vst [vmem:[#allocation70_spill] sm:$0xff] %v9345_v13  ;;  %v1872_v14 = vsel %vm1797_vm3, %v1871_v52, %v1870_v29  ;;  %v1881_v58 = vrot.slane %v9312_v48, 7  ;;  %v9349_v55 = vpop.f32.mrf.mxu1  ;;  %v9351_v25 = vld [vmem:[#allocation6 + $0x150] sm:$0x7f]  ;;  %v9353_v7 = vld [vmem:[#allocation6 + $0x260] sm:$0x7f] }
 0x406   : > { %12989 = vst [vmem:[#allocation68_spill] sm:$0xff] %v9340_v35  ;;  %12992 = vst [vmem:[#allocation71_spill] sm:$0xff] %v9351_v25  ;;  %v1874_v32 = vsel %vm1800_vm4, %v1873_v10, %v1872_v14  ;;  %v1879_v37 = vrot.slane %v9323_v26, 1  ;;  %v1883_v31 = vrot.slane %v9314_v8, 6  ;;  %v1885_v39 = vrot.slane %v9321_v3, 5  ;;  %4292 = vmatmul.mubr.f32.gmra.mxu1 %v3831_v27  ;;  %v3833_v27 = vld [vmem:[%s8299_s11 + $0x4d0] sm:$0xff] }
 0x407   : > { %12993 = vst [vmem:[#allocation72_spill] sm:$0xff] %v9353_v7  ;;  %v9359_v6 = vld [vmem:[#allocation6 + $0x180] sm:$0x7f]  ;;  %v9361_v30 = vld [vmem:[#allocation6 + $0x1a8] sm:$0x7f]  ;;  %v1876_v4 = vsel %vm1803_vm5, %v1875_v63, %v1874_v32  ;;  %v1882_v61 = vsel %vm1791_vm1, %v1881_v58, %v9310_v20  ;;  %v1887_v56 = vrot.slane %v9331_v23, 4  ;;  %v4055_v51 = vpop.f32.mrf.mxu1  ;;  %4296 = vmatprep.mubr.f32.mxu1 %v3834_v17  ;;  %v9374_v34 = vsel %vm1809_vm7, %v2918_v54, %v2917_v11 }
 0x408   : > { %12994 = vst [vmem:[#allocation73_spill] sm:$0xff] %v9359_v6  ;;  %12995 = vst [vmem:[#allocation74_spill] sm:$0xff] %v9361_v30  ;;  %v9363_v2 = vld [vmem:[#allocation6 + $0x1c8] sm:$0x7f]  ;;  %v9365_v62 = vld [vmem:[#allocation6 + $0x1f0] sm:$0x7f]  ;;  %v1878_v49 = vsel %vm1806_vm6, %v1877_v46, %v1876_v4  ;;  %v1884_v10 = vsel %vm1794_vm2, %v1883_v31, %v1882_v61 }
 0x409   : > { %12996 = vst [vmem:[#allocation75_spill] sm:$0xff] %v9363_v2  ;;  %12997 = vst [vmem:[#allocation76_spill] sm:$0xff] %v9365_v62  ;;  %v1889_v15 = vrot.slane %v9333_v22, 3  ;;  %v9376_v52 = vld [vmem:[#allocation6 + $0x218] sm:$0x7f]  ;;  %v1891_v44 = vrot.slane %v9345_v13, 2  ;;  %v1886_v17 = vsel %vm1797_vm3, %v1885_v39, %v1884_v10  ;;  %v9392_v58 = vpop.f32.mrf.mxu1  ;;  %v9400_v4 = vsel %vm1809_vm7, %v1879_v37, %v1878_v49 }
 0x40a   : > { %12998 = vst [vmem:[#allocation77_spill] sm:$0xff] %v9374_v34  ;;  %12999 = vst [vmem:[#allocation78_spill] sm:$0xff] %v9376_v52  ;;  %v9378_v19 = vld [vmem:[#allocation6 + $0x240] sm:$0x7f]  ;;  %v3836_v42 = vld [vmem:[%s8299_s11 + $0x4e8] sm:$0xff]  ;;  %v1893_v54 = vrot.slane %v9353_v7, 1  ;;  %v1888_v61 = vsel %vm1800_vm4, %v1887_v56, %v1886_v17  ;;  %4297 = vmatmul.mubr.f32.gmra.mxu1 %v3833_v27 }
 0x40b   : > { %13000 = vst [vmem:[#allocation79_spill] sm:$0xff] %v9378_v19  ;;  %v9384_v29 = vld [vmem:[#allocation6 + $0x158] sm:$0x7f]  ;;  %v9386_v63 = vld [vmem:[#allocation6 + $0x1d0] sm:$0x7f]  ;;  %v1895_v11 = vrot.slane %v9329_v36, 7  ;;  %v1890_v13 = vsel %vm1803_vm5, %v1889_v15, %v1888_v61  ;;  %v4060_v56 = vpop.f32.mrf.mxu1  ;;  %4301 = vmatprep.mubr.f32.mxu1 %v3836_v42 }
 0x40c   : > { %13001 = vst [vmem:[#allocation80_spill] sm:$0xff] %v9384_v29  ;;  %13002 = vst [vmem:[#allocation81_spill] sm:$0xff] %v9386_v63  ;;  %v1897_v14 = vrot.slane %v9343_v50, 6  ;;  %v3835_v46 = vld [vmem:[%s8299_s11 + $0x4e0] sm:$0xff]  ;;  %v9395_v32 = vld [vmem:[#allocation6 + $0x1f8] sm:$0x7f] }
 0x40d   : > { %13003 = vst [vmem:[#allocation82_spill] sm:$0xff] %v9395_v32  ;;  %v9397_v31 = vld [vmem:[#allocation6 + $0x268] sm:$0x7f]  ;;  %13005 = vst [vmem:[#allocation84_spill] sm:$0xff] %v9400_v4  ;;  %v1899_v39 = vrot.slane %v9363_v2, 5  ;;  %v1901_v51 = vrot.slane %v9365_v62, 4  ;;  %v1896_v3 = vsel %vm1791_vm1, %v1895_v11, %v9351_v25  ;;  %v1892_v62 = vsel %vm1806_vm6, %v1891_v44, %v1890_v13  ;;  %v4063_v25 = vpop.f32.mrf.mxu1 }
 0x40e   : > { %13004 = vst [vmem:[#allocation83_spill] sm:$0xff] %v9397_v31  ;;  %v9405_v10 = vld [vmem:[#allocation6 + $0x188] sm:$0x7f]  ;;  %v9407_v7 = vld [vmem:[#allocation6 + $0x220] sm:$0x7f]  ;;  %v1903_v37 = vrot.slane %v9376_v52, 3  ;;  %v1898_v50 = vsel %vm1794_vm2, %v1897_v14, %v1896_v3  ;;  %v9436_v44 = vsel %vm1809_vm7, %v1893_v54, %v1892_v62  ;;  %4302 = vmatmul.mubr.f32.gmra.mxu1 %v3835_v46 }
 0x40f   : > { %13006 = vst [vmem:[#allocation85_spill] sm:$0xff] %v9405_v10  ;;  %13007 = vst [vmem:[#allocation86_spill] sm:$0xff] %v9407_v7  ;;  %v1905_v49 = vrot.slane %v9378_v19, 2  ;;  %v9414_v17 = vld [vmem:[#allocation6 + $0x160] sm:$0x7f]  ;;  %v1909_v15 = vrot.slane %v9359_v6, 7  ;;  %v1900_v56 = vsel %vm1797_vm3, %v1899_v39, %v1898_v50 }
 0x410   : > { %v9416_v2 = vld [vmem:[#allocation6 + $0x1b0] sm:$0x7f]  ;;  %v9418_v27 = vld [vmem:[#allocation6 + $0x248] sm:$0x7f]  ;;  %v1911_v11 = vrot.slane %v9361_v30, 6  ;;  %v3838_v61 = vld [vmem:[%s8299_s11 + $0x4f8] sm:$0xff]  ;;  %v1902_v14 = vsel %vm1800_vm4, %v1901_v51, %v1900_v56  ;;  %v4065_v51 = vpop.f32.mrf.mxu1 }
 0x411   : > { %13008 = vst [vmem:[#allocation87_spill] sm:$0xff] %v9416_v2  ;;  %v9425_v52 = vld [vmem:[#allocation6 + $0x1d8] sm:$0x7f]  ;;  %v1907_v42 = vrot.slane %v9397_v31, 1  ;;  %v1913_v19 = vrot.slane %v9386_v63, 5  ;;  %v1915_v36 = vrot.slane %v9395_v32, 4  ;;  %v1910_v50 = vsel %vm1791_vm1, %v1909_v15, %v9384_v29  ;;  %4306 = vmatprep.mubr.f32.mxu1 %v3838_v61 }
 0x412   : > { %13009 = vst [vmem:[#allocation88_spill] sm:$0xff] %v9425_v52  ;;  %v9431_v13 = vld [vmem:[#allocation6 + $0x200] sm:$0x7f]  ;;  %v9433_v3 = vld [vmem:[#allocation6 + $0x270] sm:$0x7f]  ;;  %13012 = vst [vmem:[#allocation91_spill] sm:$0xff] %v9436_v44  ;;  %v1904_v31 = vsel %vm1803_vm5, %v1903_v37, %v1902_v14  ;;  %v1912_v30 = vsel %vm1794_vm2, %v1911_v11, %v1910_v50 }
 0x413   : > { %13010 = vst [vmem:[#allocation89_spill] sm:$0xff] %v9431_v13  ;;  %13011 = vst [vmem:[#allocation90_spill] sm:$0xff] %v9433_v3  ;;  %v1917_v39 = vrot.slane %v9407_v7, 3  ;;  %v9442_v63 = vld [vmem:[#allocation6 + $0x228] sm:$0x7f]  ;;  %v1919_v62 = vrot.slane %v9418_v27, 2  ;;  %v1906_v15 = vsel %vm1806_vm6, %v1905_v49, %v1904_v31  ;;  %v1914_v7 = vsel %vm1797_vm3, %v1913_v19, %v1912_v30  ;;  %v4068_v31 = vpop.f32.mrf.mxu1 }
 0x414   : > { %13013 = vst [vmem:[#allocation92_spill] sm:$0xff] %v9442_v63  ;;  %v9444_v32 = vld [vmem:[#allocation6 + $0x250] sm:$0x7f]  ;;  %v1923_v54 = vrot.slane %v9405_v10, 7  ;;  %v1925_v46 = vrot.slane %v9416_v2, 6  ;;  %v1927_v6 = vrot.slane %v9425_v52, 5  ;;  %v1916_v37 = vsel %vm1800_vm4, %v1915_v36, %v1914_v7  ;;  %6661 = vmatprep.subr.mxu0 %v4068_v31 }
 0x415   : > { %13014 = vst [vmem:[#allocation93_spill] sm:$0xff] %v9444_v32  ;;  %v3837_v56 = vld [vmem:[%s8299_s11 + $0x4f0] sm:$0xff]  ;;  %v3840_v29 = vld [vmem:[%s8299_s11 + $0x508] sm:$0xff]  ;;  %v9456_v22 = vld [vmem:[#allocation6 + $0x278] sm:$0x7f]  ;;  %v1921_v11 = vrot.slane %v9433_v3, 1  ;;  %v1918_v30 = vsel %vm1803_vm5, %v1917_v39, %v1916_v37  ;;  %v9468_v36 = vsel %vm1809_vm7, %v1907_v42, %v1906_v15  ;;  %v4070_v37 = vpop.f32.mrf.mxu1 }
 0x416   : > { %13015 = vst [vmem:[#allocation94_spill] sm:$0xff] %v9456_v22  ;;  %v1924_v14 = vsel %vm1791_vm1, %v1923_v54, %v9414_v17  ;;  %v1929_v61 = vrot.slane %v9431_v13, 4  ;;  %v1931_v49 = vrot.slane %v9442_v63, 3  ;;  %v1933_v50 = vrot.slane %v9444_v32, 2  ;;  %4307 = vmatmul.mubr.f32.gmra.mxu1 %v3837_v56  ;;  %13016 = vst [vmem:[#allocation95_spill] sm:$0xff] %v9468_v36  ;;  %v13079_v63 = vld [vmem:[#allocation50_spill] sm:$0xff] }
 0x417   : > { %v1926_v19 = vsel %vm1794_vm2, %v1925_v46, %v1924_v14  ;;  %v1920_v7 = vsel %vm1806_vm6, %v1919_v62, %v1918_v30  ;;  %v9472_v51 = vld [vmem:[#allocation6] sm:$0x7f]  ;;  %v13018_v46 = vld [vmem:[#allocation40_spill] sm:$0xff]  ;;  %4311 = vmatprep.mubr.f32.mxu1 %v3840_v29  ;;  %v1935_v31 = vrot.slane %v9456_v22, 1  ;;  %v9479_v42 = vld [vmem:[#allocation6 + $0x28] sm:$0x7f] }
 0x418   : > { %v1928_v54 = vsel %vm1797_vm3, %v1927_v6, %v1926_v19  ;;  %13017 = vst [vmem:[#allocation96_spill] sm:$0xff] %v9472_v51  ;;  %v3117_v39 = vrot.slane %v9472_v51, 5  ;;  %6662 = vmatpush3.msra.mxu0 %v13018_v46  ;;  %v3839_v14 = vld [vmem:[%s8299_s11 + $0x500] sm:$0xff]  ;;  %13019 = vst [vmem:[#allocation40_spill] sm:$0xff] %v9479_v42  ;;  %v3118_v15 = vrot.slane %v9479_v42, 4  ;;  %v3842_v30 = vld [vmem:[%s8299_s11 + $0x518] sm:$0xff]  ;;  %v9487_v19 = vsel %vm1809_vm7, %v1921_v11, %v1920_v7  ;;  %v9496_v42 = vpop.f32.mrf.mxu1 }
 0x419   : > { %v1930_v56 = vsel %vm1800_vm4, %v1929_v61, %v1928_v54  ;;  %v9482_v62 = vld [vmem:[#allocation6 + $0x50] sm:$0x7f]  ;;  %6663 = vmatprep.subr.mxu0 %v4063_v25  ;;  %13021 = vst [vmem:[#allocation98_spill] sm:$0xff] %v9487_v19  ;;  %v9490_v37 = vld [vmem:[#allocation6 + $0x78] sm:$0x7f]  ;;  %13024 = vst [vmem:[#allocation101_spill] sm:$0xff] %v9496_v42 }
 0x41a   : > { %13020 = vst [vmem:[#allocation97_spill] sm:$0xff] %v9482_v62  ;;  %v3120_v6 = vrot.slane %v9482_v62, 3  ;;  %v1932_v29 = vsel %vm1803_vm5, %v1931_v49, %v1930_v56  ;;  %13022 = vst [vmem:[#allocation99_spill] sm:$0xff] %v9490_v37  ;;  %v3122_v61 = vrot.slane %v9490_v37, 2  ;;  %v9493_v54 = vld [vmem:[#allocation6 + $0xa0] sm:$0x7f]  ;;  %v3119_v62 = vsel %vm1791_vm1, %v3118_v15, %v3117_v39  ;;  %4312 = vmatmul.mubr.f32.gmra.mxu1 %v3839_v14 }
 0x41b   : > { %13023 = vst [vmem:[#allocation100_spill] sm:$0xff] %v9493_v54  ;;  %v3124_v46 = vrot.slane %v9493_v54, 1  ;;  %v13025_v51 = vld [vmem:[#allocation39_spill] sm:$0xff]  ;;  %v1934_v25 = vsel %vm1806_vm6, %v1933_v50, %v1932_v29  ;;  %v9504_v7 = vld [vmem:[#allocation6 + $0x8] sm:$0x7f]  ;;  %4316 = vmatprep.mubr.f32.mxu1 %v3842_v30  ;;  %v13078_v22 = vld [vmem:[#allocation49_spill] sm:$0xff] }
 0x41c   : > { %6664 = vmatpush3.msra.mxu0 %v13025_v51  ;;  %v9501_v11 = vld [vmem:[#allocation6 + $0xf0] sm:$0x7f]  ;;  %13027 = vst [vmem:[#allocation102_spill] sm:$0xff] %v9504_v7  ;;  %v3131_v56 = vrot.slane %v9504_v7, 5  ;;  %v3121_v42 = vsel %vm1794_vm2, %v3120_v6, %v3119_v62  ;;  %v9509_v54 = vld [vmem:[#allocation6 + $0x118] sm:$0x7f]  ;;  %v9521_v14 = vsel %vm1809_vm7, %v1935_v31, %v1934_v25 }
 0x41d   : > { %13026 = vst [vmem:[#allocation39_spill] sm:$0xff] %v9501_v11  ;;  %v3127_v49 = vrot.slane %v9501_v11, 7  ;;  %6665 = vmatprep.subr.mxu0 %v9392_v58  ;;  %13028 = vst [vmem:[#allocation103_spill] sm:$0xff] %v9509_v54  ;;  %v3129_v50 = vrot.slane %v9509_v54, 6  ;;  %v9512_v51 = vld [vmem:[#allocation6 + $0x30] sm:$0x7f]  ;;  %v4075_v11 = vpop.f32.mrf.mxu1  ;;  %v3123_v62 = vsel %vm1797_vm3, %v3122_v61, %v3121_v42 }
 0x41e   : > { %13029 = vst [vmem:[#allocation104_spill] sm:$0xff] %v9512_v51  ;;  %v3132_v39 = vrot.slane %v9512_v51, 4  ;;  %v9515_v15 = vld [vmem:[#allocation6 + $0x58] sm:$0x7f]  ;;  %v13031_v7 = vld [vmem:[#allocation38_spill] sm:$0xff]  ;;  %v3841_v58 = vld [vmem:[%s8299_s11 + $0x510] sm:$0xff] }
 0x41f   : > { %13030 = vst [vmem:[#allocation105_spill] sm:$0xff] %v9515_v15  ;;  %v3134_v29 = vrot.slane %v9515_v15, 3  ;;  %6666 = vmatpush3.msra.mxu0 %v13031_v7  ;;  %13032 = vst [vmem:[#allocation38_spill] sm:$0xff] %v9521_v14  ;;  %v9524_v6 = vld [vmem:[#allocation6 + $0x80] sm:$0x7f]  ;;  %v3844_v11 = vld [vmem:[%s8299_s11 + $0x528] sm:$0xff]  ;;  %v3125_v7 = vsel %vm1800_vm4, %v3124_v46, %v3123_v62  ;;  %v9540_v25 = vpop.f32.mrf.mxu1  ;;  %4317 = vmatmul.mubr.f32.gmra.mxu1 %v3841_v58 }
 0x420   : > { %13033 = vst [vmem:[#allocation106_spill] sm:$0xff] %v9524_v6  ;;  %v3136_v54 = vrot.slane %v9524_v6, 2  ;;  %v9527_v37 = vld [vmem:[#allocation6 + $0xa8] sm:$0x7f]  ;;  %6667 = vmatprep.subr.mxu0 %v9349_v55  ;;  %v3133_v30 = vsel %vm1791_vm1, %v3132_v39, %v3131_v56  ;;  %v9534_v15 = vld [vmem:[#allocation6 + $0xf8] sm:$0x7f]  ;;  %4321 = vmatprep.mubr.f32.mxu1 %v3844_v11 }
 0x421   : > { %13034 = vst [vmem:[#allocation107_spill] sm:$0xff] %v9527_v37  ;;  %v3138_v51 = vrot.slane %v9527_v37, 1  ;;  %13035 = vst [vmem:[#allocation108_spill] sm:$0xff] %v9534_v15  ;;  %v3141_v31 = vrot.slane %v9534_v15, 7  ;;  %v9537_v42 = vld [vmem:[#allocation6 + $0x10] sm:$0x7f]  ;;  %v3135_v46 = vsel %vm1794_vm2, %v3134_v29, %v3133_v30 }
 0x422   : > { %13036 = vst [vmem:[#allocation109_spill] sm:$0xff] %v9537_v42  ;;  %v3145_v61 = vrot.slane %v9537_v42, 5  ;;  %13037 = vst [vmem:[#allocation110_spill] sm:$0xff] %v9540_v25  ;;  %v13038_v6 = vld [vmem:[#allocation37_spill] sm:$0xff]  ;;  %v9543_v37 = vld [vmem:[#allocation6 + $0xc8] sm:$0x7f]  ;;  %v3137_v25 = vsel %vm1797_vm3, %v3136_v54, %v3135_v46  ;;  %v4080_v42 = vpop.f32.mrf.mxu1 }
 0x423   : > { %6668 = vmatpush3.msra.mxu0 %v13038_v6  ;;  %13039 = vst [vmem:[#allocation37_spill] sm:$0xff] %v9543_v37  ;;  %v3126_v55 = vsel %vm1803_vm5, %v9543_v37, %v3125_v7  ;;  %v9548_v56 = vld [vmem:[#allocation6 + $0x38] sm:$0x7f]  ;;  %v9551_v62 = vld [vmem:[#allocation6 + $0x60] sm:$0x7f]  ;;  %v1658_v52 = vpop.permute.xlu0 %1657  ;;  %v13084_v2 = vld [vmem:[#allocation30_spill] sm:$0xff] }
 0x424   : > { %13040 = vst [vmem:[#allocation111_spill] sm:$0xff] %v9548_v56  ;;  %v3146_v39 = vrot.slane %v9548_v56, 4  ;;  %13041 = vst [vmem:[#allocation112_spill] sm:$0xff] %v9551_v62  ;;  %v3148_v15 = vrot.slane %v9551_v62, 3  ;;  %6669 = vmatprep.subr.mxu0 %v9305_v41  ;;  %v3128_v6 = vsel %vm1806_vm6, %v3127_v49, %v3126_v55  ;;  %v9557_v7 = vld [vmem:[#allocation6 + $0x88] sm:$0x7f]  ;;  %v3139_v49 = vsel %vm1800_vm4, %v3138_v51, %v3137_v25 }
 0x425   : > { %13042 = vst [vmem:[#allocation113_spill] sm:$0xff] %v9557_v7  ;;  %v3150_v29 = vrot.slane %v9557_v7, 2  ;;  %v9560_v30 = vld [vmem:[#allocation6 + $0xb0] sm:$0x7f]  ;;  %v13044_v37 = vld [vmem:[#allocation36_spill] sm:$0xff]  ;;  %v3843_v58 = vld [vmem:[%s8299_s11 + $0x520] sm:$0xff]  ;;  %v9566_v41 = vsel %vm1809_vm7, %v3129_v50, %v3128_v6  ;;  %v9586_v6 = vpop.f32.mrf.mxu1  ;;  %v2023_v32 = vmul.f32 %v13078_v22, %v1658_v52 }
 0x426   : > { %13043 = vst [vmem:[#allocation114_spill] sm:$0xff] %v9560_v30  ;;  %v3152_v56 = vrot.slane %v9560_v30, 1  ;;  %6670 = vmatpush3.msra.mxu0 %v13044_v37  ;;  %13045 = vst [vmem:[#allocation36_spill] sm:$0xff] %v9566_v41  ;;  %v9569_v55 = vld [vmem:[#allocation6 + $0x120] sm:$0x7f]  ;;  %v3147_v46 = vsel %vm1791_vm1, %v3146_v39, %v3145_v61  ;;  %v3846_v7 = vld [vmem:[%s8299_s11 + $0x538] sm:$0xff]  ;;  %4322 = vmatmul.mubr.f32.gmra.mxu1 %v3843_v58 }
 0x427   : > { %13046 = vst [vmem:[#allocation115_spill] sm:$0xff] %v9569_v55  ;;  %v3143_v54 = vrot.slane %v9569_v55, 6  ;;  %6671 = vmatprep.subr.mxu0 %v9268_v40  ;;  %v9575_v30 = vld [vmem:[#allocation6 + $0xd0] sm:$0x7f]  ;;  %v3149_v11 = vsel %vm1794_vm2, %v3148_v15, %v3147_v46  ;;  %v9580_v50 = vld [vmem:[#allocation6 + $0x100] sm:$0x7f]  ;;  %4326 = vmatprep.mubr.f32.mxu1 %v3846_v7 }
 0x428   : > { %13047 = vst [vmem:[#allocation116_spill] sm:$0xff] %v9575_v30  ;;  %v3140_v37 = vsel %vm1803_vm5, %v9575_v30, %v3139_v49  ;;  %13048 = vst [vmem:[#allocation117_spill] sm:$0xff] %v9580_v50  ;;  %v3155_v51 = vrot.slane %v9580_v50, 7  ;;  %v9583_v42 = vld [vmem:[#allocation6 + $0x18] sm:$0x7f]  ;;  %v13051_v61 = vld [vmem:[#allocation35_spill] sm:$0xff]  ;;  %v3151_v39 = vsel %vm1797_vm3, %v3150_v29, %v3149_v11 }
 0x429   : > { %13049 = vst [vmem:[#allocation118_spill] sm:$0xff] %v9583_v42  ;;  %v3159_v25 = vrot.slane %v9583_v42, 5  ;;  %13050 = vst [vmem:[#allocation119_spill] sm:$0xff] %v9586_v6  ;;  %6672 = vmatpush3.msra.mxu0 %v13051_v61  ;;  %v3142_v40 = vsel %vm1806_vm6, %v3141_v31, %v3140_v37  ;;  %v9591_v62 = vld [vmem:[#allocation6 + $0x40] sm:$0x7f]  ;;  %v3153_v6 = vsel %vm1800_vm4, %v3152_v56, %v3151_v39  ;;  %v13075_v55 = vld [vmem:[#allocation46_spill] sm:$0xff] }
 0x42a   : > { %13052 = vst [vmem:[#allocation35_spill] sm:$0xff] %v9591_v62  ;;  %v3160_v15 = vrot.slane %v9591_v62, 4  ;;  %v9594_v49 = vld [vmem:[#allocation6 + $0x68] sm:$0x7f]  ;;  %6673 = vmatprep.subr.mxu0 %v9245_v53  ;;  %v9602_v29 = vld [vmem:[#allocation6 + $0x90] sm:$0x7f]  ;;  %v4085_v62 = vpop.f32.mrf.mxu1  ;;  %v9611_v56 = vsel %vm1809_vm7, %v3143_v54, %v3142_v40 }
 0x42b   : > { %13053 = vst [vmem:[#allocation120_spill] sm:$0xff] %v9594_v49  ;;  %v3162_v46 = vrot.slane %v9594_v49, 3  ;;  %v9599_v61 = vld [vmem:[#allocation6 + $0x128] sm:$0x7f]  ;;  %13055 = vst [vmem:[#allocation122_spill] sm:$0xff] %v9602_v29  ;;  %v3164_v37 = vrot.slane %v9602_v29, 2 }
 0x42c   : > { %13054 = vst [vmem:[#allocation121_spill] sm:$0xff] %v9599_v61  ;;  %v3157_v31 = vrot.slane %v9599_v61, 6  ;;  %v9605_v11 = vld [vmem:[#allocation6 + $0xb8] sm:$0x7f]  ;;  %v13057_v49 = vld [vmem:[#allocation34_spill] sm:$0xff]  ;;  %v3845_v53 = vld [vmem:[%s8299_s11 + $0x530] sm:$0xff]  ;;  %v3161_v42 = vsel %vm1791_vm1, %v3160_v15, %v3159_v25  ;;  %v9631_v29 = vpop.f32.mrf.mxu1  ;;  %v2039_v61 = vpop.permute.xlu1 %2038 }
 0x42d   : > { %13056 = vst [vmem:[#allocation123_spill] sm:$0xff] %v9605_v11  ;;  %v3166_v50 = vrot.slane %v9605_v11, 1  ;;  %6674 = vmatpush3.msra.mxu0 %v13057_v49  ;;  %13058 = vst [vmem:[#allocation34_spill] sm:$0xff] %v9611_v56  ;;  %v9613_v58 = vld [vmem:[#allocation6 + $0xd8] sm:$0x7f]  ;;  %v4895_v62 = vld [vmem:[%s9620_s27 + $0x8] sm:$0xff]  ;;  %v3163_v7 = vsel %vm1794_vm2, %v3162_v46, %v3161_v42  ;;  %4327 = vmatmul.mubr.f32.gmra.mxu1 %v3845_v53  ;;  %v2277_v30 = vmul.f32 %v13075_v55, %v2039_v61 }
 0x42e   : > { %13059 = vst [vmem:[#allocation124_spill] sm:$0xff] %v9613_v58  ;;  %v3154_v39 = vsel %vm1803_vm5, %v9613_v58, %v3153_v6  ;;  %6675 = vmatprep.subr.mxu0 %v9222_v21  ;;  %v9625_v11 = vld [vmem:[#allocation6 + $0x20] sm:$0x7f]  ;;  %v9628_v40 = vld [vmem:[#allocation6 + $0x48] sm:$0x7f]  ;;  %13062 = vst [vmem:[#allocation127_spill] sm:$0xff] %v9631_v29  ;;  %v3165_v21 = vsel %vm1797_vm3, %v3164_v37, %v3163_v7  ;;  %5126 = vmatprep.mubr.f32.mxu1 %v4895_v62 }
 0x42f   : > { %v3156_v49 = vsel %vm1806_vm6, %v3155_v51, %v3154_v39  ;;  %13060 = vst [vmem:[#allocation125_spill] sm:$0xff] %v9625_v11  ;;  %v3173_v54 = vrot.slane %v9625_v11, 5  ;;  %13061 = vst [vmem:[#allocation126_spill] sm:$0xff] %v9628_v40  ;;  %v3174_v6 = vrot.slane %v9628_v40, 4  ;;  %v13063_v25 = vld [vmem:[#allocation33_spill] sm:$0xff]  ;;  %v3167_v37 = vsel %vm1800_vm4, %v3166_v50, %v3165_v21  ;;  %v4090_v40 = vpop.f32.mrf.mxu1  ;;  %v13083_v55 = vld [vmem:[#allocation52_spill] sm:$0xff] }
 0x430   : > { %6676 = vmatpush3.msra.mxu0 %v13063_v25  ;;  %v9635_v15 = vld [vmem:[#allocation6 + $0x108] sm:$0x7f]  ;;  %v9638_v42 = vld [vmem:[#allocation6 + $0x130] sm:$0x7f]  ;;  %v9646_v25 = vsel %vm1809_vm7, %v3157_v31, %v3156_v49  ;;  %v9650_v29 = vld [vmem:[#allocation6 + $0x98] sm:$0x7f]  ;;  %v2024_v40 = vmul.f32 %v13079_v63, %v1658_v52  ;;  %v2026_v3 = vmul.f32 %v13083_v55, %v1658_v52 }
 0x431   : > { %13064 = vst [vmem:[#allocation33_spill] sm:$0xff] %v9635_v15  ;;  %v3169_v51 = vrot.slane %v9635_v15, 7  ;;  %13065 = vst [vmem:[#allocation128_spill] sm:$0xff] %v9638_v42  ;;  %v3171_v46 = vrot.slane %v9638_v42, 6  ;;  %v9641_v39 = vld [vmem:[#allocation6 + $0x70] sm:$0x7f]  ;;  %6677 = vmatprep.subr.mxu0 %v9197_v38  ;;  %v3175_v7 = vsel %vm1791_vm1, %v3174_v6, %v3173_v54 }
 0x432   : > { %13066 = vst [vmem:[#allocation129_spill] sm:$0xff] %v9641_v39  ;;  %v3176_v11 = vrot.slane %v9641_v39, 3  ;;  %13067 = vst [vmem:[#allocation130_spill] sm:$0xff] %v9646_v25  ;;  %v3178_v15 = vrot.slane %v9650_v29, 2  ;;  %v13069_v42 = vld [vmem:[#allocation32_spill] sm:$0xff]  ;;  %v4894_v53 = vld [vmem:[%s9620_s27] sm:$0xff] }
 0x433   : > { %13068 = vst [vmem:[#allocation131_spill] sm:$0xff] %v9650_v29  ;;  %6678 = vmatpush3.msra.mxu0 %v13069_v42  ;;  %v9655_v39 = vld [vmem:[#allocation6 + $0xe0] sm:$0x7f]  ;;  %v9663_v54 = vld [vmem:[#allocation6 + $0x110] sm:$0x7f]  ;;  %v13073_v42 = vld [vmem:[#allocation44_spill] sm:$0xff]  ;;  %5127 = vmatmul.mubr.f32.vlgmr.msra.gmra.mxu1 %v4894_v53 }
 0x434   : > { %13070 = vst [vmem:[#allocation32_spill] sm:$0xff] %v9655_v39  ;;  %v3168_v38 = vsel %vm1803_vm5, %v9655_v39, %v3167_v37  ;;  %v3177_v50 = vsel %vm1794_vm2, %v3176_v11, %v3175_v7  ;;  %v9660_v31 = vld [vmem:[#allocation6 + $0xc0] sm:$0x7f]  ;;  %v13072_v6 = vld [vmem:[#allocation43_spill] sm:$0xff]  ;;  %v2275_v62 = vmul.f32 %v13073_v42, %v2039_v61  ;;  %6679 = vmatprep.subr.mxu0 %v9174_v43  ;;  %v4897_v11 = vld [vmem:[%s9620_s27 + $0x18] sm:$0xff] }
 0x435   : > { %13071 = vst [vmem:[#allocation132_spill] sm:$0xff] %v9660_v31  ;;  %v3180_v49 = vrot.slane %v9660_v31, 1  ;;  %v2274_v21 = vmul.f32 %v13072_v6, %v2039_v61  ;;  %v13074_v29 = vld [vmem:[#allocation45_spill] sm:$0xff]  ;;  %v13076_v37 = vld [vmem:[#allocation47_spill] sm:$0xff]  ;;  %v13077_v39 = vld [vmem:[#allocation48_spill] sm:$0xff]  ;;  %v9676_v6 = vpop.f32.mrf.mxu1  ;;  %v3170_v43 = vsel %vm1806_vm6, %v3169_v51, %v3168_v38  ;;  %5131 = vmatprep.mubr.f32.mxu1 %v4897_v11  ;;  %v3179_v38 = vsel %vm1797_vm3, %v3178_v15, %v3177_v50 }
 0x436   : > { %v2276_v58 = vmul.f32 %v13074_v29, %v2039_v61  ;;  %v2278_v7 = vmul.f32 %v13076_v37, %v2039_v61  ;;  %v2022_v31 = vmul.f32 %v13077_v39, %v1658_v52  ;;  %13080 = vst [vmem:[#allocation133_spill] sm:$0xff] %v9676_v6  ;;  %v13081_v42 = vld [vmem:[#allocation31_spill] sm:$0xff]  ;;  %v9683_v61 = vld [vmem:[#allocation6 + $0x138] sm:$0x7f]  ;;  %v2290_v22 = vadd.f32 %v2275_v62, %v2023_v32  ;;  %v4899_v51 = vld [vmem:[%s9620_s27 + $0x28] sm:$0xff] }
 0x437   : > { %6680 = vmatpush3.msra.mxu0 %v13081_v42  ;;  %v13082_v29 = vld [vmem:[#allocation51_spill] sm:$0xff]  ;;  %v4095_v6 = vpop.f32.mrf.mxu1  ;;  %v2654_v37 = vrot.slane %v9274_v45, 2  ;;  %v13091_v15 = vld [vmem:[#allocation57_spill] sm:$0xff] }
 0x438   : > { %v2025_v13 = vmul.f32 %v13082_v29, %v1658_v52  ;;  %6681 = vmatprep.subr.mxu0 %v9151_v18  ;;  %v2289_v63 = vadd.f32 %v2274_v21, %v2022_v31  ;;  %v2291_v39 = vadd.f32 %v2276_v58, %v2024_v40  ;;  %v4896_v42 = vld [vmem:[%s9620_s27 + $0x10] sm:$0xff]  ;;  %v2653_v52 = vrot.slane %v9293_v57, 3  ;;  %v2573_v18 = vpop.permute.xlu1 %2572  ;;  %v13085_v31 = vld [vmem:[#allocation53_spill] sm:$0xff]  ;;  %v13086_v58 = vld [vmem:[#allocation54_spill] sm:$0xff] }
 0x439   : > { %6682 = vmatpush3.msra.mxu0 %v13084_v2  ;;  %v2293_v55 = vadd.f32 %v2278_v7, %v2026_v3  ;;  %v2808_v32 = vmul.f32 %v13085_v31, %v2573_v18  ;;  %v2809_v40 = vmul.f32 %v13086_v58, %v2573_v18  ;;  %v2306_v2 = vpop.permute.xlu0 %2305  ;;  %v9695_v6 = vpop.f32.mrf.mxu1  ;;  %v9698_v57 = vsel %vm1809_vm7, %v3171_v46, %v3170_v43  ;;  %v13090_v3 = vld [vmem:[#allocation42_spill] sm:$0xff]  ;;  %v13092_v21 = vld [vmem:[#allocation59_spill] sm:$0xff] }
 0x43a   : > { %v2292_v53 = vadd.f32 %v2277_v30, %v2025_v13  ;;  %6683 = vmatprep.subr.mxu0 %v9128_v59  ;;  %13087 = vst [vmem:[#allocation31_spill] sm:$0xff] %v9695_v6  ;;  %13088 = vst [vmem:[#allocation30_spill] sm:$0xff] %v9698_v57  ;;  %v2656_v13 = vrot.slane %v9276_v28, 1  ;;  %v13089_v59 = vld [vmem:[#allocation29_spill] sm:$0xff]  ;;  %v2810_v30 = vmul.f32 %v13090_v3, %v2573_v18  ;;  %5132 = vmatmul.mubr.f32.gmra.mxu1 %v4896_v42  ;;  %v13093_v11 = vld [vmem:[#allocation55_spill] sm:$0xff] }
 0x43b   : > { %6684 = vmatpush3.msra.mxu0 %v13089_v59  ;;  %v2541_v45 = vmul.f32 %v13091_v15, %v2306_v2  ;;  %v2542_v50 = vmul.f32 %v9158_v1, %v2306_v2  ;;  %v2543_v62 = vmul.f32 %v13092_v21, %v2306_v2  ;;  %v2811_v7 = vmul.f32 %v13093_v11, %v2573_v18  ;;  %v4100_v43 = vpop.f32.mrf.mxu1  ;;  %v4898_v28 = vld [vmem:[%s9620_s27 + $0x20] sm:$0xff]  ;;  %v13094_v3 = vld [vmem:[#allocation56_spill] sm:$0xff] }
 0x43c   : > { %v2544_v58 = vmul.f32 %v9200_v0, %v2306_v2  ;;  %v2545_v46 = vmul.f32 %v9216_v12, %v2306_v2  ;;  %5136 = vmatprep.mubr.f32.mxu1 %v4899_v51  ;;  %v3181_v59 = vsel %vm1800_vm4, %v3180_v49, %v3179_v38  ;;  %v2812_v31 = vmul.f32 %v13094_v3, %v2573_v18  ;;  %v4901_v1 = vld [vmem:[%s9620_s27 + $0x38] sm:$0xff]  ;;  %v2840_v11 = vpop.permute.xlu1 %2839  ;;  %v9715_v0 = vld [vmem:[#allocation6 + $0xe8] sm:$0x7f]  ;;  %v13154_v3 = vld [vmem:[#allocation111_spill] sm:$0xff] }
 0x43d   : > { %v2556_v29 = vadd.f32 %v2541_v45, %v2289_v63  ;;  %v2557_v15 = vadd.f32 %v2542_v50, %v2290_v22  ;;  %v2558_v6 = vadd.f32 %v2543_v62, %v2291_v39  ;;  %v9713_v42 = vpop.f32.mrf.mxu1  ;;  %v3182_v51 = vsel %vm1803_vm5, %v9715_v0, %v3181_v59  ;;  %v4900_v50 = vld [vmem:[%s9620_s27 + $0x30] sm:$0xff] }
 0x43e   : > { %v2559_v10 = vadd.f32 %v2544_v58, %v2292_v53  ;;  %v2560_v21 = vadd.f32 %v2545_v46, %v2293_v55  ;;  %13095 = vst [vmem:[#allocation29_spill] sm:$0xff] %v9713_v42  ;;  %v2655_v2 = vsel %vm1791_vm1, %v2654_v37, %v2653_v52  ;;  %5137 = vmatmul.mubr.f32.gmra.mxu1 %v4898_v28  ;;  %v1663_v53 = vpop.permute.xlu0 %1662  ;;  %v13096_v52 = vrot.slane %v9663_v54, 7  ;;  %v13176_v12 = vld [vmem:[#allocation131_spill] sm:$0xff] }
 0x43f   : > { %v2823_v49 = vadd.f32 %v2808_v32, %v2556_v29  ;;  %v2824_v63 = vadd.f32 %v2809_v40, %v2557_v15  ;;  %v2825_v22 = vadd.f32 %v2810_v30, %v2558_v6  ;;  %v3075_v39 = vmul.f32 %v9239_v33, %v2840_v11  ;;  %v4105_v45 = vpop.f32.mrf.mxu1  ;;  %5141 = vmatprep.mubr.f32.mxu1 %v4901_v1  ;;  %v4903_v40 = vld [vmem:[%s9620_s27 + $0x48] sm:$0xff] }
 0x440   : > { %v2826_v55 = vadd.f32 %v2811_v7, %v2559_v10  ;;  %v2827_v18 = vadd.f32 %v2812_v31, %v2560_v21  ;;  %v3076_v38 = vmul.f32 %v9257_v24, %v2840_v11  ;;  %v3077_v58 = vmul.f32 %v9287_v47, %v2840_v11  ;;  %v3107_v46 = vpop.permute.xlu1 %3106  ;;  %v13146_v47 = vld [vmem:[#allocation104_spill] sm:$0xff]  ;;  %v13147_v24 = vld [vmem:[#allocation105_spill] sm:$0xff] }
 0x441   : > { %v3078_v62 = vmul.f32 %v9340_v35, %v2840_v11  ;;  %v3079_v37 = vmul.f32 %v9374_v34, %v2840_v11  ;;  %v3090_v29 = vadd.f32 %v3075_v39, %v2823_v49  ;;  %v3184_v32 = vsel %vm1806_vm6, %v13096_v52, %v3182_v51  ;;  %v9733_v30 = vpop.f32.mrf.mxu1  ;;  %v4902_v49 = vld [vmem:[%s9620_s27 + $0x40] sm:$0xff] }
 0x442   : > { %v3091_v6 = vadd.f32 %v3076_v38, %v2824_v63  ;;  %v3092_v10 = vadd.f32 %v3077_v58, %v2825_v22  ;;  %v9731_v31 = vmul.f32 %v9400_v4, %v1663_v53  ;;  %13097 = vst [vmem:[#allocation134_spill] sm:$0xff] %v9733_v30  ;;  %v2657_v1 = vsel %vm1794_vm2, %v2656_v13, %v2655_v2  ;;  %v13142_v4 = vld [vmem:[#allocation100_spill] sm:$0xff] }
 0x443   : > { %v3093_v15 = vadd.f32 %v3078_v62, %v2826_v55  ;;  %v3094_v21 = vadd.f32 %v3079_v37, %v2827_v18  ;;  %v9737_v11 = vmul.f32 %v9436_v44, %v1663_v53  ;;  %v9740_v7 = vmul.f32 %v9468_v36, %v1663_v53  ;;  %5142 = vmatmul.mubr.f32.gmra.mxu1 %v4900_v50  ;;  %v4110_v2 = vpop.f32.mrf.mxu1  ;;  %v4905_v18 = vld [vmem:[%s9620_s27 + $0x58] sm:$0xff]  ;;  %v13141_v44 = vld [vmem:[#allocation99_spill] sm:$0xff] }
 0x444   : > { %v13098_v43 = vrot.slane %v9683_v61, 6  ;;  %v3342_v59 = vmul.f32 %v9566_v41, %v3107_v46  ;;  %v3343_v13 = vmul.f32 %v9611_v56, %v3107_v46  ;;  %v3344_v51 = vmul.f32 %v9646_v25, %v3107_v46  ;;  %5146 = vmatprep.mubr.f32.mxu1 %v4903_v40  ;;  %v13104_v2 = vld [vmem:[#allocation71_spill] sm:$0xff]  ;;  %v9840_v25 = vpop.permute.xlu0 %2576  ;;  %v10047_v30 = vld [vmem:[#allocation6 + $0x238] sm:$0x7f] }
 0x445   : > { %v3345_v63 = vmul.f32 %v9698_v57, %v3107_v46  ;;  %v2658_v39 = vsel %vm1797_vm3, %v9283_v60, %v2657_v1  ;;  %v2659_v55 = vrot.slane %v9295_v9, 7  ;;  %v2661_v50 = vrot.slane %v9300_v5, 6  ;;  %v9764_v62 = vpop.f32.mrf.mxu1 }
 0x446   : > { %v9745_v28 = vsel %vm1809_vm7, %v13098_v43, %v3184_v32  ;;  %v9757_v38 = vadd.f32 %v3342_v59, %v3090_v29  ;;  %v9759_v58 = vadd.f32 %v3343_v13, %v3091_v6  ;;  %v9761_v45 = vadd.f32 %v3344_v51, %v3092_v10  ;;  %13100 = vst [vmem:[#allocation136_spill] sm:$0xff] %v9764_v62  ;;  %v4904_v10 = vld [vmem:[%s9620_s27 + $0x50] sm:$0xff] }
 0x447   : > { %13099 = vst [vmem:[#allocation135_spill] sm:$0xff] %v9745_v28  ;;  %v3346_v22 = vmul.f32 %v9745_v28, %v3107_v46  ;;  %v9766_v37 = vadd.f32 %v3345_v63, %v3093_v15  ;;  %v2660_v60 = vsel %vm1800_vm4, %v2659_v55, %v2658_v39  ;;  %v2663_v9 = vrot.slane %v9302_v16, 5  ;;  %5147 = vmatmul.mubr.f32.gmra.mxu1 %v4902_v49  ;;  %v4115_v6 = vpop.f32.mrf.mxu1  ;;  %v4907_v46 = vld [vmem:[%s9620_s27 + $0x68] sm:$0xff]  ;;  %v13106_v63 = vld [vmem:[#allocation69_spill] sm:$0xff] }
 0x448   : > { %v2662_v29 = vsel %vm1803_vm5, %v2661_v50, %v2660_v60  ;;  %v2665_v32 = vrot.slane %v9323_v26, 4  ;;  %v2667_v40 = vrot.slane %v9310_v20, 3  ;;  %v2668_v5 = vrot.slane %v9312_v48, 2  ;;  %5151 = vmatprep.mubr.f32.mxu1 %v4905_v18  ;;  %v13102_v26 = vld [vmem:[#allocation67_spill] sm:$0xff]  ;;  %v13108_v55 = vld [vmem:[#allocation70_spill] sm:$0xff]  ;;  %v13109_v50 = vld [vmem:[#allocation76_spill] sm:$0xff] }
 0x449   : > { %v9768_v52 = vadd.f32 %v3346_v22, %v3094_v21  ;;  %v9778_v1 = vmul.f32 %v9487_v19, %v1663_v53  ;;  %v2664_v15 = vsel %vm1806_vm6, %v2663_v9, %v2662_v29  ;;  %v2670_v21 = vrot.slane %v9314_v8, 1  ;;  %v9792_v13 = vpop.f32.mrf.mxu1  ;;  %v13107_v22 = vld [vmem:[#allocation65_spill] sm:$0xff]  ;;  %v13110_v9 = vld [vmem:[#allocation78_spill] sm:$0xff] }
 0x44a   : > { %v2673_v16 = vrot.slane %v9331_v23, 7  ;;  %v9785_v43 = vmul.f32 %v9521_v14, %v1663_v53  ;;  %v9788_v20 = vsel %vm1809_vm7, %v2665_v32, %v2664_v15  ;;  %v2669_v48 = vsel %vm1791_vm1, %v2668_v5, %v2667_v40  ;;  %13103 = vst [vmem:[#allocation67_spill] sm:$0xff] %v9792_v13  ;;  %v13105_v23 = vld [vmem:[#allocation66_spill] sm:$0xff]  ;;  %v4906_v40 = vld [vmem:[%s9620_s27 + $0x60] sm:$0xff]  ;;  %v13111_v15 = vld [vmem:[#allocation79_spill] sm:$0xff] }
 0x44b   : > { %13101 = vst [vmem:[#allocation137_spill] sm:$0xff] %v9788_v20  ;;  %v2675_v59 = vrot.slane %v13102_v26, 6  ;;  %v2671_v51 = vsel %vm1794_vm2, %v2670_v21, %v2669_v48  ;;  %v2681_v8 = vrot.slane %v13104_v2, 3  ;;  %v2682_v49 = vrot.slane %v13105_v23, 2  ;;  %5152 = vmatmul.mubr.f32.gmra.mxu1 %v4904_v10  ;;  %v4120_v32 = vpop.f32.mrf.mxu1  ;;  %v13112_v48 = vld [vmem:[#allocation80_spill] sm:$0xff]  ;;  %v13113_v23 = vld [vmem:[#allocation73_spill] sm:$0xff] }
 0x44c   : > { %v2684_v53 = vrot.slane %v13106_v63, 1  ;;  %v2672_v39 = vsel %vm1797_vm3, %v13107_v22, %v2671_v51  ;;  %v2677_v18 = vrot.slane %v13108_v55, 5  ;;  %v2687_v60 = vrot.slane %v13109_v50, 7  ;;  %5156 = vmatprep.mubr.f32.mxu1 %v4907_v46  ;;  %v4909_v26 = vld [vmem:[%s9620_s27 + $0x78] sm:$0xff]  ;;  %v13114_v22 = vld [vmem:[#allocation74_spill] sm:$0xff]  ;;  %v13116_v32 = vld [vmem:[#allocation75_spill] sm:$0xff] }
 0x44d   : > { %v2689_v29 = vrot.slane %v13110_v9, 6  ;;  %v2674_v5 = vsel %vm1800_vm4, %v2673_v16, %v2672_v39  ;;  %v2683_v6 = vsel %vm1791_vm1, %v2682_v49, %v2681_v8  ;;  %v2691_v21 = vrot.slane %v13111_v15, 5  ;;  %v13115_v46 = vld [vmem:[#allocation72_spill] sm:$0xff]  ;;  %v13117_v8 = vld [vmem:[#allocation83_spill] sm:$0xff]  ;;  %v13118_v39 = vld [vmem:[#allocation82_spill] sm:$0xff]  ;;  %v9818_v28 = vpop.f32.mrf.mxu1 }
 0x44e   : > { %v2695_v10 = vrot.slane %v13112_v48, 3  ;;  %v2676_v51 = vsel %vm1803_vm5, %v2675_v59, %v2674_v5  ;;  %v2685_v2 = vsel %vm1794_vm2, %v2684_v53, %v2683_v6  ;;  %v2696_v63 = vrot.slane %v13113_v23, 2  ;;  %13119 = vst [vmem:[#allocation71_spill] sm:$0xff] %v9818_v28  ;;  %v13120_v6 = vld [vmem:[#allocation86_spill] sm:$0xff]  ;;  %v10060_v13 = vld [vmem:[#allocation6 + $0x260] sm:$0x7f] }
 0x44f   : > { %v2698_v55 = vrot.slane %v13114_v22, 1  ;;  %v2679_v50 = vrot.slane %v13115_v46, 4  ;;  %v2686_v16 = vsel %vm1797_vm3, %v13116_v32, %v2685_v2  ;;  %v2693_v49 = vrot.slane %v13117_v8, 4  ;;  %5157 = vmatmul.mubr.f32.gmra.mxu1 %v4906_v40  ;;  %v4908_v22 = vld [vmem:[%s9620_s27 + $0x70] sm:$0xff]  ;;  %v4125_v57 = vpop.f32.mrf.mxu1  ;;  %v13121_v40 = vld [vmem:[#allocation81_spill] sm:$0xff]  ;;  %v13131_v14 = vld [vmem:[#allocation94_spill] sm:$0xff] }
 0x450   : > { %v2701_v15 = vrot.slane %v13118_v39, 7  ;;  %v2678_v59 = vsel %vm1806_vm6, %v2677_v18, %v2676_v51  ;;  %v2688_v53 = vsel %vm1800_vm4, %v2687_v60, %v2686_v16  ;;  %v2697_v5 = vsel %vm1791_vm1, %v2696_v63, %v2695_v10  ;;  %5161 = vmatprep.mubr.f32.mxu1 %v4909_v26  ;;  %v13122_v10 = vld [vmem:[#allocation85_spill] sm:$0xff]  ;;  %v13123_v63 = vld [vmem:[#allocation87_spill] sm:$0xff] }
 0x451   : > { %v2703_v23 = vrot.slane %v13120_v6, 6  ;;  %v2690_v46 = vsel %vm1803_vm5, %v2689_v29, %v2688_v53  ;;  %v2699_v2 = vsel %vm1794_vm2, %v2698_v55, %v2697_v5  ;;  %v2705_v32 = vrot.slane %v9418_v27, 5  ;;  %v13125_v55 = vld [vmem:[#allocation90_spill] sm:$0xff]  ;;  %v13126_v5 = vld [vmem:[#allocation89_spill] sm:$0xff] }
 0x452   : > { %v2709_v39 = vrot.slane %v9414_v17, 3  ;;  %v2692_v18 = vsel %vm1806_vm6, %v2691_v21, %v2690_v46  ;;  %v2700_v60 = vsel %vm1797_vm3, %v13121_v40, %v2699_v2  ;;  %v2710_v51 = vrot.slane %v13122_v10, 2  ;;  %v9842_v21 = vpop.f32.mrf.mxu1 }
 0x453   : > { %v2712_v26 = vrot.slane %v13123_v63, 1  ;;  %v9835_v16 = vsel %vm1809_vm7, %v2679_v50, %v2678_v59  ;;  %v2702_v29 = vsel %vm1800_vm4, %v2701_v15, %v2700_v60  ;;  %v2707_v53 = vrot.slane %v13125_v55, 4  ;;  %13127 = vst [vmem:[#allocation69_spill] sm:$0xff] %v9842_v21  ;;  %5162 = vmatmul.mubr.f32.gmra.mxu1 %v4908_v22  ;;  %v13129_v59 = vld [vmem:[#allocation92_spill] sm:$0xff]  ;;  %v4911_v15 = vld [vmem:[%s9620_s27 + $0x88] sm:$0xff]  ;;  %v4910_v22 = vld [vmem:[%s9620_s27 + $0x80] sm:$0xff] }
 0x454   : > { %13124 = vst [vmem:[#allocation66_spill] sm:$0xff] %v9835_v16  ;;  %v2715_v57 = vrot.slane %v13126_v5, 7  ;;  %v9845_v46 = vsel %vm1809_vm7, %v2693_v49, %v2692_v18  ;;  %v2704_v2 = vsel %vm1803_vm5, %v2703_v23, %v2702_v29  ;;  %v2711_v50 = vsel %vm1791_vm1, %v2710_v51, %v2709_v39  ;;  %v13130_v5 = vld [vmem:[#allocation93_spill] sm:$0xff]  ;;  %v4130_v36 = vpop.f32.mrf.mxu1  ;;  %5166 = vmatprep.mubr.f32.mxu1 %v4911_v15  ;;  %v13132_v49 = vld [vmem:[#allocation88_spill] sm:$0xff] }
 0x455   : > { %13128 = vst [vmem:[#allocation65_spill] sm:$0xff] %v9845_v46  ;;  %v2717_v40 = vrot.slane %v13129_v59, 6  ;;  %v2706_v60 = vsel %vm1806_vm6, %v2705_v32, %v2704_v2  ;;  %v2713_v56 = vsel %vm1794_vm2, %v2712_v26, %v2711_v50  ;;  %v2719_v41 = vrot.slane %v13130_v5, 5  ;;  %v13135_v32 = vld [vmem:[#allocation96_spill] sm:$0xff]  ;;  %v13138_v50 = vld [vmem:[#allocation97_spill] sm:$0xff]  ;;  %13190 = vst [vmem:[#allocation88_spill] sm:$0xff] %v10047_v30 }
 0x456   : > { %v2721_v19 = vrot.slane %v13131_v14, 4  ;;  %v2714_v18 = vsel %vm1797_vm3, %v13132_v49, %v2713_v56  ;;  %v9860_v23 = vmul.f32 %v9788_v20, %v9840_v25  ;;  %v9864_v39 = vmul.f32 %v9835_v16, %v9840_v25  ;;  %v13137_v29 = vld [vmem:[#allocation40_spill] sm:$0xff]  ;;  %v9873_v56 = vpop.f32.mrf.mxu1 }
 0x457   : > { %v3384_v51 = vrot.slane %v13135_v32, 6  ;;  %v9868_v26 = vsel %vm1809_vm7, %v2707_v53, %v2706_v60  ;;  %v2716_v36 = vsel %vm1800_vm4, %v2715_v57, %v2714_v18  ;;  %v3385_v2 = vrot.slane %v13137_v29, 5  ;;  %13139 = vst [vmem:[#allocation79_spill] sm:$0xff] %v9873_v56  ;;  %5167 = vmatmul.mubr.f32.gmra.mxu1 %v4910_v22  ;;  %v13143_v18 = vld [vmem:[#allocation37_spill] sm:$0xff] }
 0x458   : > { %13133 = vst [vmem:[#allocation70_spill] sm:$0xff] %v9860_v23  ;;  %13134 = vst [vmem:[#allocation76_spill] sm:$0xff] %v9864_v39  ;;  %v3387_v15 = vrot.slane %v13138_v50, 4  ;;  %v2718_v20 = vsel %vm1803_vm5, %v2717_v40, %v2716_v36  ;;  %v9878_v16 = vmul.f32 %v9845_v46, %v9840_v25  ;;  %v3389_v32 = vrot.slane %v13141_v44, 3  ;;  %v13144_v50 = vld [vmem:[#allocation102_spill] sm:$0xff]  ;;  %v4135_v35 = vpop.f32.mrf.mxu1  ;;  %v13145_v40 = vld [vmem:[#allocation103_spill] sm:$0xff] }
 0x459   : > { %13136 = vst [vmem:[#allocation78_spill] sm:$0xff] %v9868_v26  ;;  %v3391_v53 = vrot.slane %v13142_v4, 2  ;;  %v2720_v60 = vsel %vm1806_vm6, %v2719_v41, %v2718_v20  ;;  %v3386_v57 = vsel %vm1791_vm1, %v3385_v2, %v3384_v51  ;;  %v3393_v29 = vrot.slane %v13143_v18, 1  ;;  %v13149_v41 = vld [vmem:[#allocation106_spill] sm:$0xff]  ;;  %v13150_v51 = vld [vmem:[#allocation107_spill] sm:$0xff] }
 0x45a   : > { %13140 = vst [vmem:[#allocation80_spill] sm:$0xff] %v9878_v16  ;;  %v3398_v34 = vrot.slane %v13144_v50, 6  ;;  %v3388_v22 = vsel %vm1794_vm2, %v3387_v15, %v3386_v57  ;;  %v3396_v36 = vrot.slane %v13145_v40, 7  ;;  %v3399_v46 = vrot.slane %v13146_v47, 5  ;;  %v13151_v15 = vld [vmem:[#allocation116_spill] sm:$0xff]  ;;  %v13152_v50 = vld [vmem:[#allocation115_spill] sm:$0xff] }
 0x45b   : > { %v3401_v33 = vrot.slane %v13147_v24, 4  ;;  %v9891_v44 = vsel %vm1809_vm7, %v2721_v19, %v2720_v60  ;;  %v3390_v4 = vsel %vm1797_vm3, %v3389_v32, %v3388_v22  ;;  %v3403_v20 = vrot.slane %v13149_v41, 3  ;;  %v13153_v19 = vld [vmem:[#allocation109_spill] sm:$0xff]  ;;  %v13155_v22 = vld [vmem:[#allocation39_spill] sm:$0xff]  ;;  %v10231_v39 = vld [vmem:[#allocation6 + $0x1d8] sm:$0x7f] }
 0x45c   : > { %13148 = vst [vmem:[#allocation73_spill] sm:$0xff] %v9891_v44  ;;  %v3405_v2 = vrot.slane %v13150_v51, 2  ;;  %v3392_v18 = vsel %vm1800_vm4, %v3391_v53, %v3390_v4  ;;  %v3400_v35 = vsel %vm1791_vm1, %v3399_v46, %v3398_v34  ;;  %v3407_v57 = vrot.slane %v13151_v15, 1  ;;  %v13156_v53 = vld [vmem:[#allocation112_spill] sm:$0xff]  ;;  %v13157_v34 = vld [vmem:[#allocation113_spill] sm:$0xff] }
 0x45d   : > { %v3410_v40 = vrot.slane %v13152_v50, 7  ;;  %v3394_v47 = vsel %vm1803_vm5, %v3393_v29, %v3392_v18  ;;  %v3402_v24 = vsel %vm1794_vm2, %v3401_v33, %v3400_v35  ;;  %v3412_v60 = vrot.slane %v13153_v19, 6  ;;  %v13159_v18 = vld [vmem:[#allocation114_spill] sm:$0xff]  ;;  %13208 = vst [vmem:[#allocation112_spill] sm:$0xff] %v10231_v39 }
 0x45e   : > { %v3413_v32 = vrot.slane %v13154_v3, 5  ;;  %v3395_v41 = vsel %vm1806_vm6, %v13155_v22, %v3394_v47  ;;  %v3404_v51 = vsel %vm1797_vm3, %v3403_v20, %v3402_v24  ;;  %v3415_v4 = vrot.slane %v13156_v53, 4  ;;  %v13160_v47 = vld [vmem:[#allocation124_spill] sm:$0xff]  ;;  %v13161_v20 = vld [vmem:[#allocation121_spill] sm:$0xff] }
 0x45f   : > { %v3417_v46 = vrot.slane %v13157_v34, 3  ;;  %v9910_v15 = vsel %vm1809_vm7, %v3396_v36, %v3395_v41  ;;  %v3406_v29 = vsel %vm1800_vm4, %v3405_v2, %v3404_v51  ;;  %v3419_v35 = vrot.slane %v13159_v18, 2  ;;  %v13162_v22 = vld [vmem:[#allocation108_spill] sm:$0xff]  ;;  %v13163_v41 = vld [vmem:[#allocation118_spill] sm:$0xff]  ;;  %v13164_v2 = vld [vmem:[#allocation35_spill] sm:$0xff] }
 0x460   : > { %13158 = vst [vmem:[#allocation74_spill] sm:$0xff] %v9910_v15  ;;  %v3414_v33 = vsel %vm1791_vm1, %v3413_v32, %v3412_v60  ;;  %v3408_v3 = vsel %vm1803_vm5, %v3407_v57, %v3406_v29  ;;  %v3421_v19 = vrot.slane %v13160_v47, 1  ;;  %v3424_v24 = vrot.slane %v13161_v20, 7  ;;  %v13166_v32 = vld [vmem:[#allocation120_spill] sm:$0xff]  ;;  %v13167_v29 = vld [vmem:[#allocation122_spill] sm:$0xff] }
 0x461   : > { %v3416_v50 = vsel %vm1794_vm2, %v3415_v4, %v3414_v33  ;;  %v3409_v53 = vsel %vm1806_vm6, %v13162_v22, %v3408_v3  ;;  %v3426_v34 = vrot.slane %v13163_v41, 6  ;;  %v3427_v51 = vrot.slane %v13164_v2, 5  ;;  %v13168_v3 = vld [vmem:[#allocation123_spill] sm:$0xff]  ;;  %v13170_v22 = vld [vmem:[#allocation117_spill] sm:$0xff] }
 0x462   : > { %v3418_v36 = vsel %vm1797_vm3, %v3417_v46, %v3416_v50  ;;  %v9925_v60 = vsel %vm1809_vm7, %v3410_v40, %v3409_v53  ;;  %v3429_v4 = vrot.slane %v13166_v32, 4  ;;  %v3431_v33 = vrot.slane %v13167_v29, 3  ;;  %v13169_v46 = vld [vmem:[#allocation32_spill] sm:$0xff]  ;;  %v3374_v32 = vpop.permute.xlu1 %3373 }
 0x463   : > { %13165 = vst [vmem:[#allocation72_spill] sm:$0xff] %v9925_v60  ;;  %v3420_v57 = vsel %vm1800_vm4, %v3419_v35, %v3418_v36  ;;  %v3428_v47 = vsel %vm1791_vm1, %v3427_v51, %v3426_v34  ;;  %v3433_v20 = vrot.slane %v13168_v3, 2  ;;  %v3435_v50 = vrot.slane %v13169_v46, 1  ;;  %v13171_v53 = vld [vmem:[#allocation128_spill] sm:$0xff]  ;;  %v13172_v35 = vld [vmem:[#allocation125_spill] sm:$0xff]  ;;  %v13174_v34 = vld [vmem:[#allocation126_spill] sm:$0xff] }
 0x464   : > { %v3422_v18 = vsel %vm1803_vm5, %v3421_v19, %v3420_v57  ;;  %v3430_v40 = vsel %vm1794_vm2, %v3429_v4, %v3428_v47  ;;  %v3438_v2 = vrot.slane %v13171_v53, 7  ;;  %v3440_v36 = vrot.slane %v13172_v35, 6  ;;  %v13175_v57 = vld [vmem:[#allocation129_spill] sm:$0xff] }
 0x465   : > { %v3423_v41 = vsel %vm1806_vm6, %v13170_v22, %v3422_v18  ;;  %v3432_v19 = vsel %vm1797_vm3, %v3431_v33, %v3430_v40  ;;  %v3441_v51 = vrot.slane %v13174_v34, 5  ;;  %v3443_v3 = vrot.slane %v13175_v57, 4  ;;  %v13177_v22 = vld [vmem:[#allocation132_spill] sm:$0xff] }
 0x466   : > { %v9940_v29 = vsel %vm1809_vm7, %v3424_v24, %v3423_v41  ;;  %v3434_v46 = vsel %vm1800_vm4, %v3433_v20, %v3432_v19  ;;  %v3445_v18 = vrot.slane %v13176_v12, 3  ;;  %v3447_v4 = vrot.slane %v13177_v22, 2  ;;  %v13178_v41 = vld [vmem:[#allocation33_spill] sm:$0xff]  ;;  %v9980_v22 = vld [vmem:[#allocation6 + $0x190] sm:$0x7f] }
 0x467   : > { %13173 = vst [vmem:[#allocation75_spill] sm:$0xff] %v9940_v29  ;;  %v3449_v47 = vrot.slane %v9715_v0, 1  ;;  %v3436_v53 = vsel %vm1803_vm5, %v3435_v50, %v3434_v46  ;;  %v3442_v35 = vsel %vm1791_vm1, %v3441_v51, %v3440_v36  ;;  %v3452_v24 = vrot.slane %v9683_v61, 7  ;;  %v9965_v61 = vld [vmem:[#allocation6 + $0x140] sm:$0x7f] }
 0x468   : > { %v3609_v33 = vmul.f32 %v9910_v15, %v3374_v32  ;;  %v3437_v40 = vsel %vm1806_vm6, %v13178_v41, %v3436_v53  ;;  %v3444_v34 = vsel %vm1794_vm2, %v3443_v3, %v3442_v35  ;;  %v3610_v20 = vmul.f32 %v9925_v60, %v3374_v32  ;;  %v9983_v35 = vld [vmem:[#allocation6 + $0x1b8] sm:$0x7f] }
 0x469   : > { %v3611_v12 = vmul.f32 %v9940_v29, %v3374_v32  ;;  %v9959_v19 = vsel %vm1809_vm7, %v3438_v2, %v3437_v40  ;;  %v3446_v0 = vsel %vm1797_vm3, %v3445_v18, %v3444_v34  ;;  %v2920_v36 = vrot.slane %v9965_v61, 4  ;;  %v9977_v18 = vld [vmem:[#allocation6 + $0x168] sm:$0x7f]  ;;  %v10035_v29 = vld [vmem:[#allocation6 + $0x210] sm:$0x7f] }
 0x46a   : > { %13179 = vst [vmem:[#allocation83_spill] sm:$0xff] %v9959_v19  ;;  %v9963_v50 = vadd.f32 %v3609_v33, %v9757_v38  ;;  %v3448_v51 = vsel %vm1800_vm4, %v3447_v4, %v3446_v0  ;;  %v3612_v57 = vmul.f32 %v9959_v19, %v3374_v32  ;;  %v9971_v3 = vadd.f32 %v3610_v20, %v9759_v58  ;;  %v10003_v34 = vld [vmem:[#allocation6 + $0x208] sm:$0x7f]  ;;  %v10030_v19 = vld [vmem:[#allocation6 + $0x1e0] sm:$0x7f] }
 0x46b   : > { %v9974_v46 = vadd.f32 %v3611_v12, %v9761_v45  ;;  %v3450_v2 = vsel %vm1803_vm5, %v3449_v47, %v3448_v51  ;;  %v2921_v38 = vrot.slane %v9977_v18, 3  ;;  %v2923_v53 = vrot.slane %v9980_v22, 2  ;;  %v10006_v12 = vld [vmem:[#allocation6 + $0x148] sm:$0x7f]  ;;  %v10011_v51 = vld [vmem:[#allocation6 + $0x170] sm:$0x7f] }
 0x46c   : > { %13180 = vst [vmem:[#allocation82_spill] sm:$0xff] %v9963_v50  ;;  %13181 = vst [vmem:[#allocation86_spill] sm:$0xff] %v9971_v3  ;;  %v2925_v4 = vrot.slane %v9983_v35, 1  ;;  %v9988_v58 = vmul.f32 %v9868_v26, %v9840_v25  ;;  %v9992_v45 = vmul.f32 %v9891_v44, %v9840_v25  ;;  %v3451_v47 = vsel %vm1806_vm6, %v9663_v54, %v3450_v2  ;;  %v10018_v2 = vld [vmem:[#allocation6 + $0x230] sm:$0x7f] }
 0x46d   : > { %13182 = vst [vmem:[#allocation81_spill] sm:$0xff] %v9974_v46  ;;  %v9997_v33 = vadd.f32 %v3612_v57, %v9766_v37  ;;  %v10000_v41 = vsel %vm1809_vm7, %v3452_v24, %v3451_v47  ;;  %v2922_v40 = vsel %vm1791_vm1, %v2921_v38, %v2920_v36  ;;  %v2928_v20 = vrot.slane %v10003_v34, 7  ;;  %v10014_v24 = vld [vmem:[#allocation6 + $0x198] sm:$0x7f]  ;;  %13187 = vst [vmem:[#allocation92_spill] sm:$0xff] %v10018_v2 }
 0x46e   : > { %13183 = vst [vmem:[#allocation85_spill] sm:$0xff] %v9988_v58  ;;  %13184 = vst [vmem:[#allocation87_spill] sm:$0xff] %v9992_v45  ;;  %v2934_v25 = vrot.slane %v10006_v12, 4  ;;  %v3613_v0 = vmul.f32 %v10000_v41, %v3374_v32  ;;  %v2924_v54 = vsel %vm1794_vm2, %v2923_v53, %v2922_v40  ;;  %v2935_v37 = vrot.slane %v10011_v51, 3  ;;  %v10021_v47 = vld [vmem:[#allocation6 + $0x258] sm:$0x7f] }
 0x46f   : > { %13185 = vst [vmem:[#allocation90_spill] sm:$0xff] %v9997_v33  ;;  %13186 = vst [vmem:[#allocation89_spill] sm:$0xff] %v10000_v41  ;;  %v2937_v36 = vrot.slane %v10014_v24, 2  ;;  %v2926_v57 = vsel %vm1797_vm3, %v2925_v4, %v2924_v54  ;;  %v2930_v38 = vrot.slane %v10018_v2, 6  ;;  %v2932_v32 = vrot.slane %v10021_v47, 5 }
 0x470   : > { %v10024_v41 = vld [vmem:[#allocation6 + $0x1c0] sm:$0x7f]  ;;  %v10028_v40 = vadd.f32 %v3613_v0, %v9768_v52  ;;  %v2927_v4 = vsel %vm1800_vm4, %v10030_v19, %v2926_v57  ;;  %v2936_v54 = vsel %vm1791_vm1, %v2935_v37, %v2934_v25  ;;  %13189 = vst [vmem:[#allocation94_spill] sm:$0xff] %v10035_v29  ;;  %v2942_v60 = vrot.slane %v10035_v29, 7  ;;  %v10040_v44 = vld [vmem:[#allocation6 + $0x150] sm:$0x7f] }
 0x471   : > { %v2939_v53 = vrot.slane %v10024_v41, 1  ;;  %v2929_v15 = vsel %vm1803_vm5, %v2928_v20, %v2927_v4  ;;  %v2938_v26 = vsel %vm1794_vm2, %v2937_v36, %v2936_v54  ;;  %v2948_v52 = vrot.slane %v10040_v44, 4  ;;  %v10043_v0 = vld [vmem:[#allocation6 + $0x178] sm:$0x7f]  ;;  %v10050_v37 = vld [vmem:[#allocation6 + $0x1a0] sm:$0x7f] }
 0x472   : > { %13188 = vst [vmem:[#allocation93_spill] sm:$0xff] %v10028_v40  ;;  %v2949_v42 = vrot.slane %v10043_v0, 3  ;;  %v2944_v25 = vrot.slane %v10047_v30, 6  ;;  %v2951_v20 = vrot.slane %v10050_v37, 2  ;;  %v10053_v4 = vld [vmem:[#allocation6 + $0x1c8] sm:$0x7f]  ;;  %v2931_v21 = vsel %vm1806_vm6, %v2930_v38, %v2929_v15 }
 0x473   : > { %v2940_v57 = vsel %vm1797_vm3, %v2939_v53, %v2938_v26  ;;  %v2953_v36 = vrot.slane %v10053_v4, 1  ;;  %v10056_v54 = vld [vmem:[#allocation6 + $0x1e8] sm:$0x7f]  ;;  %v2946_v26 = vrot.slane %v10060_v13, 5  ;;  %v2956_v28 = vrot.slane %v13110_v9, 7 }
 0x474   : > { %v2941_v62 = vsel %vm1800_vm4, %v10056_v54, %v2940_v57  ;;  %v2950_v53 = vsel %vm1791_vm1, %v2949_v42, %v2948_v52  ;;  %v10068_v33 = vld [vmem:[#allocation6 + $0x240] sm:$0x7f]  ;;  %v2960_v3 = vrot.slane %v13117_v8, 5  ;;  %v2962_v50 = vrot.slane %v13112_v48, 4  ;;  %v10078_v15 = vld [vmem:[#allocation6 + $0x1f0] sm:$0x7f] }
 0x475   : > { %v2943_v56 = vsel %vm1803_vm5, %v2942_v60, %v2941_v62  ;;  %v2952_v40 = vsel %vm1794_vm2, %v2951_v20, %v2950_v53  ;;  %v2958_v46 = vrot.slane %v10068_v33, 6  ;;  %v10074_v45 = vld [vmem:[#allocation6 + $0x180] sm:$0x7f]  ;;  %v10082_v60 = vld [vmem:[#allocation6 + $0x1a8] sm:$0x7f]  ;;  %v10089_v48 = vsel %vm1809_vm7, %v2932_v32, %v2931_v21  ;;  %v10104_v32 = vpop.permute.xlu0 %2843 }
 0x476   : > { %v2954_v57 = vsel %vm1797_vm3, %v2953_v36, %v2952_v40  ;;  %v2963_v42 = vrot.slane %v10074_v45, 3  ;;  %v2945_v9 = vsel %vm1806_vm6, %v2944_v25, %v2943_v56  ;;  %v2965_v38 = vrot.slane %v10082_v60, 2  ;;  %v10085_v40 = vld [vmem:[#allocation6 + $0x1d0] sm:$0x7f]  ;;  %13191 = vst [vmem:[#allocation96_spill] sm:$0xff] %v10089_v48 }
 0x477   : > { %v2955_v62 = vsel %vm1800_vm4, %v10078_v15, %v2954_v57  ;;  %v2967_v8 = vrot.slane %v10085_v40, 1  ;;  %v2970_v25 = vrot.slane %v13120_v6, 7  ;;  %v2972_v53 = vrot.slane %v9418_v27, 6 }
 0x478   : > { %v2957_v52 = vsel %vm1803_vm5, %v2956_v28, %v2955_v62  ;;  %v2964_v56 = vsel %vm1791_vm1, %v2963_v42, %v2962_v50  ;;  %v2976_v57 = vrot.slane %v9414_v17, 4  ;;  %v10099_v58 = vsel %vm1809_vm7, %v2946_v26, %v2945_v9  ;;  %v4913_v62 = vld [vmem:[%s9620_s27 + $0x98] sm:$0xff] }
 0x479   : > { %v2959_v20 = vsel %vm1806_vm6, %v2958_v46, %v2957_v52  ;;  %v2966_v36 = vsel %vm1794_vm2, %v2965_v38, %v2964_v56  ;;  %13192 = vst [vmem:[#allocation40_spill] sm:$0xff] %v10099_v58  ;;  %v2977_v28 = vrot.slane %v13122_v10, 3  ;;  %v2979_v50 = vrot.slane %v13123_v63, 2  ;;  %v10109_v46 = vld [vmem:[#allocation6 + $0x1f8] sm:$0x7f]  ;;  %5171 = vmatprep.mubr.f32.mxu1 %v4913_v62 }
 0x47a   : > { %v2968_v21 = vsel %vm1797_vm3, %v2967_v8, %v2966_v36  ;;  %v10107_v6 = vsel %vm1809_vm7, %v2960_v3, %v2959_v20  ;;  %v2974_v27 = vrot.slane %v13125_v55, 5  ;;  %v2981_v26 = vrot.slane %v13132_v49, 1  ;;  %v4912_v49 = vld [vmem:[%s9620_s27 + $0x90] sm:$0xff] }
 0x47b   : > { %13193 = vst [vmem:[#allocation97_spill] sm:$0xff] %v10107_v6  ;;  %v2969_v17 = vsel %vm1800_vm4, %v10109_v46, %v2968_v21  ;;  %v2978_v10 = vsel %vm1791_vm1, %v2977_v28, %v2976_v57  ;;  %v2984_v63 = vrot.slane %v13129_v59, 7  ;;  %v2986_v9 = vrot.slane %v13130_v5, 6  ;;  %5172 = vmatmul.mubr.f32.gmra.mxu1 %v4912_v49 }
 0x47c   : > { %v2971_v42 = vsel %vm1803_vm5, %v2970_v25, %v2969_v17  ;;  %v2980_v38 = vsel %vm1794_vm2, %v2979_v50, %v2978_v10  ;;  %v2988_v8 = vrot.slane %v13131_v14, 5  ;;  %v10125_v55 = vmul.f32 %v10089_v48, %v10104_v32  ;;  %v10135_v25 = vpop.f32.mrf.mxu1  ;;  %v10137_v14 = vld [vmem:[#allocation6 + $0x200] sm:$0x7f] }
 0x47d   : > { %v2973_v3 = vsel %vm1806_vm6, %v2972_v53, %v2971_v42  ;;  %v2982_v52 = vsel %vm1797_vm3, %v2981_v26, %v2980_v38  ;;  %v10131_v59 = vmul.f32 %v10099_v58, %v10104_v32  ;;  %v2119_v5 = vrot.slane %v9965_v61, 1  ;;  %13196 = vst [vmem:[#allocation37_spill] sm:$0xff] %v10135_v25  ;;  %13197 = vst [vmem:[#allocation102_spill] sm:$0xff] %v10137_v14 }
 0x47e   : > { %13194 = vst [vmem:[#allocation99_spill] sm:$0xff] %v10125_v55  ;;  %v2121_v56 = vrot.slane %v9980_v22, 7  ;;  %v2983_v20 = vsel %vm1800_vm4, %v10137_v14, %v2982_v52  ;;  %v10143_v36 = vmul.f32 %v10107_v6, %v10104_v32  ;;  %v2123_v53 = vrot.slane %v9983_v35, 6  ;;  %v4140_v26 = vpop.f32.mrf.mxu1  ;;  %v10216_v6 = vld [vmem:[#allocation6 + $0x270] sm:$0x7f] }
 0x47f   : > { %13195 = vst [vmem:[#allocation100_spill] sm:$0xff] %v10131_v59  ;;  %v2125_v57 = vrot.slane %v10030_v19, 5  ;;  %v10148_v21 = vsel %vm1809_vm7, %v2974_v27, %v2973_v3  ;;  %v2985_v28 = vsel %vm1803_vm5, %v2984_v63, %v2983_v20  ;;  %v2120_v50 = vsel %vm1791_vm1, %v9977_v18, %v2119_v5  ;;  %13205 = vst [vmem:[#allocation109_spill] sm:$0xff] %v10216_v6 }
 0x480   : > { %13198 = vst [vmem:[#allocation103_spill] sm:$0xff] %v10143_v36  ;;  %13199 = vst [vmem:[#allocation104_spill] sm:$0xff] %v10148_v21  ;;  %v2127_v17 = vrot.slane %v10003_v34, 4  ;;  %v2987_v42 = vsel %vm1806_vm6, %v2986_v9, %v2985_v28  ;;  %v2122_v10 = vsel %vm1794_vm2, %v2121_v56, %v2120_v50  ;;  %v2129_v62 = vrot.slane %v10018_v2, 3  ;;  %v10221_v36 = vld [vmem:[#allocation6 + $0x160] sm:$0x7f] }
 0x481   : > { %v2133_v38 = vrot.slane %v10006_v12, 1  ;;  %v2124_v49 = vsel %vm1797_vm3, %v2123_v53, %v2122_v10  ;;  %v2131_v27 = vrot.slane %v10021_v47, 2  ;;  %v2135_v63 = vrot.slane %v10014_v24, 7 }
 0x482   : > { %v2137_v3 = vrot.slane %v10024_v41, 6  ;;  %v10163_v52 = vsel %vm1809_vm7, %v2988_v8, %v2987_v42  ;;  %v2126_v5 = vsel %vm1800_vm4, %v2125_v57, %v2124_v49  ;;  %v2139_v56 = vrot.slane %v10056_v54, 5 }
 0x483   : > { %13200 = vst [vmem:[#allocation105_spill] sm:$0xff] %v10163_v52  ;;  %v2134_v9 = vsel %vm1791_vm1, %v10011_v51, %v2133_v38  ;;  %v2128_v20 = vsel %vm1803_vm5, %v2127_v17, %v2126_v5  ;;  %v2141_v28 = vrot.slane %v10035_v29, 4  ;;  %v2143_v50 = vrot.slane %v10047_v30, 3  ;;  %v10187_v5 = vld [vmem:[#allocation6 + $0x218] sm:$0x7f] }
 0x484   : > { %v2136_v53 = vsel %vm1794_vm2, %v2135_v63, %v2134_v9  ;;  %v2130_v26 = vsel %vm1806_vm6, %v2129_v62, %v2128_v20  ;;  %v2145_v42 = vrot.slane %v10060_v13, 2  ;;  %v2147_v57 = vrot.slane %v10040_v44, 1  ;;  %13202 = vst [vmem:[#allocation107_spill] sm:$0xff] %v10187_v5 }
 0x485   : > { %v2138_v8 = vsel %vm1797_vm3, %v2137_v3, %v2136_v53  ;;  %v10178_v10 = vsel %vm1809_vm7, %v2131_v27, %v2130_v26  ;;  %v2149_v17 = vrot.slane %v10050_v37, 7  ;;  %v2151_v49 = vrot.slane %v10053_v4, 6  ;;  %v10193_v53 = vld [vmem:[#allocation6 + $0x268] sm:$0x7f] }
 0x486   : > { %13201 = vst [vmem:[#allocation106_spill] sm:$0xff] %v10178_v10  ;;  %v2140_v38 = vsel %vm1800_vm4, %v2139_v56, %v2138_v8  ;;  %v2148_v62 = vsel %vm1791_vm1, %v10043_v0, %v2147_v57  ;;  %v2153_v3 = vrot.slane %v10078_v15, 5  ;;  %v2155_v9 = vrot.slane %v10187_v5, 4  ;;  %v10200_v57 = vld [vmem:[#allocation6 + $0x158] sm:$0x7f] }
 0x487   : > { %v2142_v63 = vsel %vm1803_vm5, %v2141_v28, %v2140_v38  ;;  %v2150_v20 = vsel %vm1794_vm2, %v2149_v17, %v2148_v62  ;;  %v2157_v56 = vrot.slane %v10068_v33, 3  ;;  %v2159_v26 = vrot.slane %v10193_v53, 2  ;;  %v10207_v62 = vld [vmem:[#allocation6 + $0x220] sm:$0x7f] }
 0x488   : > { %v2144_v27 = vsel %vm1806_vm6, %v2143_v50, %v2142_v63  ;;  %v2152_v8 = vsel %vm1797_vm3, %v2151_v49, %v2150_v20  ;;  %v2161_v38 = vrot.slane %v10200_v57, 1  ;;  %v2163_v58 = vrot.slane %v10082_v60, 7  ;;  %13204 = vst [vmem:[#allocation115_spill] sm:$0xff] %v10207_v62 }
 0x489   : > { %v10197_v28 = vsel %vm1809_vm7, %v2145_v42, %v2144_v27  ;;  %v2154_v50 = vsel %vm1800_vm4, %v2153_v3, %v2152_v8  ;;  %v2165_v17 = vrot.slane %v10085_v40, 6  ;;  %v2167_v63 = vrot.slane %v10109_v46, 5  ;;  %v10213_v27 = vld [vmem:[#allocation6 + $0x248] sm:$0x7f] }
 0x48a   : > { %13203 = vst [vmem:[#allocation116_spill] sm:$0xff] %v10197_v28  ;;  %v2169_v48 = vrot.slane %v10207_v62, 4  ;;  %v2156_v42 = vsel %vm1803_vm5, %v2155_v9, %v2154_v50  ;;  %v2162_v49 = vsel %vm1791_vm1, %v10074_v45, %v2161_v38  ;;  %v2171_v20 = vrot.slane %v10213_v27, 3  ;;  %v10224_v9 = vld [vmem:[#allocation6 + $0x1b0] sm:$0x7f]  ;;  %v2043_v50 = vpop.permute.xlu1 %2042 }
 0x48b   : > { %v2173_v3 = vrot.slane %v10216_v6, 2  ;;  %v2158_v8 = vsel %vm1806_vm6, %v2157_v56, %v2156_v42  ;;  %v2164_v25 = vsel %vm1794_vm2, %v2163_v58, %v2162_v49  ;;  %v2175_v59 = vrot.slane %v10221_v36, 1  ;;  %13206 = vst [vmem:[#allocation111_spill] sm:$0xff] %v10224_v9  ;;  %v10236_v49 = vld [vmem:[#allocation6 + $0x188] sm:$0x7f] }
 0x48c   : > { %v2177_v38 = vrot.slane %v10224_v9, 7  ;;  %v10228_v55 = vsel %vm1809_vm7, %v2159_v26, %v2158_v8  ;;  %v2166_v16 = vsel %vm1797_vm3, %v2165_v17, %v2164_v25  ;;  %v2179_v56 = vrot.slane %v10231_v39, 6  ;;  %v10240_v62 = vld [vmem:[#allocation6 + $0x228] sm:$0x7f]  ;;  %v10243_v8 = vld [vmem:[#allocation6 + $0x250] sm:$0x7f] }
 0x48d   : > { %13207 = vst [vmem:[#allocation39_spill] sm:$0xff] %v10228_v55  ;;  %v2181_v58 = vrot.slane %v10137_v14, 5  ;;  %v2168_v42 = vsel %vm1800_vm4, %v2167_v63, %v2166_v16  ;;  %v2176_v23 = vsel %vm1791_vm1, %v10236_v49, %v2175_v59  ;;  %13209 = vst [vmem:[#allocation113_spill] sm:$0xff] %v10240_v62  ;;  %v2183_v26 = vrot.slane %v10240_v62, 4  ;;  %v10248_v14 = vld [vmem:[#allocation6 + $0x278] sm:$0x7f] }
 0x48e   : > { %13210 = vst [vmem:[#allocation114_spill] sm:$0xff] %v10243_v8  ;;  %v2185_v25 = vrot.slane %v10243_v8, 3  ;;  %v2170_v17 = vsel %vm1803_vm5, %v2169_v48, %v2168_v42  ;;  %v2178_v6 = vsel %vm1794_vm2, %v2177_v38, %v2176_v23  ;;  %v2187_v16 = vrot.slane %v10248_v14, 2 }
 0x48f   : > { %v2279_v63 = vmul.f32 %v10178_v10, %v2043_v50  ;;  %v2172_v59 = vsel %vm1806_vm6, %v2171_v20, %v2170_v17  ;;  %v2180_v39 = vsel %vm1797_vm3, %v2179_v56, %v2178_v6  ;;  %v2280_v62 = vmul.f32 %v10197_v28, %v2043_v50  ;;  %v13222_v28 = vld [vmem:[#allocation102_spill] sm:$0xff] }
 0x490   : > { %v2281_v9 = vmul.f32 %v10228_v55, %v2043_v50  ;;  %v10258_v8 = vmul.f32 %v10148_v21, %v10104_v32  ;;  %v10261_v23 = vsel %vm1809_vm7, %v2173_v3, %v2172_v59  ;;  %v2182_v48 = vsel %vm1800_vm4, %v2181_v58, %v2180_v39  ;;  %v13220_v55 = vld [vmem:[#allocation112_spill] sm:$0xff] }
 0x491   : > { %13212 = vst [vmem:[#allocation121_spill] sm:$0xff] %v10261_v23  ;;  %v3187_v38 = vrot.slane %v9965_v61, 5  ;;  %v10267_v20 = vmul.f32 %v10163_v52, %v10104_v32  ;;  %v2184_v6 = vsel %vm1803_vm5, %v2183_v26, %v2182_v48  ;;  %v2282_v56 = vmul.f32 %v10261_v23, %v2043_v50 }
 0x492   : > { %13211 = vst [vmem:[#allocation124_spill] sm:$0xff] %v10258_v8  ;;  %v10272_v42 = vadd.f32 %v2279_v63, %v9731_v31  ;;  %v2186_v17 = vsel %vm1806_vm6, %v2185_v25, %v2184_v6  ;;  %v3188_v3 = vrot.slane %v9977_v18, 4  ;;  %v3190_v59 = vrot.slane %v9980_v22, 3 }
 0x493   : > { %13213 = vst [vmem:[#allocation108_spill] sm:$0xff] %v10267_v20  ;;  %v3192_v39 = vrot.slane %v9983_v35, 2  ;;  %v10279_v58 = vsel %vm1809_vm7, %v2187_v16, %v2186_v17  ;;  %v10282_v32 = vadd.f32 %v2280_v62, %v9737_v11  ;;  %v10285_v26 = vadd.f32 %v2281_v9, %v9740_v7 }
 0x494   : > { %13214 = vst [vmem:[#allocation118_spill] sm:$0xff] %v10279_v58  ;;  %v3194_v31 = vrot.slane %v10030_v19, 1  ;;  %v10289_v63 = vadd.f32 %v2282_v56, %v9778_v1  ;;  %v3189_v25 = vsel %vm1791_vm1, %v3188_v3, %v3187_v38  ;;  %v3197_v48 = vrot.slane %v10018_v2, 7 }
 0x495   : > { %v3201_v6 = vrot.slane %v10006_v12, 5  ;;  %v3191_v16 = vsel %vm1794_vm2, %v3190_v59, %v3189_v25  ;;  %v3202_v17 = vrot.slane %v10011_v51, 4  ;;  %v3204_v11 = vrot.slane %v10014_v24, 3  ;;  %v13225_v20 = vld [vmem:[#allocation114_spill] sm:$0xff] }
 0x496   : > { %13215 = vst [vmem:[#allocation35_spill] sm:$0xff] %v10289_v63  ;;  %v3206_v7 = vrot.slane %v10024_v41, 2  ;;  %v2283_v62 = vmul.f32 %v10279_v58, %v2043_v50  ;;  %v3193_v9 = vsel %vm1797_vm3, %v3192_v39, %v3191_v16  ;;  %v3199_v1 = vrot.slane %v10021_v47, 6 }
 0x497   : > { %v3208_v38 = vrot.slane %v10056_v54, 1  ;;  %v3195_v56 = vsel %vm1800_vm4, %v3194_v31, %v3193_v9  ;;  %v3203_v3 = vsel %vm1791_vm1, %v3202_v17, %v3201_v6  ;;  %v3211_v59 = vrot.slane %v10047_v30, 7 }
 0x498   : > { %v3215_v25 = vrot.slane %v10040_v44, 5  ;;  %v3196_v21 = vsel %vm1803_vm5, %v10003_v34, %v3195_v56  ;;  %v3205_v52 = vsel %vm1794_vm2, %v3204_v11, %v3203_v3  ;;  %v3216_v50 = vrot.slane %v10043_v0, 4 }
 0x499   : > { %v3218_v39 = vrot.slane %v10050_v37, 3  ;;  %v3198_v16 = vsel %vm1806_vm6, %v3197_v48, %v3196_v21  ;;  %v3207_v58 = vsel %vm1797_vm3, %v3206_v7, %v3205_v52  ;;  %v3220_v31 = vrot.slane %v10053_v4, 2 }
 0x49a   : > { %v3222_v6 = vrot.slane %v10078_v15, 1  ;;  %v10316_v17 = vadd.f32 %v2283_v62, %v9785_v43  ;;  %v3209_v9 = vsel %vm1800_vm4, %v3208_v38, %v3207_v58  ;;  %v3213_v56 = vrot.slane %v10060_v13, 6 }
 0x49b   : > { %v3217_v11 = vsel %vm1791_vm1, %v3216_v50, %v3215_v25  ;;  %v3210_v3 = vsel %vm1803_vm5, %v10035_v29, %v3209_v9  ;;  %v3225_v52 = vrot.slane %v10068_v33, 7  ;;  %v3229_v48 = vrot.slane %v10200_v57, 5 }
 0x49c   : > { %13216 = vst [vmem:[#allocation120_spill] sm:$0xff] %v10316_v17  ;;  %v3219_v21 = vsel %vm1794_vm2, %v3218_v39, %v3217_v11  ;;  %v10327_v7 = vsel %vm1809_vm7, %v3199_v1, %v3198_v16  ;;  %v3230_v58 = vrot.slane %v10074_v45, 4  ;;  %v3232_v62 = vrot.slane %v10082_v60, 3  ;;  %v4915_v17 = vld [vmem:[%s9620_s27 + $0xa8] sm:$0xff] }
 0x49d   : > { %13217 = vst [vmem:[#allocation122_spill] sm:$0xff] %v10327_v7  ;;  %v3221_v43 = vsel %vm1797_vm3, %v3220_v31, %v3219_v21  ;;  %v3212_v38 = vsel %vm1806_vm6, %v3211_v59, %v3210_v3  ;;  %v3234_v50 = vrot.slane %v10085_v40, 2  ;;  %v3236_v39 = vrot.slane %v10109_v46, 1  ;;  %5176 = vmatprep.mubr.f32.mxu1 %v4915_v17 }
 0x49e   : > { %v3223_v25 = vsel %vm1800_vm4, %v3222_v6, %v3221_v43  ;;  %v3227_v1 = vrot.slane %v10193_v53, 6  ;;  %v3231_v16 = vsel %vm1791_vm1, %v3230_v58, %v3229_v48  ;;  %v3239_v31 = vrot.slane %v10213_v27, 7  ;;  %v10351_v58 = vpop.permute.xlu0 %3110 }
 0x49f   : > { %v3224_v9 = vsel %vm1803_vm5, %v10187_v5, %v3223_v25  ;;  %v3233_v21 = vsel %vm1794_vm2, %v3232_v62, %v3231_v16  ;;  %v3243_v59 = vrot.slane %v10221_v36, 5  ;;  %v3244_v6 = vrot.slane %v10236_v49, 4  ;;  %v13219_v25 = vld [vmem:[#allocation111_spill] sm:$0xff]  ;;  %v13221_v62 = vld [vmem:[#allocation109_spill] sm:$0xff] }
 0x4a0   : > { %v3226_v11 = vsel %vm1806_vm6, %v3225_v52, %v3224_v9  ;;  %v10346_v3 = vsel %vm1809_vm7, %v3213_v56, %v3212_v38  ;;  %v3235_v43 = vsel %vm1797_vm3, %v3234_v50, %v3233_v21  ;;  %v3246_v23 = vrot.slane %v13219_v25, 3  ;;  %v13224_v38 = vld [vmem:[#allocation115_spill] sm:$0xff] }
 0x4a1   : > { %13218 = vst [vmem:[#allocation123_spill] sm:$0xff] %v10346_v3  ;;  %v3248_v48 = vrot.slane %v13220_v55, 2  ;;  %v3237_v52 = vsel %vm1800_vm4, %v3236_v39, %v3235_v43  ;;  %v3241_v9 = vrot.slane %v13221_v62, 6  ;;  %v3245_v16 = vsel %vm1791_vm1, %v3244_v6, %v3243_v59 }
 0x4a2   : > { %v3250_v10 = vrot.slane %v13222_v28, 1  ;;  %v10358_v56 = vsel %vm1809_vm7, %v3227_v1, %v3226_v11  ;;  %v3238_v50 = vsel %vm1803_vm5, %v13224_v38, %v3237_v52  ;;  %v3247_v21 = vsel %vm1794_vm2, %v3246_v23, %v3245_v16  ;;  %v4914_v1 = vld [vmem:[%s9620_s27 + $0xa0] sm:$0xff]  ;;  %v10380_v52 = vpop.f32.mrf.mxu1 }
 0x4a3   : > { %13223 = vst [vmem:[#allocation32_spill] sm:$0xff] %v10358_v56  ;;  %v3253_v8 = vrot.slane %v13225_v20, 7  ;;  %v3240_v63 = vsel %vm1806_vm6, %v3239_v31, %v3238_v50  ;;  %v3249_v39 = vsel %vm1797_vm3, %v3248_v48, %v3247_v21  ;;  %v3255_v59 = vrot.slane %v10248_v14, 6  ;;  %13227 = vst [vmem:[#allocation128_spill] sm:$0xff] %v10380_v52  ;;  %5177 = vmatmul.mubr.f32.gmra.mxu1 %v4914_v1  ;;  %v13228_v48 = vld [vmem:[#allocation113_spill] sm:$0xff]  ;;  %v4917_v21 = vld [vmem:[%s9620_s27 + $0xb8] sm:$0xff] }
 0x4a4   : > { %v10370_v6 = vmul.f32 %v10327_v7, %v10351_v58  ;;  %v3251_v11 = vsel %vm1800_vm4, %v3250_v10, %v3249_v39  ;;  %v10376_v23 = vmul.f32 %v10346_v3, %v10351_v58  ;;  %v2386_v43 = vrot.slane %v9965_v61, 2  ;;  %v4145_v52 = vpop.f32.mrf.mxu1  ;;  %5181 = vmatprep.mubr.f32.mxu1 %v4917_v21 }
 0x4a5   : > { %v2387_v31 = vrot.slane %v9977_v18, 1  ;;  %v3252_v16 = vsel %vm1803_vm5, %v13228_v48, %v3251_v11  ;;  %v10386_v17 = vmul.f32 %v10358_v56, %v10351_v58  ;;  %v2390_v10 = vrot.slane %v9983_v35, 7 }
 0x4a6   : > { %13226 = vst [vmem:[#allocation117_spill] sm:$0xff] %v10376_v23  ;;  %v2392_v50 = vrot.slane %v10030_v19, 6  ;;  %v10392_v39 = vsel %vm1809_vm7, %v3241_v9, %v3240_v63  ;;  %v3254_v3 = vsel %vm1806_vm6, %v3253_v8, %v3252_v16  ;;  %v2394_v1 = vrot.slane %v10003_v34, 5 }
 0x4a7   : > { %13229 = vst [vmem:[#allocation125_spill] sm:$0xff] %v10386_v17  ;;  %13230 = vst [vmem:[#allocation126_spill] sm:$0xff] %v10392_v39  ;;  %v2388_v7 = vsel %vm1791_vm1, %v2387_v31, %v2386_v43  ;;  %v10398_v11 = vsel %vm1809_vm7, %v3255_v59, %v3254_v3  ;;  %v2396_v17 = vrot.slane %v10018_v2, 4  ;;  %v2400_v23 = vrot.slane %v10006_v12, 2 }
 0x4a8   : > { %13231 = vst [vmem:[#allocation129_spill] sm:$0xff] %v10398_v11  ;;  %v2389_v56 = vsel %vm1794_vm2, %v9980_v22, %v2388_v7  ;;  %v2398_v8 = vrot.slane %v10021_v47, 3  ;;  %v2401_v9 = vrot.slane %v10011_v51, 1  ;;  %v2404_v43 = vrot.slane %v10024_v41, 7 }
 0x4a9   : > { %v2391_v63 = vsel %vm1797_vm3, %v2390_v10, %v2389_v56  ;;  %v2406_v3 = vrot.slane %v10056_v54, 6  ;;  %v2408_v59 = vrot.slane %v10035_v29, 5  ;;  %v2410_v7 = vrot.slane %v10047_v30, 4 }
 0x4aa   : > { %v2393_v31 = vsel %vm1800_vm4, %v2392_v50, %v2391_v63  ;;  %v2402_v16 = vsel %vm1791_vm1, %v2401_v9, %v2400_v23  ;;  %v2412_v56 = vrot.slane %v10060_v13, 3  ;;  %v2414_v10 = vrot.slane %v10040_v44, 2 }
 0x4ab   : > { %v2395_v52 = vsel %vm1803_vm5, %v2394_v1, %v2393_v31  ;;  %v2403_v2 = vsel %vm1794_vm2, %v10014_v24, %v2402_v16  ;;  %v2415_v50 = vrot.slane %v10043_v0, 1  ;;  %v2418_v63 = vrot.slane %v10053_v4, 7 }
 0x4ac   : > { %v2397_v21 = vsel %vm1806_vm6, %v2396_v17, %v2395_v52  ;;  %v2405_v1 = vsel %vm1797_vm3, %v2404_v43, %v2403_v2  ;;  %v2420_v23 = vrot.slane %v10078_v15, 6  ;;  %v2422_v9 = vrot.slane %v10187_v5, 5 }
 0x4ad   : > { %v10422_v29 = vsel %vm1809_vm7, %v2398_v8, %v2397_v21  ;;  %v2407_v31 = vsel %vm1800_vm4, %v2406_v3, %v2405_v1  ;;  %v2416_v17 = vsel %vm1791_vm1, %v2415_v50, %v2414_v10  ;;  %v2424_v52 = vrot.slane %v10068_v33, 4 }
 0x4ae   : > { %13232 = vst [vmem:[#allocation131_spill] sm:$0xff] %v10422_v29  ;;  %v2426_v16 = vrot.slane %v10193_v53, 3  ;;  %v2409_v30 = vsel %vm1803_vm5, %v2408_v59, %v2407_v31  ;;  %v2417_v8 = vsel %vm1794_vm2, %v10050_v37, %v2416_v17  ;;  %v2428_v21 = vrot.slane %v10200_v57, 2 }
 0x4af   : > { %v2429_v2 = vrot.slane %v10074_v45, 1  ;;  %v2411_v43 = vsel %vm1806_vm6, %v2410_v7, %v2409_v30  ;;  %v2419_v5 = vsel %vm1797_vm3, %v2418_v63, %v2417_v8  ;;  %v2432_v3 = vrot.slane %v10085_v40, 7 }
 0x4b0   : > { %v2434_v10 = vrot.slane %v10109_v46, 6  ;;  %v10441_v50 = vsel %vm1809_vm7, %v2412_v56, %v2411_v43  ;;  %v2421_v59 = vsel %vm1800_vm4, %v2420_v23, %v2419_v5  ;;  %v2436_v31 = vrot.slane %v13224_v38, 5  ;;  %v2310_v23 = vpop.permute.xlu1 %2309 }
 0x4b1   : > { %13233 = vst [vmem:[#allocation132_spill] sm:$0xff] %v10441_v50  ;;  %v2430_v1 = vsel %vm1791_vm1, %v2429_v2, %v2428_v21  ;;  %v2423_v17 = vsel %vm1803_vm5, %v2422_v9, %v2421_v59  ;;  %v2438_v7 = vrot.slane %v10213_v27, 4  ;;  %v2440_v63 = vrot.slane %v13221_v62, 3 }
 0x4b2   : > { %v2431_v30 = vsel %vm1794_vm2, %v10082_v60, %v2430_v1  ;;  %v2425_v8 = vsel %vm1806_vm6, %v2424_v52, %v2423_v17  ;;  %v2442_v43 = vrot.slane %v10221_v36, 2  ;;  %v2443_v5 = vrot.slane %v10236_v49, 1 }
 0x4b3   : > { %v2433_v56 = vsel %vm1797_vm3, %v2432_v3, %v2431_v30  ;;  %v10456_v21 = vsel %vm1809_vm7, %v2426_v16, %v2425_v8  ;;  %v2446_v2 = vrot.slane %v13220_v55, 7  ;;  %v2448_v59 = vrot.slane %v13222_v28, 6 }
 0x4b4   : > { %13234 = vst [vmem:[#allocation33_spill] sm:$0xff] %v10456_v21  ;;  %v2435_v9 = vsel %vm1800_vm4, %v2434_v10, %v2433_v56  ;;  %v2444_v52 = vsel %vm1791_vm1, %v2443_v5, %v2442_v43  ;;  %v2450_v3 = vrot.slane %v13228_v48, 5  ;;  %v2452_v17 = vrot.slane %v13225_v20, 4  ;;  %v10481_v20 = vpop.f32.mrf.mxu1 }
 0x4b5   : > { %v2437_v1 = vsel %vm1803_vm5, %v2436_v31, %v2435_v9  ;;  %v2445_v16 = vsel %vm1794_vm2, %v13219_v25, %v2444_v52  ;;  %v2454_v8 = vrot.slane %v10248_v14, 3  ;;  %v2546_v10 = vmul.f32 %v10422_v29, %v2310_v23  ;;  %v4916_v9 = vld [vmem:[%s9620_s27 + $0xb0] sm:$0xff]  ;;  %13236 = vst [vmem:[#allocation112_spill] sm:$0xff] %v10481_v20  ;;  %v4918_v20 = vld [vmem:[%s9620_s27 + $0xc0] sm:$0xff] }
 0x4b6   : > { %v2439_v30 = vsel %vm1806_vm6, %v2438_v7, %v2437_v1  ;;  %v2447_v31 = vsel %vm1797_vm3, %v2446_v2, %v2445_v16  ;;  %v2547_v43 = vmul.f32 %v10441_v50, %v2310_v23  ;;  %v2548_v5 = vmul.f32 %v10456_v21, %v2310_v23  ;;  %5182 = vmatmul.mubr.f32.gmra.mxu1 %v4916_v9 }
 0x4b7   : > { %v10471_v56 = vsel %vm1809_vm7, %v2440_v63, %v2439_v30  ;;  %v2449_v7 = vsel %vm1800_vm4, %v2448_v59, %v2447_v31  ;;  %v2561_v52 = vadd.f32 %v2546_v10, %v10272_v42  ;;  %v3454_v29 = vrot.slane %v9965_v61, 6  ;;  %v13237_v31 = vld [vmem:[#allocation35_spill] sm:$0xff]  ;;  %v4150_v61 = vpop.f32.mrf.mxu1  ;;  %v4919_v10 = vld [vmem:[%s9620_s27 + $0xc8] sm:$0xff] }
 0x4b8   : > { %13235 = vst [vmem:[#allocation111_spill] sm:$0xff] %v10471_v56  ;;  %v2549_v1 = vmul.f32 %v10471_v56, %v2310_v23  ;;  %v2451_v63 = vsel %vm1803_vm5, %v2450_v3, %v2449_v7  ;;  %v2562_v2 = vadd.f32 %v2547_v43, %v10282_v32  ;;  %v2563_v30 = vadd.f32 %v2548_v5, %v10285_v26  ;;  %v13238_v56 = vld [vmem:[#allocation70_spill] sm:$0xff]  ;;  %v13240_v3 = vld [vmem:[#allocation76_spill] sm:$0xff]  ;;  %v13242_v5 = vld [vmem:[#allocation85_spill] sm:$0xff] }
 0x4b9   : > { %v3455_v16 = vrot.slane %v9977_v18, 5  ;;  %v2453_v59 = vsel %vm1806_vm6, %v2452_v17, %v2451_v63  ;;  %v2828_v50 = vadd.f32 %v13238_v56, %v2561_v52  ;;  %v3457_v42 = vrot.slane %v9980_v22, 4  ;;  %v13241_v43 = vld [vmem:[#allocation80_spill] sm:$0xff]  ;;  %5186 = vmatprep.mubr.f32.mxu1 %v4919_v10  ;;  %v13243_v56 = vld [vmem:[#allocation99_spill] sm:$0xff]  ;;  %v10503_v52 = vpop.f32.mrf.mxu1 }
 0x4ba   : > { %v2564_v21 = vadd.f32 %v2549_v1, %v13237_v31  ;;  %v10494_v9 = vsel %vm1809_vm7, %v2454_v8, %v2453_v59  ;;  %v2829_v32 = vadd.f32 %v13240_v3, %v2562_v2  ;;  %v2830_v26 = vadd.f32 %v13241_v43, %v2563_v30  ;;  %5187 = vmatmul.mubr.f32.gmra.mxu1 %v4918_v20  ;;  %v13244_v8 = vld [vmem:[#allocation100_spill] sm:$0xff]  ;;  %v13245_v59 = vld [vmem:[#allocation103_spill] sm:$0xff]  ;;  %v13249_v43 = vld [vmem:[#allocation117_spill] sm:$0xff] }
 0x4bb   : > { %13239 = vst [vmem:[#allocation109_spill] sm:$0xff] %v10494_v9  ;;  %v3456_v18 = vsel %vm1791_vm1, %v3455_v16, %v3454_v29  ;;  %v2550_v17 = vmul.f32 %v10494_v9, %v2310_v23  ;;  %v3095_v1 = vadd.f32 %v13243_v56, %v2828_v50  ;;  %v3459_v30 = vrot.slane %v9983_v35, 3  ;;  %v13246_v16 = vld [vmem:[#allocation120_spill] sm:$0xff]  ;;  %v4155_v61 = vpop.f32.mrf.mxu1  ;;  %v13248_v3 = vld [vmem:[#allocation87_spill] sm:$0xff] }
 0x4bc   : > { %v2831_v7 = vadd.f32 %v13242_v5, %v2564_v21  ;;  %v3458_v22 = vsel %vm1794_vm2, %v3457_v42, %v3456_v18  ;;  %v3096_v63 = vadd.f32 %v13244_v8, %v2829_v32  ;;  %v3097_v2 = vadd.f32 %v13245_v59, %v2830_v26  ;;  %v13247_v31 = vld [vmem:[#allocation124_spill] sm:$0xff]  ;;  %v13254_v59 = vld [vmem:[#allocation94_spill] sm:$0xff] }
 0x4bd   : > { %v3461_v29 = vrot.slane %v10030_v19, 2  ;;  %v3350_v23 = vmul.f32 %v10392_v39, %v10351_v58  ;;  %v2565_v21 = vadd.f32 %v2550_v17, %v13246_v16  ;;  %v3463_v42 = vrot.slane %v10003_v34, 1 }
 0x4be   : > { %v3098_v50 = vadd.f32 %v13247_v31, %v2831_v7  ;;  %v10516_v20 = vmul.f32 %v10398_v11, %v10351_v58  ;;  %v10519_v10 = vadd.f32 %v10370_v6, %v3095_v1  ;;  %v3460_v35 = vsel %vm1797_vm3, %v3459_v30, %v3458_v22  ;;  %v13250_v7 = vld [vmem:[#allocation108_spill] sm:$0xff] }
 0x4bf   : > { %v3466_v19 = vrot.slane %v10021_v47, 7  ;;  %v2832_v32 = vadd.f32 %v13248_v3, %v2565_v21  ;;  %v10525_v26 = vadd.f32 %v13249_v43, %v3096_v63  ;;  %v3462_v18 = vsel %vm1800_vm4, %v3461_v29, %v3460_v35  ;;  %v13251_v47 = vld [vmem:[#allocation125_spill] sm:$0xff]  ;;  %v13252_v22 = vld [vmem:[#allocation92_spill] sm:$0xff] }
 0x4c0   : > { %v3468_v34 = vrot.slane %v10006_v12, 6  ;;  %v3464_v17 = vsel %vm1803_vm5, %v3463_v42, %v3462_v18  ;;  %v3469_v58 = vrot.slane %v10011_v51, 5  ;;  %v3471_v6 = vrot.slane %v10014_v24, 4  ;;  %v13255_v42 = vld [vmem:[#allocation107_spill] sm:$0xff] }
 0x4c1   : > { %v3473_v5 = vrot.slane %v10024_v41, 3  ;;  %v10534_v56 = vadd.f32 %v13250_v7, %v2832_v32  ;;  %v10537_v1 = vadd.f32 %v13251_v47, %v3097_v2  ;;  %v3465_v8 = vsel %vm1806_vm6, %v13252_v22, %v3464_v17  ;;  %v13256_v32 = vld [vmem:[#allocation88_spill] sm:$0xff]  ;;  %v3378_v22 = vpop.permute.xlu0 %3377 }
 0x4c2   : > { %v3475_v63 = vrot.slane %v10056_v54, 2  ;;  %v10543_v12 = vsel %vm1809_vm7, %v3466_v19, %v3465_v8  ;;  %v3470_v51 = vsel %vm1791_vm1, %v3469_v58, %v3468_v34  ;;  %v3477_v24 = vrot.slane %v13254_v59, 1 }
 0x4c3   : > { %13253 = vst [vmem:[#allocation102_spill] sm:$0xff] %v10543_v12  ;;  %v3482_v41 = vrot.slane %v10040_v44, 6  ;;  %v3472_v30 = vsel %vm1794_vm2, %v3471_v6, %v3470_v51  ;;  %v3480_v29 = vrot.slane %v10060_v13, 7  ;;  %v3483_v2 = vrot.slane %v10043_v0, 5 }
 0x4c4   : > { %v3485_v16 = vrot.slane %v10050_v37, 4  ;;  %v3474_v21 = vsel %vm1797_vm3, %v3473_v5, %v3472_v30  ;;  %v3487_v54 = vrot.slane %v10053_v4, 3  ;;  %v3489_v31 = vrot.slane %v10078_v15, 2 }
 0x4c5   : > { %v3491_v61 = vrot.slane %v13255_v42, 1  ;;  %v3476_v35 = vsel %vm1800_vm4, %v3475_v63, %v3474_v21  ;;  %v3484_v44 = vsel %vm1791_vm1, %v3483_v2, %v3482_v41  ;;  %v3494_v19 = vrot.slane %v10193_v53, 7 }
 0x4c6   : > { %v3496_v13 = vrot.slane %v10200_v57, 6  ;;  %v3478_v0 = vsel %vm1803_vm5, %v3477_v24, %v3476_v35  ;;  %v3486_v37 = vsel %vm1794_vm2, %v3485_v16, %v3484_v44  ;;  %v3497_v3 = vrot.slane %v10074_v45, 5 }
 0x4c7   : > { %v3499_v4 = vrot.slane %v10082_v60, 4  ;;  %v3479_v15 = vsel %vm1806_vm6, %v13256_v32, %v3478_v0  ;;  %v3488_v43 = vsel %vm1797_vm3, %v3487_v54, %v3486_v37  ;;  %v3501_v18 = vrot.slane %v10085_v40, 3  ;;  %v13260_v0 = vld [vmem:[#allocation114_spill] sm:$0xff] }
 0x4c8   : > { %v3503_v34 = vrot.slane %v10109_v46, 2  ;;  %v10570_v53 = vsel %vm1809_vm7, %v3480_v29, %v3479_v15  ;;  %v3490_v57 = vsel %vm1800_vm4, %v3489_v31, %v3488_v43  ;;  %v3498_v17 = vsel %vm1791_vm1, %v3497_v3, %v3496_v13  ;;  %v4925_v13 = vld [vmem:[%s9620_s27 + $0xf8] sm:$0xff]  ;;  %v13261_v3 = vld [vmem:[#allocation82_spill] sm:$0xff]  ;;  %v13266_v43 = vld [vmem:[#allocation81_spill] sm:$0xff] }
 0x4c9   : > { %13257 = vst [vmem:[#allocation115_spill] sm:$0xff] %v10570_v53  ;;  %v3505_v45 = vrot.slane %v13224_v38, 1  ;;  %v3492_v60 = vsel %vm1803_vm5, %v3491_v61, %v3490_v57  ;;  %v3500_v58 = vsel %vm1794_vm2, %v3499_v4, %v3498_v17  ;;  %v3508_v6 = vrot.slane %v13221_v62, 7  ;;  %v4922_v61 = vld [vmem:[%s9620_s27 + $0xe0] sm:$0xff]  ;;  %v13263_v4 = vld [vmem:[#allocation86_spill] sm:$0xff] }
 0x4ca   : > { %v3510_v40 = vrot.slane %v10221_v36, 6  ;;  %v3493_v46 = vsel %vm1806_vm6, %v10068_v33, %v3492_v60  ;;  %v3502_v5 = vsel %vm1797_vm3, %v3501_v18, %v3500_v58  ;;  %v3511_v7 = vrot.slane %v10236_v49, 5  ;;  %v4927_v58 = vld [vmem:[%s9620_s27 + $0x108] sm:$0xff] }
 0x4cb   : > { %v3513_v47 = vrot.slane %v13219_v25, 4  ;;  %v10585_v38 = vsel %vm1809_vm7, %v3494_v19, %v3493_v46  ;;  %v3504_v8 = vsel %vm1800_vm4, %v3503_v34, %v3502_v5  ;;  %v3515_v62 = vrot.slane %v13220_v55, 3  ;;  %v4921_v25 = vld [vmem:[%s9620_s27 + $0xd8] sm:$0xff]  ;;  %v10599_v55 = vpop.f32.mrf.mxu1  ;;  %v13268_v34 = vld [vmem:[#allocation90_spill] sm:$0xff]  ;;  %v13270_v5 = vld [vmem:[#allocation93_spill] sm:$0xff] }
 0x4cc   : > { %13258 = vst [vmem:[#allocation113_spill] sm:$0xff] %v10585_v38  ;;  %v3517_v36 = vrot.slane %v13222_v28, 2  ;;  %v3365_v63 = vadd.f32 %v3350_v23, %v3098_v50  ;;  %v3506_v33 = vsel %vm1803_vm5, %v3505_v45, %v3504_v8  ;;  %v3512_v51 = vsel %vm1791_vm1, %v3511_v7, %v3510_v40  ;;  %5191 = vmatprep.mubr.f32.mxu1 %v4921_v25  ;;  %v4920_v28 = vld [vmem:[%s9620_s27 + $0xd0] sm:$0xff]  ;;  %v4923_v23 = vld [vmem:[%s9620_s27 + $0xe8] sm:$0xff]  ;;  %v10603_v50 = vpop.f32.mrf.mxu0 }
 0x4cd   : > { %v3519_v49 = vrot.slane %v13228_v48, 1  ;;  %v3507_v59 = vsel %vm1806_vm6, %v10213_v27, %v3506_v33  ;;  %v3514_v24 = vsel %vm1794_vm2, %v3513_v47, %v3512_v51  ;;  %v3614_v41 = vmul.f32 %v10543_v12, %v3378_v22  ;;  %5192 = vmatmul.mubr.f32.gmra.mxu1 %v4920_v28  ;;  %v4160_v42 = vpop.f32.mrf.mxu1  ;;  %v4924_v45 = vld [vmem:[%s9620_s27 + $0xf0] sm:$0xff]  ;;  %v4930_v28 = vld [vmem:[%s9620_s27 + $0x120] sm:$0xff] }
 0x4ce   : > { %v3615_v30 = vmul.f32 %v10570_v53, %v3378_v22  ;;  %v10606_v48 = vsel %vm1809_vm7, %v3508_v6, %v3507_v59  ;;  %v3516_v27 = vsel %vm1797_vm3, %v3515_v62, %v3514_v24  ;;  %v3522_v29 = vrot.slane %v10248_v14, 7  ;;  %5196 = vmatprep.mubr.f32.mxu1 %v4923_v23  ;;  %v3995_v35 = vpop.f32.mrf.mxu0  ;;  %v4929_v62 = vld [vmem:[%s9620_s27 + $0x118] sm:$0xff]  ;;  %v4928_v51 = vld [vmem:[%s9620_s27 + $0x110] sm:$0xff]  ;;  %v4931_v59 = vld [vmem:[%s9620_s27 + $0x128] sm:$0xff] }
 0x4cf   : > { %13259 = vst [vmem:[#allocation35_spill] sm:$0xff] %v10606_v48  ;;  %v3616_v2 = vmul.f32 %v10585_v38, %v3378_v22  ;;  %v3518_v16 = vsel %vm1800_vm4, %v3517_v36, %v3516_v27  ;;  %v3617_v21 = vmul.f32 %v10606_v48, %v3378_v22  ;;  %v3629_v54 = vadd.f32 %v3614_v41, %v10519_v10  ;;  %v10629_v15 = vpop.f32.mrf.mxu1  ;;  %v13273_v41 = vld [vmem:[#allocation27_spill] sm:$0xff]  ;;  %v13274_v23 = vld [vmem:[#allocation26_spill] sm:$0xff]  ;;  %v4933_v27 = vld [vmem:[%s9620_s27 + $0x138] sm:$0xff] }
 0x4d0   : > { %v3630_v31 = vadd.f32 %v3615_v30, %v10525_v26  ;;  %v3366_v44 = vadd.f32 %v10516_v20, %v10534_v56  ;;  %v3520_v14 = vsel %vm1803_vm5, %v3519_v49, %v3518_v16  ;;  %v3998_v20 = vpop.f32.mrf.mxu0  ;;  %v13272_v49 = vld [vmem:[#allocation28_spill] sm:$0xff]  ;;  %v7328_v16 = vld [vmem:[#allocation2] sm:$0xff]  ;;  %v7329_v42 = vld [vmem:[#allocation2 + $0x38] sm:$0xff] }
 0x4d1   : > { %v3631_v19 = vadd.f32 %v3616_v2, %v10537_v1  ;;  %v3521_v37 = vsel %vm1806_vm6, %v13260_v0, %v3520_v14  ;;  %v3632_v10 = vadd.f32 %v3617_v21, %v3365_v63  ;;  %v10624_v26 = vadd.f32 %v3629_v54, %v13261_v3  ;;  %5197 = vmatmul.mubr.f32.gmra.mxu1 %v4922_v61  ;;  %v4165_v17 = vpop.f32.mrf.mxu1  ;;  %v13275_v2 = vld [vmem:[#allocation25_spill] sm:$0xff]  ;;  %v4932_v54 = vld [vmem:[%s9620_s27 + $0x130] sm:$0xff]  ;;  %v7331_v14 = vld [vmem:[#allocation2 + $0x68] sm:$0xff] }
 0x4d2   : > { %v10627_v32 = vadd.f32 %v3630_v31, %v13263_v4  ;;  %v10632_v56 = vsel %vm1809_vm7, %v3522_v29, %v3521_v37  ;;  %5201 = vmatprep.mubr.f32.mxu1 %v4925_v13  ;;  %v4000_v60 = vpop.f32.mrf.mxu0  ;;  %v4935_v31 = vld [vmem:[%s9620_s27 + $0x148] sm:$0xff]  ;;  %v10673_v0 = vld [vmem:[#allocation2 + $0x60] sm:$0xff] }
 0x4d3   : > { %13262 = vst [vmem:[#allocation70_spill] sm:$0xff] %v10624_v26  ;;  %13265 = vst [vmem:[#allocation80_spill] sm:$0xff] %v10632_v56  ;;  %v10635_v1 = vadd.f32 %v3631_v19, %v13266_v43  ;;  %v3618_v18 = vmul.f32 %v10632_v56, %v3378_v22  ;;  %v10639_v57 = vadd.f32 %v3632_v10, %v13268_v34  ;;  %v10643_v40 = vpop.f32.mrf.mxu1  ;;  %v4926_v22 = vld [vmem:[%s9620_s27 + $0x100] sm:$0xff]  ;;  %v4937_v19 = vld [vmem:[%s9620_s27 + $0x158] sm:$0xff] }
 0x4d4   : > { %13264 = vst [vmem:[#allocation76_spill] sm:$0xff] %v10627_v32  ;;  %v4003_v46 = vpop.f32.mrf.mxu0  ;;  %v4936_v10 = vld [vmem:[%s9620_s27 + $0x150] sm:$0xff]  ;;  %v10677_v3 = vld [vmem:[#allocation2 + $0x18] sm:$0xff]  ;;  %v4941_v34 = vld [vmem:[%s9620_s27 + $0x178] sm:$0xff] }
 0x4d5   : > { %13267 = vst [vmem:[#allocation85_spill] sm:$0xff] %v10635_v1  ;;  %13269 = vst [vmem:[#allocation99_spill] sm:$0xff] %v10639_v57  ;;  %v3633_v6 = vadd.f32 %v3618_v18, %v3366_v44  ;;  %5202 = vmatmul.mubr.f32.gmra.mxu1 %v4924_v45  ;;  %v4170_v47 = vpop.f32.mrf.mxu1  ;;  %v4934_v44 = vld [vmem:[%s9620_s27 + $0x140] sm:$0xff]  ;;  %v4939_v4 = vld [vmem:[%s9620_s27 + $0x168] sm:$0xff] }
 0x4d6   : > { %5206 = vmatprep.mubr.f32.mxu1 %v4927_v58  ;;  %v4005_v8 = vpop.f32.mrf.mxu0  ;;  %v4938_v18 = vld [vmem:[%s9620_s27 + $0x160] sm:$0xff]  ;;  %v4940_v60 = vld [vmem:[%s9620_s27 + $0x170] sm:$0xff]  ;;  %v4943_v58 = vld [vmem:[%s9620_s27 + $0x188] sm:$0xff] }
 0x4d7   : > { %v10646_v7 = vadd.f32 %v3633_v6, %v13270_v5  ;;  %v10650_v36 = vpop.f32.mrf.mxu1  ;;  %v4942_v5 = vld [vmem:[%s9620_s27 + $0x180] sm:$0xff]  ;;  %v4945_v47 = vld [vmem:[%s9620_s27 + $0x198] sm:$0xff]  ;;  %v11194_v53 = vld [vmem:[#allocation6 + $0x3b0] sm:$0x7f] }
 0x4d8   : > { %v4008_v63 = vpop.f32.mrf.mxu0  ;;  %v11160_v57 = vld [vmem:[#allocation6 + $0x358] sm:$0x7f]  ;;  %v11162_v1 = vld [vmem:[#allocation6 + $0x360] sm:$0x7f] }
 0x4d9   : > { %13271 = vst [vmem:[#allocation100_spill] sm:$0xff] %v10646_v7  ;;  %5207 = vmatmul.mubr.f32.gmra.mxu1 %v4926_v22  ;;  %6685 = vmatprep.subr.mxu0 %v4008_v63  ;;  %v4175_v33 = vpop.f32.mrf.mxu1  ;;  %v4947_v63 = vld [vmem:[%s9620_s27 + $0x1a8] sm:$0xff] }
 0x4da   : > { %5211 = vmatprep.mubr.f32.mxu1 %v4929_v62  ;;  %6686 = vmatpush3.msra.mxu0 %v13272_v49  ;;  %v4010_v25 = vpop.f32.mrf.mxu0  ;;  %v4944_v62 = vld [vmem:[%s9620_s27 + $0x190] sm:$0xff]  ;;  %v4946_v49 = vld [vmem:[%s9620_s27 + $0x1a0] sm:$0xff] }
 0x4db   : > { %6687 = vmatprep.subr.mxu0 %v4003_v46  ;;  %v10655_v24 = vpop.f32.mrf.mxu1  ;;  %v4949_v25 = vld [vmem:[%s9620_s27 + $0x1b8] sm:$0xff] }
 0x4dc   : > { %6688 = vmatpush3.msra.mxu0 %v13273_v41 }
 0x4dd   : > { %5212 = vmatmul.mubr.f32.gmra.mxu1 %v4928_v51  ;;  %6689 = vmatprep.subr.mxu0 %v3998_v20  ;;  %v4180_v30 = vpop.f32.mrf.mxu1 }
 0x4de   : > { %5216 = vmatprep.mubr.f32.mxu1 %v4931_v59  ;;  %6690 = vmatpush3.msra.mxu0 %v13274_v23  ;;  %v4948_v30 = vld [vmem:[%s9620_s27 + $0x1b0] sm:$0xff] }
 0x4df   : > { %6691 = vmatprep.subr.mxu0 %v10603_v50  ;;  %v10662_v29 = vpop.f32.mrf.mxu1  ;;  %v7330_v50 = vld [vmem:[#allocation2 + $0x30] sm:$0xff] }
 0x4e0   : > { %6692 = vmatpush3.msra.mxu0 %v13275_v2  ;;  %v13276_v2 = vld [vmem:[#allocation112_spill] sm:$0xff] }
 0x4e1   : > { %5217 = vmatmul.mubr.f32.gmra.mxu1 %v4930_v28  ;;  %4397 = vmatmul.mubr.f32.vlgmr.msra.gmra.mxu0 %v7328_v16  ;;  %v4185_v21 = vpop.f32.mrf.mxu1  ;;  %v4951_v28 = vld [vmem:[%s9620_s27 + $0x1c8] sm:$0xff]  ;;  %v4950_v16 = vld [vmem:[%s9620_s27 + $0x1c0] sm:$0xff] }
 0x4e2   : > { %5221 = vmatprep.mubr.f32.mxu1 %v4933_v27  ;;  %4401 = vmatprep.mubr.f32.mxu0 %v7329_v42 }
 0x4e3   : > { %v10667_v61 = vpop.f32.mrf.mxu1 }
 0x4e5   : > { %5222 = vmatmul.mubr.f32.gmra.mxu1 %v4932_v54  ;;  %4402 = vmatmul.mubr.f32.gmra.mxu0 %v7330_v50  ;;  %v4190_v35 = vpop.f32.mrf.mxu1  ;;  %v13277_v54 = vld [vmem:[#allocation128_spill] sm:$0xff]  ;;  %v13278_v50 = vld [vmem:[#allocation37_spill] sm:$0xff] }
 0x4e6   : > { %5226 = vmatprep.mubr.f32.mxu1 %v4935_v31  ;;  %4406 = vmatprep.mubr.f32.mxu0 %v7331_v14  ;;  %v4953_v31 = vld [vmem:[%s9620_s27 + $0x1d8] sm:$0xff]  ;;  %v4952_v35 = vld [vmem:[%s9620_s27 + $0x1d0] sm:$0xff] }
 0x4e7   : > { %v10671_v13 = vpop.f32.mrf.mxu1 }
 0x4e9   : > { %5227 = vmatmul.mubr.f32.gmra.mxu1 %v4934_v44  ;;  %4407 = vmatmul.mubr.f32.gmra.mxu0 %v10673_v0  ;;  %v4195_v37 = vpop.f32.mrf.mxu1  ;;  %v4955_v44 = vld [vmem:[%s9620_s27 + $0x1e8] sm:$0xff] }
 0x4ea   : > { %5231 = vmatprep.mubr.f32.mxu1 %v4937_v19  ;;  %4476 = vmatprep.mubr.f32.mxu0 %v10677_v3  ;;  %v13279_v19 = vld [vmem:[#allocation79_spill] sm:$0xff] }
 0x4eb   : > { %v10681_v20 = vpop.f32.mrf.mxu1 }
 0x4ed   : > { %5232 = vmatmul.mubr.f32.gmra.mxu1 %v4936_v10  ;;  %v4200_v43 = vpop.f32.mrf.mxu1  ;;  %v13280_v10 = vld [vmem:[#allocation69_spill] sm:$0xff] }
 0x4ee   : > { %5236 = vmatprep.mubr.f32.mxu1 %v4939_v4  ;;  %v4954_v4 = vld [vmem:[%s9620_s27 + $0x1e0] sm:$0xff]  ;;  %v4957_v43 = vld [vmem:[%s9620_s27 + $0x1f8] sm:$0xff] }
 0x4ef   : > { %v4203_v17 = vpop.f32.mrf.mxu1 }
 0x4f1   : > { %5237 = vmatmul.mubr.f32.gmra.mxu1 %v4938_v18  ;;  %v4205_v45 = vpop.f32.mrf.mxu1 }
 0x4f2   : > { %5241 = vmatprep.mubr.f32.mxu1 %v4941_v34  ;;  %v13281_v34 = vld [vmem:[#allocation71_spill] sm:$0xff] }
 0x4f3   : > { %v4208_v6 = vpop.f32.mrf.mxu1 }
 0x4f5   : > { %5242 = vmatmul.mubr.f32.gmra.mxu1 %v4940_v60  ;;  %v4210_v46 = vpop.f32.mrf.mxu1  ;;  %v13282_v60 = vld [vmem:[#allocation67_spill] sm:$0xff] }
 0x4f6   : > { %5246 = vmatprep.mubr.f32.mxu1 %v4943_v58  ;;  %v4956_v58 = vld [vmem:[%s9620_s27 + $0x1f0] sm:$0xff] }
 0x4f7   : > { %v4213_v22 = vpop.f32.mrf.mxu1 }
 0x4f9   : > { %5247 = vmatmul.mubr.f32.gmra.mxu1 %v4942_v5  ;;  %v4215_v8 = vpop.f32.mrf.mxu1 }
 0x4fa   : > { %5251 = vmatprep.mubr.f32.mxu1 %v4945_v47  ;;  %v13284_v47 = vld [vmem:[#allocation134_spill] sm:$0xff] }
 0x4fb   : > { %v4218_v33 = vpop.f32.mrf.mxu1 }
 0x4fd   : > { %5252 = vmatmul.mubr.f32.gmra.mxu1 %v4944_v62  ;;  %v4220_v51 = vpop.f32.mrf.mxu1 }
 0x4fe   : > { %5256 = vmatprep.mubr.f32.mxu1 %v4947_v63  ;;  %v4960_v63 = vld [vmem:[%s9620_s27 + $0x210] sm:$0xff]  ;;  %v4963_v51 = vld [vmem:[%s9620_s27 + $0x228] sm:$0xff] }
 0x4ff   : > { %v4223_v59 = vpop.f32.mrf.mxu1 }
 0x501   : > { %5257 = vmatmul.mubr.f32.gmra.mxu1 %v4946_v49  ;;  %v4225_v41 = vpop.f32.mrf.mxu1 }
 0x502   : > { %5261 = vmatprep.mubr.f32.mxu1 %v4949_v25  ;;  %v4962_v25 = vld [vmem:[%s9620_s27 + $0x220] sm:$0xff] }
 0x503   : > { %v4228_v23 = vpop.f32.mrf.mxu1 }
 0x504   : > { %6702 = vmatprep.subr.mxu0 %v4228_v23  ;;  %v4967_v23 = vld [vmem:[%s9620_s27 + $0x248] sm:$0xff] }
 0x505   : > { %5262 = vmatmul.mubr.f32.gmra.mxu1 %v4948_v30  ;;  %v4230_v27 = vpop.f32.mrf.mxu1  ;;  %6703 = vmatpush3.msra.mxu0 %v13276_v2  ;;  %v13292_v2 = vmov 0.0  }
 0x506   : > { %5266 = vmatprep.mubr.f32.mxu1 %v4951_v28  ;;  %6704 = vmatprep.subr.mxu0 %v4223_v59  ;;  %v4965_v59 = vld [vmem:[%s9620_s27 + $0x238] sm:$0xff]  ;;  %v4964_v28 = vld [vmem:[%s9620_s27 + $0x230] sm:$0xff]  ;;  %v13291_v27 = vld [vmem:[#allocation101_spill] sm:$0xff] }
 0x507   : > { %v10697_v21 = vpop.f32.mrf.mxu1  ;;  %6705 = vmatpush3.msra.mxu0 %v13277_v54  ;;  %v7334_v54 = vld [vmem:[#allocation2 + $0x10] sm:$0xff] }
 0x508   : > { %6706 = vmatprep.subr.mxu0 %v4218_v33 }
 0x509   : > { %5267 = vmatmul.mubr.f32.gmra.mxu1 %v4950_v16  ;;  %v4235_v42 = vpop.f32.mrf.mxu1  ;;  %6707 = vmatpush3.msra.mxu0 %v13278_v50 }
 0x50a   : > { %6708 = vmatprep.subr.mxu0 %v4213_v22  ;;  %5271 = vmatprep.mubr.f32.mxu1 %v4953_v31  ;;  %v4961_v22 = vld [vmem:[%s9620_s27 + $0x218] sm:$0xff] }
 0x50b   : > { %v10704_v14 = vpop.f32.mrf.mxu1  ;;  %6709 = vmatpush3.msra.mxu0 %v13279_v19  ;;  %v4969_v31 = vld [vmem:[%s9620_s27 + $0x258] sm:$0xff]  ;;  %v4971_v19 = vld [vmem:[%s9620_s27 + $0x268] sm:$0xff] }
 0x50c   : > { %6710 = vmatprep.subr.mxu0 %v4208_v6  ;;  %v4959_v6 = vld [vmem:[%s9620_s27 + $0x208] sm:$0xff]  ;;  %v7335_v42 = vld [vmem:[#allocation2 + $0x48] sm:$0xff] }
 0x50d   : > { %5272 = vmatmul.mubr.f32.gmra.mxu1 %v4952_v35  ;;  %v4240_v37 = vpop.f32.mrf.mxu1  ;;  %6711 = vmatpush3.msra.mxu0 %v13280_v10  ;;  %v4968_v35 = vld [vmem:[%s9620_s27 + $0x250] sm:$0xff] }
 0x50e   : > { %5276 = vmatprep.mubr.f32.mxu1 %v4955_v44  ;;  %6712 = vmatprep.subr.mxu0 %v4203_v17  ;;  %v13283_v17 = vld [vmem:[#allocation136_spill] sm:$0xff]  ;;  %v7336_v44 = vld [vmem:[#allocation2 + $0x40] sm:$0xff]  ;;  %v7337_v37 = vld [vmem:[#allocation2 + $0x78] sm:$0xff] }
 0x50f   : > { %v10710_v18 = vpop.f32.mrf.mxu1  ;;  %6713 = vmatpush3.msra.mxu0 %v13281_v34  ;;  %v7338_v34 = vld [vmem:[#allocation2 + $0x70] sm:$0xff] }
 0x510   : > { %6714 = vmatprep.subr.mxu0 %v10681_v20  ;;  %v4958_v20 = vld [vmem:[%s9620_s27 + $0x200] sm:$0xff] }
 0x511   : > { %5277 = vmatmul.mubr.f32.gmra.mxu1 %v4954_v4  ;;  %v4245_v45 = vpop.f32.mrf.mxu1  ;;  %6715 = vmatpush3.msra.mxu0 %v13282_v60  ;;  %v7339_v60 = vld [vmem:[#allocation2 + $0x28] sm:$0xff] }
 0x512   : > { %5281 = vmatprep.mubr.f32.mxu1 %v4957_v43  ;;  %6716 = vmatprep.subr.mxu0 %v10671_v13  ;;  %v13285_v13 = vld [vmem:[#allocation29_spill] sm:$0xff]  ;;  %v4973_v45 = vld [vmem:[%s9620_s27 + $0x278] sm:$0xff] }
 0x513   : > { %v10718_v46 = vpop.f32.mrf.mxu1  ;;  %6717 = vmatpush3.msra.mxu0 %v13283_v17  ;;  %v4970_v43 = vld [vmem:[%s9620_s27 + $0x260] sm:$0xff]  ;;  %v4972_v17 = vld [vmem:[%s9620_s27 + $0x270] sm:$0xff] }
 0x514   : > { %6718 = vmatprep.subr.mxu0 %v10667_v61  ;;  %v13286_v61 = vld [vmem:[#allocation31_spill] sm:$0xff] }
 0x515   : > { %5282 = vmatmul.mubr.f32.gmra.mxu1 %v4956_v58  ;;  %v4250_v5 = vpop.f32.mrf.mxu1  ;;  %6719 = vmatpush3.msra.mxu0 %v13284_v47 }
 0x516   : > { %5286 = vmatprep.mubr.f32.mxu1 %v4959_v6  ;;  %6720 = vmatprep.subr.mxu0 %v10662_v29  ;;  %v13287_v29 = vld [vmem:[#allocation133_spill] sm:$0xff]  ;;  %v4975_v5 = vld [vmem:[%s9620_s27 + $0x288] sm:$0xff] }
 0x517   : > { %v10726_v8 = vpop.f32.mrf.mxu1  ;;  %6721 = vmatpush3.msra.mxu0 %v13285_v13  ;;  %v4977_v13 = vld [vmem:[%s9620_s27 + $0x298] sm:$0xff] }
 0x518   : > { %6722 = vmatprep.subr.mxu0 %v10655_v24  ;;  %v13288_v24 = vld [vmem:[#allocation127_spill] sm:$0xff] }
 0x519   : > { %5287 = vmatmul.mubr.f32.gmra.mxu1 %v4958_v20  ;;  %v4255_v62 = vpop.f32.mrf.mxu1  ;;  %6723 = vmatpush3.msra.mxu0 %v13286_v61 }
 0x51a   : > { %5291 = vmatprep.mubr.f32.mxu1 %v4961_v22  ;;  %6724 = vmatprep.subr.mxu0 %v10650_v36  ;;  %v13289_v36 = vld [vmem:[#allocation119_spill] sm:$0xff]  ;;  %v4974_v22 = vld [vmem:[%s9620_s27 + $0x280] sm:$0xff] }
 0x51b   : > { %v10733_v33 = vpop.f32.mrf.mxu1  ;;  %6725 = vmatpush3.msra.mxu0 %v13287_v29  ;;  %v4979_v29 = vld [vmem:[%s9620_s27 + $0x2a8] sm:$0xff] }
 0x51c   : > { %6726 = vmatprep.subr.mxu0 %v10643_v40  ;;  %v13290_v40 = vld [vmem:[#allocation110_spill] sm:$0xff] }
 0x51d   : > { %5292 = vmatmul.mubr.f32.gmra.mxu1 %v4960_v63  ;;  %v4260_v49 = vpop.f32.mrf.mxu1  ;;  %6727 = vmatpush3.msra.mxu0 %v13288_v24  ;;  %v4976_v63 = vld [vmem:[%s9620_s27 + $0x290] sm:$0xff]  ;;  %v4978_v24 = vld [vmem:[%s9620_s27 + $0x2a0] sm:$0xff] }
 0x51e   : > { %6728 = vmatprep.subr.mxu0 %v10629_v15  ;;  %5296 = vmatprep.mubr.f32.mxu1 %v4963_v51 }
 0x51f   : > { %v10742_v41 = vpop.f32.mrf.mxu1  ;;  %6729 = vmatpush3.msra.mxu0 %v13289_v36 }
 0x520   : > { %6730 = vmatprep.subr.mxu0 %v10599_v55  ;;  %v4966_v55 = vld [vmem:[%s9620_s27 + $0x240] sm:$0xff] }
 0x521   : > { %5297 = vmatmul.mubr.f32.gmra.mxu1 %v4962_v25  ;;  %v4265_v30 = vpop.f32.mrf.mxu1  ;;  %6731 = vmatpush3.msra.mxu0 %v13290_v40  ;;  %v4981_v25 = vld [vmem:[%s9620_s27 + $0x2b8] sm:$0xff] }
 0x522   : > { %5301 = vmatprep.mubr.f32.mxu1 %v4965_v59  ;;  %6732 = vmatprep.subr.mxu0 %v10503_v52  ;;  %v4980_v30 = vld [vmem:[%s9620_s27 + $0x2b0] sm:$0xff] }
 0x523   : > { %v10750_v15 = vpop.f32.mrf.mxu1  ;;  %6733 = vmatpush3.msra.mxu0 %v13291_v27  ;;  %v4982_v27 = vld [vmem:[%s9620_s27 + $0x2c0] sm:$0xff] }
 0x524   : > { %4492 = vmatprep.subr.mxu0 %v13292_v2  ;;  %4477 = vmatmul.mubr.f32.vlgmr.msra.gmra.mxu0 %v7334_v54 }
 0x525   : > { %5302 = vmatmul.mubr.f32.gmra.mxu1 %v4964_v28  ;;  %v4270_v16 = vpop.f32.mrf.mxu1  ;;  %4481 = vmatprep.mubr.f32.mxu0 %v7335_v42  ;;  %v4983_v28 = vld [vmem:[%s9620_s27 + $0x2c8] sm:$0xff] }
 0x526   : > { %5306 = vmatprep.mubr.f32.mxu1 %v4967_v23  ;;  %v4985_v16 = vld [vmem:[%s9620_s27 + $0x2d8] sm:$0xff]  ;;  %v4987_v42 = vld [vmem:[%s9620_s27 + $0x2e8] sm:$0xff] }
 0x527   : > { %v10756_v52 = vpop.f32.mrf.mxu1 }
 0x528   : > { %4482 = vmatmul.mubr.f32.gmra.mxu0 %v7336_v44  ;;  %v4986_v44 = vld [vmem:[%s9620_s27 + $0x2e0] sm:$0xff] }
 0x529   : > { %5307 = vmatmul.mubr.f32.gmra.mxu1 %v4966_v55  ;;  %v4275_v50 = vpop.f32.mrf.mxu1  ;;  %4486 = vmatprep.mubr.f32.mxu0 %v7337_v37 }
 0x52a   : > { %5311 = vmatprep.mubr.f32.mxu1 %v4969_v31  ;;  %v4984_v31 = vld [vmem:[%s9620_s27 + $0x2d0] sm:$0xff] }
 0x52b   : > { %v10760_v10 = vpop.f32.mrf.mxu1 }
 0x52c   : > { %4487 = vmatmul.mubr.f32.gmra.mxu0 %v7338_v34  ;;  %v4991_v34 = vld [vmem:[%s9620_s27 + $0x308] sm:$0xff] }
 0x52d   : > { %5312 = vmatmul.mubr.f32.gmra.mxu1 %v4968_v35  ;;  %v4280_v4 = vpop.f32.mrf.mxu1  ;;  %6571 = vmatprep.mubr.msk.f32.mxu0 %vm1405_vm0, %v7339_v60 }
 0x52e   : > { %5316 = vmatprep.mubr.f32.mxu1 %v4971_v19  ;;  %v4989_v19 = vld [vmem:[%s9620_s27 + $0x2f8] sm:$0xff] }
 0x52f   : > { %v4283_v58 = vpop.f32.mrf.mxu1 }
 0x531   : > { %5317 = vmatmul.mubr.f32.gmra.mxu1 %v4970_v43  ;;  %v4285_v6 = vpop.f32.mrf.mxu1  ;;  %v4988_v43 = vld [vmem:[%s9620_s27 + $0x2f0] sm:$0xff] }
 0x532   : > { %5321 = vmatprep.mubr.f32.mxu1 %v4973_v45  ;;  %v4992_v6 = vld [vmem:[%s9620_s27 + $0x310] sm:$0xff] }
 0x533   : > { %v4288_v47 = vpop.f32.mrf.mxu1 }
 0x535   : > { %5322 = vmatmul.mubr.f32.gmra.mxu1 %v4972_v17  ;;  %v4290_v20 = vpop.f32.mrf.mxu1  ;;  %v4995_v17 = vld [vmem:[%s9620_s27 + $0x328] sm:$0xff] }
 0x536   : > { %5326 = vmatprep.mubr.f32.mxu1 %v4975_v5  ;;  %v4994_v5 = vld [vmem:[%s9620_s27 + $0x320] sm:$0xff]  ;;  %v4996_v20 = vld [vmem:[%s9620_s27 + $0x330] sm:$0xff] }
 0x537   : > { %v4293_v62 = vpop.f32.mrf.mxu1 }
 0x539   : > { %5327 = vmatmul.mubr.f32.gmra.mxu1 %v4974_v22  ;;  %v4295_v61 = vpop.f32.mrf.mxu1  ;;  %v4999_v22 = vld [vmem:[%s9620_s27 + $0x348] sm:$0xff] }
 0x53a   : > { %5331 = vmatprep.mubr.f32.mxu1 %v4977_v13  ;;  %v4998_v13 = vld [vmem:[%s9620_s27 + $0x340] sm:$0xff] }
 0x53b   : > { %v4298_v51 = vpop.f32.mrf.mxu1 }
 0x53d   : > { %5332 = vmatmul.mubr.f32.gmra.mxu1 %v4976_v63  ;;  %v4300_v49 = vpop.f32.mrf.mxu1  ;;  %v5000_v63 = vld [vmem:[%s9620_s27 + $0x350] sm:$0xff] }
 0x53e   : > { %5336 = vmatprep.mubr.f32.mxu1 %v4979_v29  ;;  %v5003_v29 = vld [vmem:[%s9620_s27 + $0x368] sm:$0xff]  ;;  %v7340_v49 = vld [vmem:[#allocation2 + $0x20] sm:$0xff] }
 0x53f   : > { %v4303_v59 = vpop.f32.mrf.mxu1 }
 0x541   : > { %5337 = vmatmul.mubr.f32.gmra.mxu1 %v4978_v24  ;;  %v4305_v36 = vpop.f32.mrf.mxu1  ;;  %v7341_v24 = vld [vmem:[#allocation2 + $0x58] sm:$0xff] }
 0x542   : > { %5341 = vmatprep.mubr.f32.mxu1 %v4981_v25  ;;  %v5005_v36 = vld [vmem:[%s9620_s27 + $0x378] sm:$0xff] }
 0x543   : > { %v4308_v40 = vpop.f32.mrf.mxu1 }
 0x544   : > { %4493 = vmatpush1.msra.mxu0 %v4308_v40  ;;  %v7342_v40 = vld [vmem:[#allocation2 + $0x50] sm:$0xff] }
 0x545   : > { %5342 = vmatmul.mubr.f32.gmra.mxu1 %v4980_v30  ;;  %v4310_v23 = vpop.f32.mrf.mxu1  ;;  %4494 = vmatprep.subr.mxu0 %v13292_v2 }
 0x546   : > { %4495 = vmatpush1.msra.mxu0 %v4303_v59  ;;  %5346 = vmatprep.mubr.f32.mxu1 %v4983_v28  ;;  %v5002_v59 = vld [vmem:[%s9620_s27 + $0x360] sm:$0xff]  ;;  %v7343_v28 = vld [vmem:[#allocation2 + $0x88] sm:$0xff] }
 0x547   : > { %v10778_v55 = vpop.f32.mrf.mxu1  ;;  %4496 = vmatprep.subr.mxu0 %v13292_v2 }
 0x548   : > { %4497 = vmatpush1.msra.mxu0 %v4298_v51 }
 0x549   : > { %5347 = vmatmul.mubr.f32.gmra.mxu1 %v4982_v27  ;;  %v4315_v54 = vpop.f32.mrf.mxu1  ;;  %4498 = vmatprep.subr.mxu0 %v13292_v2  ;;  %v5004_v27 = vld [vmem:[%s9620_s27 + $0x370] sm:$0xff] }
 0x54a   : > { %5351 = vmatprep.mubr.f32.mxu1 %v4985_v16  ;;  %4499 = vmatpush1.msra.mxu0 %v4293_v62  ;;  %v5001_v62 = vld [vmem:[%s9620_s27 + $0x358] sm:$0xff]  ;;  %v5007_v16 = vld [vmem:[%s9620_s27 + $0x388] sm:$0xff]  ;;  %v7344_v54 = vld [vmem:[#allocation2 + $0x80] sm:$0xff] }
 0x54b   : > { %v10784_v50 = vpop.f32.mrf.mxu1  ;;  %4500 = vmatprep.subr.mxu0 %v13292_v2 }
 0x54c   : > { %4501 = vmatpush1.msra.mxu0 %v4288_v47  ;;  %v4997_v47 = vld [vmem:[%s9620_s27 + $0x338] sm:$0xff] }
 0x54d   : > { %5352 = vmatmul.mubr.f32.gmra.mxu1 %v4984_v31  ;;  %v4320_v35 = vpop.f32.mrf.mxu1  ;;  %4502 = vmatprep.subr.mxu0 %v13292_v2  ;;  %v7345_v31 = vld [vmem:[#allocation2 + $0x8] sm:$0xff] }
 0x54e   : > { %5356 = vmatprep.mubr.f32.mxu1 %v4987_v42  ;;  %4503 = vmatpush1.msra.mxu0 %v4283_v58  ;;  %v4993_v58 = vld [vmem:[%s9620_s27 + $0x318] sm:$0xff] }
 0x54f   : > { %v4323_v37 = vpop.f32.mrf.mxu1  ;;  %4504 = vmatprep.subr.mxu0 %v13292_v2  ;;  %v5009_v35 = vld [vmem:[%s9620_s27 + $0x398] sm:$0xff] }
 0x550   : > { %4505 = vmatpush1.msra.mxu0 %v10760_v10  ;;  %v4990_v10 = vld [vmem:[%s9620_s27 + $0x300] sm:$0xff] }
 0x551   : > { %5357 = vmatmul.mubr.f32.gmra.mxu1 %v4986_v44  ;;  %v4325_v4 = vpop.f32.mrf.mxu1  ;;  %4506 = vmatprep.subr.mxu0 %v13292_v2 }
 0x552   : > { %5361 = vmatprep.mubr.f32.mxu1 %v4989_v19  ;;  %4507 = vmatpush1.msra.mxu0 %v10756_v52  ;;  %v5011_v4 = vld [vmem:[%s9620_s27 + $0x3a8] sm:$0xff] }
 0x553   : > { %v4328_v45 = vpop.f32.mrf.mxu1  ;;  %4508 = vmatprep.subr.mxu0 %v13292_v2 }
 0x554   : > { %4509 = vmatpush1.msra.mxu0 %v10750_v15 }
 0x555   : > { %5362 = vmatmul.mubr.f32.gmra.mxu1 %v4988_v43  ;;  %v4330_v60 = vpop.f32.mrf.mxu1  ;;  %4510 = vmatprep.subr.mxu0 %v13292_v2 }
 0x556   : > { %5366 = vmatprep.mubr.f32.mxu1 %v4991_v34  ;;  %4511 = vmatpush1.msra.mxu0 %v10742_v41  ;;  %v5013_v60 = vld [vmem:[%s9620_s27 + $0x3b8] sm:$0xff] }
 0x557   : > { %4512 = vmatprep.subr.mxu0 %v13292_v2  ;;  %v10803_v52 = vpop.f32.mrf.mxu1 }
 0x558   : > { %4513 = vmatpush1.msra.mxu0 %v10733_v33 }
 0x559   : > { %5367 = vmatmul.mubr.f32.gmra.mxu1 %v4990_v10  ;;  %4514 = vmatprep.subr.mxu0 %v13292_v2  ;;  %v5130_v15 = vpop.f32.mrf.mxu1 }
 0x55a   : > { %5371 = vmatprep.mubr.f32.mxu1 %v4993_v58  ;;  %4515 = vmatpush1.msra.mxu0 %v10726_v8  ;;  %v5012_v15 = vld [vmem:[%s9620_s27 + $0x3b0] sm:$0xff] }
 0x55b   : > { %4516 = vmatprep.subr.mxu0 %v13292_v2  ;;  %v10811_v41 = vpop.f32.mrf.mxu1 }
 0x55c   : > { %4517 = vmatpush1.msra.mxu0 %v10718_v46 }
 0x55d   : > { %5372 = vmatmul.mubr.f32.gmra.mxu1 %v4992_v6  ;;  %4518 = vmatprep.subr.mxu0 %v13292_v2  ;;  %v5135_v33 = vpop.f32.mrf.mxu1  ;;  %v5015_v6 = vld [vmem:[%s9620_s27 + $0x3c8] sm:$0xff] }
 0x55e   : > { %5376 = vmatprep.mubr.f32.mxu1 %v4995_v17  ;;  %4519 = vmatpush1.msra.mxu0 %v10710_v18 }
 0x55f   : > { %4520 = vmatprep.subr.mxu0 %v13292_v2  ;;  %v10819_v8 = vpop.f32.mrf.mxu1 }
 0x560   : > { %4521 = vmatpush1.msra.mxu0 %v10704_v14 }
 0x561   : > { %5377 = vmatmul.mubr.f32.gmra.mxu1 %v4994_v5  ;;  %4522 = vmatprep.subr.mxu0 %v13292_v2  ;;  %v5140_v46 = vpop.f32.mrf.mxu1  ;;  %v5014_v5 = vld [vmem:[%s9620_s27 + $0x3c0] sm:$0xff] }
 0x562   : > { %5381 = vmatprep.mubr.f32.mxu1 %v4997_v47  ;;  %4523 = vmatpush1.msra.mxu0 %v10697_v21  ;;  %v5017_v47 = vld [vmem:[%s9620_s27 + $0x3d8] sm:$0xff] }
 0x563   : > { %4548 = vmatprep.subr.mxu0 %v13292_v2  ;;  %v10827_v18 = vpop.f32.mrf.mxu1 }
 0x564   : > { %4549 = vmatpush2.msra.mxu0 %v4328_v45  ;;  %v5010_v45 = vld [vmem:[%s9620_s27 + $0x3a0] sm:$0xff] }
 0x565   : > { %5382 = vmatmul.mubr.f32.gmra.mxu1 %v4996_v20  ;;  %4550 = vmatprep.subr.mxu0 %v13292_v2  ;;  %v5145_v14 = vpop.f32.mrf.mxu1 }
 0x566   : > { %5386 = vmatprep.mubr.f32.mxu1 %v4999_v22  ;;  %4551 = vmatpush2.msra.mxu0 %v4323_v37  ;;  %v5008_v37 = vld [vmem:[%s9620_s27 + $0x390] sm:$0xff]  ;;  %v5019_v14 = vld [vmem:[%s9620_s27 + $0x3e8] sm:$0xff] }
 0x567   : > { %4552 = vmatprep.subr.mxu0 %v13292_v2  ;;  %v10833_v61 = vpop.f32.mrf.mxu1  ;;  %v5016_v22 = vld [vmem:[%s9620_s27 + $0x3d0] sm:$0xff] }
 0x568   : > { %4553 = vmatpush2.msra.mxu0 %v10784_v50  ;;  %v5006_v50 = vld [vmem:[%s9620_s27 + $0x380] sm:$0xff] }
 0x569   : > { %5387 = vmatmul.mubr.f32.gmra.mxu1 %v4998_v13  ;;  %4554 = vmatprep.subr.mxu0 %v13292_v2  ;;  %v5150_v21 = vpop.f32.mrf.mxu1 }
 0x56a   : > { %5391 = vmatprep.mubr.f32.mxu1 %v5001_v62  ;;  %4555 = vmatpush2.msra.mxu0 %v10778_v55  ;;  %v5018_v62 = vld [vmem:[%s9620_s27 + $0x3e0] sm:$0xff] }
 0x56b   : > { %v10840_v51 = vpop.f32.mrf.mxu1  ;;  %4557 = vmatmul.mubr.f32.vlgmr.msra.gmra.mxu0 %v7340_v49  ;;  %v5020_v49 = vld [vmem:[%s9620_s27 + $0x3f0] sm:$0xff] }
 0x56c   : > { %6572 = vmatprep.mubr.msk.f32.mxu0 %vm1405_vm0, %v7341_v24 }
 0x56d   : > { %5392 = vmatmul.mubr.f32.gmra.mxu1 %v5000_v63  ;;  %v5155_v25 = vpop.f32.mrf.mxu1  ;;  %v5021_v63 = vld [vmem:[%s9620_s27 + $0x3f8] sm:$0xff] }
 0x56e   : > { %5396 = vmatprep.mubr.f32.mxu1 %v5003_v29  ;;  %v5023_v25 = vld [vmem:[%s9620_s27 + $0x408] sm:$0xff] }
 0x56f   : > { %v10845_v30 = vpop.f32.mrf.mxu1  ;;  %4562 = vmatmul.mubr.f32.gmra.mxu0 %v7342_v40 }
 0x570   : > { %6573 = vmatprep.mubr.msk.f32.mxu0 %vm1405_vm0, %v7343_v28  ;;  %v5025_v28 = vld [vmem:[%s9620_s27 + $0x418] sm:$0xff] }
 0x571   : > { %5397 = vmatmul.mubr.f32.gmra.mxu1 %v5002_v59  ;;  %v5160_v23 = vpop.f32.mrf.mxu1 }
 0x572   : > { %5401 = vmatprep.mubr.f32.mxu1 %v5005_v36  ;;  %v5022_v36 = vld [vmem:[%s9620_s27 + $0x400] sm:$0xff] }
 0x573   : > { %v10850_v55 = vpop.f32.mrf.mxu1  ;;  %4567 = vmatmul.mubr.f32.gmra.mxu0 %v7344_v54  ;;  %v5027_v54 = vld [vmem:[%s9620_s27 + $0x428] sm:$0xff] }
 0x574   : > { %5611 = vmatprep.mubr.f32.mxu0 %v7345_v31 }
 0x575   : > { %5402 = vmatmul.mubr.f32.gmra.mxu1 %v5004_v27  ;;  %v5165_v42 = vpop.f32.mrf.mxu1  ;;  %v5024_v27 = vld [vmem:[%s9620_s27 + $0x410] sm:$0xff] }
 0x576   : > { %5406 = vmatprep.mubr.f32.mxu1 %v5007_v16  ;;  %v5026_v42 = vld [vmem:[%s9620_s27 + $0x420] sm:$0xff] }
 0x577   : > { %v10854_v44 = vpop.f32.mrf.mxu1 }
 0x579   : > { %5407 = vmatmul.mubr.f32.gmra.mxu1 %v5006_v50  ;;  %v5170_v19 = vpop.f32.mrf.mxu1 }
 0x57a   : > { %5411 = vmatprep.mubr.f32.mxu1 %v5009_v35  ;;  %v5029_v35 = vld [vmem:[%s9620_s27 + $0x438] sm:$0xff] }
 0x57b   : > { %v10858_v43 = vpop.f32.mrf.mxu1 }
 0x57d   : > { %5412 = vmatmul.mubr.f32.gmra.mxu1 %v5008_v37  ;;  %v5175_v34 = vpop.f32.mrf.mxu1  ;;  %v5028_v37 = vld [vmem:[%s9620_s27 + $0x430] sm:$0xff] }
 0x57e   : > { %5416 = vmatprep.mubr.f32.mxu1 %v5011_v4  ;;  %v5031_v34 = vld [vmem:[%s9620_s27 + $0x448] sm:$0xff] }
 0x57f   : > { %v10862_v10 = vpop.f32.mrf.mxu1 }
 0x581   : > { %5417 = vmatmul.mubr.f32.gmra.mxu1 %v5010_v45  ;;  %v5180_v58 = vpop.f32.mrf.mxu1 }
 0x582   : > { %5421 = vmatprep.mubr.f32.mxu1 %v5013_v60  ;;  %v5030_v60 = vld [vmem:[%s9620_s27 + $0x440] sm:$0xff] }
 0x583   : > { %v10866_v17 = vpop.f32.mrf.mxu1 }
 0x585   : > { %5422 = vmatmul.mubr.f32.gmra.mxu1 %v5012_v15  ;;  %v5185_v33 = vpop.f32.mrf.mxu1  ;;  %v5033_v15 = vld [vmem:[%s9620_s27 + $0x458] sm:$0xff] }
 0x586   : > { %5426 = vmatprep.mubr.f32.mxu1 %v5015_v6  ;;  %v5032_v33 = vld [vmem:[%s9620_s27 + $0x450] sm:$0xff] }
 0x587   : > { %v10870_v46 = vpop.f32.mrf.mxu1 }
 0x589   : > { %5427 = vmatmul.mubr.f32.gmra.mxu1 %v5014_v5  ;;  %v5190_v20 = vpop.f32.mrf.mxu1 }
 0x58a   : > { %5431 = vmatprep.mubr.f32.mxu1 %v5017_v47  ;;  %v5035_v47 = vld [vmem:[%s9620_s27 + $0x468] sm:$0xff] }
 0x58d   : > { %v10874_v13 = vpop.f32.mrf.mxu1  ;;  %5432 = vmatmul.mubr.f32.gmra.mxu1 %v5016_v22  ;;  %v5034_v22 = vld [vmem:[%s9620_s27 + $0x460] sm:$0xff] }
 0x58e   : > { %5436 = vmatprep.mubr.f32.mxu1 %v5019_v14 }
 0x58f   : > { %v5195_v21 = vpop.f32.mrf.mxu1 }
 0x591   : > { %v10878_v29 = vpop.f32.mrf.mxu1  ;;  %5437 = vmatmul.mubr.f32.gmra.mxu1 %v5018_v62  ;;  %v5037_v62 = vld [vmem:[%s9620_s27 + $0x478] sm:$0xff] }
 0x592   : > { %5441 = vmatprep.mubr.f32.mxu1 %v5021_v63  ;;  %v5036_v63 = vld [vmem:[%s9620_s27 + $0x470] sm:$0xff] }
 0x593   : > { %v5200_v24 = vpop.f32.mrf.mxu1 }
 0x594   : > { %v5039_v24 = vld [vmem:[%s9620_s27 + $0x488] sm:$0xff] }
 0x595   : > { %v10882_v59 = vpop.f32.mrf.mxu1  ;;  %5442 = vmatmul.mubr.f32.gmra.mxu1 %v5020_v49 }
 0x596   : > { %5446 = vmatprep.mubr.f32.mxu1 %v5023_v25 }
 0x597   : > { %v5205_v40 = vpop.f32.mrf.mxu1 }
 0x599   : > { %v10886_v23 = vpop.f32.mrf.mxu1  ;;  %5447 = vmatmul.mubr.f32.gmra.mxu1 %v5022_v36  ;;  %v5038_v36 = vld [vmem:[%s9620_s27 + $0x480] sm:$0xff] }
 0x59a   : > { %5451 = vmatprep.mubr.f32.mxu1 %v5025_v28  ;;  %v5041_v28 = vld [vmem:[%s9620_s27 + $0x498] sm:$0xff] }
 0x59b   : > { %v5210_v16 = vpop.f32.mrf.mxu1 }
 0x59c   : > { %v5040_v16 = vld [vmem:[%s9620_s27 + $0x490] sm:$0xff] }
 0x59d   : > { %v10890_v31 = vpop.f32.mrf.mxu1  ;;  %5452 = vmatmul.mubr.f32.gmra.mxu1 %v5024_v27 }
 0x59e   : > { %5456 = vmatprep.mubr.f32.mxu1 %v5027_v54 }
 0x59f   : > { %v5215_v50 = vpop.f32.mrf.mxu1 }
 0x5a1   : > { %v10894_v19 = vpop.f32.mrf.mxu1  ;;  %5457 = vmatmul.mubr.f32.gmra.mxu1 %v5026_v42  ;;  %v5043_v42 = vld [vmem:[%s9620_s27 + $0x4a8] sm:$0xff] }
 0x5a2   : > { %5461 = vmatprep.mubr.f32.mxu1 %v5029_v35  ;;  %v5042_v35 = vld [vmem:[%s9620_s27 + $0x4a0] sm:$0xff] }
 0x5a3   : > { %v5220_v4 = vpop.f32.mrf.mxu1 }
 0x5a4   : > { %v5045_v4 = vld [vmem:[%s9620_s27 + $0x4b8] sm:$0xff] }
 0x5a5   : > { %v10898_v45 = vpop.f32.mrf.mxu1  ;;  %5462 = vmatmul.mubr.f32.gmra.mxu1 %v5028_v37 }
 0x5a6   : > { %5466 = vmatprep.mubr.f32.mxu1 %v5031_v34 }
 0x5a7   : > { %v5225_v58 = vpop.f32.mrf.mxu1 }
 0x5a9   : > { %v10902_v6 = vpop.f32.mrf.mxu1  ;;  %5467 = vmatmul.mubr.f32.gmra.mxu1 %v5030_v60  ;;  %v5044_v60 = vld [vmem:[%s9620_s27 + $0x4b0] sm:$0xff] }
 0x5aa   : > { %5471 = vmatprep.mubr.f32.mxu1 %v5033_v15  ;;  %v5047_v15 = vld [vmem:[%s9620_s27 + $0x4c8] sm:$0xff] }
 0x5ab   : > { %v5230_v5 = vpop.f32.mrf.mxu1 }
 0x5ac   : > { %v5046_v5 = vld [vmem:[%s9620_s27 + $0x4c0] sm:$0xff] }
 0x5ad   : > { %v10906_v20 = vpop.f32.mrf.mxu1  ;;  %5472 = vmatmul.mubr.f32.gmra.mxu1 %v5032_v33 }
 0x5ae   : > { %5476 = vmatprep.mubr.f32.mxu1 %v5035_v47 }
 0x5af   : > { %v5235_v14 = vpop.f32.mrf.mxu1 }
 0x5b1   : > { %v10910_v21 = vpop.f32.mrf.mxu1  ;;  %5477 = vmatmul.mubr.f32.gmra.mxu1 %v5034_v22  ;;  %v5049_v22 = vld [vmem:[%s9620_s27 + $0x4d8] sm:$0xff] }
 0x5b2   : > { %5481 = vmatprep.mubr.f32.mxu1 %v5037_v62  ;;  %v5048_v62 = vld [vmem:[%s9620_s27 + $0x4d0] sm:$0xff] }
 0x5b3   : > { %v5240_v49 = vpop.f32.mrf.mxu1 }
 0x5b4   : > { %v5051_v49 = vld [vmem:[%s9620_s27 + $0x4e8] sm:$0xff] }
 0x5b5   : > { %v10914_v25 = vpop.f32.mrf.mxu1  ;;  %5482 = vmatmul.mubr.f32.gmra.mxu1 %v5036_v63 }
 0x5b6   : > { %5486 = vmatprep.mubr.f32.mxu1 %v5039_v24 }
 0x5b7   : > { %v5245_v40 = vpop.f32.mrf.mxu1 }
 0x5b9   : > { %v10918_v27 = vpop.f32.mrf.mxu1  ;;  %5487 = vmatmul.mubr.f32.gmra.mxu1 %v5038_v36  ;;  %v5050_v36 = vld [vmem:[%s9620_s27 + $0x4e0] sm:$0xff] }
 0x5ba   : > { %5491 = vmatprep.mubr.f32.mxu1 %v5041_v28  ;;  %v5053_v28 = vld [vmem:[%s9620_s27 + $0x4f8] sm:$0xff] }
 0x5bb   : > { %v5250_v54 = vpop.f32.mrf.mxu1 }
 0x5bc   : > { %v5052_v54 = vld [vmem:[%s9620_s27 + $0x4f0] sm:$0xff] }
 0x5bd   : > { %v10922_v50 = vpop.f32.mrf.mxu1  ;;  %5492 = vmatmul.mubr.f32.gmra.mxu1 %v5040_v16 }
 0x5be   : > { %5496 = vmatprep.mubr.f32.mxu1 %v5043_v42 }
 0x5bf   : > { %v5255_v37 = vpop.f32.mrf.mxu1 }
 0x5c1   : > { %v5258_v34 = vpop.f32.mrf.mxu1  ;;  %5497 = vmatmul.mubr.f32.gmra.mxu1 %v5042_v35  ;;  %v5055_v35 = vld [vmem:[%s9620_s27 + $0x508] sm:$0xff] }
 0x5c2   : > { %5501 = vmatprep.mubr.f32.mxu1 %v5045_v4  ;;  %v5054_v4 = vld [vmem:[%s9620_s27 + $0x500] sm:$0xff] }
 0x5c3   : > { %v5260_v58 = vpop.f32.mrf.mxu1 }
 0x5c4   : > { %v5057_v58 = vld [vmem:[%s9620_s27 + $0x518] sm:$0xff] }
 0x5c5   : > { %v5263_v33 = vpop.f32.mrf.mxu1  ;;  %5502 = vmatmul.mubr.f32.gmra.mxu1 %v5044_v60 }
 0x5c6   : > { %5506 = vmatprep.mubr.f32.mxu1 %v5047_v15 }
 0x5c7   : > { %v5265_v47 = vpop.f32.mrf.mxu1 }
 0x5c9   : > { %v5268_v14 = vpop.f32.mrf.mxu1  ;;  %5507 = vmatmul.mubr.f32.gmra.mxu1 %v5046_v5  ;;  %v5056_v5 = vld [vmem:[%s9620_s27 + $0x510] sm:$0xff] }
 0x5ca   : > { %5511 = vmatprep.mubr.f32.mxu1 %v5049_v22  ;;  %v5059_v22 = vld [vmem:[%s9620_s27 + $0x528] sm:$0xff] }
 0x5cb   : > { %v5270_v63 = vpop.f32.mrf.mxu1 }
 0x5cc   : > { %v5061_v63 = vld [vmem:[%s9620_s27 + $0x538] sm:$0xff] }
 0x5cd   : > { %v5273_v24 = vpop.f32.mrf.mxu1  ;;  %5512 = vmatmul.mubr.f32.gmra.mxu1 %v5048_v62 }
 0x5ce   : > { %5516 = vmatprep.mubr.f32.mxu1 %v5051_v49 }
 0x5cf   : > { %v5275_v40 = vpop.f32.mrf.mxu1 }
 0x5d1   : > { %v5278_v16 = vpop.f32.mrf.mxu1  ;;  %5517 = vmatmul.mubr.f32.gmra.mxu1 %v5050_v36  ;;  %v6693_v36 = vpop.f32.mrf.mxu0 }
 0x5d2   : > { %5521 = vmatprep.mubr.f32.mxu1 %v5053_v28 }
 0x5d3   : > { %v5280_v42 = vpop.f32.mrf.mxu1  ;;  %v6694_v28 = vpop.f32.mrf.mxu0 }
 0x5d5   : > { %v5283_v37 = vpop.f32.mrf.mxu1  ;;  %5522 = vmatmul.mubr.f32.gmra.mxu1 %v5052_v54 }
 0x5d6   : > { %6743 = vmatprep.subr.mxu0 %v5283_v37  ;;  %5526 = vmatprep.mubr.f32.mxu1 %v5055_v35 }
 0x5d7   : > { %v5285_v60 = vpop.f32.mrf.mxu1  ;;  %6744 = vmatpush3.msra.mxu0 %v10882_v59  ;;  %v5058_v59 = vld [vmem:[%s9620_s27 + $0x520] sm:$0xff] }
 0x5d8   : > { %6745 = vmatprep.subr.mxu0 %v5278_v16  ;;  %v6696_v16 = vpop.f32.mrf.mxu0 }
 0x5d9   : > { %v10939_v15 = vpop.f32.mrf.mxu1  ;;  %6746 = vmatpush3.msra.mxu0 %v10878_v29  ;;  %5527 = vmatmul.mubr.f32.gmra.mxu1 %v5054_v4 }
 0x5da   : > { %6747 = vmatprep.subr.mxu0 %v5273_v24  ;;  %5531 = vmatprep.mubr.f32.mxu1 %v5057_v58 }
 0x5db   : > { %v5290_v47 = vpop.f32.mrf.mxu1  ;;  %6748 = vmatpush3.msra.mxu0 %v10874_v13  ;;  %v5060_v13 = vld [vmem:[%s9620_s27 + $0x530] sm:$0xff] }
 0x5dc   : > { %6749 = vmatprep.subr.mxu0 %v5268_v14 }
 0x5dd   : > { %v10945_v62 = vpop.f32.mrf.mxu1  ;;  %6750 = vmatpush3.msra.mxu0 %v10870_v46  ;;  %5532 = vmatmul.mubr.f32.gmra.mxu1 %v5056_v5 }
 0x5de   : > { %6751 = vmatprep.subr.mxu0 %v5263_v33  ;;  %5536 = vmatprep.mubr.f32.mxu1 %v5059_v22 }
 0x5df   : > { %v5295_v29 = vpop.f32.mrf.mxu1  ;;  %6752 = vmatpush3.msra.mxu0 %v10866_v17 }
 0x5e0   : > { %6753 = vmatprep.subr.mxu0 %v5258_v34 }
 0x5e1   : > { %v10951_v49 = vpop.f32.mrf.mxu1  ;;  %6754 = vmatpush3.msra.mxu0 %v10862_v10  ;;  %5537 = vmatmul.mubr.f32.gmra.mxu1 %v5058_v59 }
 0x5e2   : > { %6755 = vmatprep.subr.mxu0 %v10922_v50  ;;  %5541 = vmatprep.mubr.f32.mxu1 %v5061_v63 }
 0x5e3   : > { %v5300_v14 = vpop.f32.mrf.mxu1  ;;  %6756 = vmatpush3.msra.mxu0 %v10858_v43 }
 0x5e4   : > { %6757 = vmatprep.subr.mxu0 %v10918_v27 }
 0x5e5   : > { %v10958_v46 = vpop.f32.mrf.mxu1  ;;  %6758 = vmatpush3.msra.mxu0 %v10854_v44  ;;  %5542 = vmatmul.mubr.f32.gmra.mxu1 %v5060_v13 }
 0x5e6   : > { %6759 = vmatprep.subr.mxu0 %v10914_v25 }
 0x5e7   : > { %v5305_v17 = vpop.f32.mrf.mxu1  ;;  %6760 = vmatpush3.msra.mxu0 %v10850_v55 }
 0x5e8   : > { %6761 = vmatprep.subr.mxu0 %v10910_v21 }
 0x5e9   : > { %v10964_v10 = vpop.f32.mrf.mxu1  ;;  %6762 = vmatpush3.msra.mxu0 %v10845_v30 }
 0x5ea   : > { %6763 = vmatprep.subr.mxu0 %v10906_v20 }
 0x5eb   : > { %v5310_v43 = vpop.f32.mrf.mxu1  ;;  %6764 = vmatpush3.msra.mxu0 %v10840_v51 }
 0x5ec   : > { %6765 = vmatprep.subr.mxu0 %v10902_v6  ;;  %v7348_v6 = vld [vmem:[#allocation2 + $0x30] sm:$0xff]  ;;  %v6695_v43 = vadd.f32 %v6694_v28, %v6693_v36  ;;  %v13294_v36 = vmov 1  }
 0x5ed   : > { %v10970_v44 = vpop.f32.mrf.mxu1  ;;  %6766 = vmatpush3.msra.mxu0 %v10833_v61  ;;  %v7346_v61 = vld [vmem:[#allocation2] sm:$0xff] }
 0x5ee   : > { %6767 = vmatprep.subr.mxu0 %v10898_v45  ;;  %v7347_v45 = vld [vmem:[#allocation2 + $0x38] sm:$0xff] }
 0x5ef   : > { %v5315_v55 = vpop.f32.mrf.mxu1  ;;  %6768 = vmatpush3.msra.mxu0 %v10827_v18 }
 0x5f0   : > { %6769 = vmatprep.subr.mxu0 %v10894_v19 }
 0x5f1   : > { %v10976_v21 = vpop.f32.mrf.mxu1  ;;  %6770 = vmatpush3.msra.mxu0 %v10819_v8 }
 0x5f2   : > { %6771 = vmatprep.subr.mxu0 %v10890_v31  ;;  %v7349_v31 = vld [vmem:[#allocation2 + $0x68] sm:$0xff] }
 0x5f3   : > { %v5320_v51 = vpop.f32.mrf.mxu1  ;;  %6772 = vmatpush3.msra.mxu0 %v10811_v41 }
 0x5f4   : > { %6773 = vmatprep.subr.mxu0 %v10886_v23 }
 0x5f5   : > { %v10982_v30 = vpop.f32.mrf.mxu1  ;;  %6774 = vmatpush3.msra.mxu0 %v10803_v52 }
 0x5f6   : > { %5612 = vmatmul.mubr.f32.vlgmr.msra.gmra.mxu0 %v7346_v61 }
 0x5f7   : > { %v5325_v18 = vpop.f32.mrf.mxu1  ;;  %5616 = vmatprep.mubr.f32.mxu0 %v7347_v45 }
 0x5f9   : > { %v10985_v19 = vpop.f32.mrf.mxu1 }
 0x5fa   : > { %5617 = vmatmul.mubr.f32.gmra.mxu0 %v7348_v6 }
 0x5fb   : > { %v5330_v8 = vpop.f32.mrf.mxu1  ;;  %5621 = vmatprep.mubr.f32.mxu0 %v7349_v31 }
 0x5fd   : > { %v10987_v20 = vpop.f32.mrf.mxu1 }
 0x5fe   : > { %5622 = vmatmul.mubr.f32.gmra.mxu0 %v10673_v0 }
 0x5ff   : > { %v5335_v41 = vpop.f32.mrf.mxu1  ;;  %5691 = vmatprep.mubr.f32.mxu0 %v10677_v3  ;;  %v6697_v3 = vpop.f32.mrf.mxu0 }
 0x601   : > { %v10991_v52 = vpop.f32.mrf.mxu1  ;;  %v11003_v35 = vpop.f32.mrf.mxu0 }
 0x603   : > { %v5340_v23 = vpop.f32.mrf.mxu1  ;;  %v11007_v4 = vpop.f32.mrf.mxu0 }
 0x605   : > { %v10993_v25 = vpop.f32.mrf.mxu1  ;;  %v6734_v58 = vpop.f32.mrf.mxu0 }
 0x607   : > { %v5345_v27 = vpop.f32.mrf.mxu1  ;;  %v6735_v47 = vpop.f32.mrf.mxu0 }
 0x608   : > { %v6736_v55 = vadd.f32 %v6735_v47, %v6734_v58  ;;  %v6698_v47 = vadd.f32 %v6697_v3, %v6696_v16 }
 0x609   : > { %v10995_v50 = vpop.f32.mrf.mxu1  ;;  %v6737_v59 = vpop.f32.mrf.mxu0 }
 0x60a   : > { %v4479_v45 = vadd.f32 %v6736_v55, %v6695_v43  ;;  %v13296_v55 = vmov 5  }
 0x60b   : > { %v5350_v34 = vpop.f32.mrf.mxu1  ;;  %v6738_v63 = vpop.f32.mrf.mxu0 }
 0x60d   : > { %v10997_v33 = vpop.f32.mrf.mxu1  ;;  %v6740_v14 = vpop.f32.mrf.mxu0 }
 0x60f   : > { %v5355_v24 = vpop.f32.mrf.mxu1  ;;  %v6741_v61 = vpop.f32.mrf.mxu0 }
 0x611   : > { %v10999_v40 = vpop.f32.mrf.mxu1 }
 0x613   : > { %v5360_v0 = vpop.f32.mrf.mxu1 }
 0x614   : > { %v13293_v0 = vmov 3  }
 0x615   : > { %v11001_v54 = vpop.f32.mrf.mxu1 }
 0x617   : > { %v5365_v42 = vpop.f32.mrf.mxu1 }
 0x619   : > { %v11005_v37 = vpop.f32.mrf.mxu1 }
 0x61b   : > { %v5370_v60 = vpop.f32.mrf.mxu1 }
 0x61c   : > { %v13295_v60 = vmov 4  }
 0x61d   : > { %v11009_v5 = vpop.f32.mrf.mxu1 }
 0x61f   : > { %v5375_v22 = vpop.f32.mrf.mxu1 }
 0x620   : > { %v6739_v22 = vadd.f32 %v6738_v63, %v6737_v59  ;;  %v13298_v59 = vmov 0  }
 0x621   : > { %v11011_v29 = vpop.f32.mrf.mxu1 }
 0x623   : > { %v5380_v13 = vpop.f32.mrf.mxu1 }
 0x625   : > { %v11013_v17 = vpop.f32.mrf.mxu1 }
 0x627   : > { %v5385_v51 = vpop.f32.mrf.mxu1 }
 0x628   : > { %v4484_v51 = vadd.f32 %v6739_v22, %v6698_v47 }
 0x629   : > { %v11015_v18 = vpop.f32.mrf.mxu1 }
 0x62b   : > { %v5390_v6 = vpop.f32.mrf.mxu1  ;;  %v4558_v8 = vpop.f32.mrf.mxu0 }
 0x62c   : > { %v4559_v41 = vadd.f32 %v4558_v8, %v4479_v45 }
 0x62d   : > { %v11017_v31 = vpop.f32.mrf.mxu1  ;;  %v4560_v23 = vpop.f32.mrf.mxu0 }
 0x62e   : > { %4645 = vperm.xlu1 %7167, %v4559_v41   ;;  %4574 = vperm.xlu0 %7171, %v4559_v41  }
 0x62f   : > { %v5395_v27 = vpop.f32.mrf.mxu1  ;;  %v4563_v45 = vpop.f32.mrf.mxu0 }
 0x630   : > { %v4564_v8 = vadd.f32 %v4563_v45, %v4484_v51  ;;  %v6742_v51 = vadd.f32 %v6741_v61, %v6740_v14 }
 0x631   : > { %v11019_v34 = vpop.f32.mrf.mxu1  ;;  %v4565_v23 = vpop.f32.mrf.mxu0 }
 0x632   : > { %7173 = vset.pattern.permute.xlu1 %v13293_v0  ;;  %7172 = vset.pattern.permute.xlu0 %v13294_v36 }
 0x633   : > { %v5400_v24 = vpop.f32.mrf.mxu1  ;;  %4687 = vperm.xlu1 %7173, %v4559_v41   ;;  %4603 = vperm.xlu0 %7172, %v4559_v41   ;;  %v4568_v16 = vpop.f32.mrf.mxu0 }
 0x634   : > { %v13297_v24 = vmov 6  }
 0x635   : > { %v11023_v28 = vpop.f32.mrf.mxu1  ;;  %v4570_v63 = vpop.f32.mrf.mxu0 }
 0x637   : > { %v5405_v42 = vpop.f32.mrf.mxu1  ;;  %7174 = vset.pattern.permute.xlu1 %v13295_v60  ;;  %7180 = vset.pattern.permute.xlu0 %v13293_v0 }
 0x638   : > { %4729 = vperm.xlu1 %7174, %v4559_v41   ;;  %4691 = vperm.xlu0 %7180, %v4564_v8  }
 0x639   : > { %v11027_v58 = vpop.f32.mrf.mxu1 }
 0x63b   : > { %v5410_v13 = vpop.f32.mrf.mxu1 }
 0x63c   : > { %7175 = vset.pattern.permute.xlu1 %v13296_v55  ;;  %7181 = vset.pattern.permute.xlu0 %v13295_v60  ;;  %v6701_v13 = vadd.f32 %v11007_v4, %v11003_v35 }
 0x63d   : > { %v11029_v43 = vpop.f32.mrf.mxu1  ;;  %4771 = vperm.xlu1 %7175, %v4559_v41   ;;  %4733 = vperm.xlu0 %7181, %v4564_v8  }
 0x63f   : > { %v5415_v6 = vpop.f32.mrf.mxu1 }
 0x640   : > { %v4489_v6 = vadd.f32 %v6742_v51, %v6701_v13  ;;  %v11117_v13 = vld [vmem:[#allocation6 + $0x2e0] sm:$0x7f]  ;;  %v11119_v51 = vld [vmem:[#allocation6 + $0x2e8] sm:$0x7f] }
 0x641   : > { %v5418_v27 = vpop.f32.mrf.mxu1  ;;  %7176 = vset.pattern.permute.xlu1 %v13297_v24  ;;  %7182 = vset.pattern.permute.xlu0 %v13296_v55  ;;  %v1981_v48 = vrot.slane %v11119_v51, 6 }
 0x642   : > { %4813 = vperm.xlu1 %7176, %v4559_v41   ;;  %4775 = vperm.xlu0 %7182, %v4564_v8   ;;  %v11041_v63 = vadd.f32 %v4568_v16, %v4489_v6  ;;  %v11123_v6 = vld [vmem:[#allocation6 + $0x2f0] sm:$0x7f] }
 0x643   : > { %v5420_v42 = vpop.f32.mrf.mxu1 }
 0x644   : > { %v13299_v42 = vmov 2   ;;  %13300 = vst [vmem:[#allocation103_spill] sm:$0xff] %v11041_v63 }
 0x645   : > { %v5423_v7 = vpop.f32.mrf.mxu1 }
 0x646   : > { %7177 = vset.pattern.permute.xlu1 %v13298_v59  ;;  %7183 = vset.pattern.permute.xlu0 %v13297_v24 }
 0x647   : > { %v5425_v3 = vpop.f32.mrf.mxu1  ;;  %4579 = vperm.xlu1 %7177, %v4564_v8   ;;  %4817 = vperm.xlu0 %7183, %v4564_v8  }
 0x649   : > { %v5428_v47 = vpop.f32.mrf.mxu1 }
 0x64b   : > { %v5430_v22 = vpop.f32.mrf.mxu1  ;;  %7178 = vset.pattern.permute.xlu1 %v13294_v36  ;;  %7185 = vset.pattern.permute.xlu0 %v13294_v36 }
 0x64c   : > { %4607 = vperm.xlu1 %7178, %v4564_v8   ;;  %4611 = vperm.xlu0 %7185, %v11041_v63  }
 0x64d   : > { %v5433_v41 = vpop.f32.mrf.mxu1 }
 0x64f   : > { %v5435_v45 = vpop.f32.mrf.mxu1 }
 0x650   : > { %7179 = vset.pattern.permute.xlu1 %v13299_v42  ;;  %7193 = vset.pattern.permute.xlu0 %v13293_v0 }
 0x651   : > { %v5438_v23 = vpop.f32.mrf.mxu1  ;;  %4649 = vperm.xlu1 %7179, %v4564_v8  }
 0x653   : > { %v5440_v3 = vpop.f32.mrf.mxu1 }
 0x655   : > { %v5443_v35 = vpop.f32.mrf.mxu1  ;;  %7184 = vset.pattern.permute.xlu1 %v13298_v59 }
 0x656   : > { %6784 = vmatprep.subr.mxu0 %v5443_v35  ;;  %4584 = vperm.xlu1 %7184, %v11041_v63   ;;  %v11126_v35 = vld [vmem:[#allocation6 + $0x2b8] sm:$0x7f] }
 0x657   : > { %v5445_v4 = vpop.f32.mrf.mxu1  ;;  %6785 = vmatpush3.msra.mxu0 %v11001_v54 }
 0x658   : > { %6786 = vmatprep.subr.mxu0 %v5438_v23  ;;  %v11128_v4 = vld [vmem:[#allocation6 + $0x2c0] sm:$0x7f] }
 0x659   : > { %v11048_v14 = vpop.f32.mrf.mxu1  ;;  %6787 = vmatpush3.msra.mxu0 %v10999_v40 }
 0x65a   : > { %6788 = vmatprep.subr.mxu0 %v5433_v41  ;;  %7186 = vset.pattern.permute.xlu1 %v13299_v42 }
 0x65b   : > { %v5450_v61 = vpop.f32.mrf.mxu1  ;;  %6789 = vmatpush3.msra.mxu0 %v10997_v33  ;;  %4653 = vperm.xlu1 %7186, %v11041_v63  }
 0x65c   : > { %6790 = vmatprep.subr.mxu0 %v5428_v47  ;;  %v11113_v47 = vld [vmem:[#allocation6 + $0x2a0] sm:$0x7f]  ;;  %v11130_v61 = vld [vmem:[#allocation6 + $0x308] sm:$0x7f] }
 0x65d   : > { %v11054_v8 = vpop.f32.mrf.mxu1  ;;  %6791 = vmatpush3.msra.mxu0 %v10995_v50  ;;  %v2245_v23 = vrot.slane %v11113_v47, 1 }
 0x65e   : > { %6792 = vmatprep.subr.mxu0 %v5423_v7 }
 0x65f   : > { %v5455_v54 = vpop.f32.mrf.mxu1  ;;  %6793 = vmatpush3.msra.mxu0 %v10993_v25  ;;  %7187 = vset.pattern.permute.xlu1 %v13293_v0  ;;  %v1979_v0 = vrot.slane %v11128_v4, 7 }
 0x660   : > { %6794 = vmatprep.subr.mxu0 %v5418_v27  ;;  %4695 = vperm.xlu1 %7187, %v11041_v63   ;;  %v11111_v27 = vld [vmem:[#allocation6 + $0x298] sm:$0x7f]  ;;  %v11132_v54 = vld [vmem:[#allocation6 + $0x310] sm:$0x7f] }
 0x661   : > { %v11060_v40 = vpop.f32.mrf.mxu1  ;;  %6795 = vmatpush3.msra.mxu0 %v10991_v52  ;;  %v2231_v45 = vrot.slane %v11111_v27, 1 }
 0x662   : > { %6796 = vmatprep.subr.mxu0 %v11029_v43  ;;  %v11109_v43 = vld [vmem:[#allocation6 + $0x290] sm:$0x7f] }
 0x663   : > { %v5460_v33 = vpop.f32.mrf.mxu1  ;;  %6797 = vmatpush3.msra.mxu0 %v10987_v20  ;;  %v2217_v41 = vrot.slane %v11109_v43, 1 }
 0x664   : > { %6798 = vmatprep.subr.mxu0 %v11027_v58  ;;  %7188 = vset.pattern.permute.xlu1 %v13295_v60  ;;  %v2219_v33 = vrot.slane %v11117_v13, 7 }
 0x665   : > { %v11067_v7 = vpop.f32.mrf.mxu1  ;;  %6799 = vmatpush3.msra.mxu0 %v10985_v19  ;;  %4737 = vperm.xlu1 %7188, %v11041_v63  }
 0x666   : > { %6800 = vmatprep.subr.mxu0 %v11023_v28 }
 0x667   : > { %v5465_v52 = vpop.f32.mrf.mxu1  ;;  %6801 = vmatpush3.msra.mxu0 %v10982_v30 }
 0x668   : > { %6802 = vmatprep.subr.mxu0 %v11019_v34  ;;  %v2233_v52 = vrot.slane %v11119_v51, 7 }
 0x669   : > { %v11075_v25 = vpop.f32.mrf.mxu1  ;;  %6803 = vmatpush3.msra.mxu0 %v10976_v21  ;;  %7189 = vset.pattern.permute.xlu1 %v13296_v55  ;;  %v11176_v55 = vld [vmem:[#allocation6 + $0x380] sm:$0x7f] }
 0x66a   : > { %6804 = vmatprep.subr.mxu0 %v11017_v31  ;;  %4779 = vperm.xlu1 %7189, %v11041_v63  }
 0x66b   : > { %v5470_v19 = vpop.f32.mrf.mxu1  ;;  %6805 = vmatpush3.msra.mxu0 %v10970_v44 }
 0x66c   : > { %6806 = vmatprep.subr.mxu0 %v11015_v18  ;;  %v7353_v18 = vld [vmem:[#allocation2 + $0x78] sm:$0xff] }
 0x66d   : > { %v11083_v20 = vpop.f32.mrf.mxu1  ;;  %6807 = vmatpush3.msra.mxu0 %v10964_v10 }
 0x66e   : > { %6808 = vmatprep.subr.mxu0 %v11013_v17  ;;  %7190 = vset.pattern.permute.xlu1 %v13298_v59  ;;  %v11166_v59 = vld [vmem:[#allocation6 + $0x368] sm:$0x7f] }
 0x66f   : > { %v5475_v30 = vpop.f32.mrf.mxu1  ;;  %6809 = vmatpush3.msra.mxu0 %v10958_v46  ;;  %v7350_v46 = vld [vmem:[#allocation2 + $0x10] sm:$0xff] }
 0x670   : > { %6810 = vmatprep.subr.mxu0 %v11011_v29  ;;  %v7351_v29 = vld [vmem:[#allocation2 + $0x48] sm:$0xff]  ;;  %v11136_v30 = vld [vmem:[#allocation6 + $0x2c8] sm:$0x7f] }
 0x671   : > { %v11090_v21 = vpop.f32.mrf.mxu1  ;;  %6811 = vmatpush3.msra.mxu0 %v10951_v49  ;;  %v7352_v49 = vld [vmem:[#allocation2 + $0x40] sm:$0xff]  ;;  %v1993_v39 = vrot.slane %v11136_v30, 7 }
 0x672   : > { %6812 = vmatprep.subr.mxu0 %v11009_v5 }
 0x673   : > { %v5480_v44 = vpop.f32.mrf.mxu1  ;;  %6813 = vmatpush3.msra.mxu0 %v10945_v62 }
 0x674   : > { %6814 = vmatprep.subr.mxu0 %v11005_v37  ;;  %v7354_v37 = vld [vmem:[#allocation2 + $0x70] sm:$0xff]  ;;  %v11138_v44 = vld [vmem:[#allocation6 + $0x318] sm:$0x7f] }
 0x675   : > { %v11096_v10 = vpop.f32.mrf.mxu1  ;;  %6815 = vmatpush3.msra.mxu0 %v10939_v15  ;;  %v7355_v15 = vld [vmem:[#allocation2 + $0x28] sm:$0xff] }
 0x676   : > { %5692 = vmatmul.mubr.f32.vlgmr.msra.gmra.mxu0 %v7350_v46  ;;  %5707 = vmatprep.subr.mxu0 %v13292_v2  ;;  %v2218_v46 = vsel %vm1791_vm1, %v11126_v35, %v2217_v41 }
 0x677   : > { %v5485_v50 = vpop.f32.mrf.mxu1  ;;  %5696 = vmatprep.mubr.f32.mxu0 %v7351_v29  ;;  %v2247_v29 = vrot.slane %v11123_v6, 7 }
 0x678   : > { %v2232_v50 = vsel %vm1791_vm1, %v11128_v4, %v2231_v45  ;;  %v2249_v45 = vrot.slane %v11138_v44, 6 }
 0x679   : > { %v11100_v17 = vpop.f32.mrf.mxu1  ;;  %v2234_v41 = vsel %vm1794_vm2, %v2233_v52, %v2232_v50  ;;  %v1967_v50 = vrot.slane %v11117_v13, 6 }
 0x67a   : > { %5697 = vmatmul.mubr.f32.gmra.mxu0 %v7352_v49  ;;  %v2246_v49 = vsel %vm1791_vm1, %v11136_v30, %v2245_v23 }
 0x67b   : > { %v5490_v5 = vpop.f32.mrf.mxu1  ;;  %5701 = vmatprep.mubr.f32.mxu0 %v7353_v18  ;;  %v11147_v18 = vld [vmem:[#allocation6 + $0x330] sm:$0x7f] }
 0x67c   : > { %v2223_v32 = vrot.slane %v11147_v18, 5 }
 0x67d   : > { %v11102_v62 = vpop.f32.mrf.mxu1 }
 0x67e   : > { %5702 = vmatmul.mubr.f32.gmra.mxu0 %v7354_v37  ;;  %v11149_v37 = vld [vmem:[#allocation6 + $0x338] sm:$0x7f] }
 0x67f   : > { %v5495_v31 = vpop.f32.mrf.mxu1  ;;  %6574 = vmatprep.mubr.msk.f32.mxu0 %vm1405_vm0, %v7355_v15  ;;  %v2235_v15 = vrot.slane %v11132_v54, 6  ;;  %v2237_v26 = vrot.slane %v11149_v37, 5 }
 0x680   : > { %v2221_v31 = vrot.slane %v11130_v61, 6 }
 0x681   : > { %v11105_v34 = vpop.f32.mrf.mxu1  ;;  %v2236_v52 = vsel %vm1797_vm3, %v2235_v15, %v2234_v41  ;;  %v2239_v15 = vrot.slane %v11162_v1, 4 }
 0x683   : > { %v5500_v28 = vpop.f32.mrf.mxu1 }
 0x684   : > { %v11153_v28 = vld [vmem:[#allocation6 + $0x340] sm:$0x7f] }
 0x685   : > { %v11107_v58 = vpop.f32.mrf.mxu1  ;;  %13301 = vst [vmem:[#allocation120_spill] sm:$0xff] %v11153_v28 }
 0x687   : > { %v5505_v16 = vpop.f32.mrf.mxu1 }
 0x688   : > { %v2220_v16 = vsel %vm1794_vm2, %v2219_v33, %v2218_v46  ;;  %v2251_v46 = vrot.slane %v11153_v28, 5 }
 0x689   : > { %v11115_v22 = vpop.f32.mrf.mxu1  ;;  %v2222_v33 = vsel %vm1797_vm3, %v2221_v31, %v2220_v16  ;;  %v2225_v31 = vrot.slane %v11160_v57, 4  ;;  %v11182_v16 = vld [vmem:[#allocation6 + $0x390] sm:$0x7f] }
 0x68a   : > { %v2224_v41 = vsel %vm1800_vm4, %v2223_v32, %v2222_v33 }
 0x68b   : > { %v5510_v3 = vpop.f32.mrf.mxu1 }
 0x68c   : > { %v1965_v3 = vrot.slane %v11126_v35, 7 }
 0x68d   : > { %v5513_v19 = vpop.f32.mrf.mxu1 }
 0x68f   : > { %v5515_v5 = vpop.f32.mrf.mxu1 }
 0x690   : > { %v2248_v5 = vsel %vm1794_vm2, %v2247_v29, %v2246_v49  ;;  %v1966_v49 = vsel %vm1791_vm1, %v1965_v3, %v11109_v43  ;;  %v2253_v3 = vrot.slane %v11166_v59, 4 }
 0x691   : > { %v5518_v23 = vpop.f32.mrf.mxu1  ;;  %v2250_v29 = vsel %vm1797_vm3, %v2249_v45, %v2248_v5  ;;  %v2238_v45 = vsel %vm1800_vm4, %v2237_v26, %v2236_v52  ;;  %v1969_v5 = vrot.slane %v11130_v61, 5  ;;  %v1968_v36 = vsel %vm1794_vm2, %v1967_v50, %v1966_v49  ;;  %v11203_v52 = vld [vmem:[#allocation6 + $0x3b8] sm:$0x7f] }
 0x692   : > { %v2252_v60 = vsel %vm1800_vm4, %v2251_v46, %v2250_v29  ;;  %v2227_v26 = vrot.slane %v11176_v55, 3  ;;  %v2226_v46 = vsel %vm1803_vm5, %v2225_v31, %v2224_v41  ;;  %v2255_v50 = vrot.slane %v11182_v16, 3 }
 0x693   : > { %v5520_v63 = vpop.f32.mrf.mxu1  ;;  %v1971_v29 = vrot.slane %v11147_v18, 4  ;;  %v2254_v49 = vsel %vm1803_vm5, %v2253_v3, %v2252_v60  ;;  %v1970_v12 = vsel %vm1797_vm3, %v1969_v5, %v1968_v36  ;;  %v2257_v36 = vrot.slane %v11203_v52, 2 }
 0x694   : > { %v11178_v63 = vld [vmem:[#allocation6 + $0x388] sm:$0x7f] }
 0x695   : > { %v5523_v24 = vpop.f32.mrf.mxu1  ;;  %v2241_v32 = vrot.slane %v11178_v63, 3  ;;  %v1972_v5 = vsel %vm1800_vm4, %v1971_v29, %v1970_v12  ;;  %v2484_v12 = vrot.slane %v11109_v43, 2 }
 0x696   : > { %5708 = vmatpush1.msra.mxu0 %v5523_v24  ;;  %v11192_v24 = vld [vmem:[#allocation6 + $0x3a8] sm:$0x7f] }
 0x697   : > { %v5525_v42 = vpop.f32.mrf.mxu1  ;;  %5709 = vmatprep.subr.mxu0 %v13292_v2  ;;  %13302 = vst [vmem:[#allocation124_spill] sm:$0xff] %v11192_v24  ;;  %v2229_v31 = vrot.slane %v11192_v24, 2 }
 0x698   : > { %5710 = vmatpush1.msra.mxu0 %v5518_v23  ;;  %v1980_v42 = vsel %vm1791_vm1, %v1979_v0, %v11111_v27  ;;  %v2240_v23 = vsel %vm1803_vm5, %v2239_v15, %v2238_v45  ;;  %v1983_v0 = vrot.slane %v11132_v54, 5  ;;  %v2243_v15 = vrot.slane %v11194_v53, 2 }
 0x699   : > { %5711 = vmatprep.subr.mxu0 %v13292_v2  ;;  %v11201_v33 = vpop.f32.mrf.mxu1  ;;  %v1982_v41 = vsel %vm1794_vm2, %v1981_v48, %v1980_v42  ;;  %v2242_v60 = vsel %vm1806_vm6, %v2241_v32, %v2240_v23  ;;  %v1973_v45 = vrot.slane %v11160_v57, 3  ;;  %v1985_v48 = vrot.slane %v11149_v37, 4  ;;  %v11237_v23 = vpop.permute.xlu1 %2046 }
 0x69a   : > { %5712 = vmatpush1.msra.mxu0 %v5513_v19  ;;  %v2228_v19 = vsel %vm1806_vm6, %v2227_v26, %v2226_v46  ;;  %v1984_v26 = vsel %vm1797_vm3, %v1983_v0, %v1982_v41  ;;  %v1994_v32 = vsel %vm1791_vm1, %v1993_v39, %v11113_v47  ;;  %13304 = vst [vmem:[#allocation117_spill] sm:$0xff] %v11237_v23  ;;  %v1987_v41 = vrot.slane %v11162_v1, 3 }
 0x69b   : > { %5713 = vmatprep.subr.mxu0 %v13292_v2  ;;  %v5530_v56 = vpop.f32.mrf.mxu1  ;;  %v11235_v46 = vsel %vm1809_vm7, %v2229_v31, %v2228_v19  ;;  %v1974_v39 = vsel %vm1803_vm5, %v1973_v45, %v1972_v5  ;;  %v1986_v31 = vsel %vm1800_vm4, %v1985_v48, %v1984_v26  ;;  %v11258_v19 = vpop.permute.xlu0 %1667  ;;  %v2512_v45 = vrot.slane %v11113_v47, 2 }
 0x69c   : > { %5714 = vmatpush1.msra.mxu0 %v11115_v22  ;;  %v2256_v56 = vsel %vm1806_vm6, %v2255_v50, %v2254_v49  ;;  %v1995_v22 = vrot.slane %v11123_v6, 6  ;;  %13303 = vst [vmem:[#allocation87_spill] sm:$0xff] %v11235_v46  ;;  %v2485_v50 = vrot.slane %v11126_v35, 1  ;;  %v1975_v49 = vrot.slane %v11176_v55, 2  ;;  %13307 = vst [vmem:[#allocation92_spill] sm:$0xff] %v11258_v19 }
 0x69d   : > { %5715 = vmatprep.subr.mxu0 %v13292_v2  ;;  %v11223_v3 = vpop.f32.mrf.mxu1  ;;  %v11246_v29 = vsel %vm1809_vm7, %v2257_v36, %v2256_v56  ;;  %v2499_v36 = vrot.slane %v11128_v4, 1  ;;  %v2513_v56 = vrot.slane %v11136_v30, 1  ;;  %v2751_v26 = vrot.slane %v11109_v43, 3 }
 0x69e   : > { %5716 = vmatpush1.msra.mxu0 %v11107_v58  ;;  %v11243_v58 = vsel %vm1809_vm7, %v2243_v15, %v2242_v60  ;;  %13306 = vst [vmem:[#allocation125_spill] sm:$0xff] %v11246_v29  ;;  %v1997_v15 = vrot.slane %v11138_v44, 5  ;;  %v2498_v60 = vrot.slane %v11111_v27, 2  ;;  %v1999_v23 = vrot.slane %v11153_v28, 4 }
 0x69f   : > { %5717 = vmatprep.subr.mxu0 %v13292_v2  ;;  %v5535_v42 = vpop.f32.mrf.mxu1  ;;  %13305 = vst [vmem:[#allocation108_spill] sm:$0xff] %v11243_v58  ;;  %v2001_v48 = vrot.slane %v11166_v59, 3  ;;  %v2514_v29 = vsel %vm1791_vm1, %v2513_v56, %v2512_v45  ;;  %v2754_v58 = vrot.slane %v11117_v13, 1  ;;  %v2516_v45 = vrot.slane %v11138_v44, 7  ;;  %v11301_v56 = vpop.permute.xlu0 %2580 }
 0x6a0   : > { %5718 = vmatpush1.msra.mxu0 %v11105_v34  ;;  %v1996_v34 = vsel %vm1794_vm2, %v1995_v22, %v1994_v32  ;;  %v2486_v22 = vsel %vm1791_vm1, %v2485_v50, %v2484_v12  ;;  %v11271_v32 = vsel %vm1806_vm6, %v1975_v49, %v1974_v39  ;;  %v1989_v42 = vrot.slane %v11178_v63, 2  ;;  %v11283_v39 = vpop.permute.xlu1 %2313  ;;  %13309 = vst [vmem:[#allocation107_spill] sm:$0xff] %v11301_v56 }
 0x6a1   : > { %5719 = vmatprep.subr.mxu0 %v13292_v2  ;;  %v11251_v0 = vpop.f32.mrf.mxu1  ;;  %v1988_v12 = vsel %vm1803_vm5, %v1987_v41, %v1986_v31  ;;  %v1998_v50 = vsel %vm1797_vm3, %v1997_v15, %v1996_v34  ;;  %13308 = vst [vmem:[#allocation94_spill] sm:$0xff] %v11283_v39  ;;  %v2487_v49 = vsel %vm1794_vm2, %v11117_v13, %v2486_v22  ;;  %v2003_v41 = vrot.slane %v11182_v16, 2 }
 0x6a2   : > { %5720 = vmatpush1.msra.mxu0 %v11102_v62  ;;  %v2752_v62 = vrot.slane %v11126_v35, 2  ;;  %v2500_v19 = vsel %vm1791_vm1, %v2499_v36, %v2498_v60  ;;  %v2765_v15 = vrot.slane %v11111_v27, 3  ;;  %v2000_v22 = vsel %vm1800_vm4, %v1999_v23, %v1998_v50 }
 0x6a3   : > { %5721 = vmatprep.subr.mxu0 %v13292_v2  ;;  %v5540_v5 = vpop.f32.mrf.mxu1  ;;  %v2502_v36 = vrot.slane %v11132_v54, 7  ;;  %v2768_v60 = vrot.slane %v11119_v51, 1  ;;  %v2779_v56 = vrot.slane %v11113_v47, 3  ;;  %v2757_v46 = vrot.slane %v11147_v18, 7 }
 0x6a4   : > { %5722 = vmatpush1.msra.mxu0 %v11100_v17  ;;  %v2488_v17 = vrot.slane %v11130_v61, 7  ;;  %v2753_v34 = vsel %vm1791_vm1, %v2752_v62, %v2751_v26  ;;  %v2490_v62 = vrot.slane %v11147_v18, 6 }
 0x6a5   : > { %5723 = vmatprep.subr.mxu0 %v13292_v2  ;;  %v11277_v5 = vpop.f32.mrf.mxu1  ;;  %v2755_v50 = vsel %vm1794_vm2, %v2754_v58, %v2753_v34  ;;  %v2002_v58 = vsel %vm1803_vm5, %v2001_v48, %v2000_v22  ;;  %v2520_v48 = vrot.slane %v11166_v59, 5 }
 0x6a6   : > { %5724 = vmatpush1.msra.mxu0 %v11096_v10  ;;  %v2766_v10 = vrot.slane %v11128_v4, 2  ;;  %v2489_v26 = vsel %vm1797_vm3, %v2488_v17, %v2487_v49  ;;  %v2780_v17 = vrot.slane %v11136_v30, 2  ;;  %v11319_v49 = vsel %vm1806_vm6, %v1989_v42, %v1988_v12 }
 0x6a7   : > { %5725 = vmatprep.subr.mxu0 %v13292_v2  ;;  %v5545_v31 = vpop.f32.mrf.mxu1  ;;  %v2491_v42 = vsel %vm1800_vm4, %v2490_v62, %v2489_v26  ;;  %v2492_v12 = vrot.slane %v11160_v57, 5  ;;  %v2756_v38 = vsel %vm1797_vm3, %v11130_v61, %v2755_v50  ;;  %v2004_v26 = vsel %vm1806_vm6, %v2003_v41, %v2002_v58 }
 0x6a8   : > { %5726 = vmatpush1.msra.mxu0 %v11090_v21  ;;  %v2501_v31 = vsel %vm1794_vm2, %v11119_v51, %v2500_v19  ;;  %v2515_v21 = vsel %vm1794_vm2, %v11123_v6, %v2514_v29  ;;  %v2504_v19 = vrot.slane %v11149_v37, 6  ;;  %v2518_v29 = vrot.slane %v11153_v28, 6 }
 0x6a9   : > { %5727 = vmatprep.subr.mxu0 %v13292_v2  ;;  %v11311_v23 = vpop.permute.xlu1 %4645  ;;  %v2503_v34 = vsel %vm1797_vm3, %v2502_v36, %v2501_v31  ;;  %v2517_v39 = vsel %vm1797_vm3, %v2516_v45, %v2515_v21  ;;  %v2781_v22 = vsel %vm1791_vm1, %v2780_v17, %v2779_v56  ;;  %v11340_v36 = vpop.permute.xlu0 %2847  ;;  %v2759_v31 = vrot.slane %v11160_v57, 6 }
 0x6aa   : > { %5728 = vmatpush1.msra.mxu0 %v11083_v20  ;;  %v2767_v20 = vsel %vm1791_vm1, %v2766_v10, %v2765_v15  ;;  %v2782_v15 = vrot.slane %v11123_v6, 1  ;;  %13310 = vst [vmem:[#allocation88_spill] sm:$0xff] %v11340_v36  ;;  %v2505_v62 = vsel %vm1800_vm4, %v2504_v19, %v2503_v34  ;;  %v2508_v56 = vrot.slane %v11178_v63, 4  ;;  %v13339_v36 = vld [vmem:[#allocation54_spill] sm:$0xff] }
 0x6ab   : > { %5729 = vmatprep.subr.mxu0 %v13292_v2  ;;  %v2769_v10 = vsel %vm1794_vm2, %v2768_v60, %v2767_v20  ;;  %v2494_v60 = vrot.slane %v11176_v55, 4  ;;  %v2758_v21 = vsel %vm1800_vm4, %v2757_v46, %v2756_v38  ;;  %v2771_v50 = vrot.slane %v11149_v37, 7 }
 0x6ac   : > { %5730 = vmatpush1.msra.mxu0 %v11075_v25  ;;  %v2506_v25 = vrot.slane %v11162_v1, 5  ;;  %v2493_v41 = vsel %vm1803_vm5, %v2492_v12, %v2491_v42  ;;  %v2522_v17 = vrot.slane %v11182_v16, 4  ;;  %v2783_v19 = vsel %vm1794_vm2, %v2782_v15, %v2781_v22 }
 0x6ad   : > { %5731 = vmatprep.subr.mxu0 %v13292_v2  ;;  %v2761_v46 = vrot.slane %v11176_v55, 5  ;;  %v2510_v20 = vrot.slane %v11194_v53, 3  ;;  %v2760_v58 = vsel %vm1803_vm5, %v2759_v31, %v2758_v21  ;;  %v2773_v34 = vrot.slane %v11162_v1, 6 }
 0x6ae   : > { %5732 = vmatpush1.msra.mxu0 %v11067_v7  ;;  %v11343_v45 = vpop.permute.xlu1 %4687  ;;  %v2519_v7 = vsel %vm1800_vm4, %v2518_v29, %v2517_v39  ;;  %v2770_v39 = vsel %vm1797_vm3, %v11132_v54, %v2769_v10  ;;  %v2507_v29 = vsel %vm1803_vm5, %v2506_v25, %v2505_v62  ;;  %v2785_v42 = vrot.slane %v11153_v28, 7  ;;  %v11378_v10 = vpop.permute.xlu0 %3114  ;;  %v13352_v28 = vld [vmem:[#allocation98_spill] sm:$0xff] }
 0x6af   : > { %5733 = vmatprep.subr.mxu0 %v13292_v2  ;;  %v2521_v38 = vsel %vm1803_vm5, %v2520_v48, %v2519_v7  ;;  %v2495_v12 = vsel %vm1806_vm6, %v2494_v60, %v2493_v41  ;;  %v2524_v15 = vrot.slane %v11203_v52, 3  ;;  %v2772_v25 = vsel %vm1800_vm4, %v2771_v50, %v2770_v39  ;;  %13311 = vst [vmem:[#allocation114_spill] sm:$0xff] %v11378_v10 }
 0x6b0   : > { %5734 = vmatpush1.msra.mxu0 %v11060_v40  ;;  %v2496_v40 = vrot.slane %v11192_v24, 3  ;;  %v2784_v48 = vsel %vm1797_vm3, %v11138_v44, %v2783_v19  ;;  %v2509_v22 = vsel %vm1806_vm6, %v2508_v56, %v2507_v29  ;;  %v2523_v62 = vsel %vm1806_vm6, %v2522_v17, %v2521_v38 }
 0x6b1   : > { %5735 = vmatprep.subr.mxu0 %v13292_v2  ;;  %v2775_v7 = vrot.slane %v11178_v63, 5  ;;  %v2762_v31 = vsel %vm1806_vm6, %v2761_v46, %v2760_v58  ;;  %v2787_v60 = vrot.slane %v11166_v59, 6  ;;  %v3018_v21 = vrot.slane %v11109_v43, 4  ;;  %v13331_v58 = vld [vmem:[#allocation43_spill] sm:$0xff] }
 0x6b2   : > { %5736 = vmatpush1.msra.mxu0 %v11054_v8  ;;  %v3019_v50 = vrot.slane %v11126_v35, 3  ;;  %v13312_v56 = vrot.slane %v11192_v24, 1  ;;  %v13314_v17 = vrot.slane %v11194_v53, 1  ;;  %v2774_v39 = vsel %vm1803_vm5, %v2773_v34, %v2772_v25  ;;  %v4575_v46 = vpop.permute.xlu0 %4574  ;;  %v13323_v25 = vld [vmem:[#allocation57_spill] sm:$0xff] }
 0x6b3   : > { %5737 = vmatprep.subr.mxu0 %v13292_v2  ;;  %v11371_v8 = vpop.permute.xlu1 %4729  ;;  %v2786_v43 = vsel %vm1800_vm4, %v2785_v42, %v2784_v48  ;;  %v13316_v35 = vrot.slane %v11203_v52, 1  ;;  %v11415_v29 = vsel %vm1809_vm7, %v2510_v20, %v2509_v22  ;;  %v11431_v20 = vsel %vm1806_vm6, %v2775_v7, %v2774_v39  ;;  %v13324_v48 = vld [vmem:[#allocation48_spill] sm:$0xff]  ;;  %v7356_v7 = vld [vmem:[#allocation2 + $0x20] sm:$0xff] }
 0x6b4   : > { %5738 = vmatpush1.msra.mxu0 %v11048_v14  ;;  %v2763_v14 = vrot.slane %v11192_v24, 4  ;;  %v11395_v41 = vsel %vm1809_vm7, %v13312_v56, %v11271_v32  ;;  %v11412_v32 = vsel %vm1809_vm7, %v2496_v40, %v2495_v12  ;;  %13319 = vst [vmem:[#allocation93_spill] sm:$0xff] %v11415_v29  ;;  %v11434_v34 = vsel %vm1803_vm5, %v2787_v60, %v2786_v43  ;;  %v13328_v56 = vld [vmem:[#allocation51_spill] sm:$0xff]  ;;  %v13329_v39 = vld [vmem:[#allocation52_spill] sm:$0xff] }
 0x6b5   : > { %5763 = vmatprep.subr.mxu0 %v13292_v2  ;;  %13313 = vst [vmem:[#allocation82_spill] sm:$0xff] %v11395_v41  ;;  %v11409_v19 = vsel %vm1809_vm7, %v13316_v35, %v2004_v26  ;;  %13318 = vst [vmem:[#allocation90_spill] sm:$0xff] %v11412_v32  ;;  %v11437_v42 = vsel %vm1791_vm1, %v3019_v50, %v3018_v21  ;;  %v4587_v22 = vmul.f32 %v4575_v46, %v13324_v48  ;;  %v13327_v21 = vld [vmem:[#allocation50_spill] sm:$0xff]  ;;  %v13332_v12 = vld [vmem:[#allocation44_spill] sm:$0xff] }
 0x6b6   : > { %5764 = vmatpush2.msra.mxu0 %v11277_v5  ;;  %v11401_v5 = vsel %vm1809_vm7, %v13314_v17, %v11319_v49  ;;  %13317 = vst [vmem:[#allocation81_spill] sm:$0xff] %v11409_v19  ;;  %v11418_v49 = vsel %vm1809_vm7, %v2524_v15, %v2523_v62  ;;  %v13325_v62 = vld [vmem:[#allocation49_spill] sm:$0xff]  ;;  %v4589_v50 = vmul.f32 %v4575_v46, %v13327_v21  ;;  %v4604_v35 = vpop.permute.xlu0 %4603  ;;  %v13342_v24 = vld [vmem:[#allocation55_spill] sm:$0xff] }
 0x6b7   : > { %5765 = vmatprep.subr.mxu0 %v13292_v2  ;;  %13315 = vst [vmem:[#allocation86_spill] sm:$0xff] %v11401_v5  ;;  %13320 = vst [vmem:[#allocation28_spill] sm:$0xff] %v11418_v49  ;;  %v4590_v17 = vmul.f32 %v4575_v46, %v13328_v56  ;;  %v4591_v43 = vmul.f32 %v4575_v46, %v13329_v39  ;;  %v4614_v26 = vmul.f32 %v4604_v35, %v13331_v58  ;;  %v13336_v56 = vld [vmem:[#allocation60_spill] sm:$0xff]  ;;  %v13337_v39 = vld [vmem:[#allocation61_spill] sm:$0xff] }
 0x6b8   : > { %5766 = vmatpush2.msra.mxu0 %v11251_v0  ;;  %v11421_v38 = vpop.permute.xlu1 %4771  ;;  %v11424_v0 = vsel %vm1809_vm7, %v2763_v14, %v2762_v31  ;;  %v4588_v14 = vmul.f32 %v4575_v46, %v13325_v62  ;;  %v13326_v31 = vld [vmem:[#allocation58_spill] sm:$0xff]  ;;  %v4615_v15 = vmul.f32 %v4604_v35, %v13332_v12  ;;  %v13335_v62 = vld [vmem:[#allocation59_spill] sm:$0xff]  ;;  %v4659_v46 = vmul.f32 %v11311_v23, %v13336_v56 }
 0x6b9   : > { %5767 = vmatprep.subr.mxu0 %v13292_v2  ;;  %13321 = vst [vmem:[#allocation27_spill] sm:$0xff] %v11421_v38  ;;  %13322 = vst [vmem:[#allocation26_spill] sm:$0xff] %v11424_v0  ;;  %v4657_v60 = vmul.f32 %v11311_v23, %v13326_v31  ;;  %v4658_v48 = vmul.f32 %v11311_v23, %v13335_v62  ;;  %v4660_v21 = vmul.f32 %v11311_v23, %v13337_v39  ;;  %v13340_v12 = vld [vmem:[#allocation47_spill] sm:$0xff]  ;;  %v13341_v0 = vld [vmem:[#allocation42_spill] sm:$0xff] }
 0x6ba   : > { %5768 = vmatpush2.msra.mxu0 %v11223_v3  ;;  %v4656_v3 = vmul.f32 %v11311_v23, %v13323_v25  ;;  %v13334_v25 = vld [vmem:[#allocation46_spill] sm:$0xff]  ;;  %v4699_v58 = vmul.f32 %v11343_v45, %v13339_v36  ;;  %v4630_v38 = vadd.f32 %v4615_v15, %v4588_v14  ;;  %v4700_v62 = vmul.f32 %v11343_v45, %v13341_v0  ;;  %v11474_v39 = vpop.permute.xlu0 %4691  ;;  %v13343_v36 = vld [vmem:[#allocation56_spill] sm:$0xff]  ;;  %v13345_v0 = vld [vmem:[#allocation63_spill] sm:$0xff] }
 0x6bb   : > { %5769 = vmatprep.subr.mxu0 %v13292_v2  ;;  %v4617_v31 = vmul.f32 %v4604_v35, %v13334_v25  ;;  %v7358_v25 = vld [vmem:[#allocation2 + $0x50] sm:$0xff]  ;;  %v4701_v56 = vmul.f32 %v11343_v45, %v13342_v24 }
 0x6bc   : > { %5770 = vmatpush2.msra.mxu0 %v11201_v33  ;;  %v7357_v33 = vld [vmem:[#allocation2 + $0x58] sm:$0xff] }
 0x6bd   : > { %5772 = vmatmul.mubr.f32.vlgmr.msra.gmra.mxu0 %v7356_v7  ;;  %v11453_v40 = vpop.permute.xlu1 %4813  ;;  %v13333_v7 = vld [vmem:[#allocation45_spill] sm:$0xff]  ;;  %v4632_v23 = vadd.f32 %v4617_v31, %v4590_v17  ;;  %v3035_v17 = vrot.slane %v11119_v51, 2 }
 0x6be   : > { %6575 = vmatprep.mubr.msk.f32.mxu0 %vm1405_vm0, %v7357_v33  ;;  %13330 = vst [vmem:[#allocation25_spill] sm:$0xff] %v11453_v40  ;;  %v4616_v2 = vmul.f32 %v4604_v35, %v13333_v7  ;;  %v13338_v33 = vld [vmem:[#allocation53_spill] sm:$0xff]  ;;  %v4618_v40 = vmul.f32 %v4604_v35, %v13340_v12  ;;  %v4629_v7 = vadd.f32 %v4614_v26, %v4587_v22 }
 0x6bf   : > { %v4698_v10 = vmul.f32 %v11343_v45, %v13338_v33  ;;  %v7359_v33 = vld [vmem:[#allocation2 + $0x88] sm:$0xff]  ;;  %v4702_v35 = vmul.f32 %v11343_v45, %v13343_v36  ;;  %v4672_v22 = vadd.f32 %v4657_v60, %v4630_v38  ;;  %v4741_v12 = vmul.f32 %v11371_v8, %v13345_v0  ;;  %v7360_v38 = vld [vmem:[#allocation2 + $0x80] sm:$0xff] }
 0x6c0   : > { %v4631_v49 = vadd.f32 %v4616_v2, %v4589_v50  ;;  %v4633_v26 = vadd.f32 %v4618_v40, %v4591_v43  ;;  %v4671_v15 = vadd.f32 %v4656_v3, %v4629_v7  ;;  %v4674_v31 = vadd.f32 %v4659_v46, %v4632_v23  ;;  %v13347_v45 = vld [vmem:[#allocation68_spill] sm:$0xff]  ;;  %v13348_v3 = vld [vmem:[#allocation77_spill] sm:$0xff]  ;;  %v13350_v46 = vld [vmem:[#allocation91_spill] sm:$0xff] }
 0x6c1   : > { %5777 = vmatmul.mubr.f32.gmra.mxu0 %v7358_v25  ;;  %v13344_v25 = vld [vmem:[#allocation62_spill] sm:$0xff]  ;;  %v3033_v50 = vrot.slane %v11128_v4, 3  ;;  %v4743_v40 = vmul.f32 %v11371_v8, %v13347_v45  ;;  %v4744_v60 = vmul.f32 %v11371_v8, %v13348_v3  ;;  %v4714_v0 = vadd.f32 %v4699_v58, %v4672_v22 }
 0x6c2   : > { %6576 = vmatprep.mubr.msk.f32.mxu0 %vm1405_vm0, %v7359_v33  ;;  %v4740_v14 = vmul.f32 %v11371_v8, %v13344_v25  ;;  %v4580_v24 = vpop.permute.xlu1 %4579  ;;  %v4673_v2 = vadd.f32 %v4658_v48, %v4631_v49  ;;  %v13346_v33 = vld [vmem:[#allocation64_spill] sm:$0xff]  ;;  %v4675_v43 = vadd.f32 %v4660_v21, %v4633_v26  ;;  %v4713_v7 = vadd.f32 %v4698_v10, %v4671_v15  ;;  %v11491_v49 = vpop.permute.xlu0 %4733  ;;  %v13353_v21 = vld [vmem:[#allocation38_spill] sm:$0xff] }
 0x6c3   : > { %v4742_v29 = vmul.f32 %v11371_v8, %v13346_v33  ;;  %v13349_v48 = vld [vmem:[#allocation84_spill] sm:$0xff]  ;;  %v4593_v51 = vmul.f32 %v4580_v24, %v13350_v46  ;;  %v4716_v25 = vadd.f32 %v4701_v56, %v4674_v31  ;;  %v13351_v33 = vld [vmem:[#allocation95_spill] sm:$0xff]  ;;  %v4595_v8 = vmul.f32 %v4580_v24, %v13352_v28 }
 0x6c4   : > { %v4592_v4 = vmul.f32 %v4580_v24, %v13349_v48  ;;  %v4715_v23 = vadd.f32 %v4700_v62, %v4673_v2  ;;  %v4594_v36 = vmul.f32 %v4580_v24, %v13351_v33  ;;  %v4717_v32 = vadd.f32 %v4702_v35, %v4675_v43  ;;  %v13354_v62 = vld [vmem:[#allocation106_spill] sm:$0xff]  ;;  %v13355_v2 = vld [vmem:[#allocation116_spill] sm:$0xff]  ;;  %v13356_v35 = vld [vmem:[#allocation39_spill] sm:$0xff] }
 0x6c5   : > { %5782 = vmatmul.mubr.f32.gmra.mxu0 %v7360_v38  ;;  %v11496_v45 = vadd.f32 %v4740_v14, %v4713_v7  ;;  %v11498_v38 = vadd.f32 %v4741_v12, %v4714_v0  ;;  %v4596_v10 = vmul.f32 %v4580_v24, %v13353_v21  ;;  %v11504_v26 = vadd.f32 %v4743_v40, %v4716_v25  ;;  %v13358_v24 = vld [vmem:[#allocation121_spill] sm:$0xff]  ;;  %v13359_v7 = vld [vmem:[#allocation118_spill] sm:$0xff] }
 0x6c6   : > { %v11502_v58 = vadd.f32 %v4742_v29, %v4715_v23  ;;  %v11506_v22 = vadd.f32 %v4744_v60, %v4717_v32  ;;  %v13357_v0 = vrot.slane %v11111_v27, 4  ;;  %v3046_v43 = vrot.slane %v11113_v47, 4  ;;  %v11517_v40 = vpop.permute.xlu0 %4775  ;;  %v13361_v48 = vld [vmem:[#allocation65_spill] sm:$0xff] }
 0x6c7   : > { %v4608_v15 = vpop.permute.xlu1 %4607  ;;  %v3047_v32 = vrot.slane %v11136_v30, 3  ;;  %v13360_v28 = vrot.slane %v11117_v13, 2  ;;  %v3049_v46 = vrot.slane %v11123_v6, 2  ;;  %v4705_v30 = vmul.f32 %v11474_v39, %v13361_v48  ;;  %v13367_v6 = vld [vmem:[#allocation97_spill] sm:$0xff]  ;;  %v13387_v48 = vld [vmem:[#allocation26_spill] sm:$0xff] }
 0x6c8   : > { %v4619_v56 = vmul.f32 %v4608_v15, %v13354_v62  ;;  %v4620_v31 = vmul.f32 %v4608_v15, %v13355_v2  ;;  %v4621_v14 = vmul.f32 %v4608_v15, %v13356_v35  ;;  %v3034_v12 = vsel %vm1791_vm1, %v3033_v50, %v13357_v0  ;;  %v6775_v2 = vpop.f32.mrf.mxu0 }
 0x6c9   : > { %v4622_v29 = vmul.f32 %v4608_v15, %v13358_v24  ;;  %v4623_v25 = vmul.f32 %v4608_v15, %v13359_v7  ;;  %v3022_v27 = vsel %vm1794_vm2, %v13360_v28, %v11437_v42  ;;  %v3023_v50 = vrot.slane %v11130_v61, 1  ;;  %v13365_v42 = vld [vmem:[#allocation111_spill] sm:$0xff] }
 0x6ca   : > { %v4634_v60 = vadd.f32 %v4619_v56, %v4592_v4  ;;  %v4635_v23 = vadd.f32 %v4620_v31, %v4593_v51  ;;  %v4636_v21 = vadd.f32 %v4621_v14, %v4594_v36  ;;  %v3036_v33 = vsel %vm1794_vm2, %v3035_v17, %v3034_v12  ;;  %v13362_v36 = vld [vmem:[#allocation131_spill] sm:$0xff]  ;;  %v13363_v56 = vld [vmem:[#allocation132_spill] sm:$0xff]  ;;  %v13364_v31 = vld [vmem:[#allocation33_spill] sm:$0xff] }
 0x6cb   : > { %v4637_v0 = vadd.f32 %v4622_v29, %v4595_v8  ;;  %v4638_v47 = vadd.f32 %v4623_v25, %v4596_v10  ;;  %v3037_v15 = vrot.slane %v11132_v54, 1  ;;  %v3048_v8 = vsel %vm1791_vm1, %v3047_v32, %v3046_v43  ;;  %v13366_v10 = vld [vmem:[#allocation73_spill] sm:$0xff] }
 0x6cc   : > { %v4650_v4 = vpop.permute.xlu1 %4649  ;;  %v4707_v17 = vmul.f32 %v11474_v39, %v13366_v10  ;;  %v4747_v14 = vmul.f32 %v11491_v49, %v13367_v6  ;;  %v13368_v43 = vrot.slane %v11194_v53, 4  ;;  %v3058_v10 = vrot.slane %v11203_v52, 5 }
 0x6cd   : > { %v4661_v51 = vmul.f32 %v4650_v4, %v13362_v36  ;;  %v4662_v13 = vmul.f32 %v4650_v4, %v13363_v56  ;;  %v4663_v28 = vmul.f32 %v4650_v4, %v13364_v31  ;;  %v4664_v61 = vmul.f32 %v4650_v4, %v13365_v42  ;;  %v11546_v31 = vpop.permute.xlu0 %4817 }
 0x6ce   : > { %v4665_v54 = vmul.f32 %v4650_v4, %v10494_v9  ;;  %v11552_v32 = vsel %vm1809_vm7, %v13368_v43, %v11431_v20  ;;  %v13370_v4 = vrot.slane %v11182_v16, 5  ;;  %v3038_v20 = vsel %vm1797_vm3, %v3037_v15, %v3036_v33 }
 0x6cf   : > { %v11540_v12 = vadd.f32 %v4661_v51, %v4634_v60  ;;  %v11542_v29 = vadd.f32 %v4662_v13, %v4635_v23  ;;  %v4678_v25 = vadd.f32 %v4663_v28, %v4636_v21  ;;  %v11544_v56 = vadd.f32 %v4664_v61, %v4637_v0  ;;  %13369 = vst [vmem:[#allocation112_spill] sm:$0xff] %v11552_v32  ;;  %v13371_v51 = vld [vmem:[#allocation105_spill] sm:$0xff]  ;;  %v13372_v28 = vld [vmem:[#allocation32_spill] sm:$0xff] }
 0x6d0   : > { %v2790_v9 = vsel %vm1806_vm6, %v13370_v4, %v11434_v34  ;;  %v4680_v60 = vadd.f32 %v4665_v54, %v4638_v47  ;;  %v4749_v23 = vmul.f32 %v11491_v49, %v13371_v51  ;;  %v3024_v21 = vsel %vm1797_vm3, %v3023_v50, %v3022_v27 }
 0x6d1   : > { %v3051_v0 = vrot.slane %v11138_v44, 1  ;;  %v4720_v13 = vadd.f32 %v4705_v30, %v4678_v25  ;;  %v4789_v61 = vmul.f32 %v11517_v40, %v13372_v28  ;;  %v11564_v42 = vpop.permute.xlu1 %4584  ;;  %v3050_v43 = vsel %vm1794_vm2, %v3049_v46, %v3048_v8  ;;  %v13375_v30 = vld [vmem:[#allocation113_spill] sm:$0xff]  ;;  %v11578_v25 = vpop.permute.xlu0 %4611  ;;  %v13376_v8 = vld [vmem:[#allocation80_spill] sm:$0xff] }
 0x6d2   : > { %v4722_v6 = vadd.f32 %v4707_v17, %v4680_v60  ;;  %v4791_v34 = vmul.f32 %v11517_v40, %v10398_v11  ;;  %v13373_v47 = vrot.slane %v11203_v52, 4  ;;  %v3026_v44 = vrot.slane %v11160_v57, 7 }
 0x6d3   : > { %v4762_v50 = vadd.f32 %v4747_v14, %v4720_v13  ;;  %v4831_v54 = vmul.f32 %v11546_v31, %v13375_v30  ;;  %v3025_v33 = vsel %vm1800_vm4, %v11147_v18, %v3024_v21  ;;  %v3040_v46 = vrot.slane %v11162_v1, 7  ;;  %v13378_v1 = vld [vmem:[#allocation87_spill] sm:$0xff]  ;;  %v13381_v30 = vld [vmem:[#allocation90_spill] sm:$0xff] }
 0x6d4   : > { %v11573_v27 = vsel %vm1809_vm7, %v13373_v47, %v2790_v9  ;;  %v4764_v15 = vadd.f32 %v4749_v23, %v4722_v6  ;;  %v4833_v17 = vmul.f32 %v11546_v31, %v13376_v8  ;;  %v3039_v9 = vsel %vm1800_vm4, %v11149_v37, %v3038_v20  ;;  %v13379_v23 = vld [vmem:[#allocation108_spill] sm:$0xff] }
 0x6d5   : > { %13374 = vst [vmem:[#allocation128_spill] sm:$0xff] %v11573_v27  ;;  %v3052_v57 = vsel %vm1797_vm3, %v3051_v0, %v3050_v43  ;;  %v4804_v14 = vadd.f32 %v4789_v61, %v4762_v50  ;;  %v4599_v4 = vmul.f32 %v11564_v42, %v11395_v41  ;;  %v4600_v13 = vmul.f32 %v11564_v42, %v11401_v5  ;;  %v13380_v47 = vld [vmem:[#allocation120_spill] sm:$0xff] }
 0x6d6   : > { %v4806_v60 = vadd.f32 %v4791_v34, %v4764_v15  ;;  %v11592_v18 = vpop.permute.xlu1 %4653  ;;  %v4626_v6 = vmul.f32 %v11578_v25, %v13378_v1  ;;  %v4627_v21 = vmul.f32 %v11578_v25, %v13379_v23  ;;  %v3028_v37 = vrot.slane %v11176_v55, 6 }
 0x6d7   : > { %13377 = vst [vmem:[#allocation37_spill] sm:$0xff] %v11592_v18  ;;  %v3054_v0 = vrot.slane %v11166_v59, 7  ;;  %v11600_v61 = vadd.f32 %v4831_v54, %v4804_v14  ;;  %v4601_v20 = vmul.f32 %v11564_v42, %v11409_v19  ;;  %v3027_v43 = vsel %vm1803_vm5, %v3026_v44, %v3025_v33  ;;  %v13382_v59 = vld [vmem:[#allocation93_spill] sm:$0xff]  ;;  %v13384_v33 = vld [vmem:[#allocation28_spill] sm:$0xff] }
 0x6d8   : > { %v3042_v34 = vrot.slane %v11178_v63, 6  ;;  %v3053_v50 = vsel %vm1800_vm4, %v13380_v47, %v3052_v57  ;;  %v11608_v15 = vadd.f32 %v4833_v17, %v4806_v60  ;;  %v3041_v8 = vsel %vm1803_vm5, %v3040_v46, %v3039_v9  ;;  %v13383_v14 = vld [vmem:[#allocation125_spill] sm:$0xff]  ;;  %v13385_v17 = vld [vmem:[#allocation124_spill] sm:$0xff] }
 0x6d9   : > { %v4668_v55 = vmul.f32 %v11592_v18, %v13381_v30  ;;  %v4669_v54 = vmul.f32 %v11592_v18, %v13382_v59  ;;  %v4628_v11 = vmul.f32 %v11578_v25, %v13383_v14  ;;  %v3056_v44 = vrot.slane %v11182_v16, 6 }
 0x6da   : > { %v4670_v63 = vmul.f32 %v11592_v18, %v13384_v33  ;;  %v4641_v28 = vadd.f32 %v4626_v6, %v4599_v4  ;;  %v4642_v57 = vadd.f32 %v4627_v21, %v4600_v13  ;;  %v3030_v60 = vrot.slane %v13385_v17, 5 }
 0x6db   : > { %v3044_v46 = vrot.slane %v11194_v53, 5  ;;  %v3055_v9 = vsel %vm1803_vm5, %v3054_v0, %v3053_v50  ;;  %v11623_v47 = vpop.permute.xlu1 %4695  ;;  %v4643_v51 = vadd.f32 %v4628_v11, %v4601_v20  ;;  %v3029_v36 = vsel %vm1806_vm6, %v3028_v37, %v3027_v43 }
 0x6dc   : > { %13386 = vst [vmem:[#allocation79_spill] sm:$0xff] %v11623_v47  ;;  %v4710_v16 = vmul.f32 %v11623_v47, %v13387_v48  ;;  %v4711_v4 = vmul.f32 %v11623_v47, %v11552_v32  ;;  %v3043_v13 = vsel %vm1806_vm6, %v3042_v34, %v3041_v8  ;;  %v4712_v53 = vmul.f32 %v11623_v47, %v11573_v27 }
 0x6dd   : > { %v4683_v6 = vadd.f32 %v4668_v55, %v4641_v28  ;;  %v4684_v21 = vadd.f32 %v4669_v54, %v4642_v57  ;;  %v3057_v0 = vsel %vm1806_vm6, %v3056_v44, %v3055_v9  ;;  %v4685_v11 = vadd.f32 %v4670_v63, %v4643_v51  ;;  %v13395_v44 = vld [vmem:[#allocation137_spill] sm:$0xff]  ;;  %v13398_v9 = vld [vmem:[#allocation96_spill] sm:$0xff] }
 0x6de   : > { %v11636_v52 = vsel %vm1809_vm7, %v3030_v60, %v3029_v36  ;;  %v11639_v43 = vsel %vm1809_vm7, %v3044_v46, %v3043_v13  ;;  %v11644_v8 = vsel %vm1809_vm7, %v3058_v10, %v3057_v0  ;;  %v4703_v63 = vmul.f32 %v11474_v39, %v13395_v44  ;;  %v13396_v10 = vld [vmem:[#allocation66_spill] sm:$0xff]  ;;  %v13400_v0 = vld [vmem:[#allocation104_spill] sm:$0xff] }
 0x6df   : > { %v4725_v20 = vadd.f32 %v4710_v16, %v4683_v6  ;;  %v4726_v37 = vadd.f32 %v4711_v4, %v4684_v21  ;;  %13388 = vst [vmem:[#allocation69_spill] sm:$0xff] %v11636_v52  ;;  %13389 = vst [vmem:[#allocation71_spill] sm:$0xff] %v11639_v43  ;;  %v4727_v17 = vadd.f32 %v4712_v53, %v4685_v11  ;;  %v13397_v60 = vld [vmem:[#allocation78_spill] sm:$0xff]  ;;  %v13399_v4 = vld [vmem:[#allocation40_spill] sm:$0xff]  ;;  %vm6401_vm0 = vcmask 34818  }
 0x6e0   : > { %v11641_v50 = vpop.permute.xlu1 %4737  ;;  %13391 = vst [vmem:[#allocation136_spill] sm:$0xff] %v11644_v8  ;;  %v4704_v57 = vmul.f32 %v11474_v39, %v13396_v10  ;;  %v4706_v46 = vmul.f32 %v11474_v39, %v13397_v60  ;;  %v4745_v16 = vmul.f32 %v11491_v49, %v13398_v9  ;;  %v4746_v13 = vmul.f32 %v11491_v49, %v13399_v4  ;;  %v13403_v9 = vld [vmem:[#allocation126_spill] sm:$0xff]  ;;  %v13407_v60 = vld [vmem:[#allocation36_spill] sm:$0xff]  ;;  %v13418_v10 = vld [vmem:[#allocation89_spill] sm:$0xff] }
 0x6e1   : > { %13390 = vst [vmem:[#allocation67_spill] sm:$0xff] %v11641_v50  ;;  %v4752_v28 = vmul.f32 %v11641_v50, %v11636_v52  ;;  %v4753_v51 = vmul.f32 %v11641_v50, %v11639_v43  ;;  %v4754_v34 = vmul.f32 %v11641_v50, %v11644_v8  ;;  %v4718_v53 = vadd.f32 %v4703_v63, %v11540_v12  ;;  %v13404_v12 = vld [vmem:[#allocation102_spill] sm:$0xff]  ;;  %v13405_v63 = vld [vmem:[#allocation115_spill] sm:$0xff]  ;;  %v687_v8 = vld [vmem:[#allocation7 + $0x78] sm:$0xff] }
 0x6e2   : > { %v4719_v6 = vadd.f32 %v4704_v57, %v11542_v29  ;;  %v4721_v21 = vadd.f32 %v4706_v46, %v11544_v56  ;;  %v4748_v11 = vmul.f32 %v11491_v49, %v13400_v0  ;;  %v4790_v4 = vmul.f32 %v11517_v40, %v13403_v9  ;;  %v13406_v0 = vld [vmem:[#allocation35_spill] sm:$0xff] }
 0x6e3   : > { %v11652_v36 = vadd.f32 %v4752_v28, %v4725_v20  ;;  %v11654_v55 = vadd.f32 %v4753_v51, %v4726_v37  ;;  %v11656_v54 = vadd.f32 %v4754_v34, %v4727_v17  ;;  %v13401_v20 = vld [vmem:[#allocation122_spill] sm:$0xff]  ;;  %v13402_v17 = vld [vmem:[#allocation123_spill] sm:$0xff]  ;;  %v4760_v28 = vadd.f32 %v4745_v16, %v4718_v53 }
 0x6e4   : > { %v4787_v37 = vmul.f32 %v11517_v40, %v13401_v20  ;;  %v4788_v39 = vmul.f32 %v11517_v40, %v13402_v17  ;;  %v4761_v51 = vadd.f32 %v4746_v13, %v4719_v6  ;;  %v4763_v34 = vadd.f32 %v4748_v11, %v4721_v21  ;;  %v13408_v17 = vld [vmem:[#allocation27_spill] sm:$0xff]  ;;  %v13409_v13 = vld [vmem:[#allocation34_spill] sm:$0xff] }
 0x6e5   : > { %13392 = vst [vmem:[#allocation134_spill] sm:$0xff] %v11652_v36  ;;  %13393 = vst [vmem:[#allocation29_spill] sm:$0xff] %v11654_v55  ;;  %v4829_v29 = vmul.f32 %v11546_v31, %v13404_v12  ;;  %v4830_v56 = vmul.f32 %v11546_v31, %v13405_v63  ;;  %v4832_v20 = vmul.f32 %v11546_v31, %v13406_v0  ;;  %v13410_v6 = vld [vmem:[#allocation130_spill] sm:$0xff]  ;;  %v13412_v12 = vld [vmem:[#allocation135_spill] sm:$0xff] }
 0x6e6   : > { %13394 = vst [vmem:[#allocation31_spill] sm:$0xff] %v11656_v54  ;;  %v4802_v57 = vadd.f32 %v4787_v37, %v4760_v28  ;;  %v4803_v49 = vadd.f32 %v4788_v39, %v4761_v51  ;;  %v4805_v46 = vadd.f32 %v4790_v4, %v4763_v34  ;;  %v4782_v16 = vmul.f32 %v13408_v17, %v13407_v60  ;;  %v13411_v21 = vld [vmem:[#allocation30_spill] sm:$0xff]  ;;  %v13414_v4 = vld [vmem:[#allocation25_spill] sm:$0xff]  ;;  %v13415_v51 = vld [vmem:[#allocation72_spill] sm:$0xff] }
 0x6e7   : > { %v4783_v53 = vmul.f32 %v13408_v17, %v13409_v13  ;;  %v4784_v40 = vmul.f32 %v13408_v17, %v13410_v6  ;;  %v4785_v11 = vmul.f32 %v13408_v17, %v13411_v21  ;;  %v4786_v37 = vmul.f32 %v13408_v17, %v13412_v12  ;;  %v13413_v39 = vld [vmem:[#allocation74_spill] sm:$0xff]  ;;  %v13416_v34 = vld [vmem:[#allocation75_spill] sm:$0xff] }
 0x6e8   : > { %v4824_v28 = vmul.f32 %v13414_v4, %v13413_v39  ;;  %v4825_v31 = vmul.f32 %v13414_v4, %v13415_v51  ;;  %v4826_v0 = vmul.f32 %v13414_v4, %v13416_v34  ;;  %v13417_v63 = vld [vmem:[#allocation83_spill] sm:$0xff]  ;;  %v4828_v44 = vmul.f32 %v13414_v4, %v13418_v10  ;;  %v11810_v10 = vld [vmem:[#allocation6 + $0x3a0] sm:$0x7f] }
 0x6e9   : > { %v4827_v9 = vmul.f32 %v13414_v4, %v13417_v63  ;;  %v4844_v7 = vadd.f32 %v4829_v29, %v4802_v57  ;;  %v4845_v24 = vadd.f32 %v4830_v56, %v4803_v49  ;;  %v4847_v35 = vadd.f32 %v4832_v20, %v4805_v46  ;;  %v6776_v4 = vpop.f32.mrf.mxu0  ;;  %13438 = vst [vmem:[#allocation139_spill] sm:$0xff] %v11810_v10 }
 0x6ea   : > { %v4797_v17 = vadd.f32 %v4782_v16, %v11496_v45  ;;  %v4798_v39 = vadd.f32 %v4783_v53, %v11498_v38  ;;  %v4799_v62 = vadd.f32 %v4784_v40, %v11502_v58  ;;  %v4800_v51 = vadd.f32 %v4785_v11, %v11504_v26 }
 0x6eb   : > { %v4801_v34 = vadd.f32 %v4786_v37, %v11506_v22  ;;  %v6778_v26 = vpop.f32.mrf.mxu0  ;;  %v13425_v53 = vmov 4   ;;  %v13427_v37 = vmov 5  }
 0x6ec   : > { %v4839_v21 = vadd.f32 %v4824_v28, %v4797_v17  ;;  %v4840_v6 = vadd.f32 %v4825_v31, %v4798_v39  ;;  %v4841_v63 = vadd.f32 %v4826_v0, %v4799_v62  ;;  %v4842_v13 = vadd.f32 %v4827_v9, %v4800_v51 }
 0x6ed   : > { %v4843_v12 = vadd.f32 %v4828_v44, %v4801_v34  ;;  %v6779_v22 = vpop.f32.mrf.mxu0  ;;  %v13428_v51 = vmov 6   ;;  %v13429_v31 = vmov 3   ;;  %v13430_v34 = vmov 0  }
 0x6ee   : > { %v11710_v29 = vadd.f32 %v4844_v7, %v4839_v21  ;;  %v11712_v20 = vadd.f32 %v4845_v24, %v4840_v6  ;;  %v11715_v45 = vadd.f32 %v11600_v61, %v4841_v63  ;;  %v11717_v38 = vadd.f32 %v4847_v35, %v4842_v13 }
 0x6ef   : > { %v11720_v58 = vadd.f32 %v11608_v15, %v4843_v12  ;;  %v6781_v56 = vpop.f32.mrf.mxu0  ;;  %v6777_v24 = vadd.f32 %v6776_v4, %v6775_v2  ;;  %v13424_v13 = vmov 1   ;;  %v6780_v40 = vadd.f32 %v6779_v22, %v6778_v26  ;;  %v11732_v26 = vld [vmem:[#allocation6 + $0x280] sm:$0x7f] }
 0x6f0   : > { %13419 = vst [vmem:[#allocation133_spill] sm:$0xff] %v11710_v29  ;;  %13420 = vst [vmem:[#allocation127_spill] sm:$0xff] %v11712_v20  ;;  %v13426_v2 = vmov 2  }
 0x6f1   : > { %13421 = vst [vmem:[#allocation119_spill] sm:$0xff] %v11715_v45  ;;  %13422 = vst [vmem:[#allocation110_spill] sm:$0xff] %v11717_v38  ;;  %v6782_v57 = vpop.f32.mrf.mxu0  ;;  %v11796_v38 = vld [vmem:[#allocation6 + $0x398] sm:$0x7f] }
 0x6f2   : > { %13423 = vst [vmem:[#allocation101_spill] sm:$0xff] %v11720_v58  ;;  %v6783_v17 = vadd.f32 %v6782_v57, %v6781_v56  ;;  %v11744_v56 = vld [vmem:[#allocation6 + $0x2a8] sm:$0x7f]  ;;  %v11746_v57 = vld [vmem:[#allocation6 + $0x2d8] sm:$0x7f]  ;;  %v1949_v50 = vrot.slane %v11796_v38, 1 }
 0x6f3   : > { %13431 = vst [vmem:[#allocation120_spill] sm:$0xff] %v11746_v57  ;;  %v2457_v29 = vrot.slane %v11744_v56, 1 }
 0x736   : > { %v6816_v62 = vpop.f32.mrf.mxu0 }
 0x738   : > { %v6817_v9 = vpop.f32.mrf.mxu0 }
 0x739   : > { %v6818_v49 = vadd.f32 %v6817_v9, %v6816_v62  ;;  %v11736_v9 = vld [vmem:[#allocation6 + $0x288] sm:$0x7f] }
 0x73a   : > { %v6819_v44 = vpop.f32.mrf.mxu0 }
 0x73b   : > { %v5694_v16 = vadd.f32 %v6818_v49, %v6777_v24  ;;  %v2203_v24 = vrot.slane %v11736_v9, 1 }
 0x73c   : > { %v6820_v0 = vpop.f32.mrf.mxu0 }
 0x73d   : > { %v6821_v21 = vadd.f32 %v6820_v0, %v6819_v44  ;;  %v11738_v44 = vld [vmem:[#allocation6 + $0x2d0] sm:$0x7f]  ;;  %v2189_v0 = vrot.slane %v11732_v26, 1 }
 0x73e   : > { %v6822_v7 = vpop.f32.mrf.mxu0  ;;  %v2191_v49 = vrot.slane %v11738_v44, 7 }
 0x73f   : > { %v5699_v39 = vadd.f32 %v6821_v21, %v6780_v40  ;;  %v1937_v21 = vrot.slane %v11744_v56, 7 }
 0x740   : > { %v6823_v46 = vpop.f32.mrf.mxu0 }
 0x741   : > { %v6824_v4 = vadd.f32 %v6823_v46, %v6822_v7  ;;  %v11748_v7 = vld [vmem:[#allocation6 + $0x2f8] sm:$0x7f]  ;;  %v2190_v46 = vsel %vm1791_vm1, %v11744_v56, %v2189_v0  ;;  %v1939_v0 = vrot.slane %v11738_v44, 6 }
 0x743   : > { %v5704_v22 = vadd.f32 %v6824_v4, %v6783_v17 }
 0x77d   : > { %v5773_v61 = vpop.f32.mrf.mxu0 }
 0x77e   : > { %v5774_v63 = vadd.f32 %v5773_v61, %v5694_v16  ;;  %v11754_v16 = vld [vmem:[#allocation6 + $0x2b0] sm:$0x7f]  ;;  %v11758_v61 = vld [vmem:[#allocation6 + $0x300] sm:$0x7f] }
 0x77f   : > { %v5775_v35 = vpop.f32.mrf.mxu0  ;;  %13432 = vst [vmem:[#allocation124_spill] sm:$0xff] %v11758_v61  ;;  %v2204_v40 = vsel %vm1791_vm1, %v11754_v16, %v2203_v24  ;;  %v2207_v17 = vrot.slane %v11758_v61, 6  ;;  %v2471_v60 = vrot.slane %v11754_v16, 1 }
 0x780   : > { %5789 = vperm.xlu1 %7190, %v5774_v63   ;;  %5902 = vperm.xlu0 %7193, %v5774_v63   ;;  %v2193_v35 = vrot.slane %v11748_v7, 6 }
 0x781   : > { %v5778_v15 = vpop.f32.mrf.mxu0 }
 0x782   : > { %v5779_v28 = vadd.f32 %v5778_v15, %v5699_v39  ;;  %v2205_v15 = vrot.slane %v11746_v57, 7  ;;  %v11771_v39 = vld [vmem:[#allocation6 + $0x348] sm:$0x7f] }
 0x783   : > { %v5780_v12 = vpop.f32.mrf.mxu0  ;;  %v2197_v24 = vrot.slane %v11771_v39, 4 }
 0x784   : > { %7191 = vset.pattern.permute.xlu1 %v13424_v13  ;;  %7194 = vset.pattern.permute.xlu0 %v13425_v53  ;;  %v13433_v12 = vld [vmem:[#allocation41_spill] sm:$0xff] }
 0x785   : > { %v5783_v6 = vpop.f32.mrf.mxu0  ;;  %5818 = vperm.xlu1 %7191, %v5774_v63   ;;  %5944 = vperm.xlu0 %7194, %v5774_v63   ;;  %13436 = vst [vmem:[#allocation41_spill] sm:$0xff] %v11796_v38 }
 0x786   : > { %v11734_v62 = vadd.f32 %v5783_v6, %v5704_v22  ;;  %v2192_v6 = vsel %vm1794_vm2, %v2191_v49, %v2190_v46  ;;  %v1951_v22 = vrot.slane %v11754_v16, 7  ;;  %v11782_v49 = vld [vmem:[#allocation6 + $0x370] sm:$0x7f] }
 0x787   : > { %v5785_v11 = vpop.f32.mrf.mxu0  ;;  %v2194_v4 = vsel %vm1797_vm3, %v2193_v35, %v2192_v6  ;;  %13435 = vst [vmem:[#allocation25_spill] sm:$0xff] %v11782_v49  ;;  %v1938_v35 = vsel %vm1791_vm1, %v1937_v21, %v11732_v26  ;;  %v1953_v6 = vrot.slane %v11746_v57, 6  ;;  %v2199_v45 = vrot.slane %v11782_v49, 3 }
 0x788   : > { %v11769_v11 = vld [vmem:[#allocation6 + $0x328] sm:$0x7f]  ;;  %v1952_v58 = vsel %vm1791_vm1, %v1951_v22, %v11736_v9  ;;  %v1940_v20 = vsel %vm1794_vm2, %v1939_v0, %v1938_v35  ;;  %v2456_v21 = vrot.slane %v11732_v26, 2  ;;  %v1955_v22 = vrot.slane %v11758_v61, 5 }
 0x789   : > { %7192 = vset.pattern.permute.xlu1 %v13426_v2  ;;  %7195 = vset.pattern.permute.xlu0 %v13427_v37  ;;  %13434 = vst [vmem:[#allocation27_spill] sm:$0xff] %v11769_v11  ;;  %v2209_v46 = vrot.slane %v11769_v11, 5  ;;  %v1954_v35 = vsel %vm1794_vm2, %v1953_v6, %v1952_v58  ;;  %v1957_v3 = vrot.slane %v11769_v11, 4  ;;  %v2215_v58 = vrot.slane %v11810_v10, 2 }
 0x78a   : > { %5860 = vperm.xlu1 %7192, %v5774_v63   ;;  %5986 = vperm.xlu0 %7195, %v5774_v63   ;;  %v2458_v54 = vsel %vm1791_vm1, %v2457_v29, %v2456_v21  ;;  %v1945_v6 = vrot.slane %v11771_v39, 3  ;;  %v1956_v36 = vsel %vm1797_vm3, %v1955_v22, %v1954_v35  ;;  %v2474_v22 = vrot.slane %v11758_v61, 7 }
 0x78b   : > { %v2459_v21 = vsel %vm1794_vm2, %v11738_v44, %v2458_v54  ;;  %v2738_v35 = vrot.slane %v11754_v16, 2 }
 0x78e   : > { %7198 = vset.pattern.permute.xlu1 %v13424_v13  ;;  %7196 = vset.pattern.permute.xlu0 %v13428_v51 }
 0x78f   : > { %5822 = vperm.xlu1 %7198, %v5779_v28   ;;  %6028 = vperm.xlu0 %7196, %v5774_v63   ;;  %v11760_v63 = vld [vmem:[#allocation6 + $0x320] sm:$0x7f] }
 0x790   : > { %v1943_v0 = vrot.slane %v11760_v63, 4 }
 0x793   : > { %7200 = vset.pattern.permute.xlu1 %v13429_v31  ;;  %7197 = vset.pattern.permute.xlu0 %v13430_v34 }
 0x794   : > { %5906 = vperm.xlu1 %7200, %v5779_v28   ;;  %5794 = vperm.xlu0 %7197, %v5779_v28  }
 0x798   : > { %7201 = vset.pattern.permute.xlu1 %v13425_v53  ;;  %7199 = vset.pattern.permute.xlu0 %v13426_v2 }
 0x799   : > { %5948 = vperm.xlu1 %7201, %v5779_v28   ;;  %5864 = vperm.xlu0 %7199, %v5779_v28  }
 0x79d   : > { %7202 = vset.pattern.permute.xlu1 %v13427_v37  ;;  %7204 = vset.pattern.permute.xlu0 %v13430_v34  ;;  %v2195_v34 = vrot.slane %v11760_v63, 5 }
 0x79e   : > { %5990 = vperm.xlu1 %7202, %v5779_v28   ;;  %5799 = vperm.xlu0 %7204, %v11734_v62  }
 0x7a2   : > { %7203 = vset.pattern.permute.xlu1 %v13428_v51  ;;  %7205 = vset.pattern.permute.xlu0 %v13428_v51 }
 0x7a3   : > { %6032 = vperm.xlu1 %7203, %v5779_v28   ;;  %3381 = vperm.xlu0 %7205, %v13433_v12   ;;  %v2206_v28 = vsel %vm1794_vm2, %v2205_v15, %v2204_v40  ;;  %v11788_v15 = vld [vmem:[#allocation6 + $0x350] sm:$0x7f]  ;;  %v2196_v12 = vsel %vm1800_vm4, %v2195_v34, %v2194_v4  ;;  %v1941_v40 = vrot.slane %v11748_v7, 5  ;;  %v11803_v34 = vld [vmem:[#allocation6 + $0x378] sm:$0x7f] }
 0x7a4   : > { %13437 = vst [vmem:[#allocation138_spill] sm:$0xff] %v11803_v34  ;;  %v1959_v29 = vrot.slane %v11788_v15, 3  ;;  %v1961_v47 = vrot.slane %v11803_v34, 2 }
 0x7a7   : > { %7206 = vset.pattern.permute.xlu1 %v13424_v13  ;;  %6036 = vperm.xlu0 %7205, %v11734_v62   ;;  %v2208_v13 = vsel %vm1797_vm3, %v2207_v17, %v2206_v28  ;;  %v2198_v17 = vsel %vm1803_vm5, %v2197_v24, %v2196_v12  ;;  %v2211_v28 = vrot.slane %v11788_v15, 4  ;;  %v2201_v24 = vrot.slane %v11796_v38, 2 }
 0x7a8   : > { %5826 = vperm.xlu1 %7206, %v11734_v62   ;;  %v2210_v4 = vsel %vm1800_vm4, %v2209_v46, %v2208_v13  ;;  %v1942_v46 = vsel %vm1797_vm3, %v1941_v40, %v1940_v20  ;;  %v2200_v12 = vsel %vm1806_vm6, %v2199_v45, %v2198_v17  ;;  %v2213_v13 = vrot.slane %v11803_v34, 3 }
 0x7a9   : > { %v2212_v55 = vsel %vm1803_vm5, %v2211_v28, %v2210_v4  ;;  %v1944_v20 = vsel %vm1800_vm4, %v1943_v0, %v1942_v46  ;;  %v1947_v45 = vrot.slane %v11782_v49, 2  ;;  %v2460_v40 = vrot.slane %v11748_v7, 7 }
 0x7aa   : > { %v2723_v4 = vrot.slane %v11732_v26, 3  ;;  %v2724_v28 = vrot.slane %v11744_v56, 2  ;;  %v2737_v0 = vrot.slane %v11736_v9, 3  ;;  %v2462_v46 = vrot.slane %v11760_v63, 6 }
 0x7ac   : > { %7207 = vset.pattern.permute.xlu1 %v13426_v2  ;;  %v2470_v2 = vrot.slane %v11736_v9, 2 }
 0x7ad   : > { %5868 = vperm.xlu1 %7207, %v11734_v62  }
 0x7ae   : > { %v2472_v17 = vsel %vm1791_vm1, %v2471_v60, %v2470_v2  ;;  %v2214_v60 = vsel %vm1806_vm6, %v2213_v13, %v2212_v55  ;;  %v1946_v2 = vsel %vm1803_vm5, %v1945_v6, %v1944_v20  ;;  %v2476_v55 = vrot.slane %v11769_v11, 6 }
 0x7af   : > { %v2473_v54 = vsel %vm1794_vm2, %v11746_v57, %v2472_v17  ;;  %v2725_v13 = vsel %vm1791_vm1, %v2724_v28, %v2723_v4  ;;  %v2740_v6 = vrot.slane %v11746_v57, 1  ;;  %v1948_v20 = vsel %vm1806_vm6, %v1947_v45, %v1946_v2 }
 0x7b0   : > { %v2464_v17 = vrot.slane %v11771_v39, 5  ;;  %v1963_v4 = vrot.slane %v11810_v10, 1  ;;  %v2478_v2 = vrot.slane %v11788_v15, 5 }
 0x7b1   : > { %7208 = vset.pattern.permute.xlu1 %v13429_v31  ;;  %v1958_v31 = vsel %vm1800_vm4, %v1957_v3, %v1956_v36  ;;  %v2461_v3 = vsel %vm1797_vm3, %v2460_v40, %v2459_v21  ;;  %v2726_v36 = vrot.slane %v11738_v44, 1  ;;  %v2475_v40 = vsel %vm1797_vm3, %v2474_v22, %v2473_v54 }
 0x7b2   : > { %5910 = vperm.xlu1 %7208, %v11734_v62   ;;  %v1960_v18 = vsel %vm1803_vm5, %v1959_v29, %v1958_v31  ;;  %v2739_v21 = vsel %vm1791_vm1, %v2738_v35, %v2737_v0  ;;  %v11864_v29 = vsel %vm1809_vm7, %v2215_v58, %v2214_v60  ;;  %v2463_v28 = vsel %vm1800_vm4, %v2462_v46, %v2461_v3  ;;  %v703_v31 = vld [vmem:[#allocation7 + $0xf8] sm:$0xff]  ;;  %v13440_v35 = vld [vmem:[#allocation117_spill] sm:$0xff] }
 0x7b3   : > { %v1962_v45 = vsel %vm1806_vm6, %v1961_v47, %v1960_v18  ;;  %v2727_v22 = vsel %vm1794_vm2, %v2726_v36, %v2725_v13  ;;  %6825 = vmatprep.subr.mxu0 %v703_v31  ;;  %v11872_v0 = vsel %vm1809_vm7, %v1949_v50, %v1948_v20  ;;  %v2741_v58 = vsel %vm1794_vm2, %v2740_v6, %v2739_v21  ;;  %v13441_v3 = vld [vmem:[#allocation92_spill] sm:$0xff] }
 0x7b4   : > { %6826 = vmatpush3.msra.mxu0 %v687_v8  ;;  %v2285_v47 = vmul.f32 %v11864_v29, %v13440_v35  ;;  %v2465_v60 = vsel %vm1803_vm5, %v2464_v17, %v2463_v28  ;;  %v2729_v50 = vrot.slane %v11760_v63, 7  ;;  %v11886_v46 = vsel %vm1809_vm7, %v1963_v4, %v1962_v45 }
 0x7b5   : > { %v2480_v54 = vrot.slane %v11803_v34, 4  ;;  %v2728_v8 = vsel %vm1797_vm3, %v11748_v7, %v2727_v22  ;;  %v2032_v36 = vmul.f32 %v11872_v0, %v13441_v3  ;;  %v2286_v6 = vmul.f32 %v13378_v1, %v13440_v35  ;;  %v701_v1 = vld [vmem:[#allocation7 + $0xe8] sm:$0xff] }
 0x7b6   : > { %7209 = vset.pattern.permute.xlu1 %v13425_v53  ;;  %v11861_v53 = vsel %vm1809_vm7, %v2201_v24, %v2200_v12  ;;  %v2466_v24 = vrot.slane %v11782_v49, 4  ;;  %v2477_v12 = vsel %vm1800_vm4, %v2476_v55, %v2475_v40  ;;  %v2468_v55 = vrot.slane %v11796_v38, 3 }
 0x7b7   : > { %5952 = vperm.xlu1 %7209, %v11734_v62   ;;  %13439 = vst [vmem:[#allocation140_spill] sm:$0xff] %v11861_v53  ;;  %v2284_v18 = vmul.f32 %v11861_v53, %v13440_v35  ;;  %v2479_v13 = vsel %vm1803_vm5, %v2478_v2, %v2477_v12  ;;  %v2287_v20 = vmul.f32 %v13379_v23, %v13440_v35  ;;  %v2731_v40 = vrot.slane %v11771_v39, 6  ;;  %v13442_v12 = vld [vmem:[#allocation103_spill] sm:$0xff] }
 0x7b8   : > { %v2467_v17 = vsel %vm1806_vm6, %v2466_v24, %v2465_v60  ;;  %v2288_v21 = vmul.f32 %v13383_v14, %v13440_v35  ;;  %v2482_v4 = vrot.slane %v11810_v10, 3  ;;  %v2730_v28 = vsel %vm1800_vm4, %v2729_v50, %v2728_v8 }
 0x7b9   : > { %v2745_v31 = vrot.slane %v11788_v15, 6  ;;  %v2033_v45 = vmul.f32 %v11886_v46, %v13441_v3  ;;  %v2034_v2 = vmul.f32 %v11395_v41, %v13441_v3  ;;  %v2481_v22 = vsel %vm1806_vm6, %v2480_v54, %v2479_v13  ;;  %v700_v41 = vld [vmem:[#allocation7 + $0xe0] sm:$0xff] }
 0x7ba   : > { %v2299_v35 = vadd.f32 %v2284_v18, %v2032_v36  ;;  %v11920_v60 = vsel %vm1809_vm7, %v2468_v55, %v2467_v17  ;;  %v2732_v50 = vsel %vm1803_vm5, %v2731_v40, %v2730_v28  ;;  %v2747_v8 = vrot.slane %v11803_v34, 5  ;;  %v13443_v28 = vld [vmem:[#allocation94_spill] sm:$0xff] }
 0x7bb   : > { %7210 = vset.pattern.permute.xlu1 %v13427_v37  ;;  %v2743_v37 = vrot.slane %v11769_v11, 7  ;;  %v2990_v14 = vrot.slane %v11732_v26, 4  ;;  %v2991_v54 = vrot.slane %v11744_v56, 3  ;;  %v3004_v18 = vrot.slane %v11736_v9, 4 }
 0x7bc   : > { %5994 = vperm.xlu1 %7210, %v11734_v62   ;;  %v2742_v62 = vsel %vm1797_vm3, %v11758_v61, %v2741_v58  ;;  %v2035_v58 = vmul.f32 %v11401_v5, %v13441_v3  ;;  %v3005_v36 = vrot.slane %v11754_v16, 3  ;;  %v2036_v55 = vmul.f32 %v11409_v19, %v13441_v3 }
 0x7bd   : > { %v2744_v24 = vsel %vm1800_vm4, %v2743_v37, %v2742_v62  ;;  %v11928_v37 = vsel %vm1809_vm7, %v2482_v4, %v2481_v22  ;;  %v2300_v62 = vadd.f32 %v2285_v47, %v2033_v45  ;;  %v2301_v17 = vadd.f32 %v2286_v6, %v2034_v2  ;;  %v702_v22 = vld [vmem:[#allocation7 + $0xf0] sm:$0xff]  ;;  %v685_v45 = vld [vmem:[#allocation7 + $0x68] sm:$0xff] }
 0x7be   : > { %v2746_v13 = vsel %vm1803_vm5, %v2745_v31, %v2744_v24  ;;  %v2735_v40 = vrot.slane %v11796_v38, 4  ;;  %v2749_v4 = vrot.slane %v11810_v10, 4  ;;  %v2993_v31 = vrot.slane %v11738_v44, 2  ;;  %v686_v24 = vld [vmem:[#allocation7 + $0x70] sm:$0xff]  ;;  %6827 = vmatprep.subr.mxu0 %v702_v22 }
 0x7bf   : > { %v2552_v5 = vmul.f32 %v11928_v37, %v13443_v28  ;;  %v2748_v47 = vsel %vm1806_vm6, %v2747_v8, %v2746_v13  ;;  %v2992_v3 = vsel %vm1791_vm1, %v2991_v54, %v2990_v14  ;;  %v3007_v6 = vrot.slane %v11746_v57, 2  ;;  %6828 = vmatpush3.msra.mxu0 %v686_v24 }
 0x7c0   : > { %7211 = vset.pattern.permute.xlu1 %v13428_v51  ;;  %v2733_v51 = vrot.slane %v11782_v49, 5  ;;  %v2553_v2 = vmul.f32 %v13381_v30, %v13443_v28  ;;  %v3006_v19 = vsel %vm1791_vm1, %v3005_v36, %v3004_v18  ;;  %v2302_v8 = vadd.f32 %v2287_v20, %v2035_v58  ;;  %6829 = vmatprep.subr.mxu0 %v701_v1  ;;  %v13446_v1 = vld [vmem:[#allocation107_spill] sm:$0xff] }
 0x7c1   : > { %4821 = vperm.xlu1 %7211, %v13442_v12   ;;  %v2551_v12 = vmul.f32 %v11920_v60, %v13443_v28  ;;  %v2303_v13 = vadd.f32 %v2288_v21, %v2036_v55  ;;  %v2995_v54 = vrot.slane %v11748_v7, 1  ;;  %v11958_v30 = vsel %vm1809_vm7, %v2749_v4, %v2748_v47  ;;  %6830 = vmatpush3.msra.mxu0 %v685_v45  ;;  %v11997_v45 = vld [vmem:[#allocation6 + $0x2b8] sm:$0x7f] }
 0x7c2   : > { %v2734_v23 = vsel %vm1806_vm6, %v2733_v51, %v2732_v50  ;;  %v2554_v51 = vmul.f32 %v13382_v59, %v13443_v28  ;;  %v2555_v50 = vmul.f32 %v13384_v33, %v13443_v28  ;;  %13445 = vst [vmem:[#allocation92_spill] sm:$0xff] %v11958_v30  ;;  %v2994_v59 = vsel %vm1794_vm2, %v2993_v31, %v2992_v3  ;;  %v11994_v3 = vld [vmem:[#allocation6 + $0x290] sm:$0x7f] }
 0x7c3   : > { %v11954_v14 = vsel %vm1809_vm7, %v2735_v40, %v2734_v23  ;;  %v2566_v22 = vadd.f32 %v2551_v12, %v2299_v35  ;;  %v3009_v28 = vrot.slane %v11758_v61, 1  ;;  %v2567_v18 = vadd.f32 %v2552_v5, %v2300_v62  ;;  %6831 = vmatprep.subr.mxu0 %v700_v41  ;;  %13447 = vst [vmem:[#allocation103_spill] sm:$0xff] %v11997_v45 }
 0x7c4   : > { %13444 = vst [vmem:[#allocation117_spill] sm:$0xff] %v11954_v14  ;;  %v3008_v36 = vsel %vm1794_vm2, %v3007_v6, %v3006_v19  ;;  %v11963_v20 = vadd.f32 %v2553_v2, %v2301_v17  ;;  %v11965_v23 = vadd.f32 %v2554_v51, %v2302_v8  ;;  %v11967_v21 = vadd.f32 %v2555_v50, %v2303_v13  ;;  %v12003_v8 = vld [vmem:[#allocation6 + $0x298] sm:$0x7f] }
 0x7c5   : > { %v2818_v58 = vmul.f32 %v11954_v14, %v13446_v1  ;;  %v2819_v35 = vmul.f32 %v11958_v30, %v13446_v1  ;;  %v2996_v55 = vsel %vm1797_vm3, %v2995_v54, %v2994_v59  ;;  %v3257_v40 = vrot.slane %v11732_v26, 5  ;;  %13448 = vst [vmem:[#allocation94_spill] sm:$0xff] %v12003_v8  ;;  %v12006_v54 = vld [vmem:[#allocation6 + $0x2c0] sm:$0x7f] }
 0x7c6   : > { %v3258_v5 = vrot.slane %v11744_v56, 4  ;;  %v11978_v41 = vmul.f32 %v13387_v48, %v13446_v1  ;;  %v11982_v19 = vmul.f32 %v11552_v32, %v13446_v1  ;;  %v3010_v17 = vsel %vm1797_vm3, %v3009_v28, %v3008_v36  ;;  %13449 = vst [vmem:[#allocation107_spill] sm:$0xff] %v12006_v54  ;;  %v684_v28 = vld [vmem:[#allocation7 + $0x60] sm:$0xff]  ;;  %v699_v36 = vld [vmem:[#allocation7 + $0xd8] sm:$0xff] }
 0x7c7   : > { %v11984_v62 = vadd.f32 %v2818_v58, %v2566_v22  ;;  %v2998_v12 = vrot.slane %v11771_v39, 7  ;;  %v3012_v59 = vrot.slane %v11788_v15, 7  ;;  %v3271_v4 = vrot.slane %v11736_v9, 5  ;;  %v683_v58 = vld [vmem:[#allocation7 + $0x58] sm:$0xff]  ;;  %6832 = vmatpush3.msra.mxu0 %v684_v28  ;;  %v12023_v28 = vld [vmem:[#allocation6 + $0x2e8] sm:$0x7f] }
 0x7c8   : > { %v3272_v31 = vrot.slane %v11754_v16, 4  ;;  %v2997_v24 = vsel %vm1800_vm4, %v11760_v63, %v2996_v55  ;;  %v3260_v47 = vrot.slane %v11738_v44, 3  ;;  %v3285_v6 = vrot.slane %v11994_v3, 5  ;;  %6833 = vmatprep.subr.mxu0 %v699_v36  ;;  %13451 = vst [vmem:[#allocation142_spill] sm:$0xff] %v12023_v28 }
 0x7c9   : > { %v3286_v2 = vrot.slane %v11997_v45, 4  ;;  %v3011_v51 = vsel %vm1800_vm4, %v11769_v11, %v3010_v17  ;;  %v3259_v50 = vsel %vm1791_vm1, %v3258_v5, %v3257_v40  ;;  %v3299_v13 = vrot.slane %v12003_v8, 5  ;;  %v698_v40 = vld [vmem:[#allocation7 + $0xd0] sm:$0xff]  ;;  %6834 = vmatpush3.msra.mxu0 %v683_v58  ;;  %v696_v58 = vld [vmem:[#allocation7 + $0xc0] sm:$0xff] }
 0x7ca   : > { %v3300_v22 = vrot.slane %v12006_v54, 4  ;;  %v12009_v55 = vadd.f32 %v2819_v35, %v2567_v18  ;;  %v3000_v32 = vrot.slane %v11782_v49, 6  ;;  %v3014_v48 = vrot.slane %v11803_v34, 6  ;;  %v12017_v54 = vld [vmem:[#allocation6 + $0x2e0] sm:$0x7f]  ;;  %v682_v18 = vld [vmem:[#allocation7 + $0x50] sm:$0xff]  ;;  %6835 = vmatprep.subr.mxu0 %v698_v40 }
 0x7cb   : > { %v3274_v17 = vrot.slane %v11746_v57, 3  ;;  %v2999_v5 = vsel %vm1803_vm5, %v2998_v12, %v2997_v24  ;;  %v3262_v33 = vrot.slane %v11748_v7, 2  ;;  %v3273_v8 = vsel %vm1791_vm1, %v3272_v31, %v3271_v4  ;;  %13450 = vst [vmem:[#allocation141_spill] sm:$0xff] %v12017_v54  ;;  %v697_v24 = vld [vmem:[#allocation7 + $0xc8] sm:$0xff]  ;;  %6836 = vmatpush3.msra.mxu0 %v682_v18  ;;  %v680_v40 = vld [vmem:[#allocation7 + $0x40] sm:$0xff] }
 0x7cc   : > { %v3288_v30 = vrot.slane %v12017_v54, 3  ;;  %v3013_v35 = vsel %vm1803_vm5, %v3012_v59, %v3011_v51  ;;  %v3261_v45 = vsel %vm1794_vm2, %v3260_v47, %v3259_v50  ;;  %v3287_v57 = vsel %vm1791_vm1, %v3286_v2, %v3285_v6  ;;  %v681_v59 = vld [vmem:[#allocation7 + $0x48] sm:$0xff]  ;;  %6837 = vmatprep.subr.mxu0 %v697_v24  ;;  %v679_v24 = vld [vmem:[#allocation7 + $0x38] sm:$0xff] }
 0x7cd   : > { %v3302_v12 = vrot.slane %v12023_v28, 3  ;;  %v3002_v4 = vrot.slane %v11796_v38, 5  ;;  %v3016_v31 = vrot.slane %v11810_v10, 5  ;;  %v3276_v54 = vrot.slane %v11758_v61, 2  ;;  %v12033_v51 = vld [vmem:[#allocation6 + $0x308] sm:$0x7f]  ;;  %6838 = vmatpush3.msra.mxu0 %v681_v59 }
 0x7ce   : > { %v3301_v36 = vsel %vm1791_vm1, %v3300_v22, %v3299_v13  ;;  %v3001_v47 = vsel %vm1806_vm6, %v3000_v32, %v2999_v5  ;;  %v3264_v6 = vrot.slane %v11760_v63, 1  ;;  %v3275_v2 = vsel %vm1794_vm2, %v3274_v17, %v3273_v8  ;;  %13452 = vst [vmem:[#allocation143_spill] sm:$0xff] %v12033_v51  ;;  %v12039_v22 = vld [vmem:[#allocation6 + $0x310] sm:$0x7f]  ;;  %v12044_v5 = vld [vmem:[#allocation6 + $0x2a0] sm:$0x7f]  ;;  %6839 = vmatprep.subr.mxu0 %v696_v58 }
 0x7cf   : > { %v3290_v50 = vrot.slane %v12033_v51, 2  ;;  %v3015_v28 = vsel %vm1806_vm6, %v3014_v48, %v3013_v35  ;;  %v3263_v61 = vsel %vm1797_vm3, %v3262_v33, %v3261_v45  ;;  %v3289_v13 = vsel %vm1794_vm2, %v3288_v30, %v3287_v57  ;;  %13453 = vst [vmem:[#allocation144_spill] sm:$0xff] %v12039_v22  ;;  %v12047_v51 = vld [vmem:[#allocation6 + $0x2c8] sm:$0x7f]  ;;  %v695_v30 = vld [vmem:[#allocation7 + $0xb8] sm:$0xff]  ;;  %6840 = vmatpush3.msra.mxu0 %v680_v40 }
 0x7d0   : > { %v3304_v32 = vrot.slane %v12039_v22, 2  ;;  %v3278_v8 = vrot.slane %v11769_v11, 1  ;;  %v3303_v17 = vsel %vm1794_vm2, %v3302_v12, %v3301_v36  ;;  %v3313_v18 = vrot.slane %v12044_v5, 5  ;;  %v12056_v35 = vld [vmem:[#allocation6 + $0x330] sm:$0x7f]  ;;  %6841 = vmatprep.subr.mxu0 %v695_v30  ;;  %v677_v40 = vld [vmem:[#allocation7 + $0x28] sm:$0xff] }
 0x7d1   : > { %v3314_v48 = vrot.slane %v12047_v51, 4  ;;  %v2822_v33 = vmul.f32 %v11573_v27, %v13446_v1  ;;  %v12053_v57 = vsel %vm1809_vm7, %v3002_v4, %v3001_v47  ;;  %v3277_v45 = vsel %vm1797_vm3, %v3276_v54, %v3275_v2  ;;  %v12064_v22 = vld [vmem:[#allocation6 + $0x338] sm:$0x7f]  ;;  %v694_v4 = vld [vmem:[#allocation7 + $0xb0] sm:$0xff]  ;;  %6842 = vmatpush3.msra.mxu0 %v679_v24  ;;  %v12113_v27 = vld [vmem:[#allocation6 + $0x388] sm:$0x7f] }
 0x7d2   : > { %13454 = vst [vmem:[#allocation145_spill] sm:$0xff] %v12053_v57  ;;  %v3292_v12 = vrot.slane %v12056_v35, 1  ;;  %v12060_v36 = vsel %vm1809_vm7, %v3016_v31, %v3015_v28  ;;  %v3265_v59 = vsel %vm1800_vm4, %v3264_v6, %v3263_v61  ;;  %v3291_v11 = vsel %vm1797_vm3, %v3290_v50, %v3289_v13  ;;  %v12076_v31 = vld [vmem:[#allocation6 + $0x2f0] sm:$0x7f]  ;;  %6843 = vmatprep.subr.mxu0 %v694_v4  ;;  %v676_v4 = vld [vmem:[#allocation7 + $0x20] sm:$0xff] }
 0x7d3   : > { %13455 = vst [vmem:[#allocation146_spill] sm:$0xff] %v12060_v36  ;;  %v3306_v1 = vrot.slane %v12064_v22, 1  ;;  %v12069_v54 = vadd.f32 %v11978_v41, %v11963_v20  ;;  %v12073_v47 = vadd.f32 %v11982_v19, %v11965_v23  ;;  %v3305_v28 = vsel %vm1797_vm3, %v3304_v32, %v3303_v17  ;;  %v678_v6 = vld [vmem:[#allocation7 + $0x30] sm:$0xff]  ;;  %v693_v23 = vld [vmem:[#allocation7 + $0xa8] sm:$0xff]  ;;  %v13456_v19 = vld [vmem:[#allocation88_spill] sm:$0xff] }
 0x7d4   : > { %v3316_v61 = vrot.slane %v12076_v31, 3  ;;  %v12080_v2 = vadd.f32 %v2822_v33, %v11967_v21  ;;  %v3267_v50 = vrot.slane %v11782_v49, 7  ;;  %v3279_v20 = vsel %vm1800_vm4, %v3278_v8, %v3277_v45  ;;  %6844 = vmatpush3.msra.mxu0 %v678_v6  ;;  %v692_v33 = vld [vmem:[#allocation7 + $0xa0] sm:$0xff]  ;;  %v12109_v6 = vld [vmem:[#allocation6 + $0x358] sm:$0x7f]  ;;  %13458 = vst [vmem:[#allocation147_spill] sm:$0xff] %v12113_v27 }
 0x7d5   : > { %v3315_v41 = vsel %vm1791_vm1, %v3314_v48, %v3313_v18  ;;  %v3085_v58 = vmul.f32 %v12053_v57, %v13456_v19  ;;  %v3086_v13 = vmul.f32 %v12060_v36, %v13456_v19  ;;  %v3266_v32 = vsel %vm1803_vm5, %v11771_v39, %v3265_v59  ;;  %v12096_v48 = vld [vmem:[#allocation6 + $0x318] sm:$0x7f]  ;;  %6845 = vmatprep.subr.mxu0 %v693_v23  ;;  %v690_v49 = vld [vmem:[#allocation7 + $0x90] sm:$0xff] }
 0x7d6   : > { %v3293_v21 = vsel %vm1800_vm4, %v3292_v12, %v3291_v11  ;;  %v3087_v8 = vmul.f32 %v11636_v52, %v13456_v19  ;;  %v3281_v17 = vrot.slane %v11803_v34, 7  ;;  %v3307_v18 = vsel %vm1800_vm4, %v3306_v1, %v3305_v28  ;;  %v12102_v12 = vld [vmem:[#allocation6 + $0x380] sm:$0x7f]  ;;  %6846 = vmatpush3.msra.mxu0 %v677_v40  ;;  %v675_v34 = vld [vmem:[#allocation7 + $0x18] sm:$0xff] }
 0x7d7   : > { %v3318_v30 = vrot.slane %v12096_v48, 2  ;;  %v3269_v45 = vrot.slane %v11796_v38, 6  ;;  %v3280_v11 = vsel %vm1803_vm5, %v11788_v15, %v3279_v20  ;;  %13457 = vst [vmem:[#allocation88_spill] sm:$0xff] %v12102_v12  ;;  %v3295_v24 = vrot.slane %v12102_v12, 7  ;;  %v691_v12 = vld [vmem:[#allocation7 + $0x98] sm:$0xff]  ;;  %6847 = vmatprep.subr.mxu0 %v692_v33 }
 0x7d8   : > { %v3317_v59 = vsel %vm1794_vm2, %v3316_v61, %v3315_v41  ;;  %v3088_v1 = vmul.f32 %v11639_v43, %v13456_v19  ;;  %v3268_v28 = vsel %vm1806_vm6, %v3267_v50, %v3266_v32  ;;  %v3294_v52 = vsel %vm1803_vm5, %v12109_v6, %v3293_v21  ;;  %v12117_v41 = vld [vmem:[#allocation6 + $0x3a8] sm:$0x7f]  ;;  %v12120_v43 = vld [vmem:[#allocation6 + $0x360] sm:$0x7f]  ;;  %6848 = vmatpush3.msra.mxu0 %v676_v4 }
 0x7d9   : > { %v3309_v20 = vrot.slane %v12113_v27, 7  ;;  %v3283_v61 = vrot.slane %v11810_v10, 6  ;;  %13459 = vst [vmem:[#allocation148_spill] sm:$0xff] %v12117_v41  ;;  %v3297_v23 = vrot.slane %v12117_v41, 6  ;;  %13460 = vst [vmem:[#allocation149_spill] sm:$0xff] %v12120_v43  ;;  %v3308_v50 = vsel %vm1803_vm5, %v12120_v43, %v3307_v18  ;;  %v13462_v18 = vld [vmem:[#allocation136_spill] sm:$0xff]  ;;  %6849 = vmatprep.subr.mxu0 %v691_v12 }
 0x7da   : > { %v12124_v32 = vld [vmem:[#allocation6 + $0x340] sm:$0x7f]  ;;  %v3282_v40 = vsel %vm1806_vm6, %v3281_v17, %v3280_v11  ;;  %v3319_v27 = vsel %vm1797_vm3, %v3318_v30, %v3317_v59  ;;  %v4597_v10 = vmul.f32 %v11564_v42, %v11872_v0  ;;  %v4624_v41 = vmul.f32 %v11578_v25, %v11861_v53  ;;  %v674_v30 = vld [vmem:[#allocation7 + $0x10] sm:$0xff]  ;;  %6850 = vmatpush3.msra.mxu0 %v675_v34 }
 0x7db   : > { %13461 = vst [vmem:[#allocation150_spill] sm:$0xff] %v12124_v32  ;;  %v3320_v21 = vrot.slane %v12124_v32, 1  ;;  %v3089_v38 = vmul.f32 %v13462_v18, %v13456_v19  ;;  %v12136_v43 = vsel %vm1809_vm7, %v3269_v45, %v3268_v28  ;;  %v3296_v33 = vsel %vm1806_vm6, %v3295_v24, %v3294_v52  ;;  %v12139_v32 = vld [vmem:[#allocation6 + $0x3b0] sm:$0x7f]  ;;  %v689_v19 = vld [vmem:[#allocation7 + $0x88] sm:$0xff]  ;;  %6851 = vmatprep.subr.mxu0 %v690_v49  ;;  %v13471_v18 = vld [vmem:[#allocation92_spill] sm:$0xff] }
 0x7dc   : > { %13463 = vst [vmem:[#allocation151_spill] sm:$0xff] %v12136_v43  ;;  %v3311_v17 = vrot.slane %v12139_v32, 6  ;;  %v3100_v11 = vadd.f32 %v3085_v58, %v11984_v62  ;;  %v3101_v59 = vadd.f32 %v3086_v13, %v12009_v55  ;;  %v3102_v4 = vadd.f32 %v3087_v8, %v12069_v54  ;;  %v673_v62 = vld [vmem:[#allocation7 + $0x8] sm:$0xff]  ;;  %v13467_v58 = vld [vmem:[#allocation37_spill] sm:$0xff]  ;;  %6852 = vmatpush3.msra.mxu0 %v674_v30  ;;  %v12170_v49 = vld [vmem:[#allocation6 + $0x390] sm:$0x7f] }
 0x7dd   : > { %v3310_v53 = vsel %vm1806_vm6, %v3309_v20, %v3308_v50  ;;  %v12147_v45 = vsel %vm1809_vm7, %v3283_v61, %v3282_v40  ;;  %v3321_v52 = vsel %vm1800_vm4, %v3320_v21, %v3319_v27  ;;  %v4598_v24 = vmul.f32 %v11564_v42, %v11886_v46  ;;  %v13466_v54 = vld [vmem:[#allocation114_spill] sm:$0xff]  ;;  %v688_v27 = vld [vmem:[#allocation7 + $0x80] sm:$0xff]  ;;  %6853 = vmatprep.subr.mxu0 %v689_v19 }
 0x7de   : > { %13464 = vst [vmem:[#allocation152_spill] sm:$0xff] %v12147_v45  ;;  %v4625_v12 = vmul.f32 %v11578_v25, %v11864_v29  ;;  %v12155_v55 = vsel %vm1809_vm7, %v3297_v23, %v3296_v33  ;;  %v3352_v34 = vmul.f32 %v12136_v43, %v13466_v54  ;;  %v4666_v13 = vmul.f32 %v13467_v58, %v11920_v60  ;;  %v672_v61 = vld [vmem:[#allocation7] sm:$0xff]  ;;  %v12173_v23 = vld [vmem:[#allocation6 + $0x368] sm:$0x7f] }
 0x7df   : > { %13465 = vst [vmem:[#allocation153_spill] sm:$0xff] %v12155_v55  ;;  %v4639_v8 = vadd.f32 %v4624_v41, %v4597_v10  ;;  %v12162_v28 = vadd.f32 %v3088_v1, %v12073_v47  ;;  %v12165_v42 = vadd.f32 %v3089_v38, %v12080_v2  ;;  %v12168_v25 = vsel %vm1809_vm7, %v3311_v17, %v3310_v53  ;;  %v735_v53 = vld [vmem:[#allocation7 + $0x1f8] sm:$0xff] }
 0x7e0   : > { %13468 = vst [vmem:[#allocation114_spill] sm:$0xff] %v12168_v25  ;;  %v3323_v20 = vrot.slane %v12170_v49, 7  ;;  %v3322_v10 = vsel %vm1803_vm5, %v12173_v23, %v3321_v52  ;;  %v3353_v47 = vmul.f32 %v12147_v45, %v13466_v54  ;;  %v3524_v38 = vrot.slane %v11732_v26, 6  ;;  %6854 = vmatpush3.msra.mxu0 %v673_v62  ;;  %v12181_v1 = vld [vmem:[#allocation6 + $0x3b8] sm:$0x7f] }
 0x7e1   : > { %v3525_v2 = vrot.slane %v11744_v56, 5  ;;  %v3325_v41 = vrot.slane %v12181_v1, 6  ;;  %v3354_v50 = vmul.f32 %v12155_v55, %v13466_v54  ;;  %v4667_v21 = vmul.f32 %v13467_v58, %v11928_v37  ;;  %6855 = vmatprep.subr.mxu0 %v688_v27  ;;  %v13469_v56 = vld [vmem:[#allocation79_spill] sm:$0xff] }
 0x7e2   : > { %v4640_v40 = vadd.f32 %v4625_v12, %v4598_v24  ;;  %v12190_v33 = vmul.f32 %v12168_v25, %v13466_v54  ;;  %v12192_v26 = vadd.f32 %v3352_v34, %v3100_v11  ;;  %v4708_v17 = vmul.f32 %v13469_v56, %v11954_v14  ;;  %6856 = vmatpush3.msra.mxu0 %v672_v61  ;;  %v13470_v34 = vld [vmem:[#allocation103_spill] sm:$0xff] }
 0x7e3   : > { %v4681_v30 = vadd.f32 %v4666_v13, %v4639_v8  ;;  %v3324_v19 = vsel %vm1806_vm6, %v3323_v20, %v3322_v10  ;;  %v3527_v52 = vrot.slane %v11738_v44, 4  ;;  %v3538_v62 = vrot.slane %v11736_v9, 6  ;;  %6860 = vmatprep.subr.mxu0 %v735_v53  ;;  %v13472_v20 = vld [vmem:[#allocation94_spill] sm:$0xff]  ;;  %v13473_v44 = vld [vmem:[#allocation107_spill] sm:$0xff] }
 0x7e4   : > { %v3539_v24 = vrot.slane %v11754_v16, 5  ;;  %v12200_v12 = vadd.f32 %v3353_v47, %v3101_v59  ;;  %v3526_v58 = vsel %vm1791_vm1, %v3525_v2, %v3524_v38  ;;  %v3552_v11 = vrot.slane %v11994_v3, 6  ;;  %v13475_v2 = vld [vmem:[#allocation120_spill] sm:$0xff] }
 0x7e5   : > { %v3553_v27 = vrot.slane %v13470_v34, 5  ;;  %v4709_v13 = vmul.f32 %v13469_v56, %v13471_v18  ;;  %v4682_v8 = vadd.f32 %v4667_v21, %v4640_v40  ;;  %v3566_v61 = vrot.slane %v13472_v20, 6  ;;  %v13476_v56 = vld [vmem:[#allocation141_spill] sm:$0xff]  ;;  %v13477_v34 = vld [vmem:[#allocation142_spill] sm:$0xff]  ;;  %v13562_v18 = vld [vmem:[#allocation32_spill] sm:$0xff] }
 0x7e6   : > { %v3567_v10 = vrot.slane %v13473_v44, 5  ;;  %v12210_v9 = vsel %vm1809_vm7, %v3325_v41, %v3324_v19  ;;  %v12212_v16 = vadd.f32 %v3354_v50, %v3102_v4  ;;  %v4723_v59 = vadd.f32 %v4708_v17, %v4681_v30  ;;  %v13478_v17 = vld [vmem:[#allocation67_spill] sm:$0xff] }
 0x7e7   : > { %13474 = vst [vmem:[#allocation37_spill] sm:$0xff] %v12210_v9  ;;  %v3529_v47 = vrot.slane %v11748_v7, 3  ;;  %v3528_v3 = vsel %vm1794_vm2, %v3527_v52, %v3526_v58  ;;  %v3540_v38 = vsel %vm1791_vm1, %v3539_v24, %v3538_v62  ;;  %v3541_v53 = vrot.slane %v13475_v2, 4  ;;  %v13479_v24 = vld [vmem:[#allocation124_spill] sm:$0xff] }
 0x7e8   : > { %v3555_v21 = vrot.slane %v13476_v56, 4  ;;  %v3554_v40 = vsel %vm1791_vm1, %v3553_v27, %v3552_v11  ;;  %v3569_v20 = vrot.slane %v13477_v34, 4  ;;  %v3580_v41 = vrot.slane %v12044_v5, 6  ;;  %v13480_v11 = vld [vmem:[#allocation143_spill] sm:$0xff] }
 0x7e9   : > { %v3581_v4 = vrot.slane %v12047_v51, 5  ;;  %v4724_v50 = vadd.f32 %v4709_v13, %v4682_v8  ;;  %v4750_v7 = vmul.f32 %v13478_v17, %v12053_v57  ;;  %v3531_v30 = vrot.slane %v11760_v63, 2  ;;  %v13481_v13 = vld [vmem:[#allocation144_spill] sm:$0xff] }
 0x7ea   : > { %v3568_v19 = vsel %vm1791_vm1, %v3567_v10, %v3566_v61  ;;  %v4751_v52 = vmul.f32 %v13478_v17, %v12060_v36  ;;  %v3530_v62 = vsel %vm1797_vm3, %v3529_v47, %v3528_v3  ;;  %v3543_v58 = vrot.slane %v13479_v24, 3  ;;  %v4780_v61 = vpop.permute.xlu1 %4779 }
 0x7eb   : > { %v3557_v27 = vrot.slane %v13480_v11, 3  ;;  %v3542_v5 = vsel %vm1794_vm2, %v3541_v53, %v3540_v38  ;;  %v3556_v51 = vsel %vm1794_vm2, %v3555_v21, %v3554_v40  ;;  %v3571_v8 = vrot.slane %v13481_v13, 3  ;;  %v13482_v38 = vld [vmem:[#allocation27_spill] sm:$0xff]  ;;  %v13485_v13 = vld [vmem:[#allocation41_spill] sm:$0xff] }
 0x7ec   : > { %v3583_v44 = vrot.slane %v12076_v31, 4  ;;  %v3356_v63 = vmul.f32 %v12210_v9, %v13466_v54  ;;  %v3533_v10 = vrot.slane %v11771_v39, 1  ;;  %v3570_v47 = vsel %vm1794_vm2, %v3569_v20, %v3568_v19  ;;  %v13484_v19 = vld [vmem:[#allocation150_spill] sm:$0xff] }
 0x7ed   : > { %v3582_v3 = vsel %vm1791_vm1, %v3581_v4, %v3580_v41  ;;  %v4765_v2 = vadd.f32 %v4750_v7, %v4723_v59  ;;  %v3532_v56 = vsel %vm1800_vm4, %v3531_v30, %v3530_v62  ;;  %v3545_v53 = vrot.slane %v13482_v38, 2 }
 0x7ee   : > { %v3559_v21 = vrot.slane %v12056_v35, 2  ;;  %v3544_v40 = vsel %vm1797_vm3, %v3543_v58, %v3542_v5  ;;  %v3558_v31 = vsel %vm1797_vm3, %v3557_v27, %v3556_v51  ;;  %v3573_v54 = vrot.slane %v12064_v22, 2 }
 0x7ef   : > { %v3585_v34 = vrot.slane %v12096_v48, 3  ;;  %v4766_v39 = vadd.f32 %v4751_v52, %v4724_v50  ;;  %v4792_v20 = vmul.f32 %v4780_v61, %v12136_v43  ;;  %v3572_v41 = vsel %vm1797_vm3, %v3571_v8, %v3570_v47  ;;  %v13483_v48 = vld [vmem:[#allocation149_spill] sm:$0xff] }
 0x7f0   : > { %v3584_v59 = vsel %vm1794_vm2, %v3583_v44, %v3582_v3  ;;  %v4793_v4 = vmul.f32 %v4780_v61, %v12147_v45  ;;  %v3534_v17 = vsel %vm1803_vm5, %v3533_v10, %v3532_v56  ;;  %v3547_v35 = vrot.slane %v11788_v15, 1  ;;  %v13486_v44 = vld [vmem:[#allocation25_spill] sm:$0xff] }
 0x7f1   : > { %v3561_v7 = vrot.slane %v12109_v6, 1  ;;  %v3546_v30 = vsel %vm1800_vm4, %v3545_v53, %v3544_v40  ;;  %v3560_v22 = vsel %vm1800_vm4, %v3559_v21, %v3558_v31  ;;  %v3575_v50 = vrot.slane %v13483_v48, 1  ;;  %v13490_v53 = vld [vmem:[#allocation148_spill] sm:$0xff]  ;;  %v13491_v40 = vld [vmem:[#allocation134_spill] sm:$0xff]  ;;  %v13555_v45 = vld [vmem:[#allocation97_spill] sm:$0xff] }
 0x7f2   : > { %v3587_v52 = vrot.slane %v13484_v19, 2  ;;  %v4794_v62 = vmul.f32 %v4780_v61, %v12155_v55  ;;  %v4795_v24 = vmul.f32 %v4780_v61, %v12168_v25  ;;  %v3574_v58 = vsel %vm1800_vm4, %v3573_v54, %v3572_v41  ;;  %v13493_v54 = vld [vmem:[#allocation29_spill] sm:$0xff]  ;;  %v13495_v41 = vld [vmem:[#allocation138_spill] sm:$0xff] }
 0x7f3   : > { %v3586_v11 = vsel %vm1797_vm3, %v3585_v34, %v3584_v59  ;;  %v12265_v15 = vadd.f32 %v12190_v33, %v12162_v28  ;;  %v12268_v6 = vadd.f32 %v3356_v63, %v12165_v42  ;;  %v4796_v27 = vmul.f32 %v4780_v61, %v12210_v9  ;;  %v13489_v61 = vld [vmem:[#allocation139_spill] sm:$0xff] }
 0x7f4   : > { %v3536_v8 = vrot.slane %v13485_v13, 7  ;;  %v3535_v10 = vsel %vm1806_vm6, %v13486_v44, %v3534_v17  ;;  %v3548_v47 = vsel %vm1803_vm5, %v3547_v35, %v3546_v30  ;;  %v3562_v3 = vsel %vm1803_vm5, %v3561_v7, %v3560_v22  ;;  %v13499_v17 = vld [vmem:[#allocation50_spill] sm:$0xff]  ;;  %v13500_v22 = vld [vmem:[#allocation147_spill] sm:$0xff]  ;;  %v13505_v44 = vld [vmem:[#allocation52_spill] sm:$0xff] }
 0x7f5   : > { %v3589_v56 = vrot.slane %v12173_v23, 1  ;;  %v3576_v28 = vsel %vm1803_vm5, %v3575_v50, %v3574_v58  ;;  %v3588_v42 = vsel %vm1800_vm4, %v3587_v52, %v3586_v11  ;;  %v12279_v33 = vadd.f32 %v4792_v20, %v4765_v2  ;;  %v13496_v2 = vld [vmem:[#allocation88_spill] sm:$0xff]  ;;  %v13497_v20 = vld [vmem:[#allocation31_spill] sm:$0xff]  ;;  %v13503_v11 = vld [vmem:[#allocation45_spill] sm:$0xff] }
 0x7f6   : > { %v12281_v63 = vadd.f32 %v4793_v4, %v4766_v39  ;;  %v3550_v38 = vrot.slane %v13489_v61, 7  ;;  %v3564_v21 = vrot.slane %v13490_v53, 7  ;;  %v12286_v31 = vadd.f32 %v4794_v62, %v13491_v40  ;;  %v13501_v52 = vld [vmem:[#allocation43_spill] sm:$0xff] }
 0x7f7   : > { %13487 = vst [vmem:[#allocation79_spill] sm:$0xff] %v12279_v33  ;;  %v12289_v34 = vadd.f32 %v4795_v24, %v13493_v54  ;;  %v12292_v23 = vsel %vm1809_vm7, %v3536_v8, %v3535_v10  ;;  %v3549_v59 = vsel %vm1806_vm6, %v13495_v41, %v3548_v47  ;;  %v3563_v39 = vsel %vm1806_vm6, %v13496_v2, %v3562_v3  ;;  %v13502_v24 = vld [vmem:[#allocation44_spill] sm:$0xff]  ;;  %v13504_v8 = vld [vmem:[#allocation46_spill] sm:$0xff]  ;;  %v13506_v47 = vld [vmem:[#allocation47_spill] sm:$0xff] }
 0x7f8   : > { %13488 = vst [vmem:[#allocation103_spill] sm:$0xff] %v12281_v63  ;;  %13492 = vst [vmem:[#allocation94_spill] sm:$0xff] %v12286_v31  ;;  %v12299_v4 = vadd.f32 %v4796_v27, %v13497_v20  ;;  %v3577_v48 = vsel %vm1806_vm6, %v13500_v22, %v3576_v28  ;;  %v3578_v50 = vrot.slane %v12139_v32, 7  ;;  %v3590_v19 = vsel %vm1803_vm5, %v3589_v56, %v3588_v42  ;;  %v13507_v32 = vld [vmem:[#allocation48_spill] sm:$0xff]  ;;  %v13508_v42 = vld [vmem:[#allocation49_spill] sm:$0xff] }
 0x7f9   : > { %13494 = vst [vmem:[#allocation107_spill] sm:$0xff] %v12289_v34  ;;  %v12313_v61 = vsel %vm1809_vm7, %v3550_v38, %v3549_v59  ;;  %v12316_v28 = vsel %vm1809_vm7, %v3564_v21, %v3563_v39  ;;  %v13509_v40 = vld [vmem:[#allocation51_spill] sm:$0xff]  ;;  %v3592_v38 = vrot.slane %v12181_v1, 7  ;;  %v13510_v59 = vld [vmem:[#allocation53_spill] sm:$0xff] }
 0x7fa   : > { %13498 = vst [vmem:[#allocation120_spill] sm:$0xff] %v12299_v4  ;;  %v12322_v20 = vsel %vm1809_vm7, %v3578_v50, %v3577_v48  ;;  %v13514_v48 = vld [vmem:[#allocation60_spill] sm:$0xff]  ;;  %v13517_v1 = vld [vmem:[#allocation55_spill] sm:$0xff] }
 0x7fb   : > { %v5790_v5 = vpop.permute.xlu1 %5789  ;;  %v5903_v51 = vpop.permute.xlu0 %5902 }
 0x7fc   : > { %v5804_v35 = vmul.f32 %v5790_v5, %v13499_v17  ;;  %v5806_v10 = vmul.f32 %v5790_v5, %v13505_v44  ;;  %v5802_v56 = vmul.f32 %v5790_v5, %v13507_v32  ;;  %v5803_v53 = vmul.f32 %v5790_v5, %v13508_v42  ;;  %v13518_v32 = vld [vmem:[#allocation61_spill] sm:$0xff] }
 0x7fd   : > { %v5805_v54 = vmul.f32 %v5790_v5, %v13509_v40  ;;  %v3591_v17 = vsel %vm1806_vm6, %v12170_v49, %v3590_v19  ;;  %v13512_v5 = vld [vmem:[#allocation58_spill] sm:$0xff] }
 0x7fe   : > { %v13516_v49 = vld [vmem:[#allocation42_spill] sm:$0xff] }
 0x7ff   : > { %v5915_v19 = vmul.f32 %v5903_v51, %v13516_v49 }
 0x800   : > { %v5819_v7 = vpop.permute.xlu1 %5818  ;;  %v5945_v30 = vpop.permute.xlu0 %5944 }
 0x801   : > { %v5829_v62 = vmul.f32 %v5819_v7, %v13501_v52  ;;  %v5830_v58 = vmul.f32 %v5819_v7, %v13502_v24  ;;  %v5831_v13 = vmul.f32 %v5819_v7, %v13503_v11  ;;  %v5832_v27 = vmul.f32 %v5819_v7, %v13504_v8  ;;  %v13511_v11 = vld [vmem:[#allocation57_spill] sm:$0xff] }
 0x802   : > { %v5833_v3 = vmul.f32 %v5819_v7, %v13506_v47  ;;  %v5913_v7 = vmul.f32 %v5903_v51, %v13510_v59 }
 0x803   : > { %v5846_v41 = vadd.f32 %v5831_v13, %v5804_v35  ;;  %v5844_v21 = vadd.f32 %v5829_v62, %v5802_v56  ;;  %v5845_v39 = vadd.f32 %v5830_v58, %v5803_v53  ;;  %v5847_v22 = vadd.f32 %v5832_v27, %v5805_v54  ;;  %v13513_v13 = vld [vmem:[#allocation59_spill] sm:$0xff]  ;;  %v13519_v53 = vld [vmem:[#allocation56_spill] sm:$0xff]  ;;  %v13520_v54 = vld [vmem:[#allocation62_spill] sm:$0xff] }
 0x804   : > { %v5848_v2 = vadd.f32 %v5833_v3, %v5806_v10  ;;  %v13515_v10 = vld [vmem:[#allocation54_spill] sm:$0xff]  ;;  %v5916_v3 = vmul.f32 %v5903_v51, %v13517_v1  ;;  %v5917_v40 = vmul.f32 %v5903_v51, %v13519_v53  ;;  %v5955_v59 = vmul.f32 %v5945_v30, %v13520_v54  ;;  %v13522_v1 = vld [vmem:[#allocation64_spill] sm:$0xff] }
 0x805   : > { %v5861_v52 = vpop.permute.xlu1 %5860  ;;  %v5987_v24 = vpop.permute.xlu0 %5986  ;;  %v5914_v47 = vmul.f32 %v5903_v51, %v13515_v10  ;;  %v5957_v63 = vmul.f32 %v5945_v30, %v13522_v1  ;;  %v13525_v51 = vld [vmem:[#allocation36_spill] sm:$0xff] }
 0x806   : > { %v5871_v8 = vmul.f32 %v5861_v52, %v13511_v11  ;;  %v5872_v35 = vmul.f32 %v5861_v52, %v13512_v5  ;;  %v5873_v44 = vmul.f32 %v5861_v52, %v13513_v13  ;;  %v5874_v50 = vmul.f32 %v5861_v52, %v13514_v48  ;;  %v13521_v11 = vld [vmem:[#allocation63_spill] sm:$0xff]  ;;  %v13531_v54 = vld [vmem:[#allocation116_spill] sm:$0xff] }
 0x807   : > { %v5875_v62 = vmul.f32 %v5861_v52, %v13518_v32  ;;  %v5956_v5 = vmul.f32 %v5945_v30, %v13521_v11  ;;  %v13523_v52 = vld [vmem:[#allocation68_spill] sm:$0xff]  ;;  %v13527_v32 = vld [vmem:[#allocation34_spill] sm:$0xff]  ;;  %v13532_v11 = vld [vmem:[#allocation39_spill] sm:$0xff] }
 0x808   : > { %v5886_v58 = vadd.f32 %v5871_v8, %v5844_v21  ;;  %v5887_v27 = vadd.f32 %v5872_v35, %v5845_v39  ;;  %v5888_v56 = vadd.f32 %v5873_v44, %v5846_v41  ;;  %v5889_v42 = vadd.f32 %v5874_v50, %v5847_v22  ;;  %v13524_v39 = vld [vmem:[#allocation77_spill] sm:$0xff]  ;;  %v13526_v44 = vld [vmem:[#allocation135_spill] sm:$0xff] }
 0x809   : > { %v5890_v13 = vadd.f32 %v5875_v62, %v5848_v2  ;;  %v5958_v21 = vmul.f32 %v5945_v30, %v13523_v52  ;;  %v5959_v41 = vmul.f32 %v5945_v30, %v13524_v39  ;;  %v5997_v35 = vmul.f32 %v5987_v24, %v13525_v51  ;;  %v13530_v30 = vld [vmem:[#allocation106_spill] sm:$0xff]  ;;  %v13536_v52 = vld [vmem:[#allocation89_spill] sm:$0xff] }
 0x80a   : > { %v5928_v48 = vadd.f32 %v5913_v7, %v5886_v58  ;;  %v5929_v4 = vadd.f32 %v5914_v47, %v5887_v27  ;;  %v5930_v10 = vadd.f32 %v5915_v19, %v5888_v56  ;;  %v5931_v34 = vadd.f32 %v5916_v3, %v5889_v42  ;;  %v5823_v49 = vpop.permute.xlu1 %5822  ;;  %v6029_v31 = vpop.permute.xlu0 %6028  ;;  %v13528_v58 = vld [vmem:[#allocation130_spill] sm:$0xff] }
 0x80b   : > { %v5932_v22 = vadd.f32 %v5917_v40, %v5890_v13  ;;  %v6001_v50 = vmul.f32 %v5987_v24, %v13526_v44  ;;  %v12345_v2 = vsel %vm1809_vm7, %v3592_v38, %v3591_v17  ;;  %v5998_v62 = vmul.f32 %v5987_v24, %v13527_v32  ;;  %v13529_v56 = vld [vmem:[#allocation30_spill] sm:$0xff]  ;;  %v13538_v44 = vld [vmem:[#allocation75_spill] sm:$0xff] }
 0x80c   : > { %v5970_v8 = vadd.f32 %v5955_v59, %v5928_v48  ;;  %v5971_v7 = vadd.f32 %v5956_v5, %v5929_v4  ;;  %v5972_v47 = vadd.f32 %v5957_v63, %v5930_v10  ;;  %v5973_v19 = vadd.f32 %v5958_v21, %v5931_v34  ;;  %v13533_v48 = vld [vmem:[#allocation121_spill] sm:$0xff]  ;;  %v13534_v34 = vld [vmem:[#allocation118_spill] sm:$0xff] }
 0x80d   : > { %v5974_v3 = vadd.f32 %v5959_v41, %v5932_v22  ;;  %v5999_v27 = vmul.f32 %v5987_v24, %v13528_v58  ;;  %v6000_v42 = vmul.f32 %v5987_v24, %v13529_v56  ;;  %v5834_v53 = vmul.f32 %v5823_v49, %v13530_v30  ;;  %v13535_v10 = vld [vmem:[#allocation74_spill] sm:$0xff]  ;;  %v13537_v22 = vld [vmem:[#allocation72_spill] sm:$0xff] }
 0x80e   : > { %v5835_v59 = vmul.f32 %v5823_v49, %v13531_v54  ;;  %v5836_v13 = vmul.f32 %v5823_v49, %v13532_v11  ;;  %v5837_v17 = vmul.f32 %v5823_v49, %v13533_v48  ;;  %v6012_v63 = vadd.f32 %v5997_v35, %v5970_v8  ;;  %v13540_v56 = vld [vmem:[#allocation84_spill] sm:$0xff]  ;;  %v13541_v8 = vld [vmem:[#allocation91_spill] sm:$0xff]  ;;  %v13543_v11 = vld [vmem:[#allocation98_spill] sm:$0xff] }
 0x80f   : > { %v6016_v40 = vadd.f32 %v6001_v50, %v5974_v3  ;;  %v5907_v38 = vpop.permute.xlu1 %5906  ;;  %v5795_v4 = vpop.permute.xlu0 %5794  ;;  %v5838_v5 = vmul.f32 %v5823_v49, %v13534_v34  ;;  %v6039_v1 = vmul.f32 %v6029_v31, %v13535_v10  ;;  %v6043_v21 = vmul.f32 %v6029_v31, %v13536_v52  ;;  %v13539_v3 = vld [vmem:[#allocation83_spill] sm:$0xff]  ;;  %v13544_v34 = vld [vmem:[#allocation38_spill] sm:$0xff]  ;;  %v13547_v10 = vld [vmem:[#allocation65_spill] sm:$0xff] }
 0x810   : > { %v6013_v39 = vadd.f32 %v5998_v62, %v5971_v7  ;;  %v6014_v24 = vadd.f32 %v5999_v27, %v5972_v47  ;;  %v6015_v41 = vadd.f32 %v6000_v42, %v5973_v19  ;;  %v6040_v51 = vmul.f32 %v6029_v31, %v13537_v22  ;;  %v13542_v49 = vld [vmem:[#allocation95_spill] sm:$0xff]  ;;  %v13545_v19 = vld [vmem:[#allocation137_spill] sm:$0xff]  ;;  %v13546_v27 = vld [vmem:[#allocation66_spill] sm:$0xff] }
 0x811   : > { %v6041_v50 = vmul.f32 %v6029_v31, %v13538_v44  ;;  %v6042_v32 = vmul.f32 %v6029_v31, %v13539_v3  ;;  %v12360_v58 = vadd.f32 %v6043_v21, %v6016_v40  ;;  %v5807_v30 = vmul.f32 %v5795_v4, %v13540_v56  ;;  %v13548_v21 = vld [vmem:[#allocation78_spill] sm:$0xff]  ;;  %v13549_v44 = vld [vmem:[#allocation73_spill] sm:$0xff] }
 0x812   : > { %v5808_v35 = vmul.f32 %v5795_v4, %v13541_v8  ;;  %v5809_v54 = vmul.f32 %v5795_v4, %v13542_v49  ;;  %v5810_v48 = vmul.f32 %v5795_v4, %v13543_v11  ;;  %v5811_v7 = vmul.f32 %v5795_v4, %v13544_v34  ;;  %v13550_v4 = vld [vmem:[#allocation96_spill] sm:$0xff] }
 0x813   : > { %v12367_v47 = vadd.f32 %v6039_v1, %v6012_v63  ;;  %v5918_v62 = vmul.f32 %v5907_v38, %v13545_v19  ;;  %v5919_v42 = vmul.f32 %v5907_v38, %v13546_v27  ;;  %v5920_v31 = vmul.f32 %v5907_v38, %v13547_v10  ;;  %v13551_v1 = vld [vmem:[#allocation40_spill] sm:$0xff]  ;;  %v13552_v19 = vld [vmem:[#allocation131_spill] sm:$0xff]  ;;  %v13554_v10 = vld [vmem:[#allocation33_spill] sm:$0xff] }
 0x814   : > { %v5949_v40 = vpop.permute.xlu1 %5948  ;;  %v5865_v52 = vpop.permute.xlu0 %5864  ;;  %v5921_v22 = vmul.f32 %v5907_v38, %v13548_v21  ;;  %v5922_v3 = vmul.f32 %v5907_v38, %v13549_v44  ;;  %v5849_v56 = vadd.f32 %v5834_v53, %v5807_v30  ;;  %v5853_v8 = vadd.f32 %v5838_v5, %v5811_v7  ;;  %v13553_v27 = vld [vmem:[#allocation132_spill] sm:$0xff]  ;;  %v13557_v38 = vld [vmem:[#allocation111_spill] sm:$0xff]  ;;  %v13558_v5 = vld [vmem:[#allocation109_spill] sm:$0xff] }
 0x815   : > { %v5850_v49 = vadd.f32 %v5835_v59, %v5808_v35  ;;  %v5851_v11 = vadd.f32 %v5836_v13, %v5809_v54  ;;  %v5852_v33 = vadd.f32 %v5837_v17, %v5810_v48  ;;  %v5960_v63 = vmul.f32 %v5949_v40, %v13550_v4  ;;  %v13556_v21 = vld [vmem:[#allocation104_spill] sm:$0xff]  ;;  %v13559_v13 = vld [vmem:[#allocation105_spill] sm:$0xff] }
 0x816   : > { %v5961_v34 = vmul.f32 %v5949_v40, %v13551_v1  ;;  %v5876_v9 = vmul.f32 %v5865_v52, %v13552_v19  ;;  %v5877_v25 = vmul.f32 %v5865_v52, %v13553_v27  ;;  %v5878_v55 = vmul.f32 %v5865_v52, %v13554_v10  ;;  %v13560_v1 = vld [vmem:[#allocation122_spill] sm:$0xff]  ;;  %v13561_v27 = vld [vmem:[#allocation123_spill] sm:$0xff] }
 0x817   : > { %v5962_v43 = vmul.f32 %v5949_v40, %v13555_v45  ;;  %v5963_v36 = vmul.f32 %v5949_v40, %v13556_v21  ;;  %v5879_v53 = vmul.f32 %v5865_v52, %v13557_v38  ;;  %v5880_v59 = vmul.f32 %v5865_v52, %v13558_v5  ;;  %v13563_v5 = vld [vmem:[#allocation126_spill] sm:$0xff] }
 0x818   : > { %v5964_v17 = vmul.f32 %v5949_v40, %v13559_v13  ;;  %v5891_v30 = vadd.f32 %v5876_v9, %v5849_v56  ;;  %v5892_v35 = vadd.f32 %v5877_v25, %v5850_v49  ;;  %v5893_v54 = vadd.f32 %v5878_v55, %v5851_v11  ;;  %v13564_v9 = vld [vmem:[#allocation129_spill] sm:$0xff] }
 0x819   : > { %v5991_v48 = vpop.permute.xlu1 %5990  ;;  %v5800_v7 = vpop.permute.xlu0 %5799  ;;  %v5894_v44 = vadd.f32 %v5879_v53, %v5852_v33  ;;  %v5895_v4 = vadd.f32 %v5880_v59, %v5853_v8  ;;  %v6055_v55 = vadd.f32 %v6040_v51, %v6013_v39  ;;  %v6056_v8 = vadd.f32 %v6041_v50, %v6014_v24  ;;  %v13565_v51 = vld [vmem:[#allocation102_spill] sm:$0xff] }
 0x81a   : > { %v6002_v19 = vmul.f32 %v5991_v48, %v13560_v1  ;;  %v6003_v10 = vmul.f32 %v5991_v48, %v13561_v27  ;;  %v5933_v45 = vadd.f32 %v5918_v62, %v5891_v30  ;;  %v5934_v57 = vadd.f32 %v5919_v42, %v5892_v35  ;;  %v13570_v1 = vld [vmem:[#allocation82_spill] sm:$0xff] }
 0x81b   : > { %v5935_v21 = vadd.f32 %v5920_v31, %v5893_v54  ;;  %v6004_v38 = vmul.f32 %v5991_v48, %v13562_v18  ;;  %v5936_v14 = vadd.f32 %v5921_v22, %v5894_v44  ;;  %v5937_v52 = vadd.f32 %v5922_v3, %v5895_v4 }
 0x81c   : > { %v6005_v40 = vmul.f32 %v5991_v48, %v13563_v5  ;;  %v6006_v25 = vmul.f32 %v5991_v48, %v13564_v9  ;;  %v5975_v56 = vadd.f32 %v5960_v63, %v5933_v45  ;;  %v5976_v49 = vadd.f32 %v5961_v34, %v5934_v57 }
 0x81d   : > { %v5977_v33 = vadd.f32 %v5962_v43, %v5935_v21  ;;  %v6057_v11 = vadd.f32 %v6042_v32, %v6015_v41  ;;  %v5978_v53 = vadd.f32 %v5963_v36, %v5936_v14  ;;  %v5979_v59 = vadd.f32 %v5964_v17, %v5937_v52  ;;  %v13566_v43 = vld [vmem:[#allocation115_spill] sm:$0xff]  ;;  %v13567_v41 = vld [vmem:[#allocation113_spill] sm:$0xff]  ;;  %v13569_v32 = vld [vmem:[#allocation80_spill] sm:$0xff] }
 0x81e   : > { %v6033_v13 = vpop.permute.xlu1 %6032  ;;  %v6017_v62 = vadd.f32 %v6002_v19, %v5975_v56  ;;  %v6018_v42 = vadd.f32 %v6003_v10, %v5976_v49  ;;  %v12390_v31 = vmul.f32 %v5800_v7, %v11872_v0  ;;  %v12393_v18 = vmul.f32 %v5800_v7, %v11886_v46  ;;  %v3382_v22 = vpop.permute.xlu0 %3381  ;;  %v13568_v36 = vld [vmem:[#allocation35_spill] sm:$0xff]  ;;  %v13571_v21 = vld [vmem:[#allocation86_spill] sm:$0xff]  ;;  %v13572_v52 = vld [vmem:[#allocation81_spill] sm:$0xff] }
 0x81f   : > { %v6019_v3 = vadd.f32 %v6004_v38, %v5977_v33  ;;  %v6020_v30 = vadd.f32 %v6005_v40, %v5978_v53  ;;  %v6021_v39 = vadd.f32 %v6006_v25, %v5979_v59  ;;  %v6044_v57 = vmul.f32 %v6033_v13, %v13565_v51 }
 0x820   : > { %v6045_v24 = vmul.f32 %v6033_v13, %v13566_v43  ;;  %v6046_v14 = vmul.f32 %v6033_v13, %v13567_v41  ;;  %v6047_v50 = vmul.f32 %v6033_v13, %v13568_v36  ;;  %v6048_v63 = vmul.f32 %v6033_v13, %v13569_v32 }
 0x821   : > { %v6059_v34 = vadd.f32 %v6044_v57, %v6017_v62  ;;  %v3619_v0 = vmul.f32 %v12292_v23, %v3382_v22  ;;  %v3620_v46 = vmul.f32 %v12313_v61, %v3382_v22  ;;  %v3621_v17 = vmul.f32 %v12316_v28, %v3382_v22  ;;  %v13574_v62 = vld [vmem:[#allocation76_spill] sm:$0xff] }
 0x822   : > { %v6060_v35 = vadd.f32 %v6045_v24, %v6018_v42  ;;  %v6061_v54 = vadd.f32 %v6046_v14, %v6019_v3  ;;  %v6062_v48 = vadd.f32 %v6047_v50, %v6020_v30  ;;  %v6063_v44 = vadd.f32 %v6048_v63, %v6021_v39  ;;  %v6037_v53 = vpop.permute.xlu0 %6036  ;;  %v13575_v42 = vld [vmem:[#allocation85_spill] sm:$0xff]  ;;  %v13579_v50 = vld [vmem:[#allocation87_spill] sm:$0xff] }
 0x823   : > { %v5827_v4 = vpop.permute.xlu1 %5826  ;;  %v5814_v19 = vmul.f32 %v5800_v7, %v13570_v1  ;;  %v3622_v27 = vmul.f32 %v12322_v20, %v3382_v22  ;;  %v3623_v10 = vmul.f32 %v12345_v2, %v3382_v22  ;;  %v3634_v45 = vadd.f32 %v3619_v0, %v12192_v26 }
 0x824   : > { %v5815_v38 = vmul.f32 %v5800_v7, %v13571_v21  ;;  %v5816_v5 = vmul.f32 %v5800_v7, %v13572_v52  ;;  %v12410_v40 = vadd.f32 %v6059_v34, %v12367_v47  ;;  %v12413_v9 = vadd.f32 %v6063_v44, %v12360_v58  ;;  %v13573_v47 = vld [vmem:[#allocation70_spill] sm:$0xff]  ;;  %v13581_v44 = vld [vmem:[#allocation125_spill] sm:$0xff] }
 0x825   : > { %v3635_v25 = vadd.f32 %v3620_v46, %v12200_v12  ;;  %v3636_v56 = vadd.f32 %v3621_v17, %v12212_v16  ;;  %v3637_v49 = vadd.f32 %v3622_v27, %v12265_v15  ;;  %v3638_v33 = vadd.f32 %v3623_v10, %v12268_v6  ;;  %v13576_v12 = vld [vmem:[#allocation99_spill] sm:$0xff]  ;;  %v13577_v16 = vld [vmem:[#allocation100_spill] sm:$0xff] }
 0x826   : > { %v12419_v26 = vadd.f32 %v6060_v35, %v6055_v55  ;;  %v12421_v59 = vadd.f32 %v6061_v54, %v6056_v8  ;;  %v12423_v7 = vadd.f32 %v6062_v48, %v6057_v11  ;;  %v3640_v13 = vadd.f32 %v13573_v47, %v3634_v45  ;;  %v13578_v8 = vld [vmem:[#allocation140_spill] sm:$0xff] }
 0x827   : > { %v3648_v58 = vadd.f32 %v13574_v62, %v3635_v25  ;;  %v3656_v22 = vadd.f32 %v13575_v42, %v3636_v56  ;;  %v3664_v3 = vadd.f32 %v13576_v12, %v3637_v49  ;;  %v3672_v30 = vadd.f32 %v13577_v16, %v3638_v33  ;;  %v13580_v54 = vld [vmem:[#allocation108_spill] sm:$0xff] }
 0x828   : > { %v5869_v15 = vpop.permute.xlu1 %5868  ;;  %v3641_v39 = vrot.slane %v3640_v13, 4  ;;  %v12431_v6 = vmul.f32 %v6037_v53, %v12292_v23  ;;  %v12434_v55 = vmul.f32 %v6037_v53, %v12313_v61  ;;  %v5839_v11 = vmul.f32 %v5827_v4, %v13578_v8  ;;  %v13584_v12 = vld [vmem:[#allocation28_spill] sm:$0xff] }
 0x829   : > { %v3649_v51 = vrot.slane %v3648_v58, 4  ;;  %v3657_v57 = vrot.slane %v3656_v22, 4  ;;  %v3665_v43 = vrot.slane %v3664_v3, 4  ;;  %v3673_v24 = vrot.slane %v3672_v30, 4 }
 0x82a   : > { %v3642_v41 = vadd.f32 %v3641_v39, %v3640_v13  ;;  %v12438_v14 = vmul.f32 %v6037_v53, %v12316_v28  ;;  %v5840_v36 = vmul.f32 %v5827_v4, %v11864_v29  ;;  %v5841_v32 = vmul.f32 %v5827_v4, %v13579_v50  ;;  %v13590_v50 = vld [vmem:[#allocation145_spill] sm:$0xff] }
 0x82b   : > { %v3650_v63 = vadd.f32 %v3649_v51, %v3648_v58  ;;  %v3658_v34 = vadd.f32 %v3657_v57, %v3656_v22  ;;  %v12442_v0 = vadd.f32 %v3665_v43, %v3664_v3  ;;  %v3674_v46 = vadd.f32 %v3673_v24, %v3672_v30  ;;  %v13582_v58 = vld [vmem:[#allocation90_spill] sm:$0xff]  ;;  %v13583_v22 = vld [vmem:[#allocation93_spill] sm:$0xff]  ;;  %v13588_v24 = vld [vmem:[#allocation112_spill] sm:$0xff] }
 0x82c   : > { %v3643_v17 = vrot.slane %v3642_v41, 2  ;;  %v12445_v35 = vmul.f32 %v6037_v53, %v12322_v20  ;;  %v5842_v48 = vmul.f32 %v5827_v4, %v13580_v54  ;;  %v5843_v1 = vmul.f32 %v5827_v4, %v13581_v44  ;;  %v13587_v57 = vld [vmem:[#allocation26_spill] sm:$0xff] }
 0x82d   : > { %v5911_v27 = vpop.permute.xlu1 %5910  ;;  %v3659_v10 = vrot.slane %v3658_v34, 2  ;;  %v3675_v45 = vrot.slane %v3674_v46, 2  ;;  %v12450_v29 = vmul.f32 %v6037_v53, %v12345_v2  ;;  %v5854_v21 = vadd.f32 %v5839_v11, %v12390_v31  ;;  %v13585_v11 = vld [vmem:[#allocation117_spill] sm:$0xff] }
 0x82e   : > { %v3644_v52 = vadd.f32 %v3643_v17, %v3642_v41  ;;  %v3651_v25 = vrot.slane %v3650_v63, 2  ;;  %v5855_v56 = vadd.f32 %v5840_v36, %v12393_v18  ;;  %v5858_v49 = vadd.f32 %v5843_v1, %v5816_v5  ;;  %v13592_v17 = vld [vmem:[#allocation69_spill] sm:$0xff] }
 0x82f   : > { %v3667_v33 = vrot.slane %v12442_v0, 2  ;;  %v5856_v47 = vadd.f32 %v5841_v32, %v5814_v19  ;;  %v5881_v13 = vmul.f32 %v5869_v15, %v11920_v60  ;;  %v5882_v4 = vmul.f32 %v5869_v15, %v11928_v37 }
 0x830   : > { %v5857_v62 = vadd.f32 %v5842_v48, %v5815_v38  ;;  %v5883_v42 = vmul.f32 %v5869_v15, %v13582_v58  ;;  %v5884_v53 = vmul.f32 %v5869_v15, %v13583_v22  ;;  %v5885_v3 = vmul.f32 %v5869_v15, %v13584_v12  ;;  %v13586_v38 = vld [vmem:[#allocation92_spill] sm:$0xff]  ;;  %v13595_v58 = vld [vmem:[#allocation151_spill] sm:$0xff] }
 0x831   : > { %v3645_v31 = vrot.slane %v3644_v52, 1  ;;  %v12460_v16 = vadd.f32 %v3659_v10, %v3658_v34  ;;  %v12462_v30 = vadd.f32 %v3675_v45, %v3674_v46  ;;  %v5896_v18 = vadd.f32 %v5881_v13, %v5854_v21  ;;  %v13589_v15 = vld [vmem:[#allocation128_spill] sm:$0xff]  ;;  %v13591_v34 = vld [vmem:[#allocation146_spill] sm:$0xff] }
 0x832   : > { %v5953_v5 = vpop.permute.xlu1 %5952  ;;  %v5897_v39 = vadd.f32 %v5882_v4, %v5855_v56  ;;  %v5898_v19 = vadd.f32 %v5883_v42, %v5856_v47  ;;  %v5899_v8 = vadd.f32 %v5884_v53, %v5857_v62  ;;  %v5900_v60 = vadd.f32 %v5885_v3, %v5858_v49  ;;  %v13593_v56 = vld [vmem:[#allocation71_spill] sm:$0xff]  ;;  %v13594_v47 = vld [vmem:[#allocation136_spill] sm:$0xff] }
 0x833   : > { %v5923_v37 = vmul.f32 %v5911_v27, %v13585_v11  ;;  %v5924_v51 = vmul.f32 %v5911_v27, %v13586_v38  ;;  %v5925_v43 = vmul.f32 %v5911_v27, %v13587_v57  ;;  %v5926_v41 = vmul.f32 %v5911_v27, %v13588_v24  ;;  %v13596_v3 = vld [vmem:[#allocation152_spill] sm:$0xff]  ;;  %v13597_v38 = vld [vmem:[#allocation153_spill] sm:$0xff] }
 0x834   : > { %v5927_v36 = vmul.f32 %v5911_v27, %v13589_v15  ;;  %v5965_v32 = vmul.f32 %v5953_v5, %v13590_v50  ;;  %v5966_v46 = vmul.f32 %v5953_v5, %v13591_v34  ;;  %v5967_v54 = vmul.f32 %v5953_v5, %v13592_v17 }
 0x835   : > { %v3661_v48 = vrot.slane %v12460_v16, 1  ;;  %v5938_v44 = vadd.f32 %v5923_v37, %v5896_v18  ;;  %v5939_v1 = vadd.f32 %v5924_v51, %v5897_v39  ;;  %v5940_v10 = vadd.f32 %v5925_v43, %v5898_v19  ;;  %v13598_v19 = vld [vmem:[#allocation114_spill] sm:$0xff] }
 0x836   : > { %v5941_v45 = vadd.f32 %v5926_v41, %v5899_v8  ;;  %v5942_v21 = vadd.f32 %v5927_v36, %v5900_v60  ;;  %v5968_v49 = vmul.f32 %v5953_v5, %v13593_v56  ;;  %v5969_v13 = vmul.f32 %v5953_v5, %v13594_v47  ;;  %v13599_v60 = vld [vmem:[#allocation37_spill] sm:$0xff]  ;;  %v13604_v47 = vld [vmem:[#allocation120_spill] sm:$0xff] }
 0x837   : > { %v5995_v4 = vpop.permute.xlu1 %5994  ;;  %v5980_v62 = vadd.f32 %v5965_v32, %v5938_v44  ;;  %v5981_v27 = vadd.f32 %v5966_v46, %v5939_v1  ;;  %v3652_v22 = vadd.f32 %v3651_v25, %v3650_v63  ;;  %v5982_v53 = vadd.f32 %v5967_v54, %v5940_v10 }
 0x838   : > { %v6007_v42 = vmul.f32 %v5995_v4, %v13595_v58  ;;  %v5984_v12 = vadd.f32 %v5969_v13, %v5942_v21  ;;  %v6008_v11 = vmul.f32 %v5995_v4, %v13596_v3  ;;  %v6009_v18 = vmul.f32 %v5995_v4, %v13597_v38  ;;  %v13608_v3 = vld [vmem:[#allocation110_spill] sm:$0xff] }
 0x839   : > { %v5983_v39 = vadd.f32 %v5968_v49, %v5941_v45  ;;  %v6010_v8 = vmul.f32 %v5995_v4, %v13598_v19  ;;  %v6011_v37 = vmul.f32 %v5995_v4, %v13599_v60  ;;  %v12480_v57 = vadd.f32 %v3645_v31, %v3644_v52  ;;  %v13605_v4 = vld [vmem:[#allocation133_spill] sm:$0xff] }
 0x83a   : > { %v6022_v51 = vadd.f32 %v6007_v42, %v5980_v62  ;;  %v3677_v5 = vrot.slane %v12462_v30, 1  ;;  %v6023_v43 = vadd.f32 %v6008_v11, %v5981_v27  ;;  %v6024_v24 = vadd.f32 %v6009_v18, %v5982_v53  ;;  %v13606_v62 = vld [vmem:[#allocation127_spill] sm:$0xff]  ;;  %v13609_v18 = vld [vmem:[#allocation101_spill] sm:$0xff] }
 0x83b   : > { %v6025_v41 = vadd.f32 %v6010_v8, %v5983_v39  ;;  %v6026_v63 = vadd.f32 %v6011_v37, %v5984_v12  ;;  %v3653_v36 = vrot.slane %v3652_v22, 1  ;;  %v13607_v53 = vld [vmem:[#allocation119_spill] sm:$0xff] }
 0x83c   : > { %v6064_v25 = vadd.f32 %v12431_v6, %v6022_v51  ;;  %v4822_v15 = vpop.permute.xlu1 %4821  ;;  %v6065_v50 = vadd.f32 %v12434_v55, %v6023_v43  ;;  %v6066_v32 = vadd.f32 %v12438_v14, %v6024_v24 }
 0x83d   : > { %v4834_v34 = vmul.f32 %v4822_v15, %v12292_v23  ;;  %v4835_v46 = vmul.f32 %v4822_v15, %v12313_v61  ;;  %v6067_v52 = vadd.f32 %v12445_v35, %v6025_v41  ;;  %v6068_v31 = vadd.f32 %v12450_v29, %v6026_v63  ;;  %v13600_v61 = vld [vmem:[#allocation79_spill] sm:$0xff] }
 0x83e   : > { %v6070_v17 = vadd.f32 %v12410_v40, %v6064_v25  ;;  %v4836_v54 = vmul.f32 %v4822_v15, %v12316_v28  ;;  %v6078_v6 = vadd.f32 %v12419_v26, %v6065_v50  ;;  %v6086_v44 = vadd.f32 %v12421_v59, %v6066_v32  ;;  %v13601_v28 = vld [vmem:[#allocation103_spill] sm:$0xff]  ;;  %v13602_v26 = vld [vmem:[#allocation94_spill] sm:$0xff] }
 0x83f   : > { %v4837_v55 = vmul.f32 %v4822_v15, %v12322_v20  ;;  %v4838_v14 = vmul.f32 %v4822_v15, %v12345_v2  ;;  %v6102_v23 = vadd.f32 %v12413_v9, %v6068_v31  ;;  %v4849_v10 = vadd.f32 %v4834_v34, %v13600_v61  ;;  %v13603_v9 = vld [vmem:[#allocation107_spill] sm:$0xff] }
 0x840   : > { %v6071_v1 = vrot.slane %v6070_v17, 4  ;;  %v12500_v35 = vmul.f32 %v12480_v57, %v12480_v57  ;;  %v6094_v40 = vadd.f32 %v12423_v7, %v6067_v52  ;;  %v4850_v29 = vadd.f32 %v4835_v46, %v13601_v28 }
 0x841   : > { %v4851_v45 = vadd.f32 %v4836_v54, %v13602_v26  ;;  %v12508_v20 = vadd.f32 %v3667_v33, %v12442_v0  ;;  %v6087_v59 = vrot.slane %v6086_v44, 4  ;;  %v4852_v21 = vadd.f32 %v4837_v55, %v13603_v9 }
 0x842   : > { %v6072_v2 = vadd.f32 %v6071_v1, %v6070_v17  ;;  %v12511_v56 = vadd.f32 %v3653_v36, %v3652_v22  ;;  %v6079_v49 = vrot.slane %v6078_v6, 4  ;;  %v4853_v13 = vadd.f32 %v4838_v14, %v13604_v47 }
 0x843   : > { %v4855_v7 = vadd.f32 %v13605_v4, %v4849_v10  ;;  %v4863_v27 = vadd.f32 %v13606_v62, %v4850_v29  ;;  %v6103_v42 = vrot.slane %v6102_v23, 4  ;;  %v4871_v12 = vadd.f32 %v13607_v53, %v4851_v45 }
 0x844   : > { %v6073_v58 = vrot.slane %v6072_v2, 2  ;;  %v4879_v0 = vadd.f32 %v13608_v3, %v4852_v21  ;;  %v6095_v33 = vrot.slane %v6094_v40, 4  ;;  %v4887_v39 = vadd.f32 %v13609_v18, %v4853_v13 }
 0x845   : > { %v4856_v11 = vrot.slane %v4855_v7, 4  ;;  %v4864_v38 = vrot.slane %v4863_v27, 4  ;;  %v12519_v19 = vadd.f32 %v6087_v59, %v6086_v44  ;;  %v4872_v8 = vrot.slane %v4871_v12, 4 }
 0x846   : > { %v6074_v22 = vadd.f32 %v6073_v58, %v6072_v2  ;;  %v4880_v60 = vrot.slane %v4879_v0, 4  ;;  %v4888_v43 = vrot.slane %v4887_v39, 4  ;;  %v6080_v24 = vadd.f32 %v6079_v49, %v6078_v6 }
 0x847   : > { %v4857_v37 = vadd.f32 %v4856_v11, %v4855_v7  ;;  %v4865_v51 = vadd.f32 %v4864_v38, %v4863_v27  ;;  %v12521_v41 = vadd.f32 %v6103_v42, %v6102_v23  ;;  %v4873_v63 = vadd.f32 %v4872_v8, %v4871_v12 }
 0x848   : > { %v4881_v25 = vadd.f32 %v4880_v60, %v4879_v0  ;;  %v6075_v15 = vrot.slane %v6074_v22, 1  ;;  %v4889_v32 = vadd.f32 %v4888_v43, %v4887_v39  ;;  %v6081_v34 = vrot.slane %v6080_v24, 2 }
 0x849   : > { %v4858_v36 = vrot.slane %v4857_v37, 2  ;;  %v4866_v50 = vrot.slane %v4865_v51, 2  ;;  %v6089_v46 = vrot.slane %v12519_v19, 2  ;;  %v4874_v52 = vrot.slane %v4873_v63, 2 }
 0x84a   : > { %v4882_v31 = vrot.slane %v4881_v25, 2  ;;  %v6076_v17 = vadd.f32 %v6075_v15, %v6074_v22  ;;  %v4890_v6 = vrot.slane %v4889_v32, 2  ;;  %v6082_v55 = vadd.f32 %v6081_v34, %v6080_v24  ;;  %v734_v34 = vld [vmem:[#allocation7 + $0x1f0] sm:$0xff] }
 0x84b   : > { %v4859_v54 = vadd.f32 %v4858_v36, %v4857_v37  ;;  %v4867_v44 = vadd.f32 %v4866_v50, %v4865_v51  ;;  %v6105_v14 = vrot.slane %v12521_v41, 2  ;;  %v4875_v1 = vadd.f32 %v4874_v52, %v4873_v63  ;;  %v719_v50 = vld [vmem:[#allocation7 + $0x178] sm:$0xff]  ;;  %v718_v52 = vld [vmem:[#allocation7 + $0x170] sm:$0xff] }
 0x84c   : > { %v4883_v23 = vadd.f32 %v4882_v31, %v4881_v25  ;;  %v3669_v61 = vrot.slane %v12508_v20, 1  ;;  %v4891_v28 = vadd.f32 %v4890_v6, %v4889_v32  ;;  %v6083_v26 = vrot.slane %v6082_v55, 1 }
 0x84d   : > { %v4860_v10 = vrot.slane %v4859_v54, 1  ;;  %v4868_v29 = vrot.slane %v4867_v44, 1  ;;  %v4876_v45 = vrot.slane %v4875_v1, 1  ;;  %v6125_v2 = vmul.f32 %v12511_v56, %v12511_v56 }
 0x84e   : > { %v4884_v59 = vrot.slane %v4883_v23, 1  ;;  %v6096_v9 = vadd.f32 %v6095_v33, %v6094_v40  ;;  %v6084_v47 = vadd.f32 %v6083_v26, %v6082_v55  ;;  %v6119_v13 = vmul.f32 %v6076_v17, %v12480_v57 }
 0x84f   : > { %v4861_v21 = vadd.f32 %v4860_v10, %v4859_v54  ;;  %v4869_v49 = vadd.f32 %v4868_v29, %v4867_v44  ;;  %v6134_v4 = vmul.f32 %v6076_v17, %v6076_v17  ;;  %v3670_v7 = vadd.f32 %v3669_v61, %v12508_v20  ;;  %v733_v54 = vld [vmem:[#allocation7 + $0x1e8] sm:$0xff] }
 0x850   : > { %v4885_v62 = vadd.f32 %v4884_v59, %v4883_v23  ;;  %v6097_v27 = vrot.slane %v6096_v9, 2  ;;  %v4892_v58 = vrot.slane %v4891_v28, 1  ;;  %v4877_v3 = vadd.f32 %v4876_v45, %v4875_v1  ;;  %v717_v23 = vld [vmem:[#allocation7 + $0x168] sm:$0xff]  ;;  %v716_v45 = vld [vmem:[#allocation7 + $0x160] sm:$0xff] }
 0x851   : > { %v6109_v42 = vmul.f32 %v4861_v21, %v12480_v57  ;;  %v6110_v53 = vmul.f32 %v4869_v49, %v12511_v56  ;;  %v6115_v12 = vmul.f32 %v6084_v47, %v4869_v49  ;;  %v6120_v0 = vmul.f32 %v6084_v47, %v12511_v56 }
 0x852   : > { %v6130_v40 = vmul.f32 %v4869_v49, %v4869_v49  ;;  %v6114_v33 = vmul.f32 %v6076_v17, %v4861_v21  ;;  %v6135_v11 = vmul.f32 %v6084_v47, %v6084_v47  ;;  %v6098_v18 = vadd.f32 %v6097_v27, %v6096_v9 }
 0x853   : > { %v6141_v38 = vsel %vm6139_vm8, %v6110_v53, %v6115_v12  ;;  %v6112_v39 = vmul.f32 %v4885_v62, %v3670_v7  ;;  %v6129_v22 = vmul.f32 %v4861_v21, %v4861_v21  ;;  %v3662_v57 = vadd.f32 %v3661_v48, %v12460_v16  ;;  %v731_v21 = vld [vmem:[#allocation7 + $0x1d8] sm:$0xff] }
 0x854   : > { %v6147_v20 = vsel %vm6145_vm9, %v6141_v38, %v6120_v0  ;;  %v6140_v8 = vsel %vm6139_vm8, %v6109_v42, %v6114_v33  ;;  %v6099_v37 = vrot.slane %v6098_v18, 1  ;;  %v6090_v51 = vadd.f32 %v6089_v46, %v12519_v19 }
 0x855   : > { %v6153_v60 = vsel %vm6151_vm10, %v6147_v20, %v6125_v2  ;;  %v6146_v56 = vsel %vm6145_vm9, %v6140_v8, %v6119_v13  ;;  %v4893_v43 = vadd.f32 %v4892_v58, %v4891_v28  ;;  %v6111_v25 = vmul.f32 %v4877_v3, %v3662_v57  ;;  %v730_v58 = vld [vmem:[#allocation7 + $0x1d0] sm:$0xff] }
 0x856   : > { %v6159_v24 = vsel %vm6157_vm11, %v6153_v60, %v6130_v40  ;;  %v6152_v63 = vsel %vm6151_vm10, %v6146_v56, %v12500_v35  ;;  %v6100_v16 = vadd.f32 %v6099_v37, %v6098_v18  ;;  %v6091_v48 = vrot.slane %v6090_v51, 1  ;;  %v727_v60 = vld [vmem:[#allocation7 + $0x1b8] sm:$0xff]  ;;  %v726_v37 = vld [vmem:[#allocation7 + $0x1b0] sm:$0xff] }
 0x857   : > { %v6165_v15 = vsel %vm6163_vm12, %v6159_v24, %v6135_v11  ;;  %v6158_v36 = vsel %vm6157_vm11, %v6152_v63, %v6129_v22  ;;  %v3678_v19 = vadd.f32 %v3677_v5, %v12462_v30  ;;  %v6106_v46 = vadd.f32 %v6105_v14, %v12521_v41  ;;  %v732_v5 = vld [vmem:[#allocation7 + $0x1e0] sm:$0xff]  ;;  %v729_v11 = vld [vmem:[#allocation7 + $0x1c8] sm:$0xff]  ;;  %v711_v56 = vld [vmem:[#allocation7 + $0x138] sm:$0xff] }
 0x858   : > { %6233 = vmatprep.mubr.f32.mxu0 %v6165_v15  ;;  %v6164_v32 = vsel %vm6163_vm12, %v6158_v36, %v6134_v4  ;;  %v6117_v35 = vmul.f32 %v6100_v16, %v4885_v62  ;;  %v6092_v31 = vadd.f32 %v6091_v48, %v6090_v51  ;;  %v6122_v17 = vmul.f32 %v6100_v16, %v3670_v7  ;;  %v728_v22 = vld [vmem:[#allocation7 + $0x1c0] sm:$0xff]  ;;  %v710_v51 = vld [vmem:[#allocation7 + $0x130] sm:$0xff]  ;;  %v709_v24 = vld [vmem:[#allocation7 + $0x128] sm:$0xff] }
 0x859   : > { %6234 = vmatmul.mubr.f32.vlgmr.msra.gmra.mxu0 %v6164_v32  ;;  %v6107_v44 = vrot.slane %v6106_v46, 1  ;;  %v6113_v6 = vmul.f32 %v4893_v43, %v3678_v19  ;;  %v6127_v55 = vmul.f32 %v3670_v7, %v3670_v7  ;;  %v6132_v28 = vmul.f32 %v4885_v62, %v4885_v62  ;;  %v715_v7 = vld [vmem:[#allocation7 + $0x158] sm:$0xff]  ;;  %v724_v63 = vld [vmem:[#allocation7 + $0x1a0] sm:$0xff]  ;;  %v721_v48 = vld [vmem:[#allocation7 + $0x188] sm:$0xff] }
 0x85a   : > { %6861 = vmatpush3.msra.mxu0 %v719_v50  ;;  %v6143_v1 = vsel %vm6139_vm8, %v6112_v39, %v6117_v35  ;;  %v6116_v61 = vmul.f32 %v6092_v31, %v4877_v3  ;;  %v6121_v10 = vmul.f32 %v6092_v31, %v3662_v57  ;;  %v6126_v41 = vmul.f32 %v3662_v57, %v3662_v57  ;;  %v713_v39 = vld [vmem:[#allocation7 + $0x148] sm:$0xff]  ;;  %v712_v57 = vld [vmem:[#allocation7 + $0x140] sm:$0xff]  ;;  %v723_v15 = vld [vmem:[#allocation7 + $0x198] sm:$0xff] }
 0x85b   : > { %6862 = vmatprep.subr.mxu0 %v734_v34  ;;  %v6149_v30 = vsel %vm6145_vm9, %v6143_v1, %v6122_v17  ;;  %v6108_v14 = vadd.f32 %v6107_v44, %v6106_v46  ;;  %v6137_v29 = vmul.f32 %v6100_v16, %v6100_v16  ;;  %v6131_v2 = vmul.f32 %v4877_v3, %v4877_v3  ;;  %v714_v3 = vld [vmem:[#allocation7 + $0x150] sm:$0xff]  ;;  %v707_v36 = vld [vmem:[#allocation7 + $0x118] sm:$0xff]  ;;  %v705_v32 = vld [vmem:[#allocation7 + $0x108] sm:$0xff] }
 0x85c   : > { %6863 = vmatpush3.msra.mxu0 %v718_v52  ;;  %v6155_v26 = vsel %vm6151_vm10, %v6149_v30, %v6127_v55  ;;  %v6142_v59 = vsel %vm6139_vm8, %v6111_v25, %v6116_v61  ;;  %v6136_v62 = vmul.f32 %v6092_v31, %v6092_v31  ;;  %v6128_v53 = vmul.f32 %v3678_v19, %v3678_v19  ;;  %v708_v25 = vld [vmem:[#allocation7 + $0x120] sm:$0xff]  ;;  %v722_v50 = vld [vmem:[#allocation7 + $0x190] sm:$0xff]  ;;  %v751_v46 = vld [vmem:[#allocation7 + $0x278] sm:$0xff] }
 0x85d   : > { %6864 = vmatprep.subr.mxu0 %v733_v54  ;;  %v6161_v9 = vsel %vm6157_vm11, %v6155_v26, %v6132_v28  ;;  %v6148_v49 = vsel %vm6145_vm9, %v6142_v59, %v6121_v10  ;;  %v6118_v47 = vmul.f32 %v6108_v14, %v4893_v43  ;;  %v6123_v13 = vmul.f32 %v6108_v14, %v3678_v19  ;;  %v706_v16 = vld [vmem:[#allocation7 + $0x110] sm:$0xff]  ;;  %v720_v34 = vld [vmem:[#allocation7 + $0x180] sm:$0xff]  ;;  %v749_v31 = vld [vmem:[#allocation7 + $0x268] sm:$0xff] }
 0x85e   : > { %6865 = vmatpush3.msra.mxu0 %v717_v23  ;;  %v6167_v4 = vsel %vm6163_vm12, %v6161_v9, %v6137_v29  ;;  %v6154_v27 = vsel %vm6151_vm10, %v6148_v49, %v6126_v41  ;;  %v6133_v40 = vmul.f32 %v4893_v43, %v4893_v43  ;;  %v6138_v38 = vmul.f32 %v6108_v14, %v6108_v14  ;;  %v725_v43 = vld [vmem:[#allocation7 + $0x1a8] sm:$0xff]  ;;  %v704_v19 = vld [vmem:[#allocation7 + $0x100] sm:$0xff]  ;;  %v750_v52 = vld [vmem:[#allocation7 + $0x270] sm:$0xff] }
 0x85f   : > { %6866 = vmatprep.subr.mxu0 %v732_v5  ;;  %6303 = vmatprep.mubr.f32.mxu0 %v6167_v4  ;;  %v6160_v42 = vsel %vm6157_vm11, %v6154_v27, %v6131_v2  ;;  %v6144_v12 = vsel %vm6139_vm8, %v6113_v6, %v6118_v47  ;;  %v13610_v35 = vmov 0.0   ;;  %v748_v17 = vld [vmem:[#allocation7 + $0x260] sm:$0xff]  ;;  %v747_v54 = vld [vmem:[#allocation7 + $0x258] sm:$0xff]  ;;  %v746_v44 = vld [vmem:[#allocation7 + $0x250] sm:$0xff] }
 0x860   : > { %6867 = vmatpush3.msra.mxu0 %v716_v45  ;;  %v6166_v0 = vsel %vm6163_vm12, %v6160_v42, %v6136_v62  ;;  %v6150_v33 = vsel %vm6145_vm9, %v6144_v12, %v6123_v13  ;;  %v745_v6 = vld [vmem:[#allocation7 + $0x248] sm:$0xff]  ;;  %v744_v55 = vld [vmem:[#allocation7 + $0x240] sm:$0xff]  ;;  %v743_v1 = vld [vmem:[#allocation7 + $0x238] sm:$0xff] }
 0x861   : > { %6868 = vmatprep.subr.mxu0 %v731_v21  ;;  %v6156_v18 = vsel %vm6151_vm10, %v6150_v33, %v6128_v53  ;;  %v742_v23 = vld [vmem:[#allocation7 + $0x230] sm:$0xff]  ;;  %v741_v61 = vld [vmem:[#allocation7 + $0x228] sm:$0xff]  ;;  %v740_v10 = vld [vmem:[#allocation7 + $0x220] sm:$0xff] }
 0x862   : > { %6869 = vmatpush3.msra.mxu0 %v715_v7  ;;  %v6162_v20 = vsel %vm6157_vm11, %v6156_v18, %v6133_v40  ;;  %v739_v28 = vld [vmem:[#allocation7 + $0x218] sm:$0xff]  ;;  %v738_v30 = vld [vmem:[#allocation7 + $0x210] sm:$0xff]  ;;  %v737_v5 = vld [vmem:[#allocation7 + $0x208] sm:$0xff] }
 0x863   : > { %6870 = vmatprep.subr.mxu0 %v730_v58  ;;  %v12567_v8 = vsel %vm6163_vm12, %v6162_v20, %v6138_v38  ;;  %v736_v41 = vld [vmem:[#allocation7 + $0x200] sm:$0xff] }
 0x864   : > { %6871 = vmatpush3.msra.mxu0 %v714_v3 }
 0x865   : > { %6872 = vmatprep.subr.mxu0 %v729_v11 }
 0x866   : > { %6873 = vmatpush3.msra.mxu0 %v713_v39 }
 0x867   : > { %6874 = vmatprep.subr.mxu0 %v728_v22 }
 0x868   : > { %6875 = vmatpush3.msra.mxu0 %v712_v57 }
 0x869   : > { %6876 = vmatprep.subr.mxu0 %v727_v60 }
 0x86a   : > { %6877 = vmatpush3.msra.mxu0 %v711_v56 }
 0x86b   : > { %6878 = vmatprep.subr.mxu0 %v726_v37 }
 0x86c   : > { %6879 = vmatpush3.msra.mxu0 %v710_v51 }
 0x86d   : > { %6880 = vmatprep.subr.mxu0 %v725_v43 }
 0x86e   : > { %6881 = vmatpush3.msra.mxu0 %v709_v24 }
 0x86f   : > { %6882 = vmatprep.subr.mxu0 %v724_v63 }
 0x870   : > { %6883 = vmatpush3.msra.mxu0 %v708_v25 }
 0x871   : > { %6884 = vmatprep.subr.mxu0 %v723_v15 }
 0x872   : > { %6885 = vmatpush3.msra.mxu0 %v707_v36 }
 0x873   : > { %6886 = vmatprep.subr.mxu0 %v722_v50 }
 0x874   : > { %6887 = vmatpush3.msra.mxu0 %v706_v16 }
 0x875   : > { %6888 = vmatprep.subr.mxu0 %v721_v48 }
 0x876   : > { %6889 = vmatpush3.msra.mxu0 %v705_v32 }
 0x877   : > { %6890 = vmatprep.subr.mxu0 %v720_v34 }
 0x878   : > { %6891 = vmatpush3.msra.mxu0 %v704_v19 }
 0x879   : > { %6304 = vmatmul.mubr.f32.vlgmr.msra.gmra.mxu0 %v6166_v0  ;;  %6912 = vmatprep.subr.mxu0 %v13610_v35 }
 0x87a   : > { %6913 = vmatpush3.msra.mxu0 %v751_v46  ;;  %6944 = vmatprep.mubr.msk.f32.mxu0 %vm7573_vm13, %v13610_v35 }
 0x87b   : > { %6914 = vmatprep.subr.mxu0 %v13610_v35 }
 0x87c   : > { %6915 = vmatpush3.msra.mxu0 %v750_v52 }
 0x87d   : > { %6916 = vmatprep.subr.mxu0 %v13610_v35 }
 0x87e   : > { %6917 = vmatpush3.msra.mxu0 %v749_v31 }
 0x87f   : > { %6918 = vmatprep.subr.mxu0 %v13610_v35 }
 0x880   : > { %6919 = vmatpush3.msra.mxu0 %v748_v17 }
 0x881   : > { %6920 = vmatprep.subr.mxu0 %v13610_v35 }
 0x882   : > { %6921 = vmatpush3.msra.mxu0 %v747_v54 }
 0x883   : > { %6922 = vmatprep.subr.mxu0 %v13610_v35 }
 0x884   : > { %6923 = vmatpush3.msra.mxu0 %v746_v44 }
 0x885   : > { %6924 = vmatprep.subr.mxu0 %v13610_v35 }
 0x886   : > { %6925 = vmatpush3.msra.mxu0 %v745_v6 }
 0x887   : > { %6926 = vmatprep.subr.mxu0 %v13610_v35 }
 0x888   : > { %6927 = vmatpush3.msra.mxu0 %v744_v55 }
 0x889   : > { %6928 = vmatprep.subr.mxu0 %v13610_v35 }
 0x88a   : > { %6929 = vmatpush3.msra.mxu0 %v743_v1 }
 0x88b   : > { %6930 = vmatprep.subr.mxu0 %v13610_v35 }
 0x88c   : > { %6931 = vmatpush3.msra.mxu0 %v742_v23 }
 0x88d   : > { %6932 = vmatprep.subr.mxu0 %v13610_v35 }
 0x88e   : > { %6933 = vmatpush3.msra.mxu0 %v741_v61 }
 0x88f   : > { %6934 = vmatprep.subr.mxu0 %v13610_v35 }
 0x890   : > { %6935 = vmatpush3.msra.mxu0 %v740_v10 }
 0x891   : > { %6936 = vmatprep.subr.mxu0 %v13610_v35 }
 0x892   : > { %6937 = vmatpush3.msra.mxu0 %v739_v28 }
 0x893   : > { %6938 = vmatprep.subr.mxu0 %v13610_v35 }
 0x894   : > { %6939 = vmatpush3.msra.mxu0 %v738_v30 }
 0x895   : > { %6940 = vmatprep.subr.mxu0 %v13610_v35 }
 0x896   : > { %6941 = vmatpush3.msra.mxu0 %v737_v5 }
 0x897   : > { %6942 = vmatprep.subr.mxu0 %v13610_v35 }
 0x898   : > { %6943 = vmatpush3.msra.mxu0 %v736_v41 }
 0x899   : > { %6945 = vmatmul.mubr.f32.vlgmr.msra.gmra.mxu0 %v12567_v8 }
 0x919   : > { %v6857_v14 = vpop.f32.mrf.mxu0 }
 0x91b   : > { %v6858_v29 = vpop.f32.mrf.mxu0 }
 0x91c   : > { %v6859_v59 = vadd.f32 %v6858_v29, %v6857_v14 }
 0x939   : > { %v6892_v26 = vpop.f32.mrf.mxu0 }
 0x93b   : > { %v6893_v45 = vpop.f32.mrf.mxu0 }
 0x93c   : > { %v6894_v2 = vadd.f32 %v6893_v45, %v6892_v26 }
 0x93e   : > { %v6306_v9 = vadd.f32 %v6894_v2, %v6859_v59 }
 0x959   : > { %v6375_v21 = vpop.f32.mrf.mxu0 }
 0x95a   : > { %v6376_v49 = vadd.f32 %v6375_v21, %v6306_v9 }
 0x95b   : > { %v6946_v47 = vpop.f32.mrf.mxu0 }
 0x95c   : > { %v6379_v13 = vmax.f32 %v6376_v49, 1e-16 }
 0x95e   : > { %v6381_v4 = vrot.slane %v6379_v13, 1  ;;  %v6393_v7 = vrot.slane %v6379_v13, 2 }
 0x960   : > { %v6383_v62 = vmul.f32 %v6381_v4, %v6379_v13  ;;  %v6395_v27 = vmul.f32 %v6393_v7, %v6379_v13 }
 0x962   : > { %7212 = vrsqrt.f32 %v6383_v62 }
 0x963   : > { %7214 = vrsqrt.f32 %v6395_v27 }
 0x96f   : > { %v7213_v58 = vpop.eup %7212 }
 0x970   : > { %v7215_v42 = vpop.eup %7214  ;;  %v6386_v53 = vrot.slane %v7213_v58, 3 }
 0x971   : > { %v6398_v12 = vrot.slane %v7215_v42, 1 }
 0x972   : > { %v6388_v3 = vmul.f32 %v6386_v53, %v6376_v49 }
 0x973   : > { %v6400_v0 = vmul.f32 %v6398_v12, %v6376_v49 }
 0x974   : > { %6390 = vst.msk [vmem:[%s501_s13] sm:$0x1] %vm6389_vm14, %v6388_v3 }
 0x975   : > { %6392 = vst.msk [vmem:[%s501_s13] sm:$0x2] %vm6391_vm15, %v6388_v3 }
 0x976   : > { %6402 = vst.msk [vmem:[%s501_s13] sm:$0x4] %vm6401_vm0, %v6400_v0 }
 0x977 PF: > { %p17_p5 = scmp.ge.s32.totalorder %s7636_s29, 4   ;;  %s13611_s24 = smov %s7527_s25 }
 0x978   : > { %s13612_s25 = smov %s7531_s26  ;;  %s13613_s26 = smov %s7646_s9 }
 0x979   : > { %s13614_s27 = smov %s7636_s29  ;;  %19 = sbr.rel (!%p17_p5) target bundleno = 4 (0x4), region = 140 }
 0x97e   :  { %6422 = vsyncpa [#allocation3], 1 }
 0x97f   :  { %6424 = vsyncpa [#allocation3 + $0x1], 1 }
 0x980   :  { %6425 = vsyncpa [#allocation5], 1 }
 0x981   :  { %6426 = vsyncpa [#allocation8], 1 }

</bundles_post_ra>
